<compile_context>
chip_gen: v7x
topology: tpu7x:2x2x1
jax: 0.10.0
libtpu: 0.0.40
codegen_flags: <defaults>
</compile_context>

<pallas_src>
import jax
import jax.numpy as jnp
from jax import lax
from jax.experimental import pallas as pl
from jax.experimental.pallas import tpu as pltpu

TB = 8  # batch rows processed per grid step


# ----------------------------------------------------------------------------
# Fused Pallas kernel
# ----------------------------------------------------------------------------
def _net_kernel(x_ref, w1_ref, b1_ref, w2_ref, b2_ref,
                fc1_ref, fb1_ref, fc2_ref, fb2_ref, fc3_ref, fb3_ref,
                o_ref, hd1, p1, hd2, p2, flat):
    bf16, f32 = jnp.bfloat16, jnp.float32
    xv = x_ref[...]                                         # (TB, 32, 96) f32

    # ---- conv1 + bias + ReLU: 5 banded MXU matmuls over (W,C) lanes -------
    acc = None
    for di in range(5):
        lhs = xv[:, di:di + 28, :].astype(bf16)             # (TB, 28, 96)
        rhs = jnp.broadcast_to(w1_ref[di], (lhs.shape[0], 168, 96))
        t = jnp.einsum("bik,bok->bio", lhs, rhs,
                       preferred_element_type=f32)          # (TB, 28, 168)
        acc = t if acc is None else acc + t
    y1 = jnp.maximum(acc + b1_ref[...], 0.0)                # lane = 6*w + o

    # ---- maxpool 2x2 #1: (TB,28,168) -> (TB,14,84) -------------------------
    m1 = jnp.maximum(y1[:, 0:27, :], y1[:, 1:28, :])        # row pair-max
    for i in range(14):                                     # keep even rows
        hd1[:, i:i + 1, :] = m1[:, 2 * i:2 * i + 1, :]
    hv1 = hd1[...]                                          # (TB, 14, 168)
    for j in range(14):                                     # lane pair-max
        p1[:, :, 6 * j:6 * j + 6] = jnp.maximum(
            hv1[:, :, 12 * j:12 * j + 6], hv1[:, :, 12 * j + 6:12 * j + 12])

    # ---- conv2 + bias + ReLU ----------------------------------------------
    pv1 = p1[...]                                           # (TB, 14, 84)
    acc = None
    for di in range(5):
        lhs = pv1[:, di:di + 10, :].astype(bf16)            # (TB, 10, 84)
        rhs = jnp.broadcast_to(w2_ref[di], (lhs.shape[0], 160, 84))
        t = jnp.einsum("bik,bok->bio", lhs, rhs,
                       preferred_element_type=f32)          # (TB, 10, 160)
        acc = t if acc is None else acc + t
    y2 = jnp.maximum(acc + b2_ref[...], 0.0)                # lane = 16*w + o

    # ---- maxpool 2x2 #2: (TB,10,160) -> (TB,5,80) ---------------------------
    m2 = jnp.maximum(y2[:, 0:9, :], y2[:, 1:10, :])
    for i in range(5):
        hd2[:, i:i + 1, :] = m2[:, 2 * i:2 * i + 1, :]
    hv2 = hd2[...]                                          # (TB, 5, 160)
    for j in range(5):
        p2[:, :, 16 * j:16 * j + 16] = jnp.maximum(
            hv2[:, :, 32 * j:32 * j + 16], hv2[:, :, 32 * j + 16:32 * j + 32])

    # ---- flatten (NHWC order; fc1 rows are pre-permuted to match) -----------
    pv2 = p2[...]                                           # (TB, 5, 80)
    for h in range(5):
        flat[:, 80 * h:80 * h + 80] = pv2[:, h, :]

    # ---- FC head: bf16 MXU matmuls, f32 accumulate, lane-dense N=128 --------
    fv = flat[...].astype(bf16)                             # (TB, 400)
    h1 = jnp.maximum(
        jnp.dot(fv, fc1_ref[...], preferred_element_type=f32) + fb1_ref[...],
        0.0)
    h2 = jnp.maximum(
        jnp.dot(h1.astype(bf16), fc2_ref[...], preferred_element_type=f32)
        + fb2_ref[...], 0.0)
    o_ref[...] = (jnp.dot(h2.astype(bf16), fc3_ref[...],
                          preferred_element_type=f32) + fb3_ref[...])


# ----------------------------------------------------------------------------
# Constant weight preprocessing (outside the kernel, tiny)
# ----------------------------------------------------------------------------
def _conv_band_weights(w_oihw, out_w):
    """Block-banded conv weights over the flattened (W, C) lane axis.

    Returns (KH, N, K) with N = out_w * O, K = (out_w + KW - 1) * C so that
    out[i, O*j + o] += sum_k in_[i + di, k] * band[di, O*j + o, k].
    """
    O, C, KH, KW = w_oihw.shape
    in_w = out_w + KW - 1
    K, N = in_w * C, out_w * O
    DI, J, DJ, CC, OO = jnp.meshgrid(
        jnp.arange(KH), jnp.arange(out_w), jnp.arange(KW),
        jnp.arange(C), jnp.arange(O), indexing="ij")
    rows = (J + DJ) * C + CC            # input lane  = C * w_in + c
    cols = J * O + OO                   # output lane = O * j + o
    vals = w_oihw[OO, CC, DI, DJ]
    band = jnp.zeros((KH, K, N), jnp.float32).at[DI, rows, cols].set(vals)
    return jnp.swapaxes(band, 1, 2)     # (KH, N, K)


# ----------------------------------------------------------------------------
# Forward pass (semantics of Net.forward)
# ----------------------------------------------------------------------------
@jax.jit
def net_forward(params, x_nchw):
    B = x_nchw.shape[0]
    f32, bf16 = jnp.float32, jnp.bfloat16

    # conv weights -> banded form, biases tiled to the output lane layout
    w1b = _conv_band_weights(params["conv1_w"], 28).astype(bf16)   # (5,168,96)
    b1t = jnp.tile(params["conv1_b"], 28).reshape(1, 1, 168).astype(f32)
    w2b = _conv_band_weights(params["conv2_w"], 10).astype(bf16)   # (5,160,84)
    b2t = jnp.tile(params["conv2_b"], 10).reshape(1, 1, 160).astype(f32)

    # fold the PyTorch NCHW flatten into a row permutation of fc1, pad N->128
    hh, ww, cc = jnp.meshgrid(jnp.arange(5), jnp.arange(5), jnp.arange(16),
                              indexing="ij")
    order = (cc * 25 + hh * 5 + ww).reshape(400)
    fc1p = params["fc1_w"][order, :]                                # (400,120)
    fc1w = jnp.zeros((400, 128), f32).at[:, :120].set(fc1p).astype(bf16)
    fb1 = jnp.zeros((1, 128), f32).at[0, :120].set(params["fc1_b"])
    fc2w = jnp.zeros((128, 128), f32).at[:120, :84].set(params["fc2_w"]).astype(bf16)
    fb2 = jnp.zeros((1, 128), f32).at[0, :84].set(params["fc2_b"])
    fc3w = jnp.zeros((128, 128), f32).at[:84, :10].set(params["fc3_w"]).astype(bf16)
    fb3 = jnp.zeros((1, 128), f32).at[0, :10].set(params["fc3_b"])

    # input layout: NCHW -> NHWC -> (B, H=32, W*C=96); pad batch to TB multiple
    x = jnp.transpose(x_nchw, (0, 2, 3, 1)).astype(f32).reshape(B, 32, 96)
    b_pad = ((B + TB - 1) // TB) * TB
    if b_pad != B:
        x = jnp.pad(x, ((0, b_pad - B), (0, 0), (0, 0)))

    full3 = lambda i: (0, 0, 0)
    full2 = lambda i: (0, 0)
    out = pl.pallas_call(
        _net_kernel,
        out_shape=jax.ShapeDtypeStruct((b_pad, 128), f32),
        grid=(b_pad // TB,),
        in_specs=[
            pl.BlockSpec((TB, 32, 96), lambda i: (i, 0, 0)),
            pl.BlockSpec((5, 168, 96), full3),
            pl.BlockSpec((1, 1, 168), full3),
            pl.BlockSpec((5, 160, 84), full3),
            pl.BlockSpec((1, 1, 160), full3),
            pl.BlockSpec((400, 128), full2),
            pl.BlockSpec((1, 128), full2),
            pl.BlockSpec((128, 128), full2),
            pl.BlockSpec((1, 128), full2),
            pl.BlockSpec((128, 128), full2),
            pl.BlockSpec((1, 128), full2),
        ],
        out_specs=pl.BlockSpec((TB, 128), lambda i: (i, 0)),
        scratch_shapes=[
            pltpu.VMEM((TB, 14, 168), f32),   # conv1 H-downsampled
            pltpu.VMEM((TB, 14, 84), f32),    # pooled conv1 (conv2 input)
            pltpu.VMEM((TB, 5, 160), f32),    # conv2 H-downsampled
            pltpu.VMEM((TB, 5, 80), f32),     # pooled conv2
            pltpu.VMEM((TB, 400), f32),       # flattened FC input
        ],
        compiler_params=pltpu.CompilerParams(
            dimension_semantics=("parallel",)),
    )(x, w1b, b1t, w2b, b2t, fc1w, fb1, fc2w, fb2, fc3w, fb3)
    return out[:B, :10]


# ----------------------------------------------------------------------------
# Pure-JAX reference (for an in-script numerical check)
# ----------------------------------------------------------------------------
@jax.jit
def net_forward_reference(params, x_nchw):
    x = jnp.transpose(x_nchw, (0, 2, 3, 1))

    def conv(h, w, b):
        wh = jnp.transpose(w, (2, 3, 1, 0))     # (KH,KW,Ci,O) = HWIO
        y = lax.conv_general_dilated(h, wh, (1, 1), "VALID",
                                     dimension_numbers=("NHWC", "HWIO", "NHWC"))
        return jax.nn.relu(y + b)

    def pool(h):
        return lax.reduce_window(h, -jnp.inf, lax.max,
                                 (1, 2, 2, 1), (1, 2, 2, 1), "VALID")

    y = pool(conv(x, params["conv1_w"], params["conv1_b"]))
    y = pool(conv(y, params["conv2_w"], params["conv2_b"]))
    B = x.shape[0]
    y = jnp.transpose(y, (0, 3, 1, 2)).reshape(B, 400)   # PyTorch NCHW flatten
    y = jax.nn.relu(y @ params["fc1_w"] + params["fc1_b"])
    y = jax.nn.relu(y @ params["fc2_w"] + params["fc2_b"])
    return y @ params["fc3_w"] + params["fc3_b"]


# ----------------------------------------------------------------------------
# Parameter init (deterministic, PyTorch-default-like uniform(+-1/sqrt(fan_in)))
# ----------------------------------------------------------------------------
def init_params(key):
    def uni(k, shape, fan_in):
        bound = 1.0 / jnp.sqrt(jnp.float32(fan_in))
        return jax.random.uniform(k, shape, jnp.float32, -bound, bound)

    keys = jax.random.split(key, 10)
    return {
        "conv1_w": uni(keys[0], (6, 3, 5, 5), 3 * 5 * 5),
        "conv1_b": uni(keys[1], (6,), 3 * 5 * 5),
        "conv2_w": uni(keys[2], (16, 6, 5, 5), 6 * 5 * 5),
        "conv2_b": uni(keys[3], (16,), 6 * 5 * 5),
        "fc1_w": uni(keys[4], (400, 120), 400),
        "fc1_b": uni(keys[5], (120,), 400),
        "fc2_w": uni(keys[6], (120, 84), 120),
        "fc2_b": uni(keys[7], (84,), 120),
        "fc3_w": uni(keys[8], (84, 10), 84),
        "fc3_b": uni(keys[9], (10,), 84),
    }


if __name__ == "__main__":
    key = jax.random.PRNGKey(0)
    pkey, xkey = jax.random.split(key)
    params = init_params(pkey)
    # CIFAR-like input: fc1 dim (16*5*5) implies 32x32 spatial input.
    x = jax.random.normal(xkey, (2, 3, 32, 32), dtype=jnp.float32)

    out = jax.block_until_ready(net_forward(params, x))
    assert out.shape == (2, 10), out.shape
    assert bool(jnp.all(jnp.isfinite(out)))

    ref = jax.block_until_ready(net_forward_reference(params, x))
    max_err = float(jnp.max(jnp.abs(out - ref)))
    assert jnp.allclose(out, ref, atol=2e-2, rtol=2e-2), max_err

    print("KERNEL_OK")
</pallas_src>

<mosaic_0001>
module attributes {stable_mosaic.version = 11 : i64} {
  func.func @_net_kernel(%arg0: i32, %arg1: memref<8x32x96xf32, #tpu.memory_space<vmem>>, %arg2: memref<5x168x96xbf16, #tpu.memory_space<vmem>>, %arg3: memref<1x1x168xf32, #tpu.memory_space<vmem>>, %arg4: memref<5x160x84xbf16, #tpu.memory_space<vmem>>, %arg5: memref<1x1x160xf32, #tpu.memory_space<vmem>>, %arg6: memref<400x128xbf16, #tpu.memory_space<vmem>>, %arg7: memref<1x128xf32, #tpu.memory_space<vmem>>, %arg8: memref<128x128xbf16, #tpu.memory_space<vmem>>, %arg9: memref<1x128xf32, #tpu.memory_space<vmem>>, %arg10: memref<128x128xbf16, #tpu.memory_space<vmem>>, %arg11: memref<1x128xf32, #tpu.memory_space<vmem>>, %arg12: memref<8x128xf32, #tpu.memory_space<vmem>>, %arg13: memref<8x14x168xf32, #tpu.memory_space<vmem>>, %arg14: memref<8x14x84xf32, #tpu.memory_space<vmem>>, %arg15: memref<8x5x160xf32, #tpu.memory_space<vmem>>, %arg16: memref<8x5x80xf32, #tpu.memory_space<vmem>>, %arg17: memref<8x400xf32, #tpu.memory_space<vmem>>) attributes {dimension_semantics = [#tpu.dimension_semantics<parallel>], iteration_bounds = array<i64: 1>, scalar_prefetch = 0 : i64, scratch_operands = 5 : i64, tpu.core_type = #tpu.core_type<tc>, window_params = [{transform_indices = @transform_0, window_bounds = array<i64: 8, 32, 96>}, {pipeline_mode = #tpu.pipeline_mode<synchronous>, transform_indices = @transform_1, window_bounds = array<i64: 5, 168, 96>}, {pipeline_mode = #tpu.pipeline_mode<synchronous>, transform_indices = @transform_2, window_bounds = array<i64: 1, 1, 168>}, {pipeline_mode = #tpu.pipeline_mode<synchronous>, transform_indices = @transform_3, window_bounds = array<i64: 5, 160, 84>}, {pipeline_mode = #tpu.pipeline_mode<synchronous>, transform_indices = @transform_4, window_bounds = array<i64: 1, 1, 160>}, {pipeline_mode = #tpu.pipeline_mode<synchronous>, transform_indices = @transform_5, window_bounds = array<i64: 400, 128>}, {pipeline_mode = #tpu.pipeline_mode<synchronous>, transform_indices = @transform_6, window_bounds = array<i64: 1, 128>}, {pipeline_mode = #tpu.pipeline_mode<synchronous>, transform_indices = @transform_7, window_bounds = array<i64: 128, 128>}, {pipeline_mode = #tpu.pipeline_mode<synchronous>, transform_indices = @transform_8, window_bounds = array<i64: 1, 128>}, {pipeline_mode = #tpu.pipeline_mode<synchronous>, transform_indices = @transform_9, window_bounds = array<i64: 128, 128>}, {pipeline_mode = #tpu.pipeline_mode<synchronous>, transform_indices = @transform_10, window_bounds = array<i64: 1, 128>}, {transform_indices = @transform_11, window_bounds = array<i64: 8, 128>}]} {
    %c0 = arith.constant 0 : index
    %c0_0 = arith.constant 0 : index
    %c0_1 = arith.constant 0 : index
    %0 = vector.load %arg1[%c0, %c0_0, %c0_1] : memref<8x32x96xf32, #tpu.memory_space<vmem>>, vector<8x32x96xf32>
    %1 = vector.extract_strided_slice %0 {offsets = [0, 0, 0], sizes = [8, 28, 96], strides = [1, 1, 1]} : vector<8x32x96xf32> to vector<8x28x96xf32>
    %2 = arith.truncf %1 : vector<8x28x96xf32> to vector<8x28x96xbf16>
    %c0_2 = arith.constant 0 : index
    %c0_3 = arith.constant 0 : index
    %c0_4 = arith.constant 0 : index
    %3 = vector.load %arg2[%c0_2, %c0_3, %c0_4] : memref<5x168x96xbf16, #tpu.memory_space<vmem>>, vector<1x168x96xbf16>
    %4 = vector.shape_cast %3 : vector<1x168x96xbf16> to vector<168x96xbf16>
    %5 = vector.shape_cast %4 : vector<168x96xbf16> to vector<1x168x96xbf16>
    %6 = vector.broadcast %5 : vector<1x168x96xbf16> to vector<8x168x96xbf16>
    "tpu.trace_start"() <{level = 10 : i32, message = "bik,bok->bio"}> : () -> ()
    %cst = arith.constant dense<0.000000e+00> : vector<8x28x168xf32>
    %7 = tpu.matmul %2, %6, %cst {dimension_numbers = #tpu.dot_dimension_numbers<[2], [2], [1], [1], [0, 0, 0, 1, 1, 1], [0], [0]>} : vector<8x28x96xbf16>, vector<8x168x96xbf16>, vector<8x28x168xf32> -> vector<8x28x168xf32>
    "tpu.trace_stop"() : () -> ()
    %8 = vector.extract_strided_slice %0 {offsets = [0, 1, 0], sizes = [8, 28, 96], strides = [1, 1, 1]} : vector<8x32x96xf32> to vector<8x28x96xf32>
    %9 = arith.truncf %8 : vector<8x28x96xf32> to vector<8x28x96xbf16>
    %c1 = arith.constant 1 : index
    %c0_5 = arith.constant 0 : index
    %c0_6 = arith.constant 0 : index
    %10 = vector.load %arg2[%c1, %c0_5, %c0_6] : memref<5x168x96xbf16, #tpu.memory_space<vmem>>, vector<1x168x96xbf16>
    %11 = vector.shape_cast %10 : vector<1x168x96xbf16> to vector<168x96xbf16>
    %12 = vector.shape_cast %11 : vector<168x96xbf16> to vector<1x168x96xbf16>
    %13 = vector.broadcast %12 : vector<1x168x96xbf16> to vector<8x168x96xbf16>
    "tpu.trace_start"() <{level = 10 : i32, message = "bik,bok->bio"}> : () -> ()
    %cst_7 = arith.constant dense<0.000000e+00> : vector<8x28x168xf32>
    %14 = tpu.matmul %9, %13, %cst_7 {dimension_numbers = #tpu.dot_dimension_numbers<[2], [2], [1], [1], [0, 0, 0, 1, 1, 1], [0], [0]>} : vector<8x28x96xbf16>, vector<8x168x96xbf16>, vector<8x28x168xf32> -> vector<8x28x168xf32>
    "tpu.trace_stop"() : () -> ()
    %15 = arith.addf %7, %14 : vector<8x28x168xf32>
    %16 = vector.extract_strided_slice %0 {offsets = [0, 2, 0], sizes = [8, 28, 96], strides = [1, 1, 1]} : vector<8x32x96xf32> to vector<8x28x96xf32>
    %17 = arith.truncf %16 : vector<8x28x96xf32> to vector<8x28x96xbf16>
    %c2 = arith.constant 2 : index
    %c0_8 = arith.constant 0 : index
    %c0_9 = arith.constant 0 : index
    %18 = vector.load %arg2[%c2, %c0_8, %c0_9] : memref<5x168x96xbf16, #tpu.memory_space<vmem>>, vector<1x168x96xbf16>
    %19 = vector.shape_cast %18 : vector<1x168x96xbf16> to vector<168x96xbf16>
    %20 = vector.shape_cast %19 : vector<168x96xbf16> to vector<1x168x96xbf16>
    %21 = vector.broadcast %20 : vector<1x168x96xbf16> to vector<8x168x96xbf16>
    "tpu.trace_start"() <{level = 10 : i32, message = "bik,bok->bio"}> : () -> ()
    %cst_10 = arith.constant dense<0.000000e+00> : vector<8x28x168xf32>
    %22 = tpu.matmul %17, %21, %cst_10 {dimension_numbers = #tpu.dot_dimension_numbers<[2], [2], [1], [1], [0, 0, 0, 1, 1, 1], [0], [0]>} : vector<8x28x96xbf16>, vector<8x168x96xbf16>, vector<8x28x168xf32> -> vector<8x28x168xf32>
    "tpu.trace_stop"() : () -> ()
    %23 = arith.addf %15, %22 : vector<8x28x168xf32>
    %24 = vector.extract_strided_slice %0 {offsets = [0, 3, 0], sizes = [8, 28, 96], strides = [1, 1, 1]} : vector<8x32x96xf32> to vector<8x28x96xf32>
    %25 = arith.truncf %24 : vector<8x28x96xf32> to vector<8x28x96xbf16>
    %c3 = arith.constant 3 : index
    %c0_11 = arith.constant 0 : index
    %c0_12 = arith.constant 0 : index
    %26 = vector.load %arg2[%c3, %c0_11, %c0_12] : memref<5x168x96xbf16, #tpu.memory_space<vmem>>, vector<1x168x96xbf16>
    %27 = vector.shape_cast %26 : vector<1x168x96xbf16> to vector<168x96xbf16>
    %28 = vector.shape_cast %27 : vector<168x96xbf16> to vector<1x168x96xbf16>
    %29 = vector.broadcast %28 : vector<1x168x96xbf16> to vector<8x168x96xbf16>
    "tpu.trace_start"() <{level = 10 : i32, message = "bik,bok->bio"}> : () -> ()
    %cst_13 = arith.constant dense<0.000000e+00> : vector<8x28x168xf32>
    %30 = tpu.matmul %25, %29, %cst_13 {dimension_numbers = #tpu.dot_dimension_numbers<[2], [2], [1], [1], [0, 0, 0, 1, 1, 1], [0], [0]>} : vector<8x28x96xbf16>, vector<8x168x96xbf16>, vector<8x28x168xf32> -> vector<8x28x168xf32>
    "tpu.trace_stop"() : () -> ()
    %31 = arith.addf %23, %30 : vector<8x28x168xf32>
    %32 = vector.extract_strided_slice %0 {offsets = [0, 4, 0], sizes = [8, 28, 96], strides = [1, 1, 1]} : vector<8x32x96xf32> to vector<8x28x96xf32>
    %33 = arith.truncf %32 : vector<8x28x96xf32> to vector<8x28x96xbf16>
    %c4 = arith.constant 4 : index
    %c0_14 = arith.constant 0 : index
    %c0_15 = arith.constant 0 : index
    %34 = vector.load %arg2[%c4, %c0_14, %c0_15] : memref<5x168x96xbf16, #tpu.memory_space<vmem>>, vector<1x168x96xbf16>
    %35 = vector.shape_cast %34 : vector<1x168x96xbf16> to vector<168x96xbf16>
    %36 = vector.shape_cast %35 : vector<168x96xbf16> to vector<1x168x96xbf16>
    %37 = vector.broadcast %36 : vector<1x168x96xbf16> to vector<8x168x96xbf16>
    "tpu.trace_start"() <{level = 10 : i32, message = "bik,bok->bio"}> : () -> ()
    %cst_16 = arith.constant dense<0.000000e+00> : vector<8x28x168xf32>
    %38 = tpu.matmul %33, %37, %cst_16 {dimension_numbers = #tpu.dot_dimension_numbers<[2], [2], [1], [1], [0, 0, 0, 1, 1, 1], [0], [0]>} : vector<8x28x96xbf16>, vector<8x168x96xbf16>, vector<8x28x168xf32> -> vector<8x28x168xf32>
    "tpu.trace_stop"() : () -> ()
    %39 = arith.addf %31, %38 : vector<8x28x168xf32>
    %c0_17 = arith.constant 0 : index
    %c0_18 = arith.constant 0 : index
    %c0_19 = arith.constant 0 : index
    %40 = vector.load %arg3[%c0_17, %c0_18, %c0_19] : memref<1x1x168xf32, #tpu.memory_space<vmem>>, vector<1x1x168xf32>
    %41 = vector.broadcast %40 : vector<1x1x168xf32> to vector<8x28x168xf32>
    %42 = arith.addf %39, %41 : vector<8x28x168xf32>
    %cst_20 = arith.constant 0.000000e+00 : f32
    %43 = vector.broadcast %cst_20 : f32 to vector<8x28x168xf32>
    %44 = arith.maximumf %42, %43 : vector<8x28x168xf32>
    %45 = vector.extract_strided_slice %44 {offsets = [0, 0, 0], sizes = [8, 27, 168], strides = [1, 1, 1]} : vector<8x28x168xf32> to vector<8x27x168xf32>
    %46 = vector.extract_strided_slice %44 {offsets = [0, 1, 0], sizes = [8, 27, 168], strides = [1, 1, 1]} : vector<8x28x168xf32> to vector<8x27x168xf32>
    %47 = arith.maximumf %45, %46 : vector<8x27x168xf32>
    %48 = vector.extract_strided_slice %47 {offsets = [0, 0, 0], sizes = [8, 1, 168], strides = [1, 1, 1]} : vector<8x27x168xf32> to vector<8x1x168xf32>
    %c0_21 = arith.constant 0 : index
    %c0_22 = arith.constant 0 : index
    %c0_23 = arith.constant 0 : index
    %49 = vector.load %arg13[%c0_21, %c0_22, %c0_23] : memref<8x14x168xf32, #tpu.memory_space<vmem>>, vector<8x1x168xf32>
    tpu.vector_store %arg13[%c0_21, %c0_22, %c0_23], %48 {strides = array<i32>} : memref<8x14x168xf32, #tpu.memory_space<vmem>>, vector<8x1x168xf32>,
    %50 = vector.extract_strided_slice %47 {offsets = [0, 2, 0], sizes = [8, 1, 168], strides = [1, 1, 1]} : vector<8x27x168xf32> to vector<8x1x168xf32>
    %c0_24 = arith.constant 0 : index
    %c1_25 = arith.constant 1 : index
    %c0_26 = arith.constant 0 : index
    %51 = vector.load %arg13[%c0_24, %c1_25, %c0_26] : memref<8x14x168xf32, #tpu.memory_space<vmem>>, vector<8x1x168xf32>
    tpu.vector_store %arg13[%c0_24, %c1_25, %c0_26], %50 {strides = array<i32>} : memref<8x14x168xf32, #tpu.memory_space<vmem>>, vector<8x1x168xf32>,
    %52 = vector.extract_strided_slice %47 {offsets = [0, 4, 0], sizes = [8, 1, 168], strides = [1, 1, 1]} : vector<8x27x168xf32> to vector<8x1x168xf32>
    %c0_27 = arith.constant 0 : index
    %c2_28 = arith.constant 2 : index
    %c0_29 = arith.constant 0 : index
    %53 = vector.load %arg13[%c0_27, %c2_28, %c0_29] : memref<8x14x168xf32, #tpu.memory_space<vmem>>, vector<8x1x168xf32>
    tpu.vector_store %arg13[%c0_27, %c2_28, %c0_29], %52 {strides = array<i32>} : memref<8x14x168xf32, #tpu.memory_space<vmem>>, vector<8x1x168xf32>,
    %54 = vector.extract_strided_slice %47 {offsets = [0, 6, 0], sizes = [8, 1, 168], strides = [1, 1, 1]} : vector<8x27x168xf32> to vector<8x1x168xf32>
    %c0_30 = arith.constant 0 : index
    %c3_31 = arith.constant 3 : index
    %c0_32 = arith.constant 0 : index
    %55 = vector.load %arg13[%c0_30, %c3_31, %c0_32] : memref<8x14x168xf32, #tpu.memory_space<vmem>>, vector<8x1x168xf32>
    tpu.vector_store %arg13[%c0_30, %c3_31, %c0_32], %54 {strides = array<i32>} : memref<8x14x168xf32, #tpu.memory_space<vmem>>, vector<8x1x168xf32>,
    %56 = vector.extract_strided_slice %47 {offsets = [0, 8, 0], sizes = [8, 1, 168], strides = [1, 1, 1]} : vector<8x27x168xf32> to vector<8x1x168xf32>
    %c0_33 = arith.constant 0 : index
    %c4_34 = arith.constant 4 : index
    %c0_35 = arith.constant 0 : index
    %57 = vector.load %arg13[%c0_33, %c4_34, %c0_35] : memref<8x14x168xf32, #tpu.memory_space<vmem>>, vector<8x1x168xf32>
    tpu.vector_store %arg13[%c0_33, %c4_34, %c0_35], %56 {strides = array<i32>} : memref<8x14x168xf32, #tpu.memory_space<vmem>>, vector<8x1x168xf32>,
    %58 = vector.extract_strided_slice %47 {offsets = [0, 10, 0], sizes = [8, 1, 168], strides = [1, 1, 1]} : vector<8x27x168xf32> to vector<8x1x168xf32>
    %c0_36 = arith.constant 0 : index
    %c5 = arith.constant 5 : index
    %c0_37 = arith.constant 0 : index
    %59 = vector.load %arg13[%c0_36, %c5, %c0_37] : memref<8x14x168xf32, #tpu.memory_space<vmem>>, vector<8x1x168xf32>
    tpu.vector_store %arg13[%c0_36, %c5, %c0_37], %58 {strides = array<i32>} : memref<8x14x168xf32, #tpu.memory_space<vmem>>, vector<8x1x168xf32>,
    %60 = vector.extract_strided_slice %47 {offsets = [0, 12, 0], sizes = [8, 1, 168], strides = [1, 1, 1]} : vector<8x27x168xf32> to vector<8x1x168xf32>
    %c0_38 = arith.constant 0 : index
    %c6 = arith.constant 6 : index
    %c0_39 = arith.constant 0 : index
    %61 = vector.load %arg13[%c0_38, %c6, %c0_39] : memref<8x14x168xf32, #tpu.memory_space<vmem>>, vector<8x1x168xf32>
    tpu.vector_store %arg13[%c0_38, %c6, %c0_39], %60 {strides = array<i32>} : memref<8x14x168xf32, #tpu.memory_space<vmem>>, vector<8x1x168xf32>,
    %62 = vector.extract_strided_slice %47 {offsets = [0, 14, 0], sizes = [8, 1, 168], strides = [1, 1, 1]} : vector<8x27x168xf32> to vector<8x1x168xf32>
    %c0_40 = arith.constant 0 : index
    %c7 = arith.constant 7 : index
    %c0_41 = arith.constant 0 : index
    %63 = vector.load %arg13[%c0_40, %c7, %c0_41] : memref<8x14x168xf32, #tpu.memory_space<vmem>>, vector<8x1x168xf32>
    tpu.vector_store %arg13[%c0_40, %c7, %c0_41], %62 {strides = array<i32>} : memref<8x14x168xf32, #tpu.memory_space<vmem>>, vector<8x1x168xf32>,
    %64 = vector.extract_strided_slice %47 {offsets = [0, 16, 0], sizes = [8, 1, 168], strides = [1, 1, 1]} : vector<8x27x168xf32> to vector<8x1x168xf32>
    %c0_42 = arith.constant 0 : index
    %c8 = arith.constant 8 : index
    %c0_43 = arith.constant 0 : index
    %65 = vector.load %arg13[%c0_42, %c8, %c0_43] : memref<8x14x168xf32, #tpu.memory_space<vmem>>, vector<8x1x168xf32>
    tpu.vector_store %arg13[%c0_42, %c8, %c0_43], %64 {strides = array<i32>} : memref<8x14x168xf32, #tpu.memory_space<vmem>>, vector<8x1x168xf32>,
    %66 = vector.extract_strided_slice %47 {offsets = [0, 18, 0], sizes = [8, 1, 168], strides = [1, 1, 1]} : vector<8x27x168xf32> to vector<8x1x168xf32>
    %c0_44 = arith.constant 0 : index
    %c9 = arith.constant 9 : index
    %c0_45 = arith.constant 0 : index
    %67 = vector.load %arg13[%c0_44, %c9, %c0_45] : memref<8x14x168xf32, #tpu.memory_space<vmem>>, vector<8x1x168xf32>
    tpu.vector_store %arg13[%c0_44, %c9, %c0_45], %66 {strides = array<i32>} : memref<8x14x168xf32, #tpu.memory_space<vmem>>, vector<8x1x168xf32>,
    %68 = vector.extract_strided_slice %47 {offsets = [0, 20, 0], sizes = [8, 1, 168], strides = [1, 1, 1]} : vector<8x27x168xf32> to vector<8x1x168xf32>
    %c0_46 = arith.constant 0 : index
    %c10 = arith.constant 10 : index
    %c0_47 = arith.constant 0 : index
    %69 = vector.load %arg13[%c0_46, %c10, %c0_47] : memref<8x14x168xf32, #tpu.memory_space<vmem>>, vector<8x1x168xf32>
    tpu.vector_store %arg13[%c0_46, %c10, %c0_47], %68 {strides = array<i32>} : memref<8x14x168xf32, #tpu.memory_space<vmem>>, vector<8x1x168xf32>,
    %70 = vector.extract_strided_slice %47 {offsets = [0, 22, 0], sizes = [8, 1, 168], strides = [1, 1, 1]} : vector<8x27x168xf32> to vector<8x1x168xf32>
    %c0_48 = arith.constant 0 : index
    %c11 = arith.constant 11 : index
    %c0_49 = arith.constant 0 : index
    %71 = vector.load %arg13[%c0_48, %c11, %c0_49] : memref<8x14x168xf32, #tpu.memory_space<vmem>>, vector<8x1x168xf32>
    tpu.vector_store %arg13[%c0_48, %c11, %c0_49], %70 {strides = array<i32>} : memref<8x14x168xf32, #tpu.memory_space<vmem>>, vector<8x1x168xf32>,
    %72 = vector.extract_strided_slice %47 {offsets = [0, 24, 0], sizes = [8, 1, 168], strides = [1, 1, 1]} : vector<8x27x168xf32> to vector<8x1x168xf32>
    %c0_50 = arith.constant 0 : index
    %c12 = arith.constant 12 : index
    %c0_51 = arith.constant 0 : index
    %73 = vector.load %arg13[%c0_50, %c12, %c0_51] : memref<8x14x168xf32, #tpu.memory_space<vmem>>, vector<8x1x168xf32>
    tpu.vector_store %arg13[%c0_50, %c12, %c0_51], %72 {strides = array<i32>} : memref<8x14x168xf32, #tpu.memory_space<vmem>>, vector<8x1x168xf32>,
    %74 = vector.extract_strided_slice %47 {offsets = [0, 26, 0], sizes = [8, 1, 168], strides = [1, 1, 1]} : vector<8x27x168xf32> to vector<8x1x168xf32>
    %c0_52 = arith.constant 0 : index
    %c13 = arith.constant 13 : index
    %c0_53 = arith.constant 0 : index
    %75 = vector.load %arg13[%c0_52, %c13, %c0_53] : memref<8x14x168xf32, #tpu.memory_space<vmem>>, vector<8x1x168xf32>
    tpu.vector_store %arg13[%c0_52, %c13, %c0_53], %74 {strides = array<i32>} : memref<8x14x168xf32, #tpu.memory_space<vmem>>, vector<8x1x168xf32>,
    %c0_54 = arith.constant 0 : index
    %c0_55 = arith.constant 0 : index
    %c0_56 = arith.constant 0 : index
    %76 = vector.load %arg13[%c0_54, %c0_55, %c0_56] : memref<8x14x168xf32, #tpu.memory_space<vmem>>, vector<8x14x168xf32>
    %77 = vector.extract_strided_slice %76 {offsets = [0, 0, 0], sizes = [8, 14, 6], strides = [1, 1, 1]} : vector<8x14x168xf32> to vector<8x14x6xf32>
    %78 = vector.extract_strided_slice %76 {offsets = [0, 0, 6], sizes = [8, 14, 6], strides = [1, 1, 1]} : vector<8x14x168xf32> to vector<8x14x6xf32>
    %79 = arith.maximumf %77, %78 : vector<8x14x6xf32>
    %c0_57 = arith.constant 0 : index
    %c0_58 = arith.constant 0 : index
    %c0_59 = arith.constant 0 : index
    %80 = vector.load %arg14[%c0_57, %c0_58, %c0_59] : memref<8x14x84xf32, #tpu.memory_space<vmem>>, vector<8x14x6xf32>
    tpu.vector_store %arg14[%c0_57, %c0_58, %c0_59], %79 {strides = array<i32>} : memref<8x14x84xf32, #tpu.memory_space<vmem>>, vector<8x14x6xf32>,
    %81 = vector.extract_strided_slice %76 {offsets = [0, 0, 12], sizes = [8, 14, 6], strides = [1, 1, 1]} : vector<8x14x168xf32> to vector<8x14x6xf32>
    %82 = vector.extract_strided_slice %76 {offsets = [0, 0, 18], sizes = [8, 14, 6], strides = [1, 1, 1]} : vector<8x14x168xf32> to vector<8x14x6xf32>
    %83 = arith.maximumf %81, %82 : vector<8x14x6xf32>
    %c0_60 = arith.constant 0 : index
    %c0_61 = arith.constant 0 : index
    %c6_62 = arith.constant 6 : index
    %84 = vector.load %arg14[%c0_60, %c0_61, %c6_62] : memref<8x14x84xf32, #tpu.memory_space<vmem>>, vector<8x14x6xf32>
    tpu.vector_store %arg14[%c0_60, %c0_61, %c6_62], %83 {strides = array<i32>} : memref<8x14x84xf32, #tpu.memory_space<vmem>>, vector<8x14x6xf32>,
    %85 = vector.extract_strided_slice %76 {offsets = [0, 0, 24], sizes = [8, 14, 6], strides = [1, 1, 1]} : vector<8x14x168xf32> to vector<8x14x6xf32>
    %86 = vector.extract_strided_slice %76 {offsets = [0, 0, 30], sizes = [8, 14, 6], strides = [1, 1, 1]} : vector<8x14x168xf32> to vector<8x14x6xf32>
    %87 = arith.maximumf %85, %86 : vector<8x14x6xf32>
    %c0_63 = arith.constant 0 : index
    %c0_64 = arith.constant 0 : index
    %c12_65 = arith.constant 12 : index
    %88 = vector.load %arg14[%c0_63, %c0_64, %c12_65] : memref<8x14x84xf32, #tpu.memory_space<vmem>>, vector<8x14x6xf32>
    tpu.vector_store %arg14[%c0_63, %c0_64, %c12_65], %87 {strides = array<i32>} : memref<8x14x84xf32, #tpu.memory_space<vmem>>, vector<8x14x6xf32>,
    %89 = vector.extract_strided_slice %76 {offsets = [0, 0, 36], sizes = [8, 14, 6], strides = [1, 1, 1]} : vector<8x14x168xf32> to vector<8x14x6xf32>
    %90 = vector.extract_strided_slice %76 {offsets = [0, 0, 42], sizes = [8, 14, 6], strides = [1, 1, 1]} : vector<8x14x168xf32> to vector<8x14x6xf32>
    %91 = arith.maximumf %89, %90 : vector<8x14x6xf32>
    %c0_66 = arith.constant 0 : index
    %c0_67 = arith.constant 0 : index
    %c18 = arith.constant 18 : index
    %92 = vector.load %arg14[%c0_66, %c0_67, %c18] : memref<8x14x84xf32, #tpu.memory_space<vmem>>, vector<8x14x6xf32>
    tpu.vector_store %arg14[%c0_66, %c0_67, %c18], %91 {strides = array<i32>} : memref<8x14x84xf32, #tpu.memory_space<vmem>>, vector<8x14x6xf32>,
    %93 = vector.extract_strided_slice %76 {offsets = [0, 0, 48], sizes = [8, 14, 6], strides = [1, 1, 1]} : vector<8x14x168xf32> to vector<8x14x6xf32>
    %94 = vector.extract_strided_slice %76 {offsets = [0, 0, 54], sizes = [8, 14, 6], strides = [1, 1, 1]} : vector<8x14x168xf32> to vector<8x14x6xf32>
    %95 = arith.maximumf %93, %94 : vector<8x14x6xf32>
    %c0_68 = arith.constant 0 : index
    %c0_69 = arith.constant 0 : index
    %c24 = arith.constant 24 : index
    %96 = vector.load %arg14[%c0_68, %c0_69, %c24] : memref<8x14x84xf32, #tpu.memory_space<vmem>>, vector<8x14x6xf32>
    tpu.vector_store %arg14[%c0_68, %c0_69, %c24], %95 {strides = array<i32>} : memref<8x14x84xf32, #tpu.memory_space<vmem>>, vector<8x14x6xf32>,
    %97 = vector.extract_strided_slice %76 {offsets = [0, 0, 60], sizes = [8, 14, 6], strides = [1, 1, 1]} : vector<8x14x168xf32> to vector<8x14x6xf32>
    %98 = vector.extract_strided_slice %76 {offsets = [0, 0, 66], sizes = [8, 14, 6], strides = [1, 1, 1]} : vector<8x14x168xf32> to vector<8x14x6xf32>
    %99 = arith.maximumf %97, %98 : vector<8x14x6xf32>
    %c0_70 = arith.constant 0 : index
    %c0_71 = arith.constant 0 : index
    %c30 = arith.constant 30 : index
    %100 = vector.load %arg14[%c0_70, %c0_71, %c30] : memref<8x14x84xf32, #tpu.memory_space<vmem>>, vector<8x14x6xf32>
    tpu.vector_store %arg14[%c0_70, %c0_71, %c30], %99 {strides = array<i32>} : memref<8x14x84xf32, #tpu.memory_space<vmem>>, vector<8x14x6xf32>,
    %101 = vector.extract_strided_slice %76 {offsets = [0, 0, 72], sizes = [8, 14, 6], strides = [1, 1, 1]} : vector<8x14x168xf32> to vector<8x14x6xf32>
    %102 = vector.extract_strided_slice %76 {offsets = [0, 0, 78], sizes = [8, 14, 6], strides = [1, 1, 1]} : vector<8x14x168xf32> to vector<8x14x6xf32>
    %103 = arith.maximumf %101, %102 : vector<8x14x6xf32>
    %c0_72 = arith.constant 0 : index
    %c0_73 = arith.constant 0 : index
    %c36 = arith.constant 36 : index
    %104 = vector.load %arg14[%c0_72, %c0_73, %c36] : memref<8x14x84xf32, #tpu.memory_space<vmem>>, vector<8x14x6xf32>
    tpu.vector_store %arg14[%c0_72, %c0_73, %c36], %103 {strides = array<i32>} : memref<8x14x84xf32, #tpu.memory_space<vmem>>, vector<8x14x6xf32>,
    %105 = vector.extract_strided_slice %76 {offsets = [0, 0, 84], sizes = [8, 14, 6], strides = [1, 1, 1]} : vector<8x14x168xf32> to vector<8x14x6xf32>
    %106 = vector.extract_strided_slice %76 {offsets = [0, 0, 90], sizes = [8, 14, 6], strides = [1, 1, 1]} : vector<8x14x168xf32> to vector<8x14x6xf32>
    %107 = arith.maximumf %105, %106 : vector<8x14x6xf32>
    %c0_74 = arith.constant 0 : index
    %c0_75 = arith.constant 0 : index
    %c42 = arith.constant 42 : index
    %108 = vector.load %arg14[%c0_74, %c0_75, %c42] : memref<8x14x84xf32, #tpu.memory_space<vmem>>, vector<8x14x6xf32>
    tpu.vector_store %arg14[%c0_74, %c0_75, %c42], %107 {strides = array<i32>} : memref<8x14x84xf32, #tpu.memory_space<vmem>>, vector<8x14x6xf32>,
    %109 = vector.extract_strided_slice %76 {offsets = [0, 0, 96], sizes = [8, 14, 6], strides = [1, 1, 1]} : vector<8x14x168xf32> to vector<8x14x6xf32>
    %110 = vector.extract_strided_slice %76 {offsets = [0, 0, 102], sizes = [8, 14, 6], strides = [1, 1, 1]} : vector<8x14x168xf32> to vector<8x14x6xf32>
    %111 = arith.maximumf %109, %110 : vector<8x14x6xf32>
    %c0_76 = arith.constant 0 : index
    %c0_77 = arith.constant 0 : index
    %c48 = arith.constant 48 : index
    %112 = vector.load %arg14[%c0_76, %c0_77, %c48] : memref<8x14x84xf32, #tpu.memory_space<vmem>>, vector<8x14x6xf32>
    tpu.vector_store %arg14[%c0_76, %c0_77, %c48], %111 {strides = array<i32>} : memref<8x14x84xf32, #tpu.memory_space<vmem>>, vector<8x14x6xf32>,
    %113 = vector.extract_strided_slice %76 {offsets = [0, 0, 108], sizes = [8, 14, 6], strides = [1, 1, 1]} : vector<8x14x168xf32> to vector<8x14x6xf32>
    %114 = vector.extract_strided_slice %76 {offsets = [0, 0, 114], sizes = [8, 14, 6], strides = [1, 1, 1]} : vector<8x14x168xf32> to vector<8x14x6xf32>
    %115 = arith.maximumf %113, %114 : vector<8x14x6xf32>
    %c0_78 = arith.constant 0 : index
    %c0_79 = arith.constant 0 : index
    %c54 = arith.constant 54 : index
    %116 = vector.load %arg14[%c0_78, %c0_79, %c54] : memref<8x14x84xf32, #tpu.memory_space<vmem>>, vector<8x14x6xf32>
    tpu.vector_store %arg14[%c0_78, %c0_79, %c54], %115 {strides = array<i32>} : memref<8x14x84xf32, #tpu.memory_space<vmem>>, vector<8x14x6xf32>,
    %117 = vector.extract_strided_slice %76 {offsets = [0, 0, 120], sizes = [8, 14, 6], strides = [1, 1, 1]} : vector<8x14x168xf32> to vector<8x14x6xf32>
    %118 = vector.extract_strided_slice %76 {offsets = [0, 0, 126], sizes = [8, 14, 6], strides = [1, 1, 1]} : vector<8x14x168xf32> to vector<8x14x6xf32>
    %119 = arith.maximumf %117, %118 : vector<8x14x6xf32>
    %c0_80 = arith.constant 0 : index
    %c0_81 = arith.constant 0 : index
    %c60 = arith.constant 60 : index
    %120 = vector.load %arg14[%c0_80, %c0_81, %c60] : memref<8x14x84xf32, #tpu.memory_space<vmem>>, vector<8x14x6xf32>
    tpu.vector_store %arg14[%c0_80, %c0_81, %c60], %119 {strides = array<i32>} : memref<8x14x84xf32, #tpu.memory_space<vmem>>, vector<8x14x6xf32>,
    %121 = vector.extract_strided_slice %76 {offsets = [0, 0, 132], sizes = [8, 14, 6], strides = [1, 1, 1]} : vector<8x14x168xf32> to vector<8x14x6xf32>
    %122 = vector.extract_strided_slice %76 {offsets = [0, 0, 138], sizes = [8, 14, 6], strides = [1, 1, 1]} : vector<8x14x168xf32> to vector<8x14x6xf32>
    %123 = arith.maximumf %121, %122 : vector<8x14x6xf32>
    %c0_82 = arith.constant 0 : index
    %c0_83 = arith.constant 0 : index
    %c66 = arith.constant 66 : index
    %124 = vector.load %arg14[%c0_82, %c0_83, %c66] : memref<8x14x84xf32, #tpu.memory_space<vmem>>, vector<8x14x6xf32>
    tpu.vector_store %arg14[%c0_82, %c0_83, %c66], %123 {strides = array<i32>} : memref<8x14x84xf32, #tpu.memory_space<vmem>>, vector<8x14x6xf32>,
    %125 = vector.extract_strided_slice %76 {offsets = [0, 0, 144], sizes = [8, 14, 6], strides = [1, 1, 1]} : vector<8x14x168xf32> to vector<8x14x6xf32>
    %126 = vector.extract_strided_slice %76 {offsets = [0, 0, 150], sizes = [8, 14, 6], strides = [1, 1, 1]} : vector<8x14x168xf32> to vector<8x14x6xf32>
    %127 = arith.maximumf %125, %126 : vector<8x14x6xf32>
    %c0_84 = arith.constant 0 : index
    %c0_85 = arith.constant 0 : index
    %c72 = arith.constant 72 : index
    %128 = vector.load %arg14[%c0_84, %c0_85, %c72] : memref<8x14x84xf32, #tpu.memory_space<vmem>>, vector<8x14x6xf32>
    tpu.vector_store %arg14[%c0_84, %c0_85, %c72], %127 {strides = array<i32>} : memref<8x14x84xf32, #tpu.memory_space<vmem>>, vector<8x14x6xf32>,
    %129 = vector.extract_strided_slice %76 {offsets = [0, 0, 156], sizes = [8, 14, 6], strides = [1, 1, 1]} : vector<8x14x168xf32> to vector<8x14x6xf32>
    %130 = vector.extract_strided_slice %76 {offsets = [0, 0, 162], sizes = [8, 14, 6], strides = [1, 1, 1]} : vector<8x14x168xf32> to vector<8x14x6xf32>
    %131 = arith.maximumf %129, %130 : vector<8x14x6xf32>
    %c0_86 = arith.constant 0 : index
    %c0_87 = arith.constant 0 : index
    %c78 = arith.constant 78 : index
    %132 = vector.load %arg14[%c0_86, %c0_87, %c78] : memref<8x14x84xf32, #tpu.memory_space<vmem>>, vector<8x14x6xf32>
    tpu.vector_store %arg14[%c0_86, %c0_87, %c78], %131 {strides = array<i32>} : memref<8x14x84xf32, #tpu.memory_space<vmem>>, vector<8x14x6xf32>,
    %c0_88 = arith.constant 0 : index
    %c0_89 = arith.constant 0 : index
    %c0_90 = arith.constant 0 : index
    %133 = vector.load %arg14[%c0_88, %c0_89, %c0_90] : memref<8x14x84xf32, #tpu.memory_space<vmem>>, vector<8x14x84xf32>
    %134 = vector.extract_strided_slice %133 {offsets = [0, 0, 0], sizes = [8, 10, 84], strides = [1, 1, 1]} : vector<8x14x84xf32> to vector<8x10x84xf32>
    %135 = arith.truncf %134 : vector<8x10x84xf32> to vector<8x10x84xbf16>
    %c0_91 = arith.constant 0 : index
    %c0_92 = arith.constant 0 : index
    %c0_93 = arith.constant 0 : index
    %136 = vector.load %arg4[%c0_91, %c0_92, %c0_93] : memref<5x160x84xbf16, #tpu.memory_space<vmem>>, vector<1x160x84xbf16>
    %137 = vector.shape_cast %136 : vector<1x160x84xbf16> to vector<160x84xbf16>
    %138 = vector.shape_cast %137 : vector<160x84xbf16> to vector<1x160x84xbf16>
    %139 = vector.broadcast %138 : vector<1x160x84xbf16> to vector<8x160x84xbf16>
    "tpu.trace_start"() <{level = 10 : i32, message = "bik,bok->bio"}> : () -> ()
    %cst_94 = arith.constant dense<0.000000e+00> : vector<8x10x160xf32>
    %140 = tpu.matmul %135, %139, %cst_94 {dimension_numbers = #tpu.dot_dimension_numbers<[2], [2], [1], [1], [0, 0, 0, 1, 1, 1], [0], [0]>} : vector<8x10x84xbf16>, vector<8x160x84xbf16>, vector<8x10x160xf32> -> vector<8x10x160xf32>
    "tpu.trace_stop"() : () -> ()
    %141 = vector.extract_strided_slice %133 {offsets = [0, 1, 0], sizes = [8, 10, 84], strides = [1, 1, 1]} : vector<8x14x84xf32> to vector<8x10x84xf32>
    %142 = arith.truncf %141 : vector<8x10x84xf32> to vector<8x10x84xbf16>
    %c1_95 = arith.constant 1 : index
    %c0_96 = arith.constant 0 : index
    %c0_97 = arith.constant 0 : index
    %143 = vector.load %arg4[%c1_95, %c0_96, %c0_97] : memref<5x160x84xbf16, #tpu.memory_space<vmem>>, vector<1x160x84xbf16>
    %144 = vector.shape_cast %143 : vector<1x160x84xbf16> to vector<160x84xbf16>
    %145 = vector.shape_cast %144 : vector<160x84xbf16> to vector<1x160x84xbf16>
    %146 = vector.broadcast %145 : vector<1x160x84xbf16> to vector<8x160x84xbf16>
    "tpu.trace_start"() <{level = 10 : i32, message = "bik,bok->bio"}> : () -> ()
    %cst_98 = arith.constant dense<0.000000e+00> : vector<8x10x160xf32>
    %147 = tpu.matmul %142, %146, %cst_98 {dimension_numbers = #tpu.dot_dimension_numbers<[2], [2], [1], [1], [0, 0, 0, 1, 1, 1], [0], [0]>} : vector<8x10x84xbf16>, vector<8x160x84xbf16>, vector<8x10x160xf32> -> vector<8x10x160xf32>
    "tpu.trace_stop"() : () -> ()
    %148 = arith.addf %140, %147 : vector<8x10x160xf32>
    %149 = vector.extract_strided_slice %133 {offsets = [0, 2, 0], sizes = [8, 10, 84], strides = [1, 1, 1]} : vector<8x14x84xf32> to vector<8x10x84xf32>
    %150 = arith.truncf %149 : vector<8x10x84xf32> to vector<8x10x84xbf16>
    %c2_99 = arith.constant 2 : index
    %c0_100 = arith.constant 0 : index
    %c0_101 = arith.constant 0 : index
    %151 = vector.load %arg4[%c2_99, %c0_100, %c0_101] : memref<5x160x84xbf16, #tpu.memory_space<vmem>>, vector<1x160x84xbf16>
    %152 = vector.shape_cast %151 : vector<1x160x84xbf16> to vector<160x84xbf16>
    %153 = vector.shape_cast %152 : vector<160x84xbf16> to vector<1x160x84xbf16>
    %154 = vector.broadcast %153 : vector<1x160x84xbf16> to vector<8x160x84xbf16>
    "tpu.trace_start"() <{level = 10 : i32, message = "bik,bok->bio"}> : () -> ()
    %cst_102 = arith.constant dense<0.000000e+00> : vector<8x10x160xf32>
    %155 = tpu.matmul %150, %154, %cst_102 {dimension_numbers = #tpu.dot_dimension_numbers<[2], [2], [1], [1], [0, 0, 0, 1, 1, 1], [0], [0]>} : vector<8x10x84xbf16>, vector<8x160x84xbf16>, vector<8x10x160xf32> -> vector<8x10x160xf32>
    "tpu.trace_stop"() : () -> ()
    %156 = arith.addf %148, %155 : vector<8x10x160xf32>
    %157 = vector.extract_strided_slice %133 {offsets = [0, 3, 0], sizes = [8, 10, 84], strides = [1, 1, 1]} : vector<8x14x84xf32> to vector<8x10x84xf32>
    %158 = arith.truncf %157 : vector<8x10x84xf32> to vector<8x10x84xbf16>
    %c3_103 = arith.constant 3 : index
    %c0_104 = arith.constant 0 : index
    %c0_105 = arith.constant 0 : index
    %159 = vector.load %arg4[%c3_103, %c0_104, %c0_105] : memref<5x160x84xbf16, #tpu.memory_space<vmem>>, vector<1x160x84xbf16>
    %160 = vector.shape_cast %159 : vector<1x160x84xbf16> to vector<160x84xbf16>
    %161 = vector.shape_cast %160 : vector<160x84xbf16> to vector<1x160x84xbf16>
    %162 = vector.broadcast %161 : vector<1x160x84xbf16> to vector<8x160x84xbf16>
    "tpu.trace_start"() <{level = 10 : i32, message = "bik,bok->bio"}> : () -> ()
    %cst_106 = arith.constant dense<0.000000e+00> : vector<8x10x160xf32>
    %163 = tpu.matmul %158, %162, %cst_106 {dimension_numbers = #tpu.dot_dimension_numbers<[2], [2], [1], [1], [0, 0, 0, 1, 1, 1], [0], [0]>} : vector<8x10x84xbf16>, vector<8x160x84xbf16>, vector<8x10x160xf32> -> vector<8x10x160xf32>
    "tpu.trace_stop"() : () -> ()
    %164 = arith.addf %156, %163 : vector<8x10x160xf32>
    %165 = vector.extract_strided_slice %133 {offsets = [0, 4, 0], sizes = [8, 10, 84], strides = [1, 1, 1]} : vector<8x14x84xf32> to vector<8x10x84xf32>
    %166 = arith.truncf %165 : vector<8x10x84xf32> to vector<8x10x84xbf16>
    %c4_107 = arith.constant 4 : index
    %c0_108 = arith.constant 0 : index
    %c0_109 = arith.constant 0 : index
    %167 = vector.load %arg4[%c4_107, %c0_108, %c0_109] : memref<5x160x84xbf16, #tpu.memory_space<vmem>>, vector<1x160x84xbf16>
    %168 = vector.shape_cast %167 : vector<1x160x84xbf16> to vector<160x84xbf16>
    %169 = vector.shape_cast %168 : vector<160x84xbf16> to vector<1x160x84xbf16>
    %170 = vector.broadcast %169 : vector<1x160x84xbf16> to vector<8x160x84xbf16>
    "tpu.trace_start"() <{level = 10 : i32, message = "bik,bok->bio"}> : () -> ()
    %cst_110 = arith.constant dense<0.000000e+00> : vector<8x10x160xf32>
    %171 = tpu.matmul %166, %170, %cst_110 {dimension_numbers = #tpu.dot_dimension_numbers<[2], [2], [1], [1], [0, 0, 0, 1, 1, 1], [0], [0]>} : vector<8x10x84xbf16>, vector<8x160x84xbf16>, vector<8x10x160xf32> -> vector<8x10x160xf32>
    "tpu.trace_stop"() : () -> ()
    %172 = arith.addf %164, %171 : vector<8x10x160xf32>
    %c0_111 = arith.constant 0 : index
    %c0_112 = arith.constant 0 : index
    %c0_113 = arith.constant 0 : index
    %173 = vector.load %arg5[%c0_111, %c0_112, %c0_113] : memref<1x1x160xf32, #tpu.memory_space<vmem>>, vector<1x1x160xf32>
    %174 = vector.broadcast %173 : vector<1x1x160xf32> to vector<8x10x160xf32>
    %175 = arith.addf %172, %174 : vector<8x10x160xf32>
    %cst_114 = arith.constant 0.000000e+00 : f32
    %176 = vector.broadcast %cst_114 : f32 to vector<8x10x160xf32>
    %177 = arith.maximumf %175, %176 : vector<8x10x160xf32>
    %178 = vector.extract_strided_slice %177 {offsets = [0, 0, 0], sizes = [8, 9, 160], strides = [1, 1, 1]} : vector<8x10x160xf32> to vector<8x9x160xf32>
    %179 = vector.extract_strided_slice %177 {offsets = [0, 1, 0], sizes = [8, 9, 160], strides = [1, 1, 1]} : vector<8x10x160xf32> to vector<8x9x160xf32>
    %180 = arith.maximumf %178, %179 : vector<8x9x160xf32>
    %181 = vector.extract_strided_slice %180 {offsets = [0, 0, 0], sizes = [8, 1, 160], strides = [1, 1, 1]} : vector<8x9x160xf32> to vector<8x1x160xf32>
    %c0_115 = arith.constant 0 : index
    %c0_116 = arith.constant 0 : index
    %c0_117 = arith.constant 0 : index
    %182 = vector.load %arg15[%c0_115, %c0_116, %c0_117] : memref<8x5x160xf32, #tpu.memory_space<vmem>>, vector<8x1x160xf32>
    tpu.vector_store %arg15[%c0_115, %c0_116, %c0_117], %181 {strides = array<i32>} : memref<8x5x160xf32, #tpu.memory_space<vmem>>, vector<8x1x160xf32>,
    %183 = vector.extract_strided_slice %180 {offsets = [0, 2, 0], sizes = [8, 1, 160], strides = [1, 1, 1]} : vector<8x9x160xf32> to vector<8x1x160xf32>
    %c0_118 = arith.constant 0 : index
    %c1_119 = arith.constant 1 : index
    %c0_120 = arith.constant 0 : index
    %184 = vector.load %arg15[%c0_118, %c1_119, %c0_120] : memref<8x5x160xf32, #tpu.memory_space<vmem>>, vector<8x1x160xf32>
    tpu.vector_store %arg15[%c0_118, %c1_119, %c0_120], %183 {strides = array<i32>} : memref<8x5x160xf32, #tpu.memory_space<vmem>>, vector<8x1x160xf32>,
    %185 = vector.extract_strided_slice %180 {offsets = [0, 4, 0], sizes = [8, 1, 160], strides = [1, 1, 1]} : vector<8x9x160xf32> to vector<8x1x160xf32>
    %c0_121 = arith.constant 0 : index
    %c2_122 = arith.constant 2 : index
    %c0_123 = arith.constant 0 : index
    %186 = vector.load %arg15[%c0_121, %c2_122, %c0_123] : memref<8x5x160xf32, #tpu.memory_space<vmem>>, vector<8x1x160xf32>
    tpu.vector_store %arg15[%c0_121, %c2_122, %c0_123], %185 {strides = array<i32>} : memref<8x5x160xf32, #tpu.memory_space<vmem>>, vector<8x1x160xf32>,
    %187 = vector.extract_strided_slice %180 {offsets = [0, 6, 0], sizes = [8, 1, 160], strides = [1, 1, 1]} : vector<8x9x160xf32> to vector<8x1x160xf32>
    %c0_124 = arith.constant 0 : index
    %c3_125 = arith.constant 3 : index
    %c0_126 = arith.constant 0 : index
    %188 = vector.load %arg15[%c0_124, %c3_125, %c0_126] : memref<8x5x160xf32, #tpu.memory_space<vmem>>, vector<8x1x160xf32>
    tpu.vector_store %arg15[%c0_124, %c3_125, %c0_126], %187 {strides = array<i32>} : memref<8x5x160xf32, #tpu.memory_space<vmem>>, vector<8x1x160xf32>,
    %189 = vector.extract_strided_slice %180 {offsets = [0, 8, 0], sizes = [8, 1, 160], strides = [1, 1, 1]} : vector<8x9x160xf32> to vector<8x1x160xf32>
    %c0_127 = arith.constant 0 : index
    %c4_128 = arith.constant 4 : index
    %c0_129 = arith.constant 0 : index
    %190 = vector.load %arg15[%c0_127, %c4_128, %c0_129] : memref<8x5x160xf32, #tpu.memory_space<vmem>>, vector<8x1x160xf32>
    tpu.vector_store %arg15[%c0_127, %c4_128, %c0_129], %189 {strides = array<i32>} : memref<8x5x160xf32, #tpu.memory_space<vmem>>, vector<8x1x160xf32>,
    %c0_130 = arith.constant 0 : index
    %c0_131 = arith.constant 0 : index
    %c0_132 = arith.constant 0 : index
    %191 = vector.load %arg15[%c0_130, %c0_131, %c0_132] : memref<8x5x160xf32, #tpu.memory_space<vmem>>, vector<8x5x160xf32>
    %192 = vector.extract_strided_slice %191 {offsets = [0, 0, 0], sizes = [8, 5, 16], strides = [1, 1, 1]} : vector<8x5x160xf32> to vector<8x5x16xf32>
    %193 = vector.extract_strided_slice %191 {offsets = [0, 0, 16], sizes = [8, 5, 16], strides = [1, 1, 1]} : vector<8x5x160xf32> to vector<8x5x16xf32>
    %194 = arith.maximumf %192, %193 : vector<8x5x16xf32>
    %c0_133 = arith.constant 0 : index
    %c0_134 = arith.constant 0 : index
    %c0_135 = arith.constant 0 : index
    %195 = vector.load %arg16[%c0_133, %c0_134, %c0_135] : memref<8x5x80xf32, #tpu.memory_space<vmem>>, vector<8x5x16xf32>
    tpu.vector_store %arg16[%c0_133, %c0_134, %c0_135], %194 {strides = array<i32>} : memref<8x5x80xf32, #tpu.memory_space<vmem>>, vector<8x5x16xf32>,
    %196 = vector.extract_strided_slice %191 {offsets = [0, 0, 32], sizes = [8, 5, 16], strides = [1, 1, 1]} : vector<8x5x160xf32> to vector<8x5x16xf32>
    %197 = vector.extract_strided_slice %191 {offsets = [0, 0, 48], sizes = [8, 5, 16], strides = [1, 1, 1]} : vector<8x5x160xf32> to vector<8x5x16xf32>
    %198 = arith.maximumf %196, %197 : vector<8x5x16xf32>
    %c0_136 = arith.constant 0 : index
    %c0_137 = arith.constant 0 : index
    %c16 = arith.constant 16 : index
    %199 = vector.load %arg16[%c0_136, %c0_137, %c16] : memref<8x5x80xf32, #tpu.memory_space<vmem>>, vector<8x5x16xf32>
    tpu.vector_store %arg16[%c0_136, %c0_137, %c16], %198 {strides = array<i32>} : memref<8x5x80xf32, #tpu.memory_space<vmem>>, vector<8x5x16xf32>,
    %200 = vector.extract_strided_slice %191 {offsets = [0, 0, 64], sizes = [8, 5, 16], strides = [1, 1, 1]} : vector<8x5x160xf32> to vector<8x5x16xf32>
    %201 = vector.extract_strided_slice %191 {offsets = [0, 0, 80], sizes = [8, 5, 16], strides = [1, 1, 1]} : vector<8x5x160xf32> to vector<8x5x16xf32>
    %202 = arith.maximumf %200, %201 : vector<8x5x16xf32>
    %c0_138 = arith.constant 0 : index
    %c0_139 = arith.constant 0 : index
    %c32 = arith.constant 32 : index
    %203 = vector.load %arg16[%c0_138, %c0_139, %c32] : memref<8x5x80xf32, #tpu.memory_space<vmem>>, vector<8x5x16xf32>
    tpu.vector_store %arg16[%c0_138, %c0_139, %c32], %202 {strides = array<i32>} : memref<8x5x80xf32, #tpu.memory_space<vmem>>, vector<8x5x16xf32>,
    %204 = vector.extract_strided_slice %191 {offsets = [0, 0, 96], sizes = [8, 5, 16], strides = [1, 1, 1]} : vector<8x5x160xf32> to vector<8x5x16xf32>
    %205 = vector.extract_strided_slice %191 {offsets = [0, 0, 112], sizes = [8, 5, 16], strides = [1, 1, 1]} : vector<8x5x160xf32> to vector<8x5x16xf32>
    %206 = arith.maximumf %204, %205 : vector<8x5x16xf32>
    %c0_140 = arith.constant 0 : index
    %c0_141 = arith.constant 0 : index
    %c48_142 = arith.constant 48 : index
    %207 = vector.load %arg16[%c0_140, %c0_141, %c48_142] : memref<8x5x80xf32, #tpu.memory_space<vmem>>, vector<8x5x16xf32>
    tpu.vector_store %arg16[%c0_140, %c0_141, %c48_142], %206 {strides = array<i32>} : memref<8x5x80xf32, #tpu.memory_space<vmem>>, vector<8x5x16xf32>,
    %208 = vector.extract_strided_slice %191 {offsets = [0, 0, 128], sizes = [8, 5, 16], strides = [1, 1, 1]} : vector<8x5x160xf32> to vector<8x5x16xf32>
    %209 = vector.extract_strided_slice %191 {offsets = [0, 0, 144], sizes = [8, 5, 16], strides = [1, 1, 1]} : vector<8x5x160xf32> to vector<8x5x16xf32>
    %210 = arith.maximumf %208, %209 : vector<8x5x16xf32>
    %c0_143 = arith.constant 0 : index
    %c0_144 = arith.constant 0 : index
    %c64 = arith.constant 64 : index
    %211 = vector.load %arg16[%c0_143, %c0_144, %c64] : memref<8x5x80xf32, #tpu.memory_space<vmem>>, vector<8x5x16xf32>
    tpu.vector_store %arg16[%c0_143, %c0_144, %c64], %210 {strides = array<i32>} : memref<8x5x80xf32, #tpu.memory_space<vmem>>, vector<8x5x16xf32>,
    %c0_145 = arith.constant 0 : index
    %c0_146 = arith.constant 0 : index
    %c0_147 = arith.constant 0 : index
    %212 = vector.load %arg16[%c0_145, %c0_146, %c0_147] : memref<8x5x80xf32, #tpu.memory_space<vmem>>, vector<8x5x80xf32>
    %213 = vector.extract_strided_slice %212 {offsets = [0, 0, 0], sizes = [8, 1, 80], strides = [1, 1, 1]} : vector<8x5x80xf32> to vector<8x1x80xf32>
    %214 = vector.shape_cast %213 : vector<8x1x80xf32> to vector<8x80xf32>
    %c0_148 = arith.constant 0 : index
    %c0_149 = arith.constant 0 : index
    %215 = vector.load %arg17[%c0_148, %c0_149] : memref<8x400xf32, #tpu.memory_space<vmem>>, vector<8x80xf32>
    tpu.vector_store %arg17[%c0_148, %c0_149], %214 {strides = array<i32>} : memref<8x400xf32, #tpu.memory_space<vmem>>, vector<8x80xf32>,
    %216 = vector.extract_strided_slice %212 {offsets = [0, 1, 0], sizes = [8, 1, 80], strides = [1, 1, 1]} : vector<8x5x80xf32> to vector<8x1x80xf32>
    %217 = vector.shape_cast %216 : vector<8x1x80xf32> to vector<8x80xf32>
    %c0_150 = arith.constant 0 : index
    %c80 = arith.constant 80 : index
    %218 = vector.load %arg17[%c0_150, %c80] : memref<8x400xf32, #tpu.memory_space<vmem>>, vector<8x80xf32>
    tpu.vector_store %arg17[%c0_150, %c80], %217 {strides = array<i32>} : memref<8x400xf32, #tpu.memory_space<vmem>>, vector<8x80xf32>,
    %219 = vector.extract_strided_slice %212 {offsets = [0, 2, 0], sizes = [8, 1, 80], strides = [1, 1, 1]} : vector<8x5x80xf32> to vector<8x1x80xf32>
    %220 = vector.shape_cast %219 : vector<8x1x80xf32> to vector<8x80xf32>
    %c0_151 = arith.constant 0 : index
    %c160 = arith.constant 160 : index
    %221 = vector.load %arg17[%c0_151, %c160] : memref<8x400xf32, #tpu.memory_space<vmem>>, vector<8x80xf32>
    tpu.vector_store %arg17[%c0_151, %c160], %220 {strides = array<i32>} : memref<8x400xf32, #tpu.memory_space<vmem>>, vector<8x80xf32>,
    %222 = vector.extract_strided_slice %212 {offsets = [0, 3, 0], sizes = [8, 1, 80], strides = [1, 1, 1]} : vector<8x5x80xf32> to vector<8x1x80xf32>
    %223 = vector.shape_cast %222 : vector<8x1x80xf32> to vector<8x80xf32>
    %c0_152 = arith.constant 0 : index
    %c240 = arith.constant 240 : index
    %224 = vector.load %arg17[%c0_152, %c240] : memref<8x400xf32, #tpu.memory_space<vmem>>, vector<8x80xf32>
    tpu.vector_store %arg17[%c0_152, %c240], %223 {strides = array<i32>} : memref<8x400xf32, #tpu.memory_space<vmem>>, vector<8x80xf32>,
    %225 = vector.extract_strided_slice %212 {offsets = [0, 4, 0], sizes = [8, 1, 80], strides = [1, 1, 1]} : vector<8x5x80xf32> to vector<8x1x80xf32>
    %226 = vector.shape_cast %225 : vector<8x1x80xf32> to vector<8x80xf32>
    %c0_153 = arith.constant 0 : index
    %c320 = arith.constant 320 : index
    %227 = vector.load %arg17[%c0_153, %c320] : memref<8x400xf32, #tpu.memory_space<vmem>>, vector<8x80xf32>
    tpu.vector_store %arg17[%c0_153, %c320], %226 {strides = array<i32>} : memref<8x400xf32, #tpu.memory_space<vmem>>, vector<8x80xf32>,
    %c0_154 = arith.constant 0 : index
    %c0_155 = arith.constant 0 : index
    %228 = vector.load %arg17[%c0_154, %c0_155] : memref<8x400xf32, #tpu.memory_space<vmem>>, vector<8x400xf32>
    %229 = arith.truncf %228 : vector<8x400xf32> to vector<8x400xbf16>
    %c0_156 = arith.constant 0 : index
    %c0_157 = arith.constant 0 : index
    %230 = vector.load %arg6[%c0_156, %c0_157] : memref<400x128xbf16, #tpu.memory_space<vmem>>, vector<400x128xbf16>
    %cst_158 = arith.constant dense<0.000000e+00> : vector<8x128xf32>
    %231 = tpu.matmul %229, %230, %cst_158 {dimension_numbers = #tpu.dot_dimension_numbers<[1], [0], [0], [1], [0, 0, 1, 1], [], []>} : vector<8x400xbf16>, vector<400x128xbf16>, vector<8x128xf32> -> vector<8x128xf32>
    %c0_159 = arith.constant 0 : index
    %c0_160 = arith.constant 0 : index
    %232 = vector.load %arg7[%c0_159, %c0_160] : memref<1x128xf32, #tpu.memory_space<vmem>>, vector<1x128xf32>
    %233 = vector.broadcast %232 : vector<1x128xf32> to vector<8x128xf32>
    %234 = arith.addf %231, %233 : vector<8x128xf32>
    %cst_161 = arith.constant 0.000000e+00 : f32
    %235 = vector.broadcast %cst_161 : f32 to vector<8x128xf32>
    %236 = arith.maximumf %234, %235 : vector<8x128xf32>
    %237 = arith.truncf %236 : vector<8x128xf32> to vector<8x128xbf16>
    %c0_162 = arith.constant 0 : index
    %c0_163 = arith.constant 0 : index
    %238 = vector.load %arg8[%c0_162, %c0_163] : memref<128x128xbf16, #tpu.memory_space<vmem>>, vector<128x128xbf16>
    %cst_164 = arith.constant dense<0.000000e+00> : vector<8x128xf32>
    %239 = tpu.matmul %237, %238, %cst_164 {dimension_numbers = #tpu.dot_dimension_numbers<[1], [0], [0], [1], [0, 0, 1, 1], [], []>} : vector<8x128xbf16>, vector<128x128xbf16>, vector<8x128xf32> -> vector<8x128xf32>
    %c0_165 = arith.constant 0 : index
    %c0_166 = arith.constant 0 : index
    %240 = vector.load %arg9[%c0_165, %c0_166] : memref<1x128xf32, #tpu.memory_space<vmem>>, vector<1x128xf32>
    %241 = vector.broadcast %240 : vector<1x128xf32> to vector<8x128xf32>
    %242 = arith.addf %239, %241 : vector<8x128xf32>
    %cst_167 = arith.constant 0.000000e+00 : f32
    %243 = vector.broadcast %cst_167 : f32 to vector<8x128xf32>
    %244 = arith.maximumf %242, %243 : vector<8x128xf32>
    %245 = arith.truncf %244 : vector<8x128xf32> to vector<8x128xbf16>
    %c0_168 = arith.constant 0 : index
    %c0_169 = arith.constant 0 : index
    %246 = vector.load %arg10[%c0_168, %c0_169] : memref<128x128xbf16, #tpu.memory_space<vmem>>, vector<128x128xbf16>
    %cst_170 = arith.constant dense<0.000000e+00> : vector<8x128xf32>
    %247 = tpu.matmul %245, %246, %cst_170 {dimension_numbers = #tpu.dot_dimension_numbers<[1], [0], [0], [1], [0, 0, 1, 1], [], []>} : vector<8x128xbf16>, vector<128x128xbf16>, vector<8x128xf32> -> vector<8x128xf32>
    %c0_171 = arith.constant 0 : index
    %c0_172 = arith.constant 0 : index
    %248 = vector.load %arg11[%c0_171, %c0_172] : memref<1x128xf32, #tpu.memory_space<vmem>>, vector<1x128xf32>
    %249 = vector.broadcast %248 : vector<1x128xf32> to vector<8x128xf32>
    %250 = arith.addf %247, %249 : vector<8x128xf32>
    %c0_173 = arith.constant 0 : index
    %c0_174 = arith.constant 0 : index
    %251 = vector.load %arg12[%c0_173, %c0_174] : memref<8x128xf32, #tpu.memory_space<vmem>>, vector<8x128xf32>
    tpu.vector_store %arg12[%c0_173, %c0_174], %250 {strides = array<i32>} : memref<8x128xf32, #tpu.memory_space<vmem>>, vector<8x128xf32>,
    return
  }
  func.func @transform_0(%arg0: i32) -> (i32, i32, i32) {
    %c0_i32 = arith.constant 0 : i32
    %c0_i32_0 = arith.constant 0 : i32
    %c0_i32_1 = arith.constant 0 : i32
    return %arg0, %c0_i32, %c0_i32_0 : i32, i32, i32
  }
  func.func @transform_1(%arg0: i32) -> (i32, i32, i32) {
    %c0_i32 = arith.constant 0 : i32
    %c0_i32_0 = arith.constant 0 : i32
    %c0_i32_1 = arith.constant 0 : i32
    %c0_i32_2 = arith.constant 0 : i32
    return %c0_i32, %c0_i32_0, %c0_i32_1 : i32, i32, i32
  }
  func.func @transform_2(%arg0: i32) -> (i32, i32, i32) {
    %c0_i32 = arith.constant 0 : i32
    %c0_i32_0 = arith.constant 0 : i32
    %c0_i32_1 = arith.constant 0 : i32
    %c0_i32_2 = arith.constant 0 : i32
    return %c0_i32, %c0_i32_0, %c0_i32_1 : i32, i32, i32
  }
  func.func @transform_3(%arg0: i32) -> (i32, i32, i32) {
    %c0_i32 = arith.constant 0 : i32
    %c0_i32_0 = arith.constant 0 : i32
    %c0_i32_1 = arith.constant 0 : i32
    %c0_i32_2 = arith.constant 0 : i32
    return %c0_i32, %c0_i32_0, %c0_i32_1 : i32, i32, i32
  }
  func.func @transform_4(%arg0: i32) -> (i32, i32, i32) {
    %c0_i32 = arith.constant 0 : i32
    %c0_i32_0 = arith.constant 0 : i32
    %c0_i32_1 = arith.constant 0 : i32
    %c0_i32_2 = arith.constant 0 : i32
    return %c0_i32, %c0_i32_0, %c0_i32_1 : i32, i32, i32
  }
  func.func @transform_5(%arg0: i32) -> (i32, i32) {
    %c0_i32 = arith.constant 0 : i32
    %c0_i32_0 = arith.constant 0 : i32
    %c0_i32_1 = arith.constant 0 : i32
    return %c0_i32, %c0_i32_0 : i32, i32
  }
  func.func @transform_6(%arg0: i32) -> (i32, i32) {
    %c0_i32 = arith.constant 0 : i32
    %c0_i32_0 = arith.constant 0 : i32
    %c0_i32_1 = arith.constant 0 : i32
    return %c0_i32, %c0_i32_0 : i32, i32
  }
  func.func @transform_7(%arg0: i32) -> (i32, i32) {
    %c0_i32 = arith.constant 0 : i32
    %c0_i32_0 = arith.constant 0 : i32
    %c0_i32_1 = arith.constant 0 : i32
    return %c0_i32, %c0_i32_0 : i32, i32
  }
  func.func @transform_8(%arg0: i32) -> (i32, i32) {
    %c0_i32 = arith.constant 0 : i32
    %c0_i32_0 = arith.constant 0 : i32
    %c0_i32_1 = arith.constant 0 : i32
    return %c0_i32, %c0_i32_0 : i32, i32
  }
  func.func @transform_9(%arg0: i32) -> (i32, i32) {
    %c0_i32 = arith.constant 0 : i32
    %c0_i32_0 = arith.constant 0 : i32
    %c0_i32_1 = arith.constant 0 : i32
    return %c0_i32, %c0_i32_0 : i32, i32
  }
  func.func @transform_10(%arg0: i32) -> (i32, i32) {
    %c0_i32 = arith.constant 0 : i32
    %c0_i32_0 = arith.constant 0 : i32
    %c0_i32_1 = arith.constant 0 : i32
    return %c0_i32, %c0_i32_0 : i32, i32
  }
  func.func @transform_11(%arg0: i32) -> (i32, i32) {
    %c0_i32 = arith.constant 0 : i32
    %c0_i32_0 = arith.constant 0 : i32
    return %arg0, %c0_i32 : i32, i32
  }
}

</mosaic_0001>

<bundles_post_ra>
// kernel: tile.13
= control target key start
LH: loop header
LB: loop body
LE: loop exit
PB: predicated region body
PF: predicated region fallthrough
CT: control target
= control target key end

     0   :  { %s40_s0 = inlined_call_operand.vmem [shape: f32[6], index: 0, kind: input, shape index: {}]   ;;  %s41_s1 = inlined_call_operand.vmem [shape: f32[28,6], index: 1, kind: output, shape index: {}]  }
   0x1   :  { %v4_v0 = vld [vmem:[%s40_s0] ss:$0 sm:$0xff] }
   0x2   :  { %5 = vst [vmem:[%s41_s1] sm:$0xff] %v4_v0  ;;  %12 = vst [vmem:[%s41_s1 + $0x8] sm:$0xff] %v4_v0 }
   0x3   :  { %13 = vst [vmem:[%s41_s1 + $0x10] sm:$0xff] %v4_v0  ;;  %14 = vst [vmem:[%s41_s1 + $0x18] sm:$0xff] %v4_v0 }

// kernel: tile.14
= control target key start
LH: loop header
LB: loop body
LE: loop exit
PB: predicated region body
PF: predicated region fallthrough
CT: control target
= control target key end

     0   :  { %vm9_vm0 = vcmask 15360   ;;  %s247_s12 = smov 126   ;;  %s248_s13 = smov 114   ;;  %vm3_vm1 = vcmask 48128   ;;  %vm13_vm2 = vcmask 31744   ;;  %vm16_vm3 = vcmask 1048560   ;;  %s377_s0 = inlined_call_operand.vmem [shape: f32[28,6], index: 0, kind: input, shape index: {}]   ;;  %s378_s1 = inlined_call_operand.vmem [shape: f32[1,1,168], index: 1, kind: output, shape index: {}]  }
   0x1   :  { %v191_v0 = vld [vmem:[%s377_s0 + $0x15] sm:$0x1]   ;;  %v194_v3 = vld [vmem:[%s377_s0 + $0x13] sm:$0x1]   ;;  %v193_v4 = vld [vmem:[%s377_s0 + $0x14] sm:$0x1]  }
   0x2   :  { %v192_v1 = vld [vmem:[%s377_s0 + $0x15] sm:$0x1]   ;;  %26 = vrot.lane.b32.xlu1 %v194_v3, %s248_s13  ;;  %v195_v5 = vld [vmem:[%s377_s0 + $0x12] sm:$0x1]   ;;  %s249_s18 = smov 120   ;;  %s250_s19 = smov 108  }
   0x3   :  { %v10_v2 = vsel %vm9_vm0, %v192_v1, %v191_v0  ;;  %v196_v6 = vld [vmem:[%s377_s0 + $0x11] sm:$0x1]   ;;  %v197_v7 = vld [vmem:[%s377_s0 + $0x10] sm:$0x1]   ;;  %s251_s24 = smov 102   ;;  %s252_s25 = smov 96  }
   0x4   :  { %11 = vrot.lane.b32.xlu0 %v10_v2, %s247_s12  ;;  %v198_v8 = vld [vmem:[%s377_s0 + $0xf] sm:$0x1]   ;;  %v199_v9 = vld [vmem:[%s377_s0 + $0xe] sm:$0x1]   ;;  %s253_s30 = smov 90   ;;  %s254_s2 = smov 84  }
   0x5   :  { %v2_v10 = vld [vmem:[%s377_s0] sm:$0x1]   ;;  %v200_v11 = vld [vmem:[%s377_s0 + $0xd] sm:$0x1]   ;;  %v201_v12 = vld [vmem:[%s377_s0 + $0xc] sm:$0x1]  }
   0x6   :  { %32 = vrot.lane.b32.xlu1 %v195_v5, %s250_s19  ;;  %4 = vst.msk [vmem:[#allocation0] sm:$0x1] %vm3_vm1, %v2_v10   ;;  %s255_s9 = smov 78   ;;  %s256_s10 = smov 72   ;;  %v202_v13 = vld [vmem:[%s377_s0 + $0xb] sm:$0x1]  }
   0x7   :  { %v203_v14 = vld [vmem:[%s377_s0 + $0xa] sm:$0x1]   ;;  %s257_s15 = smov 66   ;;  %s258_s16 = smov 60   ;;  %v204_v15 = vld [vmem:[%s377_s0 + $0x9] sm:$0x1]  }
   0x8   :  { %20 = vrot.lane.b32.xlu0 %v193_v4, %s249_s18  ;;  %v205_v16 = vld [vmem:[%s377_s0 + $0x8] sm:$0x1]   ;;  %s259_s21 = smov 54   ;;  %s260_s22 = smov 48   ;;  %v206_v17 = vld [vmem:[%s377_s0 + $0x7] sm:$0x1]  }
   0x9   :  { %v207_v18 = vld [vmem:[%s377_s0 + $0x6] sm:$0x1]   ;;  %s261_s27 = smov 42   ;;  %s262_s28 = smov 36   ;;  %v208_v19 = vld [vmem:[%s377_s0 + $0x1b] sm:$0x1]  }
   0xa   :  { %44 = vrot.lane.b32.xlu1 %v197_v7, %s252_s25  ;;  %v209_v20 = vld [vmem:[%s377_s0 + $0x5] sm:$0x1]   ;;  %s263_s4 = smov 34   ;;  %s264_s5 = smov 30   ;;  %v210_v21 = vld [vmem:[%s377_s0 + $0x1a] sm:$0x1]  }
   0xb   :  { %v211_v22 = vld [vmem:[%s377_s0 + $0x4] sm:$0x1]   ;;  %s266_s11 = smov 24   ;;  %v212_v23 = vld [vmem:[%s377_s0 + $0x19] sm:$0x1]   ;;  %s268_s17 = smov 18  }
   0xc   :  { %38 = vrot.lane.b32.xlu0 %v196_v6, %s251_s24  ;;  %v213_v24 = vld [vmem:[%s377_s0 + $0x3] sm:$0x1]   ;;  %v214_v25 = vld [vmem:[%s377_s0 + $0x18] sm:$0x1]   ;;  %v215_v26 = vld [vmem:[%s377_s0 + $0x2] sm:$0x1]  }
   0xd   :  { %s270_s23 = smov 12   ;;  %v216_v27 = vld [vmem:[%s377_s0 + $0x17] sm:$0x1]   ;;  %v217_v28 = vld [vmem:[%s377_s0 + $0x1] sm:$0x1]   ;;  %s272_s29 = smov 6  }
   0xe   :  { %56 = vrot.lane.b32.xlu1 %v199_v9, %s254_s2  ;;  %v218_v29 = vld [vmem:[%s377_s0 + $0x16] sm:$0x1]   ;;  %s273_s0 = smov 4   ;;  %vm22_vm4 = vcmask 1032128   ;;  %vm28_vm5 = vcmask 982928   ;;  %vm34_vm6 = vcmask 933728  }
   0xf   :  { %vm40_vm7 = vcmask 884528   ;;  %vm46_vm8 = vcmask 835328   ;;  %vm52_vm9 = vcmask 786128   ;;  %vm58_vm10 = vcmask 736928  }
  0x10   :  { %50 = vrot.lane.b32.xlu0 %v198_v8, %s253_s30  ;;  %vm64_vm11 = vcmask 687728   ;;  %vm70_vm12 = vcmask 638528   ;;  %vm76_vm13 = vcmask 589328   ;;  %vm82_vm14 = vcmask 540128  }
  0x11   :  { %vm88_vm15 = vcmask 490928   ;;  %vm94_vm0 = vcmask 441728   ;;  %vm100_vm1 = vcmask 392528  }
  0x12   :  { %68 = vrot.lane.b32.xlu1 %v201_v12, %s256_s10  ;;  %s265_s10 = smov 28  }
  0x14   :  { %62 = vrot.lane.b32.xlu0 %v200_v11, %s255_s9 }
  0x16   :  { %80 = vrot.lane.b32.xlu1 %v203_v14, %s258_s16  ;;  %s267_s16 = smov 22  }
  0x18   :  { %74 = vrot.lane.b32.xlu0 %v202_v13, %s257_s15 }
  0x1a   :  { %92 = vrot.lane.b32.xlu1 %v205_v16, %s260_s22  ;;  %s269_s22 = smov 16  }
  0x1c   :  { %86 = vrot.lane.b32.xlu0 %v204_v15, %s259_s21 }
  0x1e   :  { %104 = vrot.lane.b32.xlu1 %v207_v18, %s262_s28  ;;  %s271_s28 = smov 10  }
  0x20   :  { %98 = vrot.lane.b32.xlu0 %v206_v17, %s261_s27 }
  0x22   :  { %117 = vrot.lane.b32.xlu1 %v209_v20, %s264_s5 }
  0x24   :  { %110 = vrot.lane.b32.xlu0 %v208_v19, %s263_s4 }
  0x26   :  { %130 = vrot.lane.b32.xlu1 %v211_v22, %s266_s11 }
  0x28   :  { %123 = vrot.lane.b32.xlu0 %v210_v21, %s265_s10 }
  0x2a   :  { %143 = vrot.lane.b32.xlu1 %v213_v24, %s268_s17 }
  0x2c   :  { %136 = vrot.lane.b32.xlu0 %v212_v23, %s267_s16 }
  0x2e   :  { %156 = vrot.lane.b32.xlu1 %v215_v26, %s270_s23 }
  0x30   :  { %149 = vrot.lane.b32.xlu0 %v214_v25, %s269_s22 }
  0x32   :  { %169 = vrot.lane.b32.xlu1 %v217_v28, %s272_s29 }
  0x34   :  { %162 = vrot.lane.b32.xlu0 %v216_v27, %s271_s28 }
  0x38   :  { %175 = vrot.lane.b32.xlu0 %v218_v29, %s273_s0 }
  0x74   :  { %v27_v31 = vpop.permute.xlu1 %26  }
  0x76   :  { %v12_v30 = vpop.permute.xlu0 %11  }
  0x77   :  { %15 = vst.msk [vmem:[#allocation0 + $0x8] sm:$0x1] %vm13_vm2, %v12_v30   ;;  %vm106_vm2 = vcmask 343328  }
  0x78   :  { %17 = vst.msk [vmem:[#allocation0] sm:$0x1] %vm16_vm3, %v12_v30   ;;  %v33_v33 = vpop.permute.xlu1 %32   ;;  %vm112_vm3 = vcmask 326928  }
  0x7a   :  { %v21_v32 = vpop.permute.xlu0 %20  }
  0x7b   :  { %23 = vst.msk [vmem:[#allocation0] sm:$0x1] %vm22_vm4, %v21_v32   ;;  %vm119_vm4 = vcmask 294128  }
  0x7c   :  { %29 = vst.msk [vmem:[#allocation0] sm:$0x1] %vm28_vm5, %v27_v31   ;;  %v45_v35 = vpop.permute.xlu1 %44   ;;  %vm125_vm5 = vcmask 277728  }
  0x7d   :  { %35 = vst.msk [vmem:[#allocation0] sm:$0x1] %vm34_vm6, %v33_v33   ;;  %vm132_vm6 = vcmask 244928  }
  0x7e   :  { %v39_v34 = vpop.permute.xlu0 %38  }
  0x7f   :  { %41 = vst.msk [vmem:[#allocation0] sm:$0x1] %vm40_vm7, %v39_v34   ;;  %vm138_vm7 = vcmask 228528  }
  0x80   :  { %47 = vst.msk [vmem:[#allocation0] sm:$0x1] %vm46_vm8, %v45_v35   ;;  %v57_v37 = vpop.permute.xlu1 %56   ;;  %vm145_vm8 = vcmask 195728  }
  0x82   :  { %v51_v36 = vpop.permute.xlu0 %50  }
  0x83   :  { %53 = vst.msk [vmem:[#allocation0] sm:$0x1] %vm52_vm9, %v51_v36   ;;  %vm151_vm9 = vcmask 179328  }
  0x84   :  { %59 = vst.msk [vmem:[#allocation0] sm:$0x1] %vm58_vm10, %v57_v37   ;;  %v69_v39 = vpop.permute.xlu1 %68   ;;  %vm158_vm10 = vcmask 146528  }
  0x86   :  { %v63_v38 = vpop.permute.xlu0 %62  }
  0x87   :  { %65 = vst.msk [vmem:[#allocation0] sm:$0x1] %vm64_vm11, %v63_v38   ;;  %vm164_vm11 = vcmask 130128  }
  0x88   :  { %71 = vst.msk [vmem:[#allocation0] sm:$0x1] %vm70_vm12, %v69_v39   ;;  %v81_v41 = vpop.permute.xlu1 %80   ;;  %vm171_vm12 = vcmask 97328  }
  0x8a   :  { %v75_v40 = vpop.permute.xlu0 %74  }
  0x8b   :  { %77 = vst.msk [vmem:[#allocation0] sm:$0x1] %vm76_vm13, %v75_v40   ;;  %vm177_vm13 = vcmask 80928  }
  0x8c   :  { %83 = vst.msk [vmem:[#allocation0] sm:$0x1] %vm82_vm14, %v81_v41   ;;  %v93_v43 = vpop.permute.xlu1 %92  }
  0x8e   :  { %v87_v42 = vpop.permute.xlu0 %86  }
  0x8f   :  { %89 = vst.msk [vmem:[#allocation0] sm:$0x1] %vm88_vm15, %v87_v42  }
  0x90   :  { %95 = vst.msk [vmem:[#allocation0] sm:$0x1] %vm94_vm0, %v93_v43   ;;  %v105_v45 = vpop.permute.xlu1 %104  }
  0x92   :  { %v99_v44 = vpop.permute.xlu0 %98  }
  0x93   :  { %101 = vst.msk [vmem:[#allocation0] sm:$0x1] %vm100_vm1, %v99_v44  }
  0x94   :  { %107 = vst.msk [vmem:[#allocation0] sm:$0x1] %vm106_vm2, %v105_v45   ;;  %v118_v47 = vpop.permute.xlu1 %117  }
  0x95   :  { %120 = vst.msk [vmem:[#allocation0] sm:$0x1] %vm119_vm4, %v118_v47  }
  0x96   :  { %v111_v46 = vpop.permute.xlu0 %110  }
  0x97   :  { %114 = vst.msk [vmem:[#allocation0 + $0x8] sm:$0x1] %vm112_vm3, %v111_v46  }
  0x98   :  { %v131_v49 = vpop.permute.xlu1 %130  }
  0x99   :  { %133 = vst.msk [vmem:[#allocation0] sm:$0x1] %vm132_vm6, %v131_v49  }
  0x9a   :  { %v124_v48 = vpop.permute.xlu0 %123  }
  0x9b   :  { %127 = vst.msk [vmem:[#allocation0 + $0x8] sm:$0x1] %vm125_vm5, %v124_v48  }
  0x9c   :  { %v144_v51 = vpop.permute.xlu1 %143  }
  0x9d   :  { %146 = vst.msk [vmem:[#allocation0] sm:$0x1] %vm145_vm8, %v144_v51  }
  0x9e   :  { %v137_v50 = vpop.permute.xlu0 %136  }
  0x9f   :  { %140 = vst.msk [vmem:[#allocation0 + $0x8] sm:$0x1] %vm138_vm7, %v137_v50  }
  0xa0   :  { %v157_v53 = vpop.permute.xlu1 %156  }
  0xa1   :  { %159 = vst.msk [vmem:[#allocation0] sm:$0x1] %vm158_vm10, %v157_v53  }
  0xa2   :  { %v150_v52 = vpop.permute.xlu0 %149  }
  0xa3   :  { %153 = vst.msk [vmem:[#allocation0 + $0x8] sm:$0x1] %vm151_vm9, %v150_v52  }
  0xa4   :  { %v170_v55 = vpop.permute.xlu1 %169  }
  0xa5   :  { %172 = vst.msk [vmem:[#allocation0] sm:$0x1] %vm171_vm12, %v170_v55  }
  0xa6   :  { %v163_v54 = vpop.permute.xlu0 %162  }
  0xa7   :  { %166 = vst.msk [vmem:[#allocation0 + $0x8] sm:$0x1] %vm164_vm11, %v163_v54  }
  0xaa   :  { %v176_v56 = vpop.permute.xlu0 %175  }
  0xab   :  { %179 = vst.msk [vmem:[#allocation0 + $0x8] sm:$0x1] %vm177_vm13, %v176_v56  }
  0xac   :  { %v183_v57 = vld [vmem:[#allocation0] sm:$0x1] }
  0xad   :  { %185 = vst [vmem:[%s378_s1] sm:$0x1] %v183_v57 }
  0xb2   :  { %v187_v58 = vld [vmem:[#allocation0 + $0x8] sm:$0x1] }
  0xb3   :  { %219 = vst [vmem:[%s378_s1 + $0x1] sm:$0x1] %v187_v58 }

// kernel: tile.18
= control target key start
LH: loop header
LB: loop body
LE: loop exit
PB: predicated region body
PF: predicated region fallthrough
CT: control target
= control target key end

     0   :  { %s28_s0 = inlined_call_operand.vmem [shape: f32[16], index: 0, kind: input, shape index: {}]   ;;  %s29_s1 = inlined_call_operand.vmem [shape: f32[10,16], index: 1, kind: output, shape index: {}]  }
   0x1   :  { %v4_v0 = vld [vmem:[%s28_s0] ss:$0 sm:$0xff] }
   0x2   :  { %5 = vst [vmem:[%s29_s1] sm:$0xff] %v4_v0  ;;  %8 = vst [vmem:[%s29_s1 + $0x8] sm:$0xff] %v4_v0 }

// kernel: tile.19
= control target key start
LH: loop header
LB: loop body
LE: loop exit
PB: predicated region body
PF: predicated region fallthrough
CT: control target
= control target key end

     0   :  { %s75_s10 = smov 112   ;;  %s76_s11 = smov 80   ;;  %vm4_vm0 = vcmask 130048   ;;  %vm10_vm1 = vcmask 1048448   ;;  %vm16_vm2 = vcmask 917248   ;;  %vm22_vm3 = vcmask 786048   ;;  %s122_s0 = inlined_call_operand.vmem [shape: f32[10,16], index: 0, kind: input, shape index: {}]   ;;  %s123_s1 = inlined_call_operand.vmem [shape: f32[1,1,160], index: 1, kind: output, shape index: {}]  }
   0x1   :  { %v60_v0 = vld [vmem:[%s122_s0 + $0x7] sm:$0x1]   ;;  %v62_v1 = vld [vmem:[%s122_s0 + $0x5] sm:$0x1]   ;;  %v61_v2 = vld [vmem:[%s122_s0 + $0x6] sm:$0x1]  }
   0x2   :  { %8 = vrot.lane.b32.xlu0 %v60_v0, %s75_s10  ;;  %20 = vrot.lane.b32.xlu1 %v62_v1, %s76_s11  ;;  %v63_v3 = vld [vmem:[%s122_s0 + $0x4] sm:$0x1]   ;;  %s2_s16 = smov 3  ;;  %s77_s17 = smov 96   ;;  %v64_v5 = vld [vmem:[%s122_s0 + $0x3] sm:$0x1]  }
   0x3   :  { %s78_s18 = smov 64   ;;  %v3_v4 = vld [vmem:[%s122_s0] ss:$8 sm:%s2_s16]   ;;  %v65_v6 = vld [vmem:[%s122_s0 + $0x2] sm:$0x1]   ;;  %s43_s25 = smov 3 }
   0x4   :  { %5 = vst.msk [vmem:[#allocation0] ss:$8 sm:$0x3] %vm4_vm0, %v3_v4   ;;  %s79_s26 = smov 48   ;;  %s80_s27 = smov 32   ;;  %vm28_vm4 = vcmask 654848  }
   0x5   :  { %v66_v7 = vld [vmem:[%s122_s0 + $0x1] ss:$8 sm:%s43_s25]   ;;  %s81_s0 = smov 16   ;;  %vm34_vm5 = vcmask 523648   ;;  %vm40_vm6 = vcmask 392448   ;;  %vm47_vm7 = vcmask 261248  }
   0x6   :  { %14 = vrot.lane.b32.xlu0 %v61_v2, %s77_s17  ;;  %26 = vrot.lane.b32.xlu1 %v63_v3, %s78_s18 }
   0xa   :  { %32 = vrot.lane.b32.xlu0 %v64_v5, %s79_s26  ;;  %38 = vrot.lane.b32.xlu1 %v65_v6, %s80_s27 }
   0xe   :  { %45 = vrot.lane.b32.xlu0 %v66_v7, %s81_s0 }
  0x74   :  { %v9_v8 = vpop.permute.xlu0 %8   ;;  %v21_v9 = vpop.permute.xlu1 %20  }
  0x75   :  { %11 = vst.msk [vmem:[#allocation0] sm:$0x1] %vm10_vm1, %v9_v8  }
  0x78   :  { %v15_v10 = vpop.permute.xlu0 %14   ;;  %v27_v11 = vpop.permute.xlu1 %26  }
  0x79   :  { %17 = vst.msk [vmem:[#allocation0] sm:$0x1] %vm16_vm2, %v15_v10  }
  0x7a   :  { %23 = vst.msk [vmem:[#allocation0] sm:$0x1] %vm22_vm3, %v21_v9  }
  0x7b   :  { %29 = vst.msk [vmem:[#allocation0] sm:$0x1] %vm28_vm4, %v27_v11  }
  0x7c   :  { %v33_v12 = vpop.permute.xlu0 %32   ;;  %v39_v13 = vpop.permute.xlu1 %38  }
  0x7d   :  { %35 = vst.msk [vmem:[#allocation0] sm:$0x1] %vm34_vm5, %v33_v12  }
  0x7e   :  { %41 = vst.msk [vmem:[#allocation0] sm:$0x1] %vm40_vm6, %v39_v13  }
  0x80   :  { %v46_v14 = vpop.permute.xlu0 %45  }
  0x81   :  { %48 = vst.msk [vmem:[#allocation0] ss:$8 sm:$0x3] %vm47_vm7, %v46_v14  }
  0x88   :  { %v52_v15 = vld [vmem:[#allocation0] sm:$0x1]  ;;  %v56_v16 = vld [vmem:[#allocation0 + $0x8] sm:$0x1] }
  0x89   :  { %54 = vst [vmem:[%s123_s1] sm:$0x1] %v52_v15  ;;  %67 = vst [vmem:[%s123_s1 + $0x1] sm:$0x1] %v56_v16 }

// kernel: net_forward.1
= control target key start
LH: loop header
LB: loop body
LE: loop exit
PB: predicated region body
PF: predicated region fallthrough
CT: control target
= control target key end

     0   :  { %vm199_vm0 = vcmask 785408   ;;  %v17152_v0 = vmov 0   ;;  %vm130_vm1 = vsmask.f32 7424  ;;  %vm17160_vm2 = vcmask 1046528   ;;  %s11773_s16 = smov 116   ;;  %s17133_s1 = inlined_call_operand.vmem [shape: bf16[5,168,96], index: 1, kind: input, shape index: {}]   ;;  %s17134_s0 = inlined_call_operand.vmem [shape: f32[8,32,96], index: 0, kind: input, shape index: {}]   ;;  %s17135_s2 = inlined_call_operand.vmem [shape: f32[1,1,168], index: 2, kind: input, shape index: {}]   ;;  %s17136_s3 = inlined_call_operand.vmem [shape: bf16[5,160,84], index: 3, kind: input, shape index: {}]   ;;  %s17137_s4 = inlined_call_operand.vmem [shape: f32[1,1,160], index: 4, kind: input, shape index: {}]   ;;  %s17138_s5 = inlined_call_operand.vmem [shape: bf16[400,128], index: 5, kind: input, shape index: {}]   ;;  %s17139_s7 = inlined_call_operand.vmem [shape: bf16[128,128], index: 7, kind: input, shape index: {}]   ;;  %s17140_s9 = inlined_call_operand.vmem [shape: bf16[128,128], index: 9, kind: input, shape index: {}]   ;;  %s17141_s6 = inlined_call_operand.vmem [shape: f32[1,128], index: 6, kind: input, shape index: {}]   ;;  %s17142_s8 = inlined_call_operand.vmem [shape: f32[1,128], index: 8, kind: input, shape index: {}]   ;;  %s17143_s10 = inlined_call_operand.vmem [shape: f32[1,128], index: 10, kind: input, shape index: {}]   ;;  %s17144_s11 = inlined_call_operand.vmem [shape: f32[8,128], index: 11, kind: output, shape index: {}]  }
   0x1   :  { %239 = vmatprep.subr.bf16.mxu0 %v17152_v0  ;;  %313 = vmatprep.subr.bf16.mxu1 %v17152_v0  ;;  %v11601_v1 = vld [vmem:[%s17133_s1 + $0x54] sm:$0xff]   ;;  %v11602_v3 = vld [vmem:[%s17133_s1 + $0x5c] sm:$0xff]   ;;  %v11603_v5 = vld [vmem:[%s17133_s1 + $0x64] sm:$0xff]   ;;  %vm2059_vm3 = vsmask.f32 6400  ;;  %vm2760_vm4 = vcmask 1045504  }
   0x2   :  { %271 = vmatprep.mubr.bf16.mxu0 %v17152_v0  ;;  %345 = vmatprep.mubr.bf16.mxu1 %v17152_v0  ;;  %v11859_v2 = vsel %vm199_vm0, %v11601_v1, 0  ;;  %v11869_v4 = vsel %vm199_vm0, %v11602_v3, 0  ;;  %v11604_v6 = vld [vmem:[%s17133_s1 + $0x6c] sm:$0xff]   ;;  %v11605_v7 = vld [vmem:[%s17133_s1 + $0x74] sm:$0xff]   ;;  %v11885_v8 = vsel %vm199_vm0, %v11603_v5, 0  ;;  %v11606_v11 = vld [vmem:[%s17133_s1 + $0x7c] sm:$0xff]  }
   0x3   :  { %240 = vmatpush1.bf16.xpose.msra.mxu0 %v11859_v2  ;;  %314 = vmatpush1.bf16.xpose.msra.mxu1 %v11859_v2  ;;  %v11890_v9 = vsel %vm199_vm0, %v11604_v6, 0  ;;  %v11893_v10 = vsel %vm199_vm0, %v11605_v7, 0  ;;  %v11909_v12 = vsel %vm199_vm0, %v11606_v11, 0  ;;  %v11607_v13 = vld [vmem:[%s17133_s1 + $0x84] sm:$0xff]   ;;  %v11608_v15 = vld [vmem:[%s17133_s1 + $0x8c] sm:$0xff]   ;;  %v11609_v17 = vld [vmem:[%s17133_s1 + $0x94] sm:$0xff]  }
   0x4   :  { %241 = vmatprep.subr.bf16.mxu0 %v17152_v0  ;;  %315 = vmatprep.subr.bf16.mxu1 %v17152_v0  ;;  %v11919_v14 = vsel %vm199_vm0, %v11607_v13, 0  ;;  %v11929_v16 = vsel %vm199_vm0, %v11608_v15, 0  ;;  %v11939_v18 = vsel %vm199_vm0, %v11609_v17, 0  ;;  %v11610_v19 = vld [vmem:[%s17133_s1 + $0x9c] sm:$0xff]   ;;  %v40_v21 = vld [vmem:[%s17134_s0 + $0x8] sm:$0xff]  ;;  %v41_v24 = vld [vmem:[%s17134_s0 + $0x10] sm:$0xff] }
   0x5   :  { %v39_v20 = vld [vmem:[%s17134_s0] sm:$0xff]  ;;  %v44_v23 = vld [vmem:[%s17134_s0 + $0x28] sm:$0xff]  ;;  %v42_v25 = vld [vmem:[%s17134_s0 + $0x18] sm:$0xff]  ;;  %v11971_v28 = vsel %vm199_vm0, %v11610_v19, 0  ;;  %vm5375_vm6 = vcmask 48128   ;;  %vm5377_vm7 = vcmask 46080  }
   0x6   :  { %v43_v22 = vld [vmem:[%s17134_s0 + $0x20] sm:$0xff]  ;;  %v11966_v26 = vpack.c.bf16 %v40_v21, %v39_v20  ;;  %v45_v29 = vld [vmem:[%s17134_s0 + $0x30] sm:$0xff]  ;;  %v46_v30 = vld [vmem:[%s17134_s0 + $0x38] sm:$0xff]  ;;  %v11979_v31 = vpack.c.bf16 %v42_v25, %v41_v24  ;;  %s11774_s17 = smov 110   ;;  %s11775_s18 = smov 104   ;;  %vm6550_vm8 = vcmask 687104  }
   0x7   :  { %v11968_v27 = vpack.c.bf16 %v44_v23, %v43_v22  ;;  %v11984_v33 = vpack.c.bf16 %v46_v30, %v45_v29  ;;  %v11611_v35 = vld [vmem:[%s17133_s1 + $0xa4] ss:$0 sps:$4 sm:$0xff]   ;;  %v48_v54 = vld [vmem:[%s17134_s0 + $0x48] sm:$0xff]  ;;  %v49_v58 = vld [vmem:[%s17134_s0 + $0x50] sm:$0xff]  ;;  %s11776_s19 = smov 98   ;;  %s11777_s20 = smov 92  }
   0x8   :  { %v134_v32 = vshll.u32 %v11966_v26, 16  ;;  %v132_v36 = vshrl.u32 %v11966_v26, 16  ;;  %v139_v37 = vshll.u32 %v11979_v31, 16  ;;  %v12001_v42 = vsel %vm199_vm0, %v11611_v35, 0  ;;  %v47_v53 = vld [vmem:[%s17134_s0 + $0x40] sm:$0xff]  ;;  %v52_v56 = vld [vmem:[%s17134_s0 + $0x68] sm:$0xff] }
   0x9   :  { %v295_v34 = vshll.u32 %v11968_v27, 16  ;;  %v293_v39 = vshrl.u32 %v11968_v27, 16  ;;  %v300_v41 = vshll.u32 %v11984_v33, 16  ;;  %v143_v49 = vshrl.u32 %v11979_v31, 16  ;;  %v51_v55 = vld [vmem:[%s17134_s0 + $0x60] sm:$0xff]  ;;  %v50_v60 = vld [vmem:[%s17134_s0 + $0x58] sm:$0xff] }
   0xa   :  { %v136_v38 = vrot.slane %v134_v32, 1  ;;  %v141_v44 = vrot.slane %v139_v37, 1  ;;  %v304_v50 = vshrl.u32 %v11984_v33, 16  ;;  %v12079_v57 = vpack.c.bf16 %v48_v54, %v47_v53  ;;  %v53_v61 = vld [vmem:[%s17134_s0 + $0x70] sm:$0xff]  ;;  %v54_v62 = vld [vmem:[%s17134_s0 + $0x78] sm:$0xff]  ;;  %s11778_s23 = smov 86  }
   0xb   :  { %242 = vmatpush1.bf16.xpose.msra.mxu0 %v11869_v4  ;;  %316 = vmatpush1.bf16.xpose.msra.mxu1 %v11869_v4  ;;  %v297_v40 = vrot.slane %v295_v34, 1  ;;  %v302_v46 = vrot.slane %v300_v41, 1  ;;  %v12084_v59 = vpack.c.bf16 %v52_v56, %v51_v55  ;;  %v12098_v1 = vpack.c.bf16 %v50_v60, %v49_v58  ;;  %s11779_s26 = smov 80   ;;  %s11780_s28 = smov 74  }
   0xc   :  { %243 = vmatprep.subr.bf16.mxu0 %v17152_v0  ;;  %317 = vmatprep.subr.bf16.mxu1 %v17152_v0  ;;  %v137_v43 = vor.u32 %v136_v38, %v132_v36  ;;  %v145_v51 = vor.u32 %v143_v49, %v141_v44  ;;  %v369_v63 = vshll.u32 %v12079_v57, 16  ;;  %v12100_v3 = vpack.c.bf16 %v54_v62, %v53_v61  ;;  %v55_v38 = vld [vmem:[%s17134_s0 + $0x80] sm:$0xff]  ;;  %s11781_s12 = smov 62   ;;  %s11783_s22 = smov 50  }
   0xd   :  { %v298_v45 = vor.u32 %v297_v40, %v293_v39  ;;  %v306_v52 = vor.u32 %v304_v50, %v302_v46  ;;  %v443_v5 = vshll.u32 %v12084_v59, 16  ;;  %v367_v6 = vshrl.u32 %v12079_v57, 16  ;;  %v56_v40 = vld [vmem:[%s17134_s0 + $0x88] sm:$0xff]  ;;  %s11786_s13 = smov 96   ;;  %s11787_s14 = smov 64  }
   0xe   :  { %v142_v47 = vsel %vm130_vm1, %v137_v43, %v141_v44  ;;  %v371_v7 = vrot.slane %v369_v63, 1  ;;  %v374_v11 = vshll.u32 %v12098_v1, 16  ;;  %v441_v13 = vshrl.u32 %v12084_v59, 16  ;;  %v59_v43 = vld [vmem:[%s17134_s0 + $0xa0] sm:$0xff]  ;;  %v60_v44 = vld [vmem:[%s17134_s0 + $0xa8] sm:$0xff] }
   0xf   :  { %v303_v48 = vsel %vm130_vm1, %v298_v45, %v302_v46  ;;  %v445_v15 = vrot.slane %v443_v5, 1  ;;  %v448_v17 = vshll.u32 %v12100_v3, 16  ;;  %v378_v25 = vshrl.u32 %v12098_v1, 16  ;;  %v57_v46 = vld [vmem:[%s17134_s0 + $0x90] sm:$0xff] }
  0x10   :  { %v372_v19 = vor.u32 %v371_v7, %v367_v6  ;;  %v376_v20 = vrot.slane %v374_v11, 1  ;;  %v452_v29 = vshrl.u32 %v12100_v3, 16  ;;  %v12189_v45 = vpack.c.bf16 %v56_v40, %v55_v38 }
  0x11   :  { %v446_v21 = vor.u32 %v445_v15, %v441_v13  ;;  %v450_v22 = vrot.slane %v448_v17, 1  ;;  %vm6051_vm9 = vcmask 998400   ;;  %vm5457_vm10 = vcmask 97328  }
  0x12   :  { %v377_v23 = vsel %vm130_vm1, %v372_v19, %v376_v20  ;;  %v380_v30 = vor.u32 %v378_v25, %v376_v20  ;;  %v517_v53 = vshll.u32 %v12189_v45, 16  ;;  %v515_v58 = vshrl.u32 %v12189_v45, 16 }
  0x13   :  { %244 = vmatpush1.bf16.xpose.msra.mxu0 %v11885_v8  ;;  %318 = vmatpush1.bf16.xpose.msra.mxu1 %v11885_v8  ;;  %v451_v24 = vsel %vm130_vm1, %v446_v21, %v450_v22  ;;  %v454_v35 = vor.u32 %v452_v29, %v450_v22  ;;  %vm5523_vm11 = vcmask 146528   ;;  %vm5459_vm12 = vcmask 95280  }
  0x14   :  { %245 = vmatprep.subr.bf16.mxu0 %v17152_v0  ;;  %319 = vmatprep.subr.bf16.mxu1 %v17152_v0  ;;  %v519_v60 = vrot.slane %v517_v53, 1  ;;  %vm17179_vm13 = vcmask 195728   ;;  %vm17177_vm14 = vcmask 144480   ;;  %vm17175_vm15 = vcmask 244928  }
  0x16   :  { %v520_v19 = vor.u32 %v519_v60, %v515_v58 }
  0x1b   :  { %246 = vmatpush1.bf16.xpose.msra.mxu0 %v11890_v9  ;;  %320 = vmatpush1.bf16.xpose.msra.mxu1 %v11890_v9 }
  0x1c   :  { %247 = vmatprep.subr.bf16.mxu0 %v17152_v0  ;;  %321 = vmatprep.subr.bf16.mxu1 %v17152_v0 }
  0x23   :  { %248 = vmatpush1.bf16.xpose.msra.mxu0 %v11893_v10  ;;  %322 = vmatpush1.bf16.xpose.msra.mxu1 %v11893_v10 }
  0x24   :  { %249 = vmatprep.subr.bf16.mxu0 %v17152_v0  ;;  %323 = vmatprep.subr.bf16.mxu1 %v17152_v0 }
  0x2b   :  { %250 = vmatpush1.bf16.xpose.msra.mxu0 %v11909_v12  ;;  %324 = vmatpush1.bf16.xpose.msra.mxu1 %v11909_v12 }
  0x2c   :  { %251 = vmatprep.subr.bf16.mxu0 %v17152_v0  ;;  %325 = vmatprep.subr.bf16.mxu1 %v17152_v0 }
  0x33   :  { %252 = vmatpush1.bf16.xpose.msra.mxu0 %v11919_v14  ;;  %326 = vmatpush1.bf16.xpose.msra.mxu1 %v11919_v14 }
  0x34   :  { %253 = vmatprep.subr.bf16.mxu0 %v17152_v0  ;;  %327 = vmatprep.subr.bf16.mxu1 %v17152_v0 }
  0x3b   :  { %254 = vmatpush1.bf16.xpose.msra.mxu0 %v11929_v16  ;;  %328 = vmatpush1.bf16.xpose.msra.mxu1 %v11929_v16 }
  0x3c   :  { %255 = vmatprep.subr.bf16.mxu0 %v17152_v0  ;;  %329 = vmatprep.subr.bf16.mxu1 %v17152_v0 }
  0x43   :  { %256 = vmatpush1.bf16.xpose.msra.mxu0 %v11939_v18  ;;  %330 = vmatpush1.bf16.xpose.msra.mxu1 %v11939_v18 }
  0x44   :  { %257 = vmatprep.subr.bf16.mxu0 %v17152_v0  ;;  %331 = vmatprep.subr.bf16.mxu1 %v17152_v0 }
  0x4b   :  { %258 = vmatpush1.bf16.xpose.msra.mxu0 %v11971_v28  ;;  %332 = vmatpush1.bf16.xpose.msra.mxu1 %v11971_v28 }
  0x4c   :  { %259 = vmatprep.subr.bf16.mxu0 %v17152_v0  ;;  %333 = vmatprep.subr.bf16.mxu1 %v17152_v0 }
  0x53   :  { %260 = vmatpush1.bf16.xpose.msra.mxu0 %v12001_v42  ;;  %334 = vmatpush1.bf16.xpose.msra.mxu1 %v12001_v42 }
  0x54   :  { %387 = vmatprep.subr.bf16.mxu0 %v17152_v0  ;;  %461 = vmatprep.subr.bf16.mxu1 %v17152_v0 }
  0x5a   :  { %10714 = vmatmul.mubr.msk.bf16.vlgmr.msra.gmra.mrb[0].mxu0 %vm199_vm0, %v142_v47  ;;  %10716 = vmatmul.mubr.msk.bf16.vlgmr.msra.gmra.mrb[0].mxu1 %vm199_vm0, %v303_v48  ;;  %v12194_v47 = vpack.c.bf16 %v60_v44, %v59_v43  ;;  %v58_v48 = vld [vmem:[%s17134_s0 + $0x98] sm:$0xff] }
  0x5b   :  { %388 = vmatpush1.bf16.xpose.msra.mxu0 %v11859_v2  ;;  %462 = vmatpush1.bf16.xpose.msra.mxu1 %v11859_v2  ;;  %v12208_v54 = vpack.c.bf16 %v58_v48, %v57_v46  ;;  %v70_v43 = vld [vmem:[%s17134_s0 + $0xf8] sm:$0xff] }
  0x5c   :  { %389 = vmatprep.subr.bf16.mxu0 %v17152_v0  ;;  %463 = vmatprep.subr.bf16.mxu1 %v17152_v0  ;;  %v591_v56 = vshll.u32 %v12194_v47, 16  ;;  %v589_v62 = vshrl.u32 %v12194_v47, 16 }
  0x5d   :  { %281 = vmatprep.mubr.bf16.mxu0 %v17152_v0  ;;  %355 = vmatprep.mubr.bf16.mxu1 %v17152_v0  ;;  %v522_v61 = vshll.u32 %v12208_v54, 16 }
  0x5e   :  { %v593_v7 = vrot.slane %v591_v56, 1 }
  0x5f   :  { %v524_v20 = vrot.slane %v522_v61, 1 }
  0x60   :  { %v594_v21 = vor.u32 %v593_v7, %v589_v62 }
  0x62   :  { %10715 = vmatmul.mubr.msk.bf16.gmra.mrb[4].mxu0 %vm199_vm0, %v145_v51  ;;  %10717 = vmatmul.mubr.msk.bf16.gmra.mrb[4].mxu1 %vm199_vm0, %v306_v52  ;;  %v61_v51 = vld [vmem:[%s17134_s0 + $0xb0] sm:$0xff]  ;;  %v62_v52 = vld [vmem:[%s17134_s0 + $0xb8] sm:$0xff] }
  0x63   :  { %390 = vmatpush1.bf16.xpose.msra.mxu0 %v11869_v4  ;;  %464 = vmatpush1.bf16.xpose.msra.mxu1 %v11869_v4  ;;  %v12210_v55 = vpack.c.bf16 %v62_v52, %v61_v51 }
  0x64   :  { %391 = vmatprep.subr.bf16.mxu0 %v17152_v0  ;;  %465 = vmatprep.subr.bf16.mxu1 %v17152_v0 }
  0x65   :  { %419 = vmatprep.mubr.bf16.mxu0 %v17152_v0  ;;  %493 = vmatprep.mubr.bf16.mxu1 %v17152_v0  ;;  %v596_v15 = vshll.u32 %v12210_v55, 16 }
  0x67   :  { %v598_v22 = vrot.slane %v596_v15, 1 }
  0x6b   :  { %392 = vmatpush1.bf16.xpose.msra.mxu0 %v11885_v8  ;;  %466 = vmatpush1.bf16.xpose.msra.mxu1 %v11885_v8 }
  0x6c   :  { %393 = vmatprep.subr.bf16.mxu0 %v17152_v0  ;;  %467 = vmatprep.subr.bf16.mxu1 %v17152_v0 }
  0x73   :  { %394 = vmatpush1.bf16.xpose.msra.mxu0 %v11890_v9  ;;  %468 = vmatpush1.bf16.xpose.msra.mxu1 %v11890_v9 }
  0x74   :  { %395 = vmatprep.subr.bf16.mxu0 %v17152_v0  ;;  %469 = vmatprep.subr.bf16.mxu1 %v17152_v0 }
  0x7b   :  { %396 = vmatpush1.bf16.xpose.msra.mxu0 %v11893_v10  ;;  %470 = vmatpush1.bf16.xpose.msra.mxu1 %v11893_v10 }
  0x7c   :  { %397 = vmatprep.subr.bf16.mxu0 %v17152_v0  ;;  %471 = vmatprep.subr.bf16.mxu1 %v17152_v0 }
  0x83   :  { %398 = vmatpush1.bf16.xpose.msra.mxu0 %v11909_v12  ;;  %472 = vmatpush1.bf16.xpose.msra.mxu1 %v11909_v12 }
  0x84   :  { %399 = vmatprep.subr.bf16.mxu0 %v17152_v0  ;;  %473 = vmatprep.subr.bf16.mxu1 %v17152_v0 }
  0x8b   :  { %400 = vmatpush1.bf16.xpose.msra.mxu0 %v11919_v14  ;;  %474 = vmatpush1.bf16.xpose.msra.mxu1 %v11919_v14 }
  0x8c   :  { %401 = vmatprep.subr.bf16.mxu0 %v17152_v0  ;;  %475 = vmatprep.subr.bf16.mxu1 %v17152_v0 }
  0x93   :  { %402 = vmatpush1.bf16.xpose.msra.mxu0 %v11929_v16  ;;  %476 = vmatpush1.bf16.xpose.msra.mxu1 %v11929_v16 }
  0x94   :  { %403 = vmatprep.subr.bf16.mxu0 %v17152_v0  ;;  %477 = vmatprep.subr.bf16.mxu1 %v17152_v0 }
  0x9b   :  { %404 = vmatpush1.bf16.xpose.msra.mxu0 %v11939_v18  ;;  %478 = vmatpush1.bf16.xpose.msra.mxu1 %v11939_v18 }
  0x9c   :  { %405 = vmatprep.subr.bf16.mxu0 %v17152_v0  ;;  %479 = vmatprep.subr.bf16.mxu1 %v17152_v0 }
  0xa3   :  { %406 = vmatpush1.bf16.xpose.msra.mxu0 %v11971_v28  ;;  %480 = vmatpush1.bf16.xpose.msra.mxu1 %v11971_v28 }
  0xa4   :  { %407 = vmatprep.subr.bf16.mxu0 %v17152_v0  ;;  %481 = vmatprep.subr.bf16.mxu1 %v17152_v0 }
  0xab   :  { %408 = vmatpush1.bf16.xpose.msra.mxu0 %v12001_v42  ;;  %482 = vmatpush1.bf16.xpose.msra.mxu1 %v12001_v42 }
  0xac   :  { %535 = vmatprep.subr.bf16.mxu0 %v17152_v0  ;;  %609 = vmatprep.subr.bf16.mxu1 %v17152_v0 }
  0xb2   :  { %10718 = vmatmul.mubr.msk.bf16.vlgmr.msra.gmra.mrb[8].mxu0 %vm199_vm0, %v377_v23  ;;  %10720 = vmatmul.mubr.msk.bf16.vlgmr.msra.gmra.mrb[8].mxu1 %vm199_vm0, %v451_v24  ;;  %v525_v23 = vsel %vm130_vm1, %v520_v19, %v524_v20  ;;  %v599_v24 = vsel %vm130_vm1, %v594_v21, %v598_v22 }
  0xb3   :  { %536 = vmatpush1.bf16.xpose.msra.mxu0 %v11859_v2  ;;  %610 = vmatpush1.bf16.xpose.msra.mxu1 %v11859_v2 }
  0xb4   :  { %537 = vmatprep.subr.bf16.mxu0 %v17152_v0  ;;  %611 = vmatprep.subr.bf16.mxu1 %v17152_v0 }
  0xb5   :  { %429 = vmatprep.mubr.bf16.mxu0 %v17152_v0  ;;  %503 = vmatprep.mubr.bf16.mxu1 %v17152_v0 }
  0xba   :  { %10719 = vmatmul.mubr.msk.bf16.gmra.mrb[12].mxu0 %vm199_vm0, %v380_v30  ;;  %10721 = vmatmul.mubr.msk.bf16.gmra.mrb[12].mxu1 %vm199_vm0, %v454_v35  ;;  %v526_v30 = vshrl.u32 %v12208_v54, 16  ;;  %v600_v35 = vshrl.u32 %v12210_v55, 16 }
  0xbb   :  { %538 = vmatpush1.bf16.xpose.msra.mxu0 %v11869_v4  ;;  %612 = vmatpush1.bf16.xpose.msra.mxu1 %v11869_v4 }
  0xbc   :  { %539 = vmatprep.subr.bf16.mxu0 %v17152_v0  ;;  %613 = vmatprep.subr.bf16.mxu1 %v17152_v0  ;;  %v528_v38 = vor.u32 %v526_v30, %v524_v20  ;;  %v602_v40 = vor.u32 %v600_v35, %v598_v22 }
  0xbd   :  { %567 = vmatprep.mubr.bf16.mxu0 %v17152_v0  ;;  %641 = vmatprep.mubr.bf16.mxu1 %v17152_v0 }
  0xc3   :  { %540 = vmatpush1.bf16.xpose.msra.mxu0 %v11885_v8  ;;  %614 = vmatpush1.bf16.xpose.msra.mxu1 %v11885_v8 }
  0xc4   :  { %541 = vmatprep.subr.bf16.mxu0 %v17152_v0  ;;  %615 = vmatprep.subr.bf16.mxu1 %v17152_v0 }
  0xcb   :  { %542 = vmatpush1.bf16.xpose.msra.mxu0 %v11890_v9  ;;  %616 = vmatpush1.bf16.xpose.msra.mxu1 %v11890_v9 }
  0xcc   :  { %543 = vmatprep.subr.bf16.mxu0 %v17152_v0  ;;  %617 = vmatprep.subr.bf16.mxu1 %v17152_v0 }
  0xd3   :  { %544 = vmatpush1.bf16.xpose.msra.mxu0 %v11893_v10  ;;  %618 = vmatpush1.bf16.xpose.msra.mxu1 %v11893_v10 }
  0xd4   :  { %545 = vmatprep.subr.bf16.mxu0 %v17152_v0  ;;  %619 = vmatprep.subr.bf16.mxu1 %v17152_v0 }
  0xdb   :  { %546 = vmatpush1.bf16.xpose.msra.mxu0 %v11909_v12  ;;  %620 = vmatpush1.bf16.xpose.msra.mxu1 %v11909_v12 }
  0xdc   :  { %547 = vmatprep.subr.bf16.mxu0 %v17152_v0  ;;  %621 = vmatprep.subr.bf16.mxu1 %v17152_v0 }
  0xe3   :  { %548 = vmatpush1.bf16.xpose.msra.mxu0 %v11919_v14  ;;  %622 = vmatpush1.bf16.xpose.msra.mxu1 %v11919_v14 }
  0xe4   :  { %549 = vmatprep.subr.bf16.mxu0 %v17152_v0  ;;  %623 = vmatprep.subr.bf16.mxu1 %v17152_v0 }
  0xeb   :  { %550 = vmatpush1.bf16.xpose.msra.mxu0 %v11929_v16  ;;  %624 = vmatpush1.bf16.xpose.msra.mxu1 %v11929_v16 }
  0xec   :  { %551 = vmatprep.subr.bf16.mxu0 %v17152_v0  ;;  %625 = vmatprep.subr.bf16.mxu1 %v17152_v0 }
  0xf3   :  { %552 = vmatpush1.bf16.xpose.msra.mxu0 %v11939_v18  ;;  %626 = vmatpush1.bf16.xpose.msra.mxu1 %v11939_v18 }
  0xf4   :  { %553 = vmatprep.subr.bf16.mxu0 %v17152_v0  ;;  %627 = vmatprep.subr.bf16.mxu1 %v17152_v0 }
  0xfb   :  { %554 = vmatpush1.bf16.xpose.msra.mxu0 %v11971_v28  ;;  %628 = vmatpush1.bf16.xpose.msra.mxu1 %v11971_v28 }
  0xfc   :  { %555 = vmatprep.subr.bf16.mxu0 %v17152_v0  ;;  %629 = vmatprep.subr.bf16.mxu1 %v17152_v0 }
 0x103   :  { %556 = vmatpush1.bf16.xpose.msra.mxu0 %v12001_v42  ;;  %630 = vmatpush1.bf16.xpose.msra.mxu1 %v12001_v42 }
 0x104   :  { %683 = vmatprep.subr.bf16.mxu0 %v17152_v0  ;;  %757 = vmatprep.subr.bf16.mxu1 %v17152_v0 }
 0x10a   :  { %10722 = vmatmul.mubr.msk.bf16.vlgmr.msra.gmra.mrb[16].mxu0 %vm199_vm0, %v525_v23  ;;  %10724 = vmatmul.mubr.msk.bf16.vlgmr.msra.gmra.mrb[16].mxu1 %vm199_vm0, %v599_v24 }
 0x10b   :  { %684 = vmatpush1.bf16.xpose.msra.mxu0 %v11859_v2  ;;  %758 = vmatpush1.bf16.xpose.msra.mxu1 %v11859_v2  ;;  %v63_v2 = vld [vmem:[%s17134_s0 + $0xc0] sm:$0xff] }
 0x10c   :  { %685 = vmatprep.subr.bf16.mxu0 %v17152_v0  ;;  %759 = vmatprep.subr.bf16.mxu1 %v17152_v0 }
 0x10d   :  { %577 = vmatprep.mubr.bf16.mxu0 %v17152_v0  ;;  %651 = vmatprep.mubr.bf16.mxu1 %v17152_v0 }
 0x112   :  { %10723 = vmatmul.mubr.msk.bf16.gmra.mrb[20].mxu0 %vm199_vm0, %v528_v38  ;;  %10725 = vmatmul.mubr.msk.bf16.gmra.mrb[20].mxu1 %vm199_vm0, %v602_v40 }
 0x113   :  { %686 = vmatpush1.bf16.xpose.msra.mxu0 %v11869_v4  ;;  %760 = vmatpush1.bf16.xpose.msra.mxu1 %v11869_v4  ;;  %v64_v4 = vld [vmem:[%s17134_s0 + $0xc8] sm:$0xff] }
 0x114   :  { %687 = vmatprep.subr.bf16.mxu0 %v17152_v0  ;;  %761 = vmatprep.subr.bf16.mxu1 %v17152_v0 }
 0x115   :  { %715 = vmatprep.mubr.bf16.mxu0 %v17152_v0  ;;  %789 = vmatprep.mubr.bf16.mxu1 %v17152_v0 }
 0x11b   :  { %688 = vmatpush1.bf16.xpose.msra.mxu0 %v11885_v8  ;;  %762 = vmatpush1.bf16.xpose.msra.mxu1 %v11885_v8  ;;  %v67_v8 = vld [vmem:[%s17134_s0 + $0xe0] sm:$0xff] }
 0x11c   :  { %689 = vmatprep.subr.bf16.mxu0 %v17152_v0  ;;  %763 = vmatprep.subr.bf16.mxu1 %v17152_v0 }
 0x123   :  { %690 = vmatpush1.bf16.xpose.msra.mxu0 %v11890_v9  ;;  %764 = vmatpush1.bf16.xpose.msra.mxu1 %v11890_v9  ;;  %v68_v9 = vld [vmem:[%s17134_s0 + $0xe8] sm:$0xff] }
 0x124   :  { %691 = vmatprep.subr.bf16.mxu0 %v17152_v0  ;;  %765 = vmatprep.subr.bf16.mxu1 %v17152_v0 }
 0x12b   :  { %692 = vmatpush1.bf16.xpose.msra.mxu0 %v11893_v10  ;;  %766 = vmatpush1.bf16.xpose.msra.mxu1 %v11893_v10  ;;  %v12299_v10 = vpack.c.bf16 %v64_v4, %v63_v2 }
 0x12c   :  { %693 = vmatprep.subr.bf16.mxu0 %v17152_v0  ;;  %767 = vmatprep.subr.bf16.mxu1 %v17152_v0 }
 0x12d   :  { %v665_v44 = vshll.u32 %v12299_v10, 16  ;;  %v663_v52 = vshrl.u32 %v12299_v10, 16 }
 0x12f   :  { %v667_v60 = vrot.slane %v665_v44, 1 }
 0x131   :  { %v668_v21 = vor.u32 %v667_v60, %v663_v52 }
 0x133   :  { %694 = vmatpush1.bf16.xpose.msra.mxu0 %v11909_v12  ;;  %768 = vmatpush1.bf16.xpose.msra.mxu1 %v11909_v12  ;;  %v65_v12 = vld [vmem:[%s17134_s0 + $0xd0] sm:$0xff] }
 0x134   :  { %695 = vmatprep.subr.bf16.mxu0 %v17152_v0  ;;  %769 = vmatprep.subr.bf16.mxu1 %v17152_v0 }
 0x13b   :  { %696 = vmatpush1.bf16.xpose.msra.mxu0 %v11919_v14  ;;  %770 = vmatpush1.bf16.xpose.msra.mxu1 %v11919_v14  ;;  %v12304_v14 = vpack.c.bf16 %v68_v9, %v67_v8  ;;  %v11613_v9 = vld [vmem:[%s17133_s1 + $0x8] sm:$0xff]  }
 0x13c   :  { %697 = vmatprep.subr.bf16.mxu0 %v17152_v0  ;;  %771 = vmatprep.subr.bf16.mxu1 %v17152_v0 }
 0x13d   :  { %v17146_v51 = vshll.u32 %v12304_v14, 16  ;;  %v737_v19 = vshrl.u32 %v12304_v14, 16 }
 0x143   :  { %698 = vmatpush1.bf16.xpose.msra.mxu0 %v11929_v16  ;;  %772 = vmatpush1.bf16.xpose.msra.mxu1 %v11929_v16  ;;  %v66_v16 = vld [vmem:[%s17134_s0 + $0xd8] sm:$0xff] }
 0x144   :  { %699 = vmatprep.subr.bf16.mxu0 %v17152_v0  ;;  %773 = vmatprep.subr.bf16.mxu1 %v17152_v0  ;;  %v12318_v46 = vpack.c.bf16 %v66_v16, %v65_v12 }
 0x146   :  { %v670_v7 = vshll.u32 %v12318_v46, 16  ;;  %v674_v4 = vshrl.u32 %v12318_v46, 16 }
 0x148   :  { %v672_v22 = vrot.slane %v670_v7, 1 }
 0x14a   :  { %v673_v38 = vsel %vm130_vm1, %v668_v21, %v672_v22  ;;  %v676_v12 = vor.u32 %v674_v4, %v672_v22  ;;  %v11616_v22 = vld [vmem:[%s17133_s1 + $0x20] sm:$0xff]  }
 0x14b   :  { %700 = vmatpush1.bf16.xpose.msra.mxu0 %v11939_v18  ;;  %774 = vmatpush1.bf16.xpose.msra.mxu1 %v11939_v18  ;;  %v69_v18 = vld [vmem:[%s17134_s0 + $0xf0] sm:$0xff]  ;;  %s11784_s0 = smov 68  }
 0x14c   :  { %701 = vmatprep.subr.bf16.mxu0 %v17152_v0  ;;  %775 = vmatprep.subr.bf16.mxu1 %v17152_v0  ;;  %v12320_v48 = vpack.c.bf16 %v70_v43, %v69_v18  ;;  %v12371_v18 = vsel %vm199_vm0, %v11613_v9, 0  ;;  %v11614_v43 = vld [vmem:[%s17133_s1 + $0x10] sm:$0xff]   ;;  %v11619_v9 = vld [vmem:[%s17133_s1 + $0x38] sm:$0xff]  }
 0x14d   :  { %v12385_v60 = vsel %vm199_vm0, %v11614_v43, 0 }
 0x14e   :  { %v17145_v20 = vshll.u32 %v12320_v48, 16  ;;  %v748_v8 = vshrl.u32 %v12320_v48, 16 }
 0x150   :  { %v746_v24 = vrot.slane %v17145_v20, 1  ;;  %v1528_v20 = vrot.slane %v11984_v33, 1 }
 0x152   :  { %v750_v16 = vor.u32 %v748_v8, %v746_v24 }
 0x153   :  { %702 = vmatpush1.bf16.xpose.msra.mxu0 %v11971_v28  ;;  %776 = vmatpush1.bf16.xpose.msra.mxu1 %v11971_v28  ;;  %v741_v28 = vrot.slane %v17146_v51, 1 }
 0x154   :  { %703 = vmatprep.subr.bf16.mxu0 %v17152_v0  ;;  %777 = vmatprep.subr.bf16.mxu1 %v17152_v0 }
 0x155   :  { %v742_v23 = vor.u32 %v741_v28, %v737_v19  ;;  %v11615_v28 = vld [vmem:[%s17133_s1 + $0x18] sm:$0xff]  }
 0x156   :  { %v12395_v21 = vsel %vm199_vm0, %v11615_v28, 0  ;;  %v11621_v28 = vld [vmem:[%s17133_s1 + $0x48] sm:$0xff]  }
 0x157   :  { %v747_v40 = vsel %vm130_vm1, %v742_v23, %v746_v24  ;;  %v12405_v23 = vsel %vm199_vm0, %v11616_v22, 0  ;;  %v11617_v24 = vld [vmem:[%s17133_s1 + $0x28] sm:$0xff]   ;;  %v12455_v22 = vsel %vm199_vm0, %v11621_v28, 0  ;;  %vm17178_vm1 = vcmask 294128  }
 0x15b   :  { %704 = vmatpush1.bf16.xpose.msra.mxu0 %v12001_v42  ;;  %778 = vmatpush1.bf16.xpose.msra.mxu1 %v12001_v42  ;;  %v11612_v42 = vld [vmem:[%s17133_s1] sm:$0xff]  }
 0x15c   :  { %900 = vmatprep.subr.bf16.mxu0 %v17152_v0  ;;  %957 = vmatprep.subr.bf16.mxu1 %v17152_v0  ;;  %v12351_v2 = vsel %vm199_vm0, %v11612_v42, 0  ;;  %v12415_v42 = vsel %vm199_vm0, %v11617_v24, 0  ;;  %v11622_v24 = vld [vmem:[%s17133_s1 + $0x50] ss:$0 sps:$4 sm:$0xff]  }
 0x162   :  { %10726 = vmatmul.mubr.msk.bf16.vlgmr.msra.gmra.mrb[24].mxu0 %vm199_vm0, %v673_v38  ;;  %10728 = vmatmul.mubr.msk.bf16.vlgmr.msra.gmra.mrb[24].mxu1 %vm199_vm0, %v747_v40  ;;  %v11618_v38 = vld [vmem:[%s17133_s1 + $0x30] sm:$0xff]  }
 0x163   :  { %901 = vmatpush1.bf16.xpose.msra.mxu0 %v12351_v2  ;;  %958 = vmatpush1.bf16.xpose.msra.mxu1 %v12351_v2  ;;  %v12425_v40 = vsel %vm199_vm0, %v11618_v38, 0  ;;  %v12465_v38 = vsel %vm199_vm0, %v11622_v24, 0 }
 0x164   :  { %902 = vmatprep.subr.bf16.mxu0 %v17152_v0  ;;  %959 = vmatprep.subr.bf16.mxu1 %v17152_v0 }
 0x165   :  { %725 = vmatprep.mubr.bf16.mxu0 %v17152_v0  ;;  %799 = vmatprep.mubr.bf16.mxu1 %v17152_v0 }
 0x16a   :  { %10727 = vmatmul.mubr.msk.bf16.gmra.mrb[28].mxu0 %vm199_vm0, %v676_v12  ;;  %10729 = vmatmul.mubr.msk.bf16.gmra.mrb[28].mxu1 %vm199_vm0, %v750_v16  ;;  %v12435_v12 = vsel %vm199_vm0, %v11619_v9, 0  ;;  %v11620_v16 = vld [vmem:[%s17133_s1 + $0x40] sm:$0xff]  }
 0x16b   :  { %903 = vmatpush1.bf16.xpose.msra.mxu0 %v12371_v18  ;;  %960 = vmatpush1.bf16.xpose.msra.mxu1 %v12371_v18  ;;  %v12445_v43 = vsel %vm199_vm0, %v11620_v16, 0 }
 0x16c   :  { %904 = vmatprep.subr.bf16.mxu0 %v17152_v0  ;;  %961 = vmatprep.subr.bf16.mxu1 %v17152_v0 }
 0x16d   :  { %932 = vmatprep.mubr.bf16.mxu0 %v17152_v0  ;;  %989 = vmatprep.mubr.bf16.mxu1 %v17152_v0 }
 0x173   :  { %905 = vmatpush1.bf16.xpose.msra.mxu0 %v12385_v60  ;;  %962 = vmatpush1.bf16.xpose.msra.mxu1 %v12385_v60 }
 0x174   :  { %906 = vmatprep.subr.bf16.mxu0 %v17152_v0  ;;  %963 = vmatprep.subr.bf16.mxu1 %v17152_v0 }
 0x17b   :  { %907 = vmatpush1.bf16.xpose.msra.mxu0 %v12395_v21  ;;  %964 = vmatpush1.bf16.xpose.msra.mxu1 %v12395_v21 }
 0x17c   :  { %908 = vmatprep.subr.bf16.mxu0 %v17152_v0  ;;  %965 = vmatprep.subr.bf16.mxu1 %v17152_v0 }
 0x183   :  { %909 = vmatpush1.bf16.xpose.msra.mxu0 %v12405_v23  ;;  %966 = vmatpush1.bf16.xpose.msra.mxu1 %v12405_v23 }
 0x184   :  { %910 = vmatprep.subr.bf16.mxu0 %v17152_v0  ;;  %967 = vmatprep.subr.bf16.mxu1 %v17152_v0 }
 0x18b   :  { %911 = vmatpush1.bf16.xpose.msra.mxu0 %v12415_v42  ;;  %968 = vmatpush1.bf16.xpose.msra.mxu1 %v12415_v42 }
 0x18c   :  { %912 = vmatprep.subr.bf16.mxu0 %v17152_v0  ;;  %969 = vmatprep.subr.bf16.mxu1 %v17152_v0 }
 0x193   :  { %913 = vmatpush1.bf16.xpose.msra.mxu0 %v12425_v40  ;;  %970 = vmatpush1.bf16.xpose.msra.mxu1 %v12425_v40 }
 0x194   :  { %914 = vmatprep.subr.bf16.mxu0 %v17152_v0  ;;  %971 = vmatprep.subr.bf16.mxu1 %v17152_v0 }
 0x19b   :  { %915 = vmatpush1.bf16.xpose.msra.mxu0 %v12435_v12  ;;  %972 = vmatpush1.bf16.xpose.msra.mxu1 %v12435_v12 }
 0x19c   :  { %916 = vmatprep.subr.bf16.mxu0 %v17152_v0  ;;  %973 = vmatprep.subr.bf16.mxu1 %v17152_v0 }
 0x1a3   :  { %917 = vmatpush1.bf16.xpose.msra.mxu0 %v12445_v43  ;;  %974 = vmatpush1.bf16.xpose.msra.mxu1 %v12445_v43 }
 0x1a4   :  { %918 = vmatprep.subr.bf16.mxu0 %v17152_v0  ;;  %975 = vmatprep.subr.bf16.mxu1 %v17152_v0 }
 0x1ab   :  { %919 = vmatpush1.bf16.xpose.msra.mxu0 %v12455_v22  ;;  %976 = vmatpush1.bf16.xpose.msra.mxu1 %v12455_v22 }
 0x1ac   :  { %920 = vmatprep.subr.bf16.mxu0 %v17152_v0  ;;  %977 = vmatprep.subr.bf16.mxu1 %v17152_v0 }
 0x1b3   :  { %921 = vmatpush1.bf16.xpose.msra.mxu0 %v12465_v38  ;;  %978 = vmatpush1.bf16.xpose.msra.mxu1 %v12465_v38 }
 0x1b4   :  { %1014 = vmatprep.subr.bf16.mxu0 %v17152_v0  ;;  %1071 = vmatprep.subr.bf16.mxu1 %v17152_v0 }
 0x1ba   :  { %10741 = vmatmul.mubr.msk.bf16.vlgmr.msra.gmra.mrb[0].mxu0 %vm199_vm0, %v11966_v26  ;;  %10743 = vmatmul.mubr.msk.bf16.vlgmr.msra.gmra.mrb[0].mxu1 %vm199_vm0, %v11968_v27 }
 0x1bb   :  { %1015 = vmatpush1.bf16.xpose.msra.mxu0 %v12351_v2  ;;  %1072 = vmatpush1.bf16.xpose.msra.mxu1 %v12351_v2 }
 0x1bc   :  { %1016 = vmatprep.subr.bf16.mxu0 %v17152_v0  ;;  %1073 = vmatprep.subr.bf16.mxu1 %v17152_v0 }
 0x1bd   :  { %942 = vmatprep.mubr.bf16.mxu0 %v17152_v0  ;;  %999 = vmatprep.mubr.bf16.mxu1 %v17152_v0 }
 0x1c2   :  { %10742 = vmatmul.mubr.msk.bf16.gmra.mrb[4].mxu0 %vm199_vm0, %v11979_v31  ;;  %10744 = vmatmul.mubr.msk.bf16.gmra.mrb[4].mxu1 %vm199_vm0, %v11984_v33 }
 0x1c3   :  { %1017 = vmatpush1.bf16.xpose.msra.mxu0 %v12371_v18  ;;  %1074 = vmatpush1.bf16.xpose.msra.mxu1 %v12371_v18 }
 0x1c4   :  { %1018 = vmatprep.subr.bf16.mxu0 %v17152_v0  ;;  %1075 = vmatprep.subr.bf16.mxu1 %v17152_v0 }
 0x1c5   :  { %1046 = vmatprep.mubr.bf16.mxu0 %v17152_v0  ;;  %1103 = vmatprep.mubr.bf16.mxu1 %v17152_v0 }
 0x1cb   :  { %1019 = vmatpush1.bf16.xpose.msra.mxu0 %v12385_v60  ;;  %1076 = vmatpush1.bf16.xpose.msra.mxu1 %v12385_v60 }
 0x1cc   :  { %1020 = vmatprep.subr.bf16.mxu0 %v17152_v0  ;;  %1077 = vmatprep.subr.bf16.mxu1 %v17152_v0 }
 0x1d3   :  { %1021 = vmatpush1.bf16.xpose.msra.mxu0 %v12395_v21  ;;  %1078 = vmatpush1.bf16.xpose.msra.mxu1 %v12395_v21 }
 0x1d4   :  { %1022 = vmatprep.subr.bf16.mxu0 %v17152_v0  ;;  %1079 = vmatprep.subr.bf16.mxu1 %v17152_v0 }
 0x1db   :  { %1023 = vmatpush1.bf16.xpose.msra.mxu0 %v12405_v23  ;;  %1080 = vmatpush1.bf16.xpose.msra.mxu1 %v12405_v23 }
 0x1dc   :  { %1024 = vmatprep.subr.bf16.mxu0 %v17152_v0  ;;  %1081 = vmatprep.subr.bf16.mxu1 %v17152_v0 }
 0x1e3   :  { %1025 = vmatpush1.bf16.xpose.msra.mxu0 %v12415_v42  ;;  %1082 = vmatpush1.bf16.xpose.msra.mxu1 %v12415_v42 }
 0x1e4   :  { %1026 = vmatprep.subr.bf16.mxu0 %v17152_v0  ;;  %1083 = vmatprep.subr.bf16.mxu1 %v17152_v0 }
 0x1eb   :  { %1027 = vmatpush1.bf16.xpose.msra.mxu0 %v12425_v40  ;;  %1084 = vmatpush1.bf16.xpose.msra.mxu1 %v12425_v40 }
 0x1ec   :  { %1028 = vmatprep.subr.bf16.mxu0 %v17152_v0  ;;  %1085 = vmatprep.subr.bf16.mxu1 %v17152_v0 }
 0x1f3   :  { %1029 = vmatpush1.bf16.xpose.msra.mxu0 %v12435_v12  ;;  %1086 = vmatpush1.bf16.xpose.msra.mxu1 %v12435_v12 }
 0x1f4   :  { %1030 = vmatprep.subr.bf16.mxu0 %v17152_v0  ;;  %1087 = vmatprep.subr.bf16.mxu1 %v17152_v0 }
 0x1fb   :  { %1031 = vmatpush1.bf16.xpose.msra.mxu0 %v12445_v43  ;;  %1088 = vmatpush1.bf16.xpose.msra.mxu1 %v12445_v43 }
 0x1fc   :  { %1032 = vmatprep.subr.bf16.mxu0 %v17152_v0  ;;  %1089 = vmatprep.subr.bf16.mxu1 %v17152_v0 }
 0x203   :  { %1033 = vmatpush1.bf16.xpose.msra.mxu0 %v12455_v22  ;;  %1090 = vmatpush1.bf16.xpose.msra.mxu1 %v12455_v22 }
 0x204   :  { %1034 = vmatprep.subr.bf16.mxu0 %v17152_v0  ;;  %1091 = vmatprep.subr.bf16.mxu1 %v17152_v0 }
 0x20b   :  { %1035 = vmatpush1.bf16.xpose.msra.mxu0 %v12465_v38  ;;  %1092 = vmatpush1.bf16.xpose.msra.mxu1 %v12465_v38 }
 0x20c   :  { %1128 = vmatprep.subr.bf16.mxu0 %v17152_v0  ;;  %1185 = vmatprep.subr.bf16.mxu1 %v17152_v0 }
 0x212   :  { %10745 = vmatmul.mubr.msk.bf16.vlgmr.msra.gmra.mrb[8].mxu0 %vm199_vm0, %v12079_v57  ;;  %10747 = vmatmul.mubr.msk.bf16.vlgmr.msra.gmra.mrb[8].mxu1 %vm199_vm0, %v12084_v59 }
 0x213   :  { %1129 = vmatpush1.bf16.xpose.msra.mxu0 %v12351_v2  ;;  %1186 = vmatpush1.bf16.xpose.msra.mxu1 %v12351_v2 }
 0x214   :  { %1130 = vmatprep.subr.bf16.mxu0 %v17152_v0  ;;  %1187 = vmatprep.subr.bf16.mxu1 %v17152_v0 }
 0x215   :  { %1056 = vmatprep.mubr.bf16.mxu0 %v17152_v0  ;;  %1113 = vmatprep.mubr.bf16.mxu1 %v17152_v0 }
 0x21a   :  { %10746 = vmatmul.mubr.msk.bf16.gmra.mrb[12].mxu0 %vm199_vm0, %v12098_v1  ;;  %10748 = vmatmul.mubr.msk.bf16.gmra.mrb[12].mxu1 %vm199_vm0, %v12100_v3 }
 0x21b   :  { %1131 = vmatpush1.bf16.xpose.msra.mxu0 %v12371_v18  ;;  %1188 = vmatpush1.bf16.xpose.msra.mxu1 %v12371_v18 }
 0x21c   :  { %1132 = vmatprep.subr.bf16.mxu0 %v17152_v0  ;;  %1189 = vmatprep.subr.bf16.mxu1 %v17152_v0 }
 0x21d   :  { %1160 = vmatprep.mubr.bf16.mxu0 %v17152_v0  ;;  %1217 = vmatprep.mubr.bf16.mxu1 %v17152_v0 }
 0x223   :  { %1133 = vmatpush1.bf16.xpose.msra.mxu0 %v12385_v60  ;;  %1190 = vmatpush1.bf16.xpose.msra.mxu1 %v12385_v60 }
 0x224   :  { %1134 = vmatprep.subr.bf16.mxu0 %v17152_v0  ;;  %1191 = vmatprep.subr.bf16.mxu1 %v17152_v0 }
 0x22b   :  { %1135 = vmatpush1.bf16.xpose.msra.mxu0 %v12395_v21  ;;  %1192 = vmatpush1.bf16.xpose.msra.mxu1 %v12395_v21 }
 0x22c   :  { %1136 = vmatprep.subr.bf16.mxu0 %v17152_v0  ;;  %1193 = vmatprep.subr.bf16.mxu1 %v17152_v0 }
 0x233   :  { %1137 = vmatpush1.bf16.xpose.msra.mxu0 %v12405_v23  ;;  %1194 = vmatpush1.bf16.xpose.msra.mxu1 %v12405_v23 }
 0x234   :  { %1138 = vmatprep.subr.bf16.mxu0 %v17152_v0  ;;  %1195 = vmatprep.subr.bf16.mxu1 %v17152_v0 }
 0x23b   :  { %1139 = vmatpush1.bf16.xpose.msra.mxu0 %v12415_v42  ;;  %1196 = vmatpush1.bf16.xpose.msra.mxu1 %v12415_v42 }
 0x23c   :  { %1140 = vmatprep.subr.bf16.mxu0 %v17152_v0  ;;  %1197 = vmatprep.subr.bf16.mxu1 %v17152_v0 }
 0x243   :  { %1141 = vmatpush1.bf16.xpose.msra.mxu0 %v12425_v40  ;;  %1198 = vmatpush1.bf16.xpose.msra.mxu1 %v12425_v40 }
 0x244   :  { %1142 = vmatprep.subr.bf16.mxu0 %v17152_v0  ;;  %1199 = vmatprep.subr.bf16.mxu1 %v17152_v0 }
 0x24b   :  { %1143 = vmatpush1.bf16.xpose.msra.mxu0 %v12435_v12  ;;  %1200 = vmatpush1.bf16.xpose.msra.mxu1 %v12435_v12 }
 0x24c   :  { %1144 = vmatprep.subr.bf16.mxu0 %v17152_v0  ;;  %1201 = vmatprep.subr.bf16.mxu1 %v17152_v0 }
 0x253   :  { %1145 = vmatpush1.bf16.xpose.msra.mxu0 %v12445_v43  ;;  %1202 = vmatpush1.bf16.xpose.msra.mxu1 %v12445_v43 }
 0x254   :  { %1146 = vmatprep.subr.bf16.mxu0 %v17152_v0  ;;  %1203 = vmatprep.subr.bf16.mxu1 %v17152_v0 }
 0x25b   :  { %1147 = vmatpush1.bf16.xpose.msra.mxu0 %v12455_v22  ;;  %1204 = vmatpush1.bf16.xpose.msra.mxu1 %v12455_v22 }
 0x25c   :  { %1148 = vmatprep.subr.bf16.mxu0 %v17152_v0  ;;  %1205 = vmatprep.subr.bf16.mxu1 %v17152_v0 }
 0x263   :  { %1149 = vmatpush1.bf16.xpose.msra.mxu0 %v12465_v38  ;;  %1206 = vmatpush1.bf16.xpose.msra.mxu1 %v12465_v38 }
 0x264   :  { %1242 = vmatprep.subr.bf16.mxu0 %v17152_v0  ;;  %1299 = vmatprep.subr.bf16.mxu1 %v17152_v0 }
 0x26a   :  { %10749 = vmatmul.mubr.msk.bf16.vlgmr.msra.gmra.mrb[16].mxu0 %vm199_vm0, %v12189_v45  ;;  %10751 = vmatmul.mubr.msk.bf16.vlgmr.msra.gmra.mrb[16].mxu1 %vm199_vm0, %v12194_v47 }
 0x26b   :  { %1243 = vmatpush1.bf16.xpose.msra.mxu0 %v12351_v2  ;;  %1300 = vmatpush1.bf16.xpose.msra.mxu1 %v12351_v2  ;;  %v11623_v2 = vld [vmem:[%s17133_s1 + $0xa8] sm:$0xff]  }
 0x26c   :  { %1244 = vmatprep.subr.bf16.mxu0 %v17152_v0  ;;  %1301 = vmatprep.subr.bf16.mxu1 %v17152_v0 }
 0x26d   :  { %1170 = vmatprep.mubr.bf16.mxu0 %v17152_v0  ;;  %1227 = vmatprep.mubr.bf16.mxu1 %v17152_v0 }
 0x272   :  { %10750 = vmatmul.mubr.msk.bf16.gmra.mrb[20].mxu0 %vm199_vm0, %v12208_v54  ;;  %10752 = vmatmul.mubr.msk.bf16.gmra.mrb[20].mxu1 %vm199_vm0, %v12210_v55 }
 0x273   :  { %1245 = vmatpush1.bf16.xpose.msra.mxu0 %v12371_v18  ;;  %1302 = vmatpush1.bf16.xpose.msra.mxu1 %v12371_v18  ;;  %v12643_v18 = vsel %vm199_vm0, %v11623_v2, 0 }
 0x274   :  { %1246 = vmatprep.subr.bf16.mxu0 %v17152_v0  ;;  %1303 = vmatprep.subr.bf16.mxu1 %v17152_v0 }
 0x275   :  { %1274 = vmatprep.mubr.bf16.mxu0 %v17152_v0  ;;  %1331 = vmatprep.mubr.bf16.mxu1 %v17152_v0 }
 0x27b   :  { %1247 = vmatpush1.bf16.xpose.msra.mxu0 %v12385_v60  ;;  %1304 = vmatpush1.bf16.xpose.msra.mxu1 %v12385_v60  ;;  %v11624_v60 = vld [vmem:[%s17133_s1 + $0xb0] sm:$0xff]  }
 0x27c   :  { %1248 = vmatprep.subr.bf16.mxu0 %v17152_v0  ;;  %1305 = vmatprep.subr.bf16.mxu1 %v17152_v0 }
 0x283   :  { %1249 = vmatpush1.bf16.xpose.msra.mxu0 %v12395_v21  ;;  %1306 = vmatpush1.bf16.xpose.msra.mxu1 %v12395_v21  ;;  %v12659_v21 = vsel %vm199_vm0, %v11624_v60, 0  ;;  %v11631_v60 = vld [vmem:[%s17133_s1 + $0xe8] sm:$0xff]  }
 0x284   :  { %1250 = vmatprep.subr.bf16.mxu0 %v17152_v0  ;;  %1307 = vmatprep.subr.bf16.mxu1 %v17152_v0 }
 0x28b   :  { %1251 = vmatpush1.bf16.xpose.msra.mxu0 %v12405_v23  ;;  %1308 = vmatpush1.bf16.xpose.msra.mxu1 %v12405_v23  ;;  %v11625_v23 = vld [vmem:[%s17133_s1 + $0xb8] sm:$0xff]  }
 0x28c   :  { %1252 = vmatprep.subr.bf16.mxu0 %v17152_v0  ;;  %1309 = vmatprep.subr.bf16.mxu1 %v17152_v0 }
 0x293   :  { %1253 = vmatpush1.bf16.xpose.msra.mxu0 %v12415_v42  ;;  %1310 = vmatpush1.bf16.xpose.msra.mxu1 %v12415_v42  ;;  %v12675_v42 = vsel %vm199_vm0, %v11625_v23, 0  ;;  %v12735_v23 = vsel %vm199_vm0, %v11631_v60, 0  ;;  %v1378_v60 = vrot.slane %v11979_v31, 1 }
 0x294   :  { %1254 = vmatprep.subr.bf16.mxu0 %v17152_v0  ;;  %1311 = vmatprep.subr.bf16.mxu1 %v17152_v0 }
 0x29b   :  { %1255 = vmatpush1.bf16.xpose.msra.mxu0 %v12425_v40  ;;  %1312 = vmatpush1.bf16.xpose.msra.mxu1 %v12425_v40  ;;  %v11626_v40 = vld [vmem:[%s17133_s1 + $0xc0] sm:$0xff]  }
 0x29c   :  { %1256 = vmatprep.subr.bf16.mxu0 %v17152_v0  ;;  %1313 = vmatprep.subr.bf16.mxu1 %v17152_v0  ;;  %v12685_v9 = vsel %vm199_vm0, %v11626_v40, 0  ;;  %v11632_v40 = vld [vmem:[%s17133_s1 + $0xf0] sm:$0xff]  }
 0x2a3   :  { %1257 = vmatpush1.bf16.xpose.msra.mxu0 %v12435_v12  ;;  %1314 = vmatpush1.bf16.xpose.msra.mxu1 %v12435_v12  ;;  %v11627_v12 = vld [vmem:[%s17133_s1 + $0xc8] sm:$0xff]  }
 0x2a4   :  { %1258 = vmatprep.subr.bf16.mxu0 %v17152_v0  ;;  %1315 = vmatprep.subr.bf16.mxu1 %v17152_v0  ;;  %v12695_v16 = vsel %vm199_vm0, %v11627_v12, 0  ;;  %v12745_v12 = vsel %vm199_vm0, %v11632_v40, 0  ;;  %v1527_v40 = vrot.slane %v11968_v27, 1 }
 0x2a6   :  { %v1529_v51 = vsel %vm17160_vm2, %v1527_v40, %v1528_v20 }
 0x2ab   :  { %1259 = vmatpush1.bf16.xpose.msra.mxu0 %v12445_v43  ;;  %1316 = vmatpush1.bf16.xpose.msra.mxu1 %v12445_v43  ;;  %v11628_v43 = vld [vmem:[%s17133_s1 + $0xd0] sm:$0xff]  }
 0x2ac   :  { %1260 = vmatprep.subr.bf16.mxu0 %v17152_v0  ;;  %1317 = vmatprep.subr.bf16.mxu1 %v17152_v0  ;;  %v12705_v28 = vsel %vm199_vm0, %v11628_v43, 0  ;;  %v11633_v43 = vld [vmem:[%s17133_s1 + $0xf8] ss:$0 sps:$4 sm:$0xff]  }
 0x2b3   :  { %1261 = vmatpush1.bf16.xpose.msra.mxu0 %v12455_v22  ;;  %1318 = vmatpush1.bf16.xpose.msra.mxu1 %v12455_v22  ;;  %v11629_v22 = vld [vmem:[%s17133_s1 + $0xd8] sm:$0xff]  }
 0x2b4   :  { %1262 = vmatprep.subr.bf16.mxu0 %v17152_v0  ;;  %1319 = vmatprep.subr.bf16.mxu1 %v17152_v0  ;;  %v12715_v24 = vsel %vm199_vm0, %v11629_v22, 0  ;;  %v12755_v22 = vsel %vm199_vm0, %v11633_v43, 0 }
 0x2bb   :  { %1263 = vmatpush1.bf16.xpose.msra.mxu0 %v12465_v38  ;;  %1320 = vmatpush1.bf16.xpose.msra.mxu1 %v12465_v38  ;;  %v11630_v38 = vld [vmem:[%s17133_s1 + $0xe0] sm:$0xff]  }
 0x2bc   :  { %1472 = vmatprep.subr.bf16.mxu0 %v17152_v0  ;;  %1536 = vmatprep.subr.bf16.mxu1 %v17152_v0  ;;  %v12725_v2 = vsel %vm199_vm0, %v11630_v38, 0  ;;  %v1377_v38 = vrot.slane %v11966_v26, 1 }
 0x2be   :  { %v1379_v43 = vsel %vm17160_vm2, %v1377_v38, %v1378_v60  ;;  %v1655_v38 = vrot.slane %v12084_v59, 1 }
 0x2c2   :  { %10753 = vmatmul.mubr.msk.bf16.vlgmr.msra.gmra.mrb[24].mxu0 %vm199_vm0, %v12299_v10  ;;  %10755 = vmatmul.mubr.msk.bf16.vlgmr.msra.gmra.mrb[24].mxu1 %vm199_vm0, %v12304_v14 }
 0x2c3   :  { %1473 = vmatpush1.bf16.xpose.msra.mxu0 %v12643_v18  ;;  %1537 = vmatpush1.bf16.xpose.msra.mxu1 %v12643_v18 }
 0x2c4   :  { %1474 = vmatprep.subr.bf16.mxu0 %v17152_v0  ;;  %1538 = vmatprep.subr.bf16.mxu1 %v17152_v0 }
 0x2c5   :  { %1284 = vmatprep.mubr.bf16.mxu0 %v17152_v0  ;;  %1341 = vmatprep.mubr.bf16.mxu1 %v17152_v0 }
 0x2ca   :  { %10754 = vmatmul.mubr.msk.bf16.gmra.mrb[28].mxu0 %vm199_vm0, %v12318_v46  ;;  %10756 = vmatmul.mubr.msk.bf16.gmra.mrb[28].mxu1 %vm199_vm0, %v12320_v48 }
 0x2cb   :  { %1475 = vmatpush1.bf16.xpose.msra.mxu0 %v12659_v21  ;;  %1539 = vmatpush1.bf16.xpose.msra.mxu1 %v12659_v21 }
 0x2cc   :  { %1476 = vmatprep.subr.bf16.mxu0 %v17152_v0  ;;  %1540 = vmatprep.subr.bf16.mxu1 %v17152_v0 }
 0x2cd   :  { %1504 = vmatprep.mubr.bf16.mxu0 %v17152_v0  ;;  %1568 = vmatprep.mubr.bf16.mxu1 %v17152_v0 }
 0x2d3   :  { %1477 = vmatpush1.bf16.xpose.msra.mxu0 %v12675_v42  ;;  %1541 = vmatpush1.bf16.xpose.msra.mxu1 %v12675_v42 }
 0x2d4   :  { %1478 = vmatprep.subr.bf16.mxu0 %v17152_v0  ;;  %1542 = vmatprep.subr.bf16.mxu1 %v17152_v0 }
 0x2db   :  { %1479 = vmatpush1.bf16.xpose.msra.mxu0 %v12685_v9  ;;  %1543 = vmatpush1.bf16.xpose.msra.mxu1 %v12685_v9 }
 0x2dc   :  { %1480 = vmatprep.subr.bf16.mxu0 %v17152_v0  ;;  %1544 = vmatprep.subr.bf16.mxu1 %v17152_v0 }
 0x2e3   :  { %1481 = vmatpush1.bf16.xpose.msra.mxu0 %v12695_v16  ;;  %1545 = vmatpush1.bf16.xpose.msra.mxu1 %v12695_v16 }
 0x2e4   :  { %1482 = vmatprep.subr.bf16.mxu0 %v17152_v0  ;;  %1546 = vmatprep.subr.bf16.mxu1 %v17152_v0 }
 0x2eb   :  { %1483 = vmatpush1.bf16.xpose.msra.mxu0 %v12705_v28  ;;  %1547 = vmatpush1.bf16.xpose.msra.mxu1 %v12705_v28 }
 0x2ec   :  { %1484 = vmatprep.subr.bf16.mxu0 %v17152_v0  ;;  %1548 = vmatprep.subr.bf16.mxu1 %v17152_v0 }
 0x2f3   :  { %1485 = vmatpush1.bf16.xpose.msra.mxu0 %v12715_v24  ;;  %1549 = vmatpush1.bf16.xpose.msra.mxu1 %v12715_v24 }
 0x2f4   :  { %1486 = vmatprep.subr.bf16.mxu0 %v17152_v0  ;;  %1550 = vmatprep.subr.bf16.mxu1 %v17152_v0 }
 0x2fb   :  { %1487 = vmatpush1.bf16.xpose.msra.mxu0 %v12725_v2  ;;  %1551 = vmatpush1.bf16.xpose.msra.mxu1 %v12725_v2 }
 0x2fc   :  { %1488 = vmatprep.subr.bf16.mxu0 %v17152_v0  ;;  %1552 = vmatprep.subr.bf16.mxu1 %v17152_v0 }
 0x303   :  { %1489 = vmatpush1.bf16.xpose.msra.mxu0 %v12735_v23  ;;  %1553 = vmatpush1.bf16.xpose.msra.mxu1 %v12735_v23 }
 0x304   :  { %1490 = vmatprep.subr.bf16.mxu0 %v17152_v0  ;;  %1554 = vmatprep.subr.bf16.mxu1 %v17152_v0 }
 0x30b   :  { %1491 = vmatpush1.bf16.xpose.msra.mxu0 %v12745_v12  ;;  %1555 = vmatpush1.bf16.xpose.msra.mxu1 %v12745_v12 }
 0x30c   :  { %1492 = vmatprep.subr.bf16.mxu0 %v17152_v0  ;;  %1556 = vmatprep.subr.bf16.mxu1 %v17152_v0 }
 0x313   :  { %1493 = vmatpush1.bf16.xpose.msra.mxu0 %v12755_v22  ;;  %1557 = vmatpush1.bf16.xpose.msra.mxu1 %v12755_v22 }
 0x314   :  { %1600 = vmatprep.subr.bf16.mxu0 %v17152_v0  ;;  %1664 = vmatprep.subr.bf16.mxu1 %v17152_v0 }
 0x31a   :  { %10789 = vmatmul.mubr.msk.bf16.vlgmr.msra.gmra.mrb[0].mxu0 %vm199_vm0, %v1379_v43  ;;  %10791 = vmatmul.mubr.msk.bf16.vlgmr.msra.gmra.mrb[0].mxu1 %vm199_vm0, %v1529_v51  ;;  %v1591_v51 = vrot.slane %v12079_v57, 1 }
 0x31b   :  { %1601 = vmatpush1.bf16.xpose.msra.mxu0 %v12643_v18  ;;  %1665 = vmatpush1.bf16.xpose.msra.mxu1 %v12643_v18 }
 0x31c   :  { %1602 = vmatprep.subr.bf16.mxu0 %v17152_v0  ;;  %1666 = vmatprep.subr.bf16.mxu1 %v17152_v0 }
 0x31d   :  { %1514 = vmatprep.mubr.bf16.mxu0 %v17152_v0  ;;  %1578 = vmatprep.mubr.bf16.mxu1 %v17152_v0 }
 0x322   :  { %10790 = vmatmul.mubr.msk.bf16.gmra.mrb[4].mxu0 %vm199_vm0, %v1378_v60  ;;  %10792 = vmatmul.mubr.msk.bf16.gmra.mrb[4].mxu1 %vm199_vm0, %v1528_v20  ;;  %v1592_v20 = vrot.slane %v12098_v1, 1  ;;  %v1656_v60 = vrot.slane %v12100_v3, 1 }
 0x323   :  { %1603 = vmatpush1.bf16.xpose.msra.mxu0 %v12659_v21  ;;  %1667 = vmatpush1.bf16.xpose.msra.mxu1 %v12659_v21 }
 0x324   :  { %1604 = vmatprep.subr.bf16.mxu0 %v17152_v0  ;;  %1668 = vmatprep.subr.bf16.mxu1 %v17152_v0  ;;  %v1593_v40 = vsel %vm17160_vm2, %v1591_v51, %v1592_v20  ;;  %v1657_v43 = vsel %vm17160_vm2, %v1655_v38, %v1656_v60  ;;  %v1719_v51 = vrot.slane %v12189_v45, 1  ;;  %v1783_v38 = vrot.slane %v12194_v47, 1 }
 0x325   :  { %1632 = vmatprep.mubr.bf16.mxu0 %v17152_v0  ;;  %1696 = vmatprep.mubr.bf16.mxu1 %v17152_v0 }
 0x32b   :  { %1605 = vmatpush1.bf16.xpose.msra.mxu0 %v12675_v42  ;;  %1669 = vmatpush1.bf16.xpose.msra.mxu1 %v12675_v42 }
 0x32c   :  { %1606 = vmatprep.subr.bf16.mxu0 %v17152_v0  ;;  %1670 = vmatprep.subr.bf16.mxu1 %v17152_v0 }
 0x333   :  { %1607 = vmatpush1.bf16.xpose.msra.mxu0 %v12685_v9  ;;  %1671 = vmatpush1.bf16.xpose.msra.mxu1 %v12685_v9 }
 0x334   :  { %1608 = vmatprep.subr.bf16.mxu0 %v17152_v0  ;;  %1672 = vmatprep.subr.bf16.mxu1 %v17152_v0 }
 0x33b   :  { %1609 = vmatpush1.bf16.xpose.msra.mxu0 %v12695_v16  ;;  %1673 = vmatpush1.bf16.xpose.msra.mxu1 %v12695_v16 }
 0x33c   :  { %1610 = vmatprep.subr.bf16.mxu0 %v17152_v0  ;;  %1674 = vmatprep.subr.bf16.mxu1 %v17152_v0 }
 0x343   :  { %1611 = vmatpush1.bf16.xpose.msra.mxu0 %v12705_v28  ;;  %1675 = vmatpush1.bf16.xpose.msra.mxu1 %v12705_v28 }
 0x344   :  { %1612 = vmatprep.subr.bf16.mxu0 %v17152_v0  ;;  %1676 = vmatprep.subr.bf16.mxu1 %v17152_v0 }
 0x34b   :  { %1613 = vmatpush1.bf16.xpose.msra.mxu0 %v12715_v24  ;;  %1677 = vmatpush1.bf16.xpose.msra.mxu1 %v12715_v24 }
 0x34c   :  { %1614 = vmatprep.subr.bf16.mxu0 %v17152_v0  ;;  %1678 = vmatprep.subr.bf16.mxu1 %v17152_v0 }
 0x353   :  { %1615 = vmatpush1.bf16.xpose.msra.mxu0 %v12725_v2  ;;  %1679 = vmatpush1.bf16.xpose.msra.mxu1 %v12725_v2 }
 0x354   :  { %1616 = vmatprep.subr.bf16.mxu0 %v17152_v0  ;;  %1680 = vmatprep.subr.bf16.mxu1 %v17152_v0 }
 0x35b   :  { %1617 = vmatpush1.bf16.xpose.msra.mxu0 %v12735_v23  ;;  %1681 = vmatpush1.bf16.xpose.msra.mxu1 %v12735_v23 }
 0x35c   :  { %1618 = vmatprep.subr.bf16.mxu0 %v17152_v0  ;;  %1682 = vmatprep.subr.bf16.mxu1 %v17152_v0 }
 0x363   :  { %1619 = vmatpush1.bf16.xpose.msra.mxu0 %v12745_v12  ;;  %1683 = vmatpush1.bf16.xpose.msra.mxu1 %v12745_v12 }
 0x364   :  { %1620 = vmatprep.subr.bf16.mxu0 %v17152_v0  ;;  %1684 = vmatprep.subr.bf16.mxu1 %v17152_v0 }
 0x36b   :  { %1621 = vmatpush1.bf16.xpose.msra.mxu0 %v12755_v22  ;;  %1685 = vmatpush1.bf16.xpose.msra.mxu1 %v12755_v22 }
 0x36c   :  { %1728 = vmatprep.subr.bf16.mxu0 %v17152_v0  ;;  %1792 = vmatprep.subr.bf16.mxu1 %v17152_v0 }
 0x372   :  { %10793 = vmatmul.mubr.msk.bf16.vlgmr.msra.gmra.mrb[8].mxu0 %vm199_vm0, %v1593_v40  ;;  %10795 = vmatmul.mubr.msk.bf16.vlgmr.msra.gmra.mrb[8].mxu1 %vm199_vm0, %v1657_v43 }
 0x373   :  { %1729 = vmatpush1.bf16.xpose.msra.mxu0 %v12643_v18  ;;  %1793 = vmatpush1.bf16.xpose.msra.mxu1 %v12643_v18 }
 0x374   :  { %1730 = vmatprep.subr.bf16.mxu0 %v17152_v0  ;;  %1794 = vmatprep.subr.bf16.mxu1 %v17152_v0 }
 0x375   :  { %1642 = vmatprep.mubr.bf16.mxu0 %v17152_v0  ;;  %1706 = vmatprep.mubr.bf16.mxu1 %v17152_v0 }
 0x37a   :  { %10794 = vmatmul.mubr.msk.bf16.gmra.mrb[12].mxu0 %vm199_vm0, %v1592_v20  ;;  %10796 = vmatmul.mubr.msk.bf16.gmra.mrb[12].mxu1 %vm199_vm0, %v1656_v60  ;;  %v1720_v20 = vrot.slane %v12208_v54, 1  ;;  %v1784_v60 = vrot.slane %v12210_v55, 1 }
 0x37b   :  { %1731 = vmatpush1.bf16.xpose.msra.mxu0 %v12659_v21  ;;  %1795 = vmatpush1.bf16.xpose.msra.mxu1 %v12659_v21 }
 0x37c   :  { %1732 = vmatprep.subr.bf16.mxu0 %v17152_v0  ;;  %1796 = vmatprep.subr.bf16.mxu1 %v17152_v0  ;;  %v1721_v40 = vsel %vm17160_vm2, %v1719_v51, %v1720_v20  ;;  %v1785_v43 = vsel %vm17160_vm2, %v1783_v38, %v1784_v60  ;;  %v2212_v51 = vrot.slane %v293_v39, 1 }
 0x37d   :  { %1760 = vmatprep.mubr.bf16.mxu0 %v17152_v0  ;;  %1824 = vmatprep.mubr.bf16.mxu1 %v17152_v0 }
 0x383   :  { %1733 = vmatpush1.bf16.xpose.msra.mxu0 %v12675_v42  ;;  %1797 = vmatpush1.bf16.xpose.msra.mxu1 %v12675_v42 }
 0x384   :  { %1734 = vmatprep.subr.bf16.mxu0 %v17152_v0  ;;  %1798 = vmatprep.subr.bf16.mxu1 %v17152_v0 }
 0x38b   :  { %1735 = vmatpush1.bf16.xpose.msra.mxu0 %v12685_v9  ;;  %1799 = vmatpush1.bf16.xpose.msra.mxu1 %v12685_v9 }
 0x38c   :  { %1736 = vmatprep.subr.bf16.mxu0 %v17152_v0  ;;  %1800 = vmatprep.subr.bf16.mxu1 %v17152_v0 }
 0x393   :  { %1737 = vmatpush1.bf16.xpose.msra.mxu0 %v12695_v16  ;;  %1801 = vmatpush1.bf16.xpose.msra.mxu1 %v12695_v16 }
 0x394   :  { %1738 = vmatprep.subr.bf16.mxu0 %v17152_v0  ;;  %1802 = vmatprep.subr.bf16.mxu1 %v17152_v0 }
 0x39b   :  { %1739 = vmatpush1.bf16.xpose.msra.mxu0 %v12705_v28  ;;  %1803 = vmatpush1.bf16.xpose.msra.mxu1 %v12705_v28 }
 0x39c   :  { %1740 = vmatprep.subr.bf16.mxu0 %v17152_v0  ;;  %1804 = vmatprep.subr.bf16.mxu1 %v17152_v0 }
 0x3a3   :  { %1741 = vmatpush1.bf16.xpose.msra.mxu0 %v12715_v24  ;;  %1805 = vmatpush1.bf16.xpose.msra.mxu1 %v12715_v24 }
 0x3a4   :  { %1742 = vmatprep.subr.bf16.mxu0 %v17152_v0  ;;  %1806 = vmatprep.subr.bf16.mxu1 %v17152_v0 }
 0x3ab   :  { %1743 = vmatpush1.bf16.xpose.msra.mxu0 %v12725_v2  ;;  %1807 = vmatpush1.bf16.xpose.msra.mxu1 %v12725_v2 }
 0x3ac   :  { %1744 = vmatprep.subr.bf16.mxu0 %v17152_v0  ;;  %1808 = vmatprep.subr.bf16.mxu1 %v17152_v0 }
 0x3b3   :  { %1745 = vmatpush1.bf16.xpose.msra.mxu0 %v12735_v23  ;;  %1809 = vmatpush1.bf16.xpose.msra.mxu1 %v12735_v23 }
 0x3b4   :  { %1746 = vmatprep.subr.bf16.mxu0 %v17152_v0  ;;  %1810 = vmatprep.subr.bf16.mxu1 %v17152_v0 }
 0x3bb   :  { %1747 = vmatpush1.bf16.xpose.msra.mxu0 %v12745_v12  ;;  %1811 = vmatpush1.bf16.xpose.msra.mxu1 %v12745_v12 }
 0x3bc   :  { %1748 = vmatprep.subr.bf16.mxu0 %v17152_v0  ;;  %1812 = vmatprep.subr.bf16.mxu1 %v17152_v0 }
 0x3c3   :  { %1749 = vmatpush1.bf16.xpose.msra.mxu0 %v12755_v22  ;;  %1813 = vmatpush1.bf16.xpose.msra.mxu1 %v12755_v22 }
 0x3c4   :  { %1856 = vmatprep.subr.bf16.mxu0 %v17152_v0  ;;  %1920 = vmatprep.subr.bf16.mxu1 %v17152_v0 }
 0x3ca   :  { %10797 = vmatmul.mubr.msk.bf16.vlgmr.msra.gmra.mrb[16].mxu0 %vm199_vm0, %v1721_v40  ;;  %10799 = vmatmul.mubr.msk.bf16.vlgmr.msra.gmra.mrb[16].mxu1 %vm199_vm0, %v1785_v43  ;;  %v11636_v43 = vld [vmem:[%s17133_s1 + $0x10c] sm:$0xff]  }
 0x3cb   :  { %1857 = vmatpush1.bf16.xpose.msra.mxu0 %v12643_v18  ;;  %1921 = vmatpush1.bf16.xpose.msra.mxu1 %v12643_v18  ;;  %v2060_v18 = vrot.slane %v132_v36, 1 }
 0x3cc   :  { %1858 = vmatprep.subr.bf16.mxu0 %v17152_v0  ;;  %1922 = vmatprep.subr.bf16.mxu1 %v17152_v0 }
 0x3cd   :  { %1770 = vmatprep.mubr.bf16.mxu0 %v17152_v0  ;;  %1834 = vmatprep.mubr.bf16.mxu1 %v17152_v0 }
 0x3d2   :  { %10798 = vmatmul.mubr.msk.bf16.gmra.mrb[20].mxu0 %vm199_vm0, %v1720_v20  ;;  %10800 = vmatmul.mubr.msk.bf16.gmra.mrb[20].mxu1 %vm199_vm0, %v1784_v60  ;;  %v2216_v20 = vrot.slane %v300_v41, 2  ;;  %v11635_v60 = vld [vmem:[%s17133_s1 + $0x104] sm:$0xff]  }
 0x3d3   :  { %1859 = vmatpush1.bf16.xpose.msra.mxu0 %v12659_v21  ;;  %1923 = vmatpush1.bf16.xpose.msra.mxu1 %v12659_v21  ;;  %v2061_v21 = vrot.slane %v134_v32, 2  ;;  %v2215_v32 = vrot.slane %v304_v50, 1  ;;  %v1847_v50 = vrot.slane %v12299_v10, 1  ;;  %v12987_v40 = vsel %vm199_vm0, %v11635_v60, 0 }
 0x3d4   :  { %1860 = vmatprep.subr.bf16.mxu0 %v17152_v0  ;;  %1924 = vmatprep.subr.bf16.mxu1 %v17152_v0  ;;  %v2282_v60 = vrot.slane %v374_v11, 2 }
 0x3d5   :  { %1888 = vmatprep.mubr.bf16.mxu0 %v17152_v0  ;;  %1952 = vmatprep.mubr.bf16.mxu1 %v17152_v0  ;;  %v2062_v36 = vor.u32 %v2061_v21, %v2060_v18  ;;  %v12937_v41 = vor.u32 %v2216_v20, %v2215_v32  ;;  %v13001_v18 = vsel %vm199_vm0, %v11636_v43, 0  ;;  %v11637_v21 = vld [vmem:[%s17133_s1 + $0x114] sm:$0xff]   ;;  %v11640_v32 = vld [vmem:[%s17133_s1 + $0x12c] sm:$0xff]   ;;  %v2344_v43 = vrot.slane %v441_v13, 1 }
 0x3db   :  { %1861 = vmatpush1.bf16.xpose.msra.mxu0 %v12675_v42  ;;  %1925 = vmatpush1.bf16.xpose.msra.mxu1 %v12675_v42  ;;  %v2064_v42 = vrot.slane %v139_v37, 2 }
 0x3dc   :  { %1862 = vmatprep.subr.bf16.mxu0 %v17152_v0  ;;  %1926 = vmatprep.subr.bf16.mxu1 %v17152_v0 }
 0x3e3   :  { %1863 = vmatpush1.bf16.xpose.msra.mxu0 %v12685_v9  ;;  %1927 = vmatpush1.bf16.xpose.msra.mxu1 %v12685_v9  ;;  %v2063_v9 = vrot.slane %v143_v49, 1 }
 0x3e4   :  { %1864 = vmatprep.subr.bf16.mxu0 %v17152_v0  ;;  %1928 = vmatprep.subr.bf16.mxu1 %v17152_v0 }
 0x3e5   :  { %v12931_v37 = vor.u32 %v2064_v42, %v2063_v9  ;;  %v13011_v42 = vsel %vm199_vm0, %v11637_v21, 0  ;;  %v11638_v9 = vld [vmem:[%s17133_s1 + $0x11c] sm:$0xff]   ;;  %v2345_v21 = vrot.slane %v443_v5, 2  ;;  %v2413_v5 = vrot.slane %v526_v30, 1 }
 0x3e6   :  { %v2480_v30 = vrot.slane %v596_v15, 2  ;;  %v2611_v15 = vrot.slane %v748_v8, 1 }
 0x3eb   :  { %1865 = vmatpush1.bf16.xpose.msra.mxu0 %v12695_v16  ;;  %1929 = vmatpush1.bf16.xpose.msra.mxu1 %v12695_v16  ;;  %v2213_v16 = vrot.slane %v295_v34, 2  ;;  %v12935_v34 = vsel %vm2059_vm3, %v2062_v36, %v12931_v37  ;;  %v13041_v36 = vsel %vm199_vm0, %v11640_v32, 0  ;;  %v2411_v32 = vrot.slane %v517_v53, 2 }
 0x3ec   :  { %1866 = vmatprep.subr.bf16.mxu0 %v17152_v0  ;;  %1930 = vmatprep.subr.bf16.mxu1 %v17152_v0 }
 0x3ed   :  { %v2214_v39 = vor.u32 %v2213_v16, %v2212_v51  ;;  %v13021_v51 = vsel %vm199_vm0, %v11638_v9, 0  ;;  %v11639_v16 = vld [vmem:[%s17133_s1 + $0x124] sm:$0xff]  }
 0x3ee   :  { %v13031_v20 = vsel %vm199_vm0, %v11639_v16, 0  ;;  %v2410_v16 = vrot.slane %v515_v58, 1 }
 0x3ef   :  { %v12941_v49 = vsel %vm2059_vm3, %v2214_v39, %v12937_v41  ;;  %v11641_v39 = vld [vmem:[%s17133_s1 + $0x134] sm:$0xff]  }
 0x3f3   :  { %1867 = vmatpush1.bf16.xpose.msra.mxu0 %v12705_v28  ;;  %1931 = vmatpush1.bf16.xpose.msra.mxu1 %v12705_v28  ;;  %v1848_v28 = vrot.slane %v12318_v46, 1 }
 0x3f4   :  { %1868 = vmatprep.subr.bf16.mxu0 %v17152_v0  ;;  %1932 = vmatprep.subr.bf16.mxu1 %v17152_v0 }
 0x3fb   :  { %1869 = vmatpush1.bf16.xpose.msra.mxu0 %v12715_v24  ;;  %1933 = vmatpush1.bf16.xpose.msra.mxu1 %v12715_v24  ;;  %v1911_v24 = vrot.slane %v12304_v14, 1 }
 0x3fc   :  { %1870 = vmatprep.subr.bf16.mxu0 %v17152_v0  ;;  %1934 = vmatprep.subr.bf16.mxu1 %v17152_v0 }
 0x403   :  { %1871 = vmatpush1.bf16.xpose.msra.mxu0 %v12725_v2  ;;  %1935 = vmatpush1.bf16.xpose.msra.mxu1 %v12725_v2  ;;  %v1912_v2 = vrot.slane %v12320_v48, 1 }
 0x404   :  { %1872 = vmatprep.subr.bf16.mxu0 %v17152_v0  ;;  %1936 = vmatprep.subr.bf16.mxu1 %v17152_v0 }
 0x40b   :  { %1873 = vmatpush1.bf16.xpose.msra.mxu0 %v12735_v23  ;;  %1937 = vmatpush1.bf16.xpose.msra.mxu1 %v12735_v23  ;;  %v11634_v23 = vld [vmem:[%s17133_s1 + $0xfc] sm:$0xff]  }
 0x40c   :  { %1874 = vmatprep.subr.bf16.mxu0 %v17152_v0  ;;  %1938 = vmatprep.subr.bf16.mxu1 %v17152_v0  ;;  %v12973_v38 = vsel %vm199_vm0, %v11634_v23, 0 }
 0x413   :  { %1875 = vmatpush1.bf16.xpose.msra.mxu0 %v12745_v12  ;;  %1939 = vmatpush1.bf16.xpose.msra.mxu1 %v12745_v12  ;;  %v1849_v12 = vsel %vm17160_vm2, %v1847_v50, %v1848_v28  ;;  %v13051_v50 = vsel %vm199_vm0, %v11641_v39, 0  ;;  %v2414_v39 = vrot.slane %v522_v61, 2 }
 0x414   :  { %1876 = vmatprep.subr.bf16.mxu0 %v17152_v0  ;;  %1940 = vmatprep.subr.bf16.mxu1 %v17152_v0 }
 0x415   :  { %v2415_v58 = vor.u32 %v2414_v39, %v2413_v5 }
 0x41b   :  { %1877 = vmatpush1.bf16.xpose.msra.mxu0 %v12755_v22  ;;  %1941 = vmatpush1.bf16.xpose.msra.mxu1 %v12755_v22  ;;  %v1913_v22 = vsel %vm17160_vm2, %v1911_v24, %v1912_v2 }
 0x41c   :  { %2159 = vmatprep.subr.bf16.mxu0 %v17152_v0  ;;  %2225 = vmatprep.subr.bf16.mxu1 %v17152_v0 }
 0x422   :  { %10801 = vmatmul.mubr.msk.bf16.vlgmr.msra.gmra.mrb[24].mxu0 %vm199_vm0, %v1849_v12  ;;  %10803 = vmatmul.mubr.msk.bf16.vlgmr.msra.gmra.mrb[24].mxu1 %vm199_vm0, %v1913_v22  ;;  %v11644_v12 = vld [vmem:[%s17133_s1 + $0x14c] ss:$0 sps:$4 sm:$0xff]  }
 0x423   :  { %2160 = vmatpush1.bf16.xpose.msra.mxu0 %v12973_v38  ;;  %2226 = vmatpush1.bf16.xpose.msra.mxu1 %v12973_v38  ;;  %v13081_v22 = vsel %vm199_vm0, %v11644_v12, 0  ;;  %v2412_v12 = vor.u32 %v2411_v32, %v2410_v16  ;;  %v11655_v32 = vld [vmem:[%s17133_s1 + $0x1a0] ss:$0 sps:$4 sm:$0xff]  }
 0x424   :  { %2161 = vmatprep.subr.bf16.mxu0 %v17152_v0  ;;  %2227 = vmatprep.subr.bf16.mxu1 %v17152_v0  ;;  %v13413_v39 = vsel %vm199_vm0, %v11655_v32, 0 }
 0x425   :  { %1898 = vmatprep.mubr.bf16.mxu0 %v17152_v0  ;;  %1962 = vmatprep.mubr.bf16.mxu1 %v17152_v0  ;;  %v2416_v61 = vsel %vm2059_vm3, %v2412_v12, %v2415_v58  ;;  %v2910_v12 = vrot.slane %v11984_v33, 2  ;;  %v3034_v33 = vrot.slane %v12100_v3, 2  ;;  %v3158_v3 = vrot.slane %v12210_v55, 2  ;;  %v3407_v55 = vld [vmem:[%s17135_s2] sm:$0x3]  ;;  %s11772_s2 = smov 122  }
 0x42a   :  { %10802 = vmatmul.mubr.msk.bf16.gmra.mrb[28].mxu0 %vm199_vm0, %v1848_v28  ;;  %10804 = vmatmul.mubr.msk.bf16.gmra.mrb[28].mxu1 %vm199_vm0, %v1912_v2  ;;  %v11642_v28 = vld [vmem:[%s17133_s1 + $0x13c] sm:$0xff]   ;;  %v11643_v2 = vld [vmem:[%s17133_s1 + $0x144] sm:$0xff]  }
 0x42b   :  { %2162 = vmatpush1.bf16.xpose.msra.mxu0 %v12987_v40  ;;  %2228 = vmatpush1.bf16.xpose.msra.mxu1 %v12987_v40  ;;  %v13061_v24 = vsel %vm199_vm0, %v11642_v28, 0  ;;  %v13071_v23 = vsel %vm199_vm0, %v11643_v2, 0  ;;  %v2476_v28 = vrot.slane %v589_v62, 1  ;;  %v2477_v2 = vrot.slane %v591_v56, 2 }
 0x42c   :  { %2163 = vmatprep.subr.bf16.mxu0 %v17152_v0  ;;  %2229 = vmatprep.subr.bf16.mxu1 %v17152_v0  ;;  %v2545_v56 = vrot.slane %v674_v4, 1  ;;  %v17181_v4 = vshll.u32 %v12320_v48, 16 }
 0x42d   :  { %2191 = vmatprep.mubr.bf16.mxu0 %v17152_v0  ;;  %2257 = vmatprep.mubr.bf16.mxu1 %v17152_v0 }
 0x433   :  { %2164 = vmatpush1.bf16.xpose.msra.mxu0 %v13001_v18  ;;  %2230 = vmatpush1.bf16.xpose.msra.mxu1 %v13001_v18 }
 0x434   :  { %2165 = vmatprep.subr.bf16.mxu0 %v17152_v0  ;;  %2231 = vmatprep.subr.bf16.mxu1 %v17152_v0 }
 0x43b   :  { %2166 = vmatpush1.bf16.xpose.msra.mxu0 %v13011_v42  ;;  %2232 = vmatpush1.bf16.xpose.msra.mxu1 %v13011_v42 }
 0x43c   :  { %2167 = vmatprep.subr.bf16.mxu0 %v17152_v0  ;;  %2233 = vmatprep.subr.bf16.mxu1 %v17152_v0 }
 0x443   :  { %2168 = vmatpush1.bf16.xpose.msra.mxu0 %v13021_v51  ;;  %2234 = vmatpush1.bf16.xpose.msra.mxu1 %v13021_v51 }
 0x444   :  { %2169 = vmatprep.subr.bf16.mxu0 %v17152_v0  ;;  %2235 = vmatprep.subr.bf16.mxu1 %v17152_v0 }
 0x44b   :  { %2170 = vmatpush1.bf16.xpose.msra.mxu0 %v13031_v20  ;;  %2236 = vmatpush1.bf16.xpose.msra.mxu1 %v13031_v20 }
 0x44c   :  { %2171 = vmatprep.subr.bf16.mxu0 %v17152_v0  ;;  %2237 = vmatprep.subr.bf16.mxu1 %v17152_v0 }
 0x453   :  { %2172 = vmatpush1.bf16.xpose.msra.mxu0 %v13041_v36  ;;  %2238 = vmatpush1.bf16.xpose.msra.mxu1 %v13041_v36 }
 0x454   :  { %2173 = vmatprep.subr.bf16.mxu0 %v17152_v0  ;;  %2239 = vmatprep.subr.bf16.mxu1 %v17152_v0 }
 0x45b   :  { %2174 = vmatpush1.bf16.xpose.msra.mxu0 %v13051_v50  ;;  %2240 = vmatpush1.bf16.xpose.msra.mxu1 %v13051_v50 }
 0x45c   :  { %2175 = vmatprep.subr.bf16.mxu0 %v17152_v0  ;;  %2241 = vmatprep.subr.bf16.mxu1 %v17152_v0 }
 0x463   :  { %2176 = vmatpush1.bf16.xpose.msra.mxu0 %v13061_v24  ;;  %2242 = vmatpush1.bf16.xpose.msra.mxu1 %v13061_v24 }
 0x464   :  { %2177 = vmatprep.subr.bf16.mxu0 %v17152_v0  ;;  %2243 = vmatprep.subr.bf16.mxu1 %v17152_v0 }
 0x46b   :  { %2178 = vmatpush1.bf16.xpose.msra.mxu0 %v13071_v23  ;;  %2244 = vmatpush1.bf16.xpose.msra.mxu1 %v13071_v23 }
 0x46c   :  { %2179 = vmatprep.subr.bf16.mxu0 %v17152_v0  ;;  %2245 = vmatprep.subr.bf16.mxu1 %v17152_v0 }
 0x473   :  { %2180 = vmatpush1.bf16.xpose.msra.mxu0 %v13081_v22  ;;  %2246 = vmatpush1.bf16.xpose.msra.mxu1 %v13081_v22 }
 0x474   :  { %2291 = vmatprep.subr.bf16.mxu0 %v17152_v0  ;;  %2357 = vmatprep.subr.bf16.mxu1 %v17152_v0 }
 0x47a   :  { %10837 = vmatmul.mubr.msk.bf16.vlgmr.msra.gmra.mrb[0].mxu0 %vm199_vm0, %v12935_v34  ;;  %10839 = vmatmul.mubr.msk.bf16.vlgmr.msra.gmra.mrb[0].mxu1 %vm199_vm0, %v12941_v49  ;;  %v2347_v34 = vrot.slane %v452_v29, 1  ;;  %v2279_v49 = vrot.slane %v369_v63, 2  ;;  %v2346_v29 = vor.u32 %v2345_v21, %v2344_v43  ;;  %v11649_v43 = vld [vmem:[%s17133_s1 + $0x170] sm:$0xff]  }
 0x47b   :  { %2292 = vmatpush1.bf16.xpose.msra.mxu0 %v12973_v38  ;;  %2358 = vmatpush1.bf16.xpose.msra.mxu1 %v12973_v38  ;;  %v13353_v21 = vsel %vm199_vm0, %v11649_v43, 0 }
 0x47c   :  { %2293 = vmatprep.subr.bf16.mxu0 %v17152_v0  ;;  %2359 = vmatprep.subr.bf16.mxu1 %v17152_v0 }
 0x47d   :  { %2201 = vmatprep.mubr.bf16.mxu0 %v17152_v0  ;;  %2267 = vmatprep.mubr.bf16.mxu1 %v17152_v0 }
 0x482   :  { %10838 = vmatmul.mubr.msk.bf16.gmra.mrb[4].mxu0 %vm199_vm0, %v12931_v37  ;;  %10840 = vmatmul.mubr.msk.bf16.gmra.mrb[4].mxu1 %vm199_vm0, %v12937_v41  ;;  %v2281_v37 = vrot.slane %v378_v25, 1  ;;  %v2278_v41 = vrot.slane %v367_v6, 1  ;;  %v2348_v25 = vrot.slane %v448_v17, 2  ;;  %v2479_v17 = vrot.slane %v600_v35, 1 }
 0x483   :  { %2294 = vmatpush1.bf16.xpose.msra.mxu0 %v12987_v40  ;;  %2360 = vmatpush1.bf16.xpose.msra.mxu1 %v12987_v40  ;;  %v2478_v35 = vor.u32 %v2477_v2, %v2476_v28  ;;  %v2761_v28 = vrot.slane %v11966_v26, 2  ;;  %v2762_v2 = vrot.slane %v11979_v31, 2  ;;  %v2971_v26 = vrot.slane %v12079_v57, 2 }
 0x484   :  { %2295 = vmatprep.subr.bf16.mxu0 %v17152_v0  ;;  %2361 = vmatprep.subr.bf16.mxu1 %v17152_v0  ;;  %v2280_v9 = vor.u32 %v2279_v49, %v2278_v41  ;;  %v2283_v6 = vor.u32 %v2282_v60, %v2281_v37  ;;  %v2349_v63 = vor.u32 %v2348_v25, %v2347_v34  ;;  %v11647_v34 = vld [vmem:[%s17133_s1 + $0x160] sm:$0xff]   ;;  %v11648_v49 = vld [vmem:[%s17133_s1 + $0x168] sm:$0xff]   ;;  %v11650_v25 = vld [vmem:[%s17133_s1 + $0x178] sm:$0xff]   ;;  %v3033_v31 = vrot.slane %v12084_v59, 2 }
 0x485   :  { %2323 = vmatprep.mubr.bf16.mxu0 %v17152_v0  ;;  %2389 = vmatprep.mubr.bf16.mxu1 %v17152_v0  ;;  %v2481_v53 = vor.u32 %v2480_v30, %v2479_v17  ;;  %v13333_v41 = vsel %vm199_vm0, %v11647_v34, 0  ;;  %v13343_v60 = vsel %vm199_vm0, %v11648_v49, 0  ;;  %v11654_v17 = vld [vmem:[%s17133_s1 + $0x198] sm:$0xff]   ;;  %v2909_v30 = vrot.slane %v11968_v27, 2 }
 0x486   :  { %v2284_v11 = vsel %vm2059_vm3, %v2280_v9, %v2283_v6  ;;  %v2350_v13 = vsel %vm2059_vm3, %v2346_v29, %v2349_v63  ;;  %v13363_v9 = vsel %vm199_vm0, %v11650_v25, 0  ;;  %v13403_v16 = vsel %vm199_vm0, %v11654_v17, 0 }
 0x487   :  { %v2482_v62 = vsel %vm2059_vm3, %v2478_v35, %v2481_v53  ;;  %v2911_v35 = vsel %vm2760_vm4, %v2909_v30, %v2910_v12  ;;  %v2972_v27 = vrot.slane %v12098_v1, 2  ;;  %v3095_v57 = vrot.slane %v12189_v45, 2 }
 0x488   :  { %v3096_v59 = vrot.slane %v12208_v54, 2  ;;  %v3157_v1 = vrot.slane %v12194_v47, 2  ;;  %v17147_v45 = vlaneseq }
 0x48a   :  { %v13562_v47 = vshrl.u32 %v17147_v45, 7  ;;  %vm13619_vm5 = vcmp.lt.s32.totalorder %v17147_v45, 168 }
 0x48b   :  { %2296 = vmatpush1.bf16.xpose.msra.mxu0 %v13001_v18  ;;  %2362 = vmatpush1.bf16.xpose.msra.mxu1 %v13001_v18 }
 0x48c   :  { %2297 = vmatprep.subr.bf16.mxu0 %v17152_v0  ;;  %2363 = vmatprep.subr.bf16.mxu1 %v17152_v0  ;;  %17182 = vst [vmem:[#allocation7_spill] sm:$0xff] %v13562_v47  ;;  %v17149_v54 = vsub.s32 0, %v13562_v47 }
 0x493   :  { %2298 = vmatpush1.bf16.xpose.msra.mxu0 %v13011_v42  ;;  %2364 = vmatpush1.bf16.xpose.msra.mxu1 %v13011_v42 }
 0x494   :  { %2299 = vmatprep.subr.bf16.mxu0 %v17152_v0  ;;  %2365 = vmatprep.subr.bf16.mxu1 %v17152_v0 }
 0x49b   :  { %2300 = vmatpush1.bf16.xpose.msra.mxu0 %v13021_v51  ;;  %2366 = vmatpush1.bf16.xpose.msra.mxu1 %v13021_v51 }
 0x49c   :  { %2301 = vmatprep.subr.bf16.mxu0 %v17152_v0  ;;  %2367 = vmatprep.subr.bf16.mxu1 %v17152_v0 }
 0x4a3   :  { %2302 = vmatpush1.bf16.xpose.msra.mxu0 %v13031_v20  ;;  %2368 = vmatpush1.bf16.xpose.msra.mxu1 %v13031_v20 }
 0x4a4   :  { %2303 = vmatprep.subr.bf16.mxu0 %v17152_v0  ;;  %2369 = vmatprep.subr.bf16.mxu1 %v17152_v0 }
 0x4ab   :  { %2304 = vmatpush1.bf16.xpose.msra.mxu0 %v13041_v36  ;;  %2370 = vmatpush1.bf16.xpose.msra.mxu1 %v13041_v36 }
 0x4ac   :  { %2305 = vmatprep.subr.bf16.mxu0 %v17152_v0  ;;  %2371 = vmatprep.subr.bf16.mxu1 %v17152_v0 }
 0x4b3   :  { %2306 = vmatpush1.bf16.xpose.msra.mxu0 %v13051_v50  ;;  %2372 = vmatpush1.bf16.xpose.msra.mxu1 %v13051_v50 }
 0x4b4   :  { %2307 = vmatprep.subr.bf16.mxu0 %v17152_v0  ;;  %2373 = vmatprep.subr.bf16.mxu1 %v17152_v0 }
 0x4bb   :  { %2308 = vmatpush1.bf16.xpose.msra.mxu0 %v13061_v24  ;;  %2374 = vmatpush1.bf16.xpose.msra.mxu1 %v13061_v24 }
 0x4bc   :  { %2309 = vmatprep.subr.bf16.mxu0 %v17152_v0  ;;  %2375 = vmatprep.subr.bf16.mxu1 %v17152_v0 }
 0x4c3   :  { %2310 = vmatpush1.bf16.xpose.msra.mxu0 %v13071_v23  ;;  %2376 = vmatpush1.bf16.xpose.msra.mxu1 %v13071_v23 }
 0x4c4   :  { %2311 = vmatprep.subr.bf16.mxu0 %v17152_v0  ;;  %2377 = vmatprep.subr.bf16.mxu1 %v17152_v0 }
 0x4cb   :  { %2312 = vmatpush1.bf16.xpose.msra.mxu0 %v13081_v22  ;;  %2378 = vmatpush1.bf16.xpose.msra.mxu1 %v13081_v22 }
 0x4cc   :  { %2423 = vmatprep.subr.bf16.mxu0 %v17152_v0  ;;  %2489 = vmatprep.subr.bf16.mxu1 %v17152_v0 }
 0x4d2   :  { %10841 = vmatmul.mubr.msk.bf16.vlgmr.msra.gmra.mrb[8].mxu0 %vm199_vm0, %v2284_v11  ;;  %10843 = vmatmul.mubr.msk.bf16.vlgmr.msra.gmra.mrb[8].mxu1 %vm199_vm0, %v2350_v13  ;;  %v11653_v13 = vld [vmem:[%s17133_s1 + $0x190] sm:$0xff]  }
 0x4d3   :  { %2424 = vmatpush1.bf16.xpose.msra.mxu0 %v12973_v38  ;;  %2490 = vmatpush1.bf16.xpose.msra.mxu1 %v12973_v38  ;;  %v13393_v5 = vsel %vm199_vm0, %v11653_v13, 0 }
 0x4d4   :  { %2425 = vmatprep.subr.bf16.mxu0 %v17152_v0  ;;  %2491 = vmatprep.subr.bf16.mxu1 %v17152_v0 }
 0x4d5   :  { %2333 = vmatprep.mubr.bf16.mxu0 %v17152_v0  ;;  %2399 = vmatprep.mubr.bf16.mxu1 %v17152_v0 }
 0x4da   :  { %10842 = vmatmul.mubr.msk.bf16.gmra.mrb[12].mxu0 %vm199_vm0, %v2283_v6  ;;  %10844 = vmatmul.mubr.msk.bf16.gmra.mrb[12].mxu1 %vm199_vm0, %v2349_v63  ;;  %v11651_v6 = vld [vmem:[%s17133_s1 + $0x180] sm:$0xff]   ;;  %v11652_v63 = vld [vmem:[%s17133_s1 + $0x188] sm:$0xff]  }
 0x4db   :  { %2426 = vmatpush1.bf16.xpose.msra.mxu0 %v12987_v40  ;;  %2492 = vmatpush1.bf16.xpose.msra.mxu1 %v12987_v40  ;;  %v13373_v29 = vsel %vm199_vm0, %v11651_v6, 0  ;;  %v13383_v11 = vsel %vm199_vm0, %v11652_v63, 0 }
 0x4dc   :  { %2427 = vmatprep.subr.bf16.mxu0 %v17152_v0  ;;  %2493 = vmatprep.subr.bf16.mxu1 %v17152_v0 }
 0x4dd   :  { %2455 = vmatprep.mubr.bf16.mxu0 %v17152_v0  ;;  %2521 = vmatprep.mubr.bf16.mxu1 %v17152_v0 }
 0x4e3   :  { %2428 = vmatpush1.bf16.xpose.msra.mxu0 %v13001_v18  ;;  %2494 = vmatpush1.bf16.xpose.msra.mxu1 %v13001_v18 }
 0x4e4   :  { %2429 = vmatprep.subr.bf16.mxu0 %v17152_v0  ;;  %2495 = vmatprep.subr.bf16.mxu1 %v17152_v0 }
 0x4eb   :  { %2430 = vmatpush1.bf16.xpose.msra.mxu0 %v13011_v42  ;;  %2496 = vmatpush1.bf16.xpose.msra.mxu1 %v13011_v42 }
 0x4ec   :  { %2431 = vmatprep.subr.bf16.mxu0 %v17152_v0  ;;  %2497 = vmatprep.subr.bf16.mxu1 %v17152_v0 }
 0x4f3   :  { %2432 = vmatpush1.bf16.xpose.msra.mxu0 %v13021_v51  ;;  %2498 = vmatpush1.bf16.xpose.msra.mxu1 %v13021_v51 }
 0x4f4   :  { %2433 = vmatprep.subr.bf16.mxu0 %v17152_v0  ;;  %2499 = vmatprep.subr.bf16.mxu1 %v17152_v0 }
 0x4fb   :  { %2434 = vmatpush1.bf16.xpose.msra.mxu0 %v13031_v20  ;;  %2500 = vmatpush1.bf16.xpose.msra.mxu1 %v13031_v20 }
 0x4fc   :  { %2435 = vmatprep.subr.bf16.mxu0 %v17152_v0  ;;  %2501 = vmatprep.subr.bf16.mxu1 %v17152_v0 }
 0x503   :  { %2436 = vmatpush1.bf16.xpose.msra.mxu0 %v13041_v36  ;;  %2502 = vmatpush1.bf16.xpose.msra.mxu1 %v13041_v36 }
 0x504   :  { %2437 = vmatprep.subr.bf16.mxu0 %v17152_v0  ;;  %2503 = vmatprep.subr.bf16.mxu1 %v17152_v0 }
 0x50b   :  { %2438 = vmatpush1.bf16.xpose.msra.mxu0 %v13051_v50  ;;  %2504 = vmatpush1.bf16.xpose.msra.mxu1 %v13051_v50 }
 0x50c   :  { %2439 = vmatprep.subr.bf16.mxu0 %v17152_v0  ;;  %2505 = vmatprep.subr.bf16.mxu1 %v17152_v0 }
 0x513   :  { %2440 = vmatpush1.bf16.xpose.msra.mxu0 %v13061_v24  ;;  %2506 = vmatpush1.bf16.xpose.msra.mxu1 %v13061_v24 }
 0x514   :  { %2441 = vmatprep.subr.bf16.mxu0 %v17152_v0  ;;  %2507 = vmatprep.subr.bf16.mxu1 %v17152_v0 }
 0x51b   :  { %2442 = vmatpush1.bf16.xpose.msra.mxu0 %v13071_v23  ;;  %2508 = vmatpush1.bf16.xpose.msra.mxu1 %v13071_v23 }
 0x51c   :  { %2443 = vmatprep.subr.bf16.mxu0 %v17152_v0  ;;  %2509 = vmatprep.subr.bf16.mxu1 %v17152_v0 }
 0x523   :  { %2444 = vmatpush1.bf16.xpose.msra.mxu0 %v13081_v22  ;;  %2510 = vmatpush1.bf16.xpose.msra.mxu1 %v13081_v22 }
 0x524   :  { %2555 = vmatprep.subr.bf16.mxu0 %v17152_v0  ;;  %2621 = vmatprep.subr.bf16.mxu1 %v17152_v0 }
 0x52a   :  { %10845 = vmatmul.mubr.msk.bf16.vlgmr.msra.gmra.mrb[16].mxu0 %vm199_vm0, %v2416_v61  ;;  %10847 = vmatmul.mubr.msk.bf16.vlgmr.msra.gmra.mrb[16].mxu1 %vm199_vm0, %v2482_v62  ;;  %v3035_v61 = vsel %vm2760_vm4, %v3033_v31, %v3034_v33  ;;  %v3097_v62 = vsel %vm2760_vm4, %v3095_v57, %v3096_v59 }
 0x52b   :  { %2556 = vmatpush1.bf16.xpose.msra.mxu0 %v12973_v38  ;;  %2622 = vmatpush1.bf16.xpose.msra.mxu1 %v12973_v38  ;;  %v2542_v38 = vrot.slane %v663_v52, 1 }
 0x52c   :  { %2557 = vmatprep.subr.bf16.mxu0 %v17152_v0  ;;  %2623 = vmatprep.subr.bf16.mxu1 %v17152_v0 }
 0x52d   :  { %2465 = vmatprep.mubr.bf16.mxu0 %v17152_v0  ;;  %2531 = vmatprep.mubr.bf16.mxu1 %v17152_v0 }
 0x532   :  { %10846 = vmatmul.mubr.msk.bf16.gmra.mrb[20].mxu0 %vm199_vm0, %v2415_v58  ;;  %10848 = vmatmul.mubr.msk.bf16.gmra.mrb[20].mxu1 %vm199_vm0, %v2481_v53  ;;  %v2763_v58 = vsel %vm2760_vm4, %v2761_v28, %v2762_v2  ;;  %v2973_v53 = vsel %vm2760_vm4, %v2971_v26, %v2972_v27 }
 0x533   :  { %2558 = vmatpush1.bf16.xpose.msra.mxu0 %v12987_v40  ;;  %2624 = vmatpush1.bf16.xpose.msra.mxu1 %v12987_v40  ;;  %v2543_v40 = vrot.slane %v665_v44, 2 }
 0x534   :  { %2559 = vmatprep.subr.bf16.mxu0 %v17152_v0  ;;  %2625 = vmatprep.subr.bf16.mxu1 %v17152_v0 }
 0x535   :  { %2587 = vmatprep.mubr.bf16.mxu0 %v17152_v0  ;;  %2653 = vmatprep.mubr.bf16.mxu1 %v17152_v0 }
 0x53b   :  { %2560 = vmatpush1.bf16.xpose.msra.mxu0 %v13001_v18  ;;  %2626 = vmatpush1.bf16.xpose.msra.mxu1 %v13001_v18  ;;  %v2546_v18 = vrot.slane %v670_v7, 2  ;;  %v11645_v7 = vld [vmem:[%s17133_s1 + $0x150] sm:$0xff]  }
 0x53c   :  { %2561 = vmatprep.subr.bf16.mxu0 %v17152_v0  ;;  %2627 = vmatprep.subr.bf16.mxu1 %v17152_v0 }
 0x53d   :  { %v2547_v52 = vor.u32 %v2546_v18, %v2545_v56  ;;  %v3159_v56 = vsel %vm2760_vm4, %v3157_v1, %v3158_v3  ;;  %v11771_v18 = vmov 1966171168  }
 0x543   :  { %2562 = vmatpush1.bf16.xpose.msra.mxu0 %v13011_v42  ;;  %2628 = vmatpush1.bf16.xpose.msra.mxu1 %v13011_v42  ;;  %v2608_v42 = vrot.slane %v737_v19, 1 }
 0x544   :  { %2563 = vmatprep.subr.bf16.mxu0 %v17152_v0  ;;  %2629 = vmatprep.subr.bf16.mxu1 %v17152_v0 }
 0x54b   :  { %2564 = vmatpush1.bf16.xpose.msra.mxu0 %v13021_v51  ;;  %2630 = vmatpush1.bf16.xpose.msra.mxu1 %v13021_v51  ;;  %v17180_v51 = vshll.u32 %v12304_v14, 16 }
 0x54c   :  { %2565 = vmatprep.subr.bf16.mxu0 %v17152_v0  ;;  %2631 = vmatprep.subr.bf16.mxu1 %v17152_v0 }
 0x553   :  { %2566 = vmatpush1.bf16.xpose.msra.mxu0 %v13031_v20  ;;  %2632 = vmatpush1.bf16.xpose.msra.mxu1 %v13031_v20  ;;  %v2609_v20 = vrot.slane %v17180_v51, 2 }
 0x554   :  { %2567 = vmatprep.subr.bf16.mxu0 %v17152_v0  ;;  %2633 = vmatprep.subr.bf16.mxu1 %v17152_v0 }
 0x555   :  { %v2610_v8 = vor.u32 %v2609_v20, %v2608_v42  ;;  %v3870_v42 = vunpack.c.l.s4 %v11771_v18 }
 0x55b   :  { %2568 = vmatpush1.bf16.xpose.msra.mxu0 %v13041_v36  ;;  %2634 = vmatpush1.bf16.xpose.msra.mxu1 %v13041_v36  ;;  %v2612_v36 = vrot.slane %v17181_v4, 2 }
 0x55c   :  { %2569 = vmatprep.subr.bf16.mxu0 %v17152_v0  ;;  %2635 = vmatprep.subr.bf16.mxu1 %v17152_v0 }
 0x55d   :  { %v2613_v44 = vor.u32 %v2612_v36, %v2611_v15  ;;  %v17148_v15 = vsub.s32 1, %v13562_v47 }
 0x563   :  { %2570 = vmatpush1.bf16.xpose.msra.mxu0 %v13051_v50  ;;  %2636 = vmatpush1.bf16.xpose.msra.mxu1 %v13051_v50  ;;  %v2544_v50 = vor.u32 %v2543_v40, %v2542_v38  ;;  %v13575_v38 = vrot.slane %v3407_v55, %v17149_v54  ;;  %v13581_v40 = vrot.slane %v3407_v55, %v17148_v15 }
 0x564   :  { %2571 = vmatprep.subr.bf16.mxu0 %v17152_v0  ;;  %2637 = vmatprep.subr.bf16.mxu1 %v17152_v0 }
 0x565   :  { %v2548_v19 = vsel %vm2059_vm3, %v2544_v50, %v2547_v52 }
 0x56b   :  { %2572 = vmatpush1.bf16.xpose.msra.mxu0 %v13061_v24  ;;  %2638 = vmatpush1.bf16.xpose.msra.mxu1 %v13061_v24  ;;  %v2614_v24 = vsel %vm2059_vm3, %v2610_v8, %v2613_v44  ;;  %vm17162_vm3 = vcmask 242880  }
 0x56c   :  { %2573 = vmatprep.subr.bf16.mxu0 %v17152_v0  ;;  %2639 = vmatprep.subr.bf16.mxu1 %v17152_v0 }
 0x573   :  { %2574 = vmatpush1.bf16.xpose.msra.mxu0 %v13071_v23  ;;  %2640 = vmatpush1.bf16.xpose.msra.mxu1 %v13071_v23  ;;  %v13305_v23 = vsel %vm199_vm0, %v11645_v7, 0 }
 0x574   :  { %2575 = vmatprep.subr.bf16.mxu0 %v17152_v0  ;;  %2641 = vmatprep.subr.bf16.mxu1 %v17152_v0 }
 0x57b   :  { %2576 = vmatpush1.bf16.xpose.msra.mxu0 %v13081_v22  ;;  %2642 = vmatpush1.bf16.xpose.msra.mxu1 %v13081_v22  ;;  %v11646_v22 = vld [vmem:[%s17133_s1 + $0x158] sm:$0xff]   ;;  %s11782_s1 = smov 56  }
 0x57c   :  { %2856 = vmatprep.subr.bf16.mxu0 %v17152_v0  ;;  %2918 = vmatprep.subr.bf16.mxu1 %v17152_v0  ;;  %v13319_v37 = vsel %vm199_vm0, %v11646_v22, 0 }
 0x582   :  { %10849 = vmatmul.mubr.msk.bf16.vlgmr.msra.gmra.mrb[24].mxu0 %vm199_vm0, %v2548_v19  ;;  %10851 = vmatmul.mubr.msk.bf16.vlgmr.msra.gmra.mrb[24].mxu1 %vm199_vm0, %v2614_v24  ;;  %v3871_v24 = vunpack.c.0.s8 %v3870_v42 }
 0x583   :  { %2857 = vmatpush1.bf16.xpose.msra.mxu0 %v13305_v23  ;;  %2919 = vmatpush1.bf16.xpose.msra.mxu1 %v13305_v23 }
 0x584   :  { %2858 = vmatprep.subr.bf16.mxu0 %v17152_v0  ;;  %2920 = vmatprep.subr.bf16.mxu1 %v17152_v0  ;;  %v13605_v17 = vsub.s32 %v3871_v24, %v13562_v47 }
 0x585   :  { %2597 = vmatprep.mubr.bf16.mxu0 %v17152_v0  ;;  %2663 = vmatprep.mubr.bf16.mxu1 %v17152_v0 }
 0x58a   :  { %10850 = vmatmul.mubr.msk.bf16.gmra.mrb[28].mxu0 %vm199_vm0, %v2547_v52  ;;  %10852 = vmatmul.mubr.msk.bf16.gmra.mrb[28].mxu1 %vm199_vm0, %v2613_v44 }
 0x58b   :  { %2859 = vmatpush1.bf16.xpose.msra.mxu0 %v13319_v37  ;;  %2921 = vmatpush1.bf16.xpose.msra.mxu1 %v13319_v37 }
 0x58c   :  { %2860 = vmatprep.subr.bf16.mxu0 %v17152_v0  ;;  %2922 = vmatprep.subr.bf16.mxu1 %v17152_v0 }
 0x58d   :  { %2888 = vmatprep.mubr.bf16.mxu0 %v17152_v0  ;;  %2950 = vmatprep.mubr.bf16.mxu1 %v17152_v0 }
 0x593   :  { %2861 = vmatpush1.bf16.xpose.msra.mxu0 %v13333_v41  ;;  %2923 = vmatpush1.bf16.xpose.msra.mxu1 %v13333_v41 }
 0x594   :  { %2862 = vmatprep.subr.bf16.mxu0 %v17152_v0  ;;  %2924 = vmatprep.subr.bf16.mxu1 %v17152_v0 }
 0x59b   :  { %2863 = vmatpush1.bf16.xpose.msra.mxu0 %v13343_v60  ;;  %2925 = vmatpush1.bf16.xpose.msra.mxu1 %v13343_v60 }
 0x59c   :  { %2864 = vmatprep.subr.bf16.mxu0 %v17152_v0  ;;  %2926 = vmatprep.subr.bf16.mxu1 %v17152_v0 }
 0x5a3   :  { %2865 = vmatpush1.bf16.xpose.msra.mxu0 %v13353_v21  ;;  %2927 = vmatpush1.bf16.xpose.msra.mxu1 %v13353_v21 }
 0x5a4   :  { %2866 = vmatprep.subr.bf16.mxu0 %v17152_v0  ;;  %2928 = vmatprep.subr.bf16.mxu1 %v17152_v0 }
 0x5ab   :  { %2867 = vmatpush1.bf16.xpose.msra.mxu0 %v13363_v9  ;;  %2929 = vmatpush1.bf16.xpose.msra.mxu1 %v13363_v9 }
 0x5ac   :  { %2868 = vmatprep.subr.bf16.mxu0 %v17152_v0  ;;  %2930 = vmatprep.subr.bf16.mxu1 %v17152_v0 }
 0x5b3   :  { %2869 = vmatpush1.bf16.xpose.msra.mxu0 %v13373_v29  ;;  %2931 = vmatpush1.bf16.xpose.msra.mxu1 %v13373_v29 }
 0x5b4   :  { %2870 = vmatprep.subr.bf16.mxu0 %v17152_v0  ;;  %2932 = vmatprep.subr.bf16.mxu1 %v17152_v0 }
 0x5bb   :  { %2871 = vmatpush1.bf16.xpose.msra.mxu0 %v13383_v11  ;;  %2933 = vmatpush1.bf16.xpose.msra.mxu1 %v13383_v11 }
 0x5bc   :  { %2872 = vmatprep.subr.bf16.mxu0 %v17152_v0  ;;  %2934 = vmatprep.subr.bf16.mxu1 %v17152_v0 }
 0x5c3   :  { %2873 = vmatpush1.bf16.xpose.msra.mxu0 %v13393_v5  ;;  %2935 = vmatpush1.bf16.xpose.msra.mxu1 %v13393_v5 }
 0x5c4   :  { %2874 = vmatprep.subr.bf16.mxu0 %v17152_v0  ;;  %2936 = vmatprep.subr.bf16.mxu1 %v17152_v0 }
 0x5cb   :  { %2875 = vmatpush1.bf16.xpose.msra.mxu0 %v13403_v16  ;;  %2937 = vmatpush1.bf16.xpose.msra.mxu1 %v13403_v16 }
 0x5cc   :  { %2876 = vmatprep.subr.bf16.mxu0 %v17152_v0  ;;  %2938 = vmatprep.subr.bf16.mxu1 %v17152_v0 }
 0x5d3   :  { %2877 = vmatpush1.bf16.xpose.msra.mxu0 %v13413_v39  ;;  %2939 = vmatpush1.bf16.xpose.msra.mxu1 %v13413_v39 }
 0x5d4   :  { %2980 = vmatprep.subr.bf16.mxu0 %v17152_v0  ;;  %3042 = vmatprep.subr.bf16.mxu1 %v17152_v0 }
 0x5da   :  { %10885 = vmatmul.mubr.msk.bf16.vlgmr.msra.gmra.mrb[0].mxu0 %vm199_vm0, %v2763_v58  ;;  %10887 = vmatmul.mubr.msk.bf16.vlgmr.msra.gmra.mrb[0].mxu1 %vm199_vm0, %v2911_v35 }
 0x5db   :  { %2981 = vmatpush1.bf16.xpose.msra.mxu0 %v13305_v23  ;;  %3043 = vmatpush1.bf16.xpose.msra.mxu1 %v13305_v23 }
 0x5dc   :  { %2898 = vmatprep.mubr.bf16.mxu0 %v17152_v0  ;;  %2960 = vmatprep.mubr.bf16.mxu1 %v17152_v0 }
 0x5dd   :  { %2982 = vmatprep.subr.bf16.mxu0 %v17152_v0  ;;  %3044 = vmatprep.subr.bf16.mxu1 %v17152_v0 }
 0x5e2   :  { %10886 = vmatmul.mubr.msk.bf16.gmra.mrb[4].mxu0 %vm199_vm0, %v2762_v2  ;;  %10888 = vmatmul.mubr.msk.bf16.gmra.mrb[4].mxu1 %vm199_vm0, %v2910_v12 }
 0x5e3   :  { %2983 = vmatpush1.bf16.xpose.msra.mxu0 %v13319_v37  ;;  %3045 = vmatpush1.bf16.xpose.msra.mxu1 %v13319_v37 }
 0x5e4   :  { %2984 = vmatprep.subr.bf16.mxu0 %v17152_v0  ;;  %3046 = vmatprep.subr.bf16.mxu1 %v17152_v0 }
 0x5e5   :  { %3012 = vmatprep.mubr.bf16.mxu0 %v17152_v0  ;;  %3074 = vmatprep.mubr.bf16.mxu1 %v17152_v0 }
 0x5eb   :  { %2985 = vmatpush1.bf16.xpose.msra.mxu0 %v13333_v41  ;;  %3047 = vmatpush1.bf16.xpose.msra.mxu1 %v13333_v41 }
 0x5ec   :  { %2986 = vmatprep.subr.bf16.mxu0 %v17152_v0  ;;  %3048 = vmatprep.subr.bf16.mxu1 %v17152_v0 }
 0x5f3   :  { %2987 = vmatpush1.bf16.xpose.msra.mxu0 %v13343_v60  ;;  %3049 = vmatpush1.bf16.xpose.msra.mxu1 %v13343_v60 }
 0x5f4   :  { %2988 = vmatprep.subr.bf16.mxu0 %v17152_v0  ;;  %3050 = vmatprep.subr.bf16.mxu1 %v17152_v0 }
 0x5fb   :  { %2989 = vmatpush1.bf16.xpose.msra.mxu0 %v13353_v21  ;;  %3051 = vmatpush1.bf16.xpose.msra.mxu1 %v13353_v21 }
 0x5fc   :  { %2990 = vmatprep.subr.bf16.mxu0 %v17152_v0  ;;  %3052 = vmatprep.subr.bf16.mxu1 %v17152_v0 }
 0x603   :  { %2991 = vmatpush1.bf16.xpose.msra.mxu0 %v13363_v9  ;;  %3053 = vmatpush1.bf16.xpose.msra.mxu1 %v13363_v9 }
 0x604   :  { %2992 = vmatprep.subr.bf16.mxu0 %v17152_v0  ;;  %3054 = vmatprep.subr.bf16.mxu1 %v17152_v0 }
 0x60b   :  { %2993 = vmatpush1.bf16.xpose.msra.mxu0 %v13373_v29  ;;  %3055 = vmatpush1.bf16.xpose.msra.mxu1 %v13373_v29 }
 0x60c   :  { %2994 = vmatprep.subr.bf16.mxu0 %v17152_v0  ;;  %3056 = vmatprep.subr.bf16.mxu1 %v17152_v0 }
 0x613   :  { %2995 = vmatpush1.bf16.xpose.msra.mxu0 %v13383_v11  ;;  %3057 = vmatpush1.bf16.xpose.msra.mxu1 %v13383_v11 }
 0x614   :  { %2996 = vmatprep.subr.bf16.mxu0 %v17152_v0  ;;  %3058 = vmatprep.subr.bf16.mxu1 %v17152_v0 }
 0x61b   :  { %2997 = vmatpush1.bf16.xpose.msra.mxu0 %v13393_v5  ;;  %3059 = vmatpush1.bf16.xpose.msra.mxu1 %v13393_v5 }
 0x61c   :  { %2998 = vmatprep.subr.bf16.mxu0 %v17152_v0  ;;  %3060 = vmatprep.subr.bf16.mxu1 %v17152_v0 }
 0x623   :  { %2999 = vmatpush1.bf16.xpose.msra.mxu0 %v13403_v16  ;;  %3061 = vmatpush1.bf16.xpose.msra.mxu1 %v13403_v16 }
 0x624   :  { %3000 = vmatprep.subr.bf16.mxu0 %v17152_v0  ;;  %3062 = vmatprep.subr.bf16.mxu1 %v17152_v0 }
 0x62b   :  { %3001 = vmatpush1.bf16.xpose.msra.mxu0 %v13413_v39  ;;  %3063 = vmatpush1.bf16.xpose.msra.mxu1 %v13413_v39 }
 0x62c   :  { %3104 = vmatprep.subr.bf16.mxu0 %v17152_v0  ;;  %3166 = vmatprep.subr.bf16.mxu1 %v17152_v0 }
 0x632   :  { %10889 = vmatmul.mubr.msk.bf16.vlgmr.msra.gmra.mrb[8].mxu0 %vm199_vm0, %v2973_v53  ;;  %10891 = vmatmul.mubr.msk.bf16.vlgmr.msra.gmra.mrb[8].mxu1 %vm199_vm0, %v3035_v61 }
 0x633   :  { %3105 = vmatpush1.bf16.xpose.msra.mxu0 %v13305_v23  ;;  %3167 = vmatpush1.bf16.xpose.msra.mxu1 %v13305_v23 }
 0x634   :  { %3022 = vmatprep.mubr.bf16.mxu0 %v17152_v0  ;;  %3084 = vmatprep.mubr.bf16.mxu1 %v17152_v0 }
 0x635   :  { %3106 = vmatprep.subr.bf16.mxu0 %v17152_v0  ;;  %3168 = vmatprep.subr.bf16.mxu1 %v17152_v0 }
 0x63a   :  { %10890 = vmatmul.mubr.msk.bf16.gmra.mrb[12].mxu0 %vm199_vm0, %v2972_v27  ;;  %10892 = vmatmul.mubr.msk.bf16.gmra.mrb[12].mxu1 %vm199_vm0, %v3034_v33 }
 0x63b   :  { %3107 = vmatpush1.bf16.xpose.msra.mxu0 %v13319_v37  ;;  %3169 = vmatpush1.bf16.xpose.msra.mxu1 %v13319_v37 }
 0x63c   :  { %3108 = vmatprep.subr.bf16.mxu0 %v17152_v0  ;;  %3170 = vmatprep.subr.bf16.mxu1 %v17152_v0 }
 0x63d   :  { %3136 = vmatprep.mubr.bf16.mxu0 %v17152_v0  ;;  %3198 = vmatprep.mubr.bf16.mxu1 %v17152_v0 }
 0x643   :  { %3109 = vmatpush1.bf16.xpose.msra.mxu0 %v13333_v41  ;;  %3171 = vmatpush1.bf16.xpose.msra.mxu1 %v13333_v41 }
 0x644   :  { %3110 = vmatprep.subr.bf16.mxu0 %v17152_v0  ;;  %3172 = vmatprep.subr.bf16.mxu1 %v17152_v0 }
 0x64b   :  { %3111 = vmatpush1.bf16.xpose.msra.mxu0 %v13343_v60  ;;  %3173 = vmatpush1.bf16.xpose.msra.mxu1 %v13343_v60 }
 0x64c   :  { %3112 = vmatprep.subr.bf16.mxu0 %v17152_v0  ;;  %3174 = vmatprep.subr.bf16.mxu1 %v17152_v0 }
 0x653   :  { %3113 = vmatpush1.bf16.xpose.msra.mxu0 %v13353_v21  ;;  %3175 = vmatpush1.bf16.xpose.msra.mxu1 %v13353_v21 }
 0x654   :  { %3114 = vmatprep.subr.bf16.mxu0 %v17152_v0  ;;  %3176 = vmatprep.subr.bf16.mxu1 %v17152_v0 }
 0x65b   :  { %3115 = vmatpush1.bf16.xpose.msra.mxu0 %v13363_v9  ;;  %3177 = vmatpush1.bf16.xpose.msra.mxu1 %v13363_v9 }
 0x65c   :  { %3116 = vmatprep.subr.bf16.mxu0 %v17152_v0  ;;  %3178 = vmatprep.subr.bf16.mxu1 %v17152_v0 }
 0x663   :  { %3117 = vmatpush1.bf16.xpose.msra.mxu0 %v13373_v29  ;;  %3179 = vmatpush1.bf16.xpose.msra.mxu1 %v13373_v29 }
 0x664   :  { %3118 = vmatprep.subr.bf16.mxu0 %v17152_v0  ;;  %3180 = vmatprep.subr.bf16.mxu1 %v17152_v0 }
 0x66b   :  { %3119 = vmatpush1.bf16.xpose.msra.mxu0 %v13383_v11  ;;  %3181 = vmatpush1.bf16.xpose.msra.mxu1 %v13383_v11 }
 0x66c   :  { %3120 = vmatprep.subr.bf16.mxu0 %v17152_v0  ;;  %3182 = vmatprep.subr.bf16.mxu1 %v17152_v0 }
 0x673   :  { %3121 = vmatpush1.bf16.xpose.msra.mxu0 %v13393_v5  ;;  %3183 = vmatpush1.bf16.xpose.msra.mxu1 %v13393_v5 }
 0x674   :  { %3122 = vmatprep.subr.bf16.mxu0 %v17152_v0  ;;  %3184 = vmatprep.subr.bf16.mxu1 %v17152_v0 }
 0x67b   :  { %3123 = vmatpush1.bf16.xpose.msra.mxu0 %v13403_v16  ;;  %3185 = vmatpush1.bf16.xpose.msra.mxu1 %v13403_v16 }
 0x67c   :  { %3124 = vmatprep.subr.bf16.mxu0 %v17152_v0  ;;  %3186 = vmatprep.subr.bf16.mxu1 %v17152_v0 }
 0x683   :  { %3125 = vmatpush1.bf16.xpose.msra.mxu0 %v13413_v39  ;;  %3187 = vmatpush1.bf16.xpose.msra.mxu1 %v13413_v39 }
 0x684   :  { %3228 = vmatprep.subr.bf16.mxu0 %v17152_v0  ;;  %3290 = vmatprep.subr.bf16.mxu1 %v17152_v0 }
 0x68a   :  { %10893 = vmatmul.mubr.msk.bf16.vlgmr.msra.gmra.mrb[16].mxu0 %vm199_vm0, %v3097_v62  ;;  %10895 = vmatmul.mubr.msk.bf16.vlgmr.msra.gmra.mrb[16].mxu1 %vm199_vm0, %v3159_v56 }
 0x68b   :  { %3229 = vmatpush1.bf16.xpose.msra.mxu0 %v13305_v23  ;;  %3291 = vmatpush1.bf16.xpose.msra.mxu1 %v13305_v23 }
 0x68c   :  { %3146 = vmatprep.mubr.bf16.mxu0 %v17152_v0  ;;  %3208 = vmatprep.mubr.bf16.mxu1 %v17152_v0 }
 0x68d   :  { %3230 = vmatprep.subr.bf16.mxu0 %v17152_v0  ;;  %3292 = vmatprep.subr.bf16.mxu1 %v17152_v0 }
 0x692   :  { %10894 = vmatmul.mubr.msk.bf16.gmra.mrb[20].mxu0 %vm199_vm0, %v3096_v59  ;;  %10896 = vmatmul.mubr.msk.bf16.gmra.mrb[20].mxu1 %vm199_vm0, %v3158_v3 }
 0x693   :  { %3231 = vmatpush1.bf16.xpose.msra.mxu0 %v13319_v37  ;;  %3293 = vmatpush1.bf16.xpose.msra.mxu1 %v13319_v37 }
 0x694   :  { %3232 = vmatprep.subr.bf16.mxu0 %v17152_v0  ;;  %3294 = vmatprep.subr.bf16.mxu1 %v17152_v0 }
 0x695   :  { %3260 = vmatprep.mubr.bf16.mxu0 %v17152_v0  ;;  %3322 = vmatprep.mubr.bf16.mxu1 %v17152_v0 }
 0x69b   :  { %3233 = vmatpush1.bf16.xpose.msra.mxu0 %v13333_v41  ;;  %3295 = vmatpush1.bf16.xpose.msra.mxu1 %v13333_v41 }
 0x69c   :  { %3234 = vmatprep.subr.bf16.mxu0 %v17152_v0  ;;  %3296 = vmatprep.subr.bf16.mxu1 %v17152_v0 }
 0x6a3   :  { %3235 = vmatpush1.bf16.xpose.msra.mxu0 %v13343_v60  ;;  %3297 = vmatpush1.bf16.xpose.msra.mxu1 %v13343_v60 }
 0x6a4   :  { %3236 = vmatprep.subr.bf16.mxu0 %v17152_v0  ;;  %3298 = vmatprep.subr.bf16.mxu1 %v17152_v0 }
 0x6ab   :  { %3237 = vmatpush1.bf16.xpose.msra.mxu0 %v13353_v21  ;;  %3299 = vmatpush1.bf16.xpose.msra.mxu1 %v13353_v21 }
 0x6ac   :  { %3238 = vmatprep.subr.bf16.mxu0 %v17152_v0  ;;  %3300 = vmatprep.subr.bf16.mxu1 %v17152_v0 }
 0x6ad   :  { %v2890_v51 = vpop.f32.mrb[0].mxu0  ;;  %v2952_v20 = vpop.f32.mrb[0].mxu1 }
 0x6ae   :  { %v3419_v4 = vadd.f32 %v13575_v38, %v2890_v51  ;;  %v3427_v36 = vadd.f32 %v13575_v38, %v2952_v20  ;;  %v2892_v50 = vpop.f32.mrb[1].mxu0  ;;  %v2954_v52 = vpop.f32.mrb[1].mxu1 }
 0x6af   :  { %v3420_v8 = vadd.f32 %v13581_v40, %v2892_v50  ;;  %v3428_v44 = vadd.f32 %v13581_v40, %v2954_v52  ;;  %v2894_v7 = vpop.f32.mrb[2].mxu0  ;;  %v2956_v19 = vpop.f32.mrb[2].mxu1 }
 0x6b0   :  { %v3483_v23 = vmax.f32 %v3419_v4, 0.0  ;;  %v3491_v22 = vmax.f32 %v3427_v36, 0.0  ;;  %v13590_v37 = vadd.f32 %v13575_v38, %v2894_v7  ;;  %v13593_v34 = vadd.f32 %v13575_v38, %v2956_v19  ;;  %v2896_v41 = vpop.f32.mrb[3].mxu0  ;;  %v2958_v49 = vpop.f32.mrb[3].mxu1 }
 0x6b1   :  { %v3484_v60 = vmax.f32 %v3420_v8, 0.0  ;;  %v3492_v43 = vmax.f32 %v3428_v44, 0.0  ;;  %v13596_v21 = vadd.f32 %v13581_v40, %v2896_v41  ;;  %v13599_v25 = vadd.f32 %v13581_v40, %v2958_v49 }
 0x6b2   :  { %v3485_v6 = vmax.f32 %v13590_v37, 0.0  ;;  %v3493_v63 = vmax.f32 %v13593_v34, 0.0  ;;  %v3612_v28 = vrot.slane %v3483_v23, 1  ;;  %v3626_v2 = vrot.slane %v3491_v22, 1 }
 0x6b3   :  { %v3486_v13 = vmax.f32 %v13596_v21, 0.0  ;;  %v3494_v32 = vmax.f32 %v13599_v25, 0.0  ;;  %3239 = vmatpush1.bf16.xpose.msra.mxu0 %v13363_v9  ;;  %3301 = vmatpush1.bf16.xpose.msra.mxu1 %v13363_v9  ;;  %v3615_v58 = vrot.slane %v3484_v60, 1  ;;  %v3629_v35 = vrot.slane %v3492_v43, 1 }
 0x6b4   :  { %v3613_v30 = vrot.slane %v3485_v6, 1  ;;  %v3627_v12 = vrot.slane %v3493_v63, 1  ;;  %3240 = vmatprep.subr.bf16.mxu0 %v17152_v0  ;;  %3302 = vmatprep.subr.bf16.mxu1 %v17152_v0 }
 0x6b5   :  { %v3616_v26 = vrot.slane %v3486_v13, 1  ;;  %v3630_v27 = vrot.slane %v3494_v32, 1  ;;  %v2900_v31 = vpop.f32.mrb[4].mxu0  ;;  %v2962_v33 = vpop.f32.mrb[4].mxu1 }
 0x6b6   :  { %v3614_v53 = vsel %vm17160_vm2, %v3612_v28, %v3613_v30  ;;  %v3628_v61 = vsel %vm17160_vm2, %v3626_v2, %v3627_v12  ;;  %v13628_v57 = vadd.f32 %v13575_v38, %v2900_v31  ;;  %v13631_v59 = vadd.f32 %v13575_v38, %v2962_v33  ;;  %v2902_v1 = vpop.f32.mrb[5].mxu0  ;;  %v2964_v3 = vpop.f32.mrb[5].mxu1 }
 0x6b7   :  { %v3788_v62 = vmax.f32 %v3483_v23, %v3614_v53  ;;  %v3796_v56 = vmax.f32 %v3491_v22, %v3628_v61  ;;  %v3617_v55 = vsel %vm17160_vm2, %v3615_v58, %v3616_v26  ;;  %v3631_v18 = vsel %vm17160_vm2, %v3629_v35, %v3630_v27  ;;  %v2904_v42 = vpop.f32.mrb[6].mxu0  ;;  %v2966_v51 = vpop.f32.mrb[6].mxu1 }
 0x6b8   :  { %v3789_v20 = vmax.f32 %v3484_v60, %v3617_v55  ;;  %v3797_v4 = vmax.f32 %v3492_v43, %v3631_v18  ;;  %v3487_v36 = vmax.f32 %v13628_v57, 0.0  ;;  %v3495_v50 = vmax.f32 %v13631_v59, 0.0  ;;  %v2906_v52 = vpop.f32.mrb[7].mxu0  ;;  %v2968_v8 = vpop.f32.mrb[7].mxu1 }
 0x6b9   :  { %v13638_v44 = vadd.f32 %v13581_v40, %v2902_v1  ;;  %v13641_v7 = vadd.f32 %v13581_v40, %v2964_v3  ;;  %v13644_v19 = vadd.f32 %v13575_v38, %v2904_v42  ;;  %v13647_v24 = vadd.f32 %v13575_v38, %v2966_v51 }
 0x6ba   :  { %v3868_v23 = vcombine.low %v3788_v62, %v3789_v20  ;;  %v4063_v22 = vcombine.high %v3788_v62, %v3789_v20  ;;  %v3883_v41 = vcombine.low %v3796_v56, %v3797_v4  ;;  %v4078_v49 = vcombine.high %v3796_v56, %v3797_v4 }
 0x6bb   :  { %v3618_v60 = vrot.slane %v3487_v36, 1  ;;  %v3632_v43 = vrot.slane %v3495_v50, 1  ;;  %v3488_v28 = vmax.f32 %v13638_v44, 0.0  ;;  %v3496_v2 = vmax.f32 %v13641_v7, 0.0  ;;  %3241 = vmatpush1.bf16.xpose.msra.mxu0 %v13373_v29  ;;  %3303 = vmatpush1.bf16.xpose.msra.mxu1 %v13373_v29 }
 0x6bc   :  { %v3875_v58 = vrot.slane %v3868_v23, %v13605_v17  ;;  %v4070_v35 = vrot.slane %v4063_v22, %v13605_v17  ;;  %v3890_v31 = vrot.slane %v3883_v41, %v13605_v17  ;;  %v4085_v33 = vrot.slane %v4078_v49, %v13605_v17  ;;  %3242 = vmatprep.subr.bf16.mxu0 %v17152_v0 }
 0x6bd   :  { %v3619_v53 = vsel %vm17160_vm2, %v3613_v30, %v3618_v60  ;;  %v3633_v61 = vsel %vm17160_vm2, %v3627_v12, %v3632_v43  ;;  %v13666_v1 = vrot.slane %v3488_v28, 1  ;;  %v13670_v29 = vrot.slane %v3496_v2, 1  ;;  %3304 = vmatprep.subr.bf16.mxu1 %v17152_v0 }
 0x6be   :  { %v3882_v3 = vrot.slane %v3875_v58, %v13605_v17  ;;  %v4077_v62 = vrot.slane %v4070_v35, %v13605_v17  ;;  %v3897_v56 = vrot.slane %v3890_v31, %v13605_v17  ;;  %v4092_v30 = vrot.slane %v4085_v33, %v13605_v17 }
 0x6bf   :  { %v3790_v12 = vmax.f32 %v3485_v6, %v3619_v53  ;;  %v3798_v55 = vmax.f32 %v3493_v63, %v3633_v61  ;;  %v3621_v18 = vsel %vm17160_vm2, %v3616_v26, %v13666_v1  ;;  %v3635_v42 = vsel %vm17160_vm2, %v3630_v27, %v13670_v29 }
 0x6c0   :  { %4000 = vst.msk [vmem:[#allocation2] ss:$8 sm:$0x3] %vm13619_vm5, %v3882_v3  ;;  %v4023_v51 = vcombine.high %v3882_v3, %v3882_v3  ;;  %4192 = vst.msk [vmem:[#allocation2 + $0x2] ss:$8 sm:$0x3] %vm13619_vm5, %v4077_v62  ;;  %v4215_v20 = vcombine.high %v4077_v62, %v4077_v62  ;;  %v4024_v37 = vcombine.high %v3897_v56, %v3897_v56 }
 0x6c1   :  { %4003 = vst.msk [vmem:[#allocation2 + $0x20] ss:$8 sm:$0x3] %vm13619_vm5, %v3897_v56  ;;  %4195 = vst.msk [vmem:[#allocation2 + $0x22] ss:$8 sm:$0x3] %vm13619_vm5, %v4092_v30  ;;  %v4216_v34 = vcombine.high %v4092_v30, %v4092_v30  ;;  %v3791_v6 = vmax.f32 %v3486_v13, %v3621_v18  ;;  %v3799_v63 = vmax.f32 %v3494_v32, %v3635_v42 }
 0x6c2   :  { %v3489_v26 = vmax.f32 %v13644_v19, 0.0  ;;  %v3497_v27 = vmax.f32 %v13647_v24, 0.0  ;;  %4040 = vst.msk [vmem:[#allocation2 + $0x1] ss:$8 sm:$0x3] %vm13619_vm5, %v4023_v51  ;;  %v3426_v21 = vadd.f32 %v13581_v40, %v2906_v52  ;;  %v3434_v25 = vadd.f32 %v13581_v40, %v2968_v8 }
 0x6c3   :  { %4232 = vst.msk [vmem:[#allocation2 + $0x3] ss:$8 sm:$0x3] %vm13619_vm5, %v4215_v20  ;;  %4043 = vst.msk [vmem:[#allocation2 + $0x21] ss:$8 sm:$0x3] %vm13619_vm5, %v4024_v37  ;;  %v4271_v13 = vcombine.low %v3790_v12, %v3791_v6  ;;  %v4463_v32 = vcombine.high %v3790_v12, %v3791_v6  ;;  %v4286_v4 = vcombine.low %v3798_v55, %v3799_v63  ;;  %3243 = vmatpush1.bf16.xpose.msra.mxu0 %v13383_v11 }
 0x6c4   :  { %4235 = vst.msk [vmem:[#allocation2 + $0x23] ss:$8 sm:$0x3] %vm13619_vm5, %v4216_v34  ;;  %v4478_v19 = vcombine.high %v3798_v55, %v3799_v63  ;;  %v3622_v24 = vrot.slane %v3489_v26, 1  ;;  %v3636_v23 = vrot.slane %v3497_v27, 1  ;;  %v3490_v22 = vmax.f32 %v3426_v21, 0.0  ;;  %3305 = vmatpush1.bf16.xpose.msra.mxu1 %v13383_v11  ;;  %3244 = vmatprep.subr.bf16.mxu0 %v17152_v0 }
 0x6c5   :  { %v3498_v41 = vmax.f32 %v3434_v25, 0.0  ;;  %v4278_v49 = vrot.slane %v4271_v13, %v13605_v17  ;;  %v4470_v52 = vrot.slane %v4463_v32, %v13605_v17  ;;  %v4293_v8 = vrot.slane %v4286_v4, %v13605_v17  ;;  %3306 = vmatprep.subr.bf16.mxu1 %v17152_v0 }
 0x6c6   :  { %v4485_v58 = vrot.slane %v4478_v19, %v13605_v17  ;;  %v3623_v35 = vsel %vm17160_vm2, %v3618_v60, %v3622_v24  ;;  %v3794_v31 = vmax.f32 %v3489_v26, %v3622_v24  ;;  %v3637_v33 = vsel %vm17160_vm2, %v3632_v43, %v3636_v23 }
 0x6c7   :  { %v3802_v53 = vmax.f32 %v3497_v27, %v3636_v23  ;;  %v4285_v11 = vrot.slane %v4278_v49, %v13605_v17  ;;  %v4477_v61 = vrot.slane %v4470_v52, %v13605_v17  ;;  %v4300_v3 = vrot.slane %v4293_v8, %v13605_v17 }
 0x6c8   :  { %v4492_v62 = vrot.slane %v4485_v58, %v13605_v17  ;;  %v3792_v56 = vmax.f32 %v3487_v36, %v3623_v35  ;;  %v3800_v30 = vmax.f32 %v3495_v50, %v3637_v33  ;;  %v3624_v12 = vrot.slane %v3490_v22, 1 }
 0x6c9   :  { %v3638_v60 = vrot.slane %v3498_v41, 1  ;;  %4400 = vst.msk [vmem:[#allocation2 + $0x4] ss:$8 sm:$0x3] %vm13619_vm5, %v4285_v11  ;;  %v4423_v43 = vcombine.high %v4285_v11, %v4285_v11  ;;  %v4615_v55 = vcombine.high %v4477_v61, %v4477_v61  ;;  %v4424_v18 = vcombine.high %v4300_v3, %v4300_v3 }
 0x6ca   :  { %4592 = vst.msk [vmem:[#allocation2 + $0x6] ss:$8 sm:$0x3] %vm13619_vm5, %v4477_v61  ;;  %4403 = vst.msk [vmem:[#allocation2 + $0x24] ss:$8 sm:$0x3] %vm13619_vm5, %v4300_v3  ;;  %v4616_v57 = vcombine.high %v4492_v62, %v4492_v62  ;;  %v3625_v59 = vsel %vm17160_vm2, %v13666_v1, %v3624_v12  ;;  %v3795_v36 = vmax.f32 %v3490_v22, %v3624_v12 }
 0x6cb   :  { %4595 = vst.msk [vmem:[#allocation2 + $0x26] ss:$8 sm:$0x3] %vm13619_vm5, %v4492_v62  ;;  %v3639_v50 = vsel %vm17160_vm2, %v13670_v29, %v3638_v60  ;;  %v3803_v42 = vmax.f32 %v3498_v41, %v3638_v60  ;;  %4440 = vst.msk [vmem:[#allocation2 + $0x5] ss:$8 sm:$0x3] %vm13619_vm5, %v4423_v43  ;;  %v3793_v1 = vmax.f32 %v3488_v28, %v3625_v59  ;;  %3245 = vmatpush1.bf16.xpose.msra.mxu0 %v13393_v5 }
 0x6cc   :  { %4632 = vst.msk [vmem:[#allocation2 + $0x7] ss:$8 sm:$0x3] %vm13619_vm5, %v4615_v55  ;;  %4443 = vst.msk [vmem:[#allocation2 + $0x25] ss:$8 sm:$0x3] %vm13619_vm5, %v4424_v18  ;;  %v3801_v51 = vmax.f32 %v3496_v2, %v3639_v50  ;;  %v5071_v29 = vcombine.low %v3794_v31, %v3795_v36  ;;  %3307 = vmatpush1.bf16.xpose.msra.mxu1 %v13393_v5  ;;  %3246 = vmatprep.subr.bf16.mxu0 %v17152_v0 }
 0x6cd   :  { %4635 = vst.msk [vmem:[#allocation2 + $0x27] ss:$8 sm:$0x3] %vm13619_vm5, %v4616_v57  ;;  %v5086_v20 = vcombine.low %v3802_v53, %v3803_v42  ;;  %v4671_v37 = vcombine.low %v3792_v56, %v3793_v1  ;;  %v4863_v34 = vcombine.high %v3792_v56, %v3793_v1  ;;  %3308 = vmatprep.subr.bf16.mxu1 %v17152_v0  ;;  %v3219_v33 = vrot.slane %v12299_v10, 2 }
 0x6ce   :  { %v4686_v6 = vcombine.low %v3800_v30, %v3801_v51  ;;  %v4878_v63 = vcombine.high %v3800_v30, %v3801_v51  ;;  %v5078_v44 = vrot.slane %v5071_v29, %v13605_v17  ;;  %v3220_v53 = vrot.slane %v12318_v46, 2 }
 0x6cf   :  { %v5093_v28 = vrot.slane %v5086_v20, %v13605_v17  ;;  %v4678_v7 = vrot.slane %v4671_v37, %v13605_v17  ;;  %v4870_v2 = vrot.slane %v4863_v34, %v13605_v17  ;;  %v3282_v11 = vrot.slane %v12320_v48, 2 }
 0x6d0   :  { %v4693_v26 = vrot.slane %v4686_v6, %v13605_v17  ;;  %v4885_v5 = vrot.slane %v4878_v63, %v13605_v17  ;;  %v5085_v27 = vrot.slane %v5078_v44, %v13605_v17  ;;  %v3221_v10 = vsel %vm2760_vm4, %v3219_v33, %v3220_v53 }
 0x6d1   :  { %v5100_v21 = vrot.slane %v5093_v28, %v13605_v17  ;;  %v4685_v25 = vrot.slane %v4678_v7, %v13605_v17  ;;  %v4877_v13 = vrot.slane %v4870_v2, %v13605_v17 }
 0x6d2   :  { %v4700_v32 = vrot.slane %v4693_v26, %v13605_v17  ;;  %v4892_v4 = vrot.slane %v4885_v5, %v13605_v17  ;;  %5200 = vst.msk [vmem:[#allocation2 + $0x14] ss:$8 sm:$0x3] %vm13619_vm5, %v5085_v27  ;;  %v5223_v19 = vcombine.high %v5085_v27, %v5085_v27 }
 0x6d3   :  { %5203 = vst.msk [vmem:[#allocation2 + $0x34] ss:$8 sm:$0x3] %vm13619_vm5, %v5100_v21  ;;  %v5224_v24 = vcombine.high %v5100_v21, %v5100_v21  ;;  %v13773_v22 = vld [vmem:[#allocation2] sm:$0xff]  ;;  %v4823_v41 = vcombine.high %v4685_v25, %v4685_v25  ;;  %v5015_v49 = vcombine.high %v4877_v13, %v4877_v13  ;;  %3247 = vmatpush1.bf16.xpose.msra.mxu0 %v13403_v16  ;;  %v5264_v58 = vld [vmem:[#allocation2 + $0x8] sm:$0xff] }
 0x6d4   :  { %v13771_v23 = vld [vmem:[#allocation2 + $0x20] sm:$0xff]  ;;  %4800 = vst.msk [vmem:[#allocation2 + $0x10] ss:$8 sm:$0x3] %vm13619_vm5, %v4685_v25  ;;  %v4824_v52 = vcombine.high %v4700_v32, %v4700_v32  ;;  %v5016_v8 = vcombine.high %v4892_v4, %v4892_v4  ;;  %5311 = vrot.lane.b32.xlu0 %v13773_v22, %s11772_s2  ;;  %3309 = vmatpush1.bf16.xpose.msra.mxu1 %v13403_v16  ;;  %v5268_v35 = vld [vmem:[#allocation2 + $0x28] sm:$0xff]  ;;  %v3281_v16 = vrot.slane %v12304_v14, 2 }
 0x6d5   :  { %4992 = vst.msk [vmem:[#allocation2 + $0x12] ss:$8 sm:$0x3] %vm13619_vm5, %v4877_v13  ;;  %4803 = vst.msk [vmem:[#allocation2 + $0x30] ss:$8 sm:$0x3] %vm13619_vm5, %v4700_v32  ;;  %5315 = vrot.lane.b32.xlu1 %v13771_v23, %s11772_s2  ;;  %3248 = vmatprep.subr.bf16.mxu0 %v17152_v0 }
 0x6d6   :  { %4995 = vst.msk [vmem:[#allocation2 + $0x32] ss:$8 sm:$0x3] %vm13619_vm5, %v4892_v4  ;;  %5240 = vst.msk [vmem:[#allocation2 + $0x15] ss:$8 sm:$0x3] %vm13619_vm5, %v5223_v19  ;;  %3310 = vmatprep.subr.bf16.mxu1 %v17152_v0  ;;  %v3283_v46 = vsel %vm2760_vm4, %v3281_v16, %v3282_v11 }
 0x6d7   :  { %5243 = vst.msk [vmem:[#allocation2 + $0x35] ss:$8 sm:$0x3] %vm13619_vm5, %v5224_v24  ;;  %4840 = vst.msk [vmem:[#allocation2 + $0x11] ss:$8 sm:$0x3] %vm13619_vm5, %v4823_v41 }
 0x6d8   :  { %5032 = vst.msk [vmem:[#allocation2 + $0x13] ss:$8 sm:$0x3] %vm13619_vm5, %v5015_v49  ;;  %4843 = vst.msk [vmem:[#allocation2 + $0x31] ss:$8 sm:$0x3] %vm13619_vm5, %v4824_v52  ;;  %6019 = vrot.lane.b32.xlu0 %v5264_v58, %s11772_s2 }
 0x6d9   :  { %5035 = vst.msk [vmem:[#allocation2 + $0x33] ss:$8 sm:$0x3] %vm13619_vm5, %v5016_v8  ;;  %vm17161_vm4 = vcmask 343328  }
 0x6db   :  { %3249 = vmatpush1.bf16.xpose.msra.mxu0 %v13413_v39 }
 0x6dc   :  { %6023 = vrot.lane.b32.xlu0 %v5268_v35, %s11772_s2  ;;  %3311 = vmatpush1.bf16.xpose.msra.mxu1 %v13413_v39 }
 0x6dd   :  { %6584 = vmatprep.subr.bf16.mxu0 %v17152_v0  ;;  %6637 = vmatprep.subr.bf16.mxu1 %v17152_v0 }
 0x6df   :  { %v13817_v61 = vld [vmem:[#allocation2 + $0x10] sm:$0x3f]  ;;  %v5266_v3 = vld [vmem:[#allocation2 + $0x18] sm:$0x3f] }
 0x6e0   :  { %v13804_v31 = vld [vmem:[#allocation2 + $0x30] sm:$0x3f]  ;;  %5313 = vrot.lane.b32.xlu0 %v13817_v61, %s11772_s2  ;;  %v5270_v14 = vld [vmem:[#allocation2 + $0x38] sm:$0x3f] }
 0x6e1   :  { %5317 = vrot.lane.b32.xlu1 %v13804_v31, %s11772_s2 }
 0x6e2   :  { %10897 = vmatmul.mubr.msk.bf16.vlgmr.msra.gmra.mrb[24].mxu0 %vm199_vm0, %v3221_v10 }
 0x6e3   :  { %10899 = vmatmul.mubr.msk.bf16.vlgmr.msra.gmra.mrb[24].mxu1 %vm199_vm0, %v3283_v46  ;;  %3270 = vmatprep.mubr.bf16.mxu0 %v17152_v0 }
 0x6e4   :  { %3332 = vmatprep.mubr.bf16.mxu1 %v17152_v0 }
 0x6e5   :  { %6021 = vrot.lane.b32.xlu1 %v5266_v3, %s11772_s2 }
 0x6e9   :  { %6025 = vrot.lane.b32.xlu1 %v5270_v14, %s11772_s2 }
 0x6ea   :  { %10898 = vmatmul.mubr.msk.bf16.gmra.mrb[28].mxu0 %vm199_vm0, %v3220_v53 }
 0x6eb   :  { %10900 = vmatmul.mubr.msk.bf16.gmra.mrb[28].mxu1 %vm199_vm0, %v3282_v11  ;;  %6616 = vmatprep.mubr.bf16.mxu0 %v17152_v0  ;;  %vm17176_vm0 = vcmask 193680  }
 0x6ec   :  { %6669 = vmatprep.mubr.bf16.mxu1 %v17152_v0 }
 0x705   :  { %v3014_v48 = vpop.f32.mrb[8].mxu0  ;;  %v3076_v39 = vpop.f32.mrb[8].mxu1 }
 0x706   :  { %v3435_v62 = vadd.f32 %v13575_v38, %v3014_v48  ;;  %v3443_v56 = vadd.f32 %v13575_v38, %v3076_v39  ;;  %v3016_v30 = vpop.f32.mrb[9].mxu0  ;;  %v3078_v12 = vpop.f32.mrb[9].mxu1 }
 0x707   :  { %v3436_v60 = vadd.f32 %v13581_v40, %v3016_v30  ;;  %v3444_v43 = vadd.f32 %v13581_v40, %v3078_v12  ;;  %v3018_v55 = vpop.f32.mrb[10].mxu0  ;;  %v3080_v18 = vpop.f32.mrb[10].mxu1 }
 0x708   :  { %v3499_v57 = vmax.f32 %v3435_v62, 0.0  ;;  %v3507_v59 = vmax.f32 %v3443_v56, 0.0  ;;  %v13838_v36 = vadd.f32 %v13575_v38, %v3018_v55  ;;  %v13841_v50 = vadd.f32 %v13575_v38, %v3080_v18  ;;  %v3020_v42 = vpop.f32.mrb[11].mxu0  ;;  %v3082_v1 = vpop.f32.mrb[11].mxu1 }
 0x709   :  { %v3500_v51 = vmax.f32 %v3436_v60, 0.0  ;;  %v3508_v29 = vmax.f32 %v3444_v43, 0.0  ;;  %v13844_v20 = vadd.f32 %v13581_v40, %v3020_v42  ;;  %v13847_v37 = vadd.f32 %v13581_v40, %v3082_v1 }
 0x70a   :  { %v3501_v34 = vmax.f32 %v13838_v36, 0.0  ;;  %v3509_v6 = vmax.f32 %v13841_v50, 0.0  ;;  %v3640_v28 = vrot.slane %v3499_v57, 1  ;;  %v3654_v7 = vrot.slane %v3507_v59, 1 }
 0x70b   :  { %v3502_v63 = vmax.f32 %v13844_v20, 0.0  ;;  %v3510_v44 = vmax.f32 %v13847_v37, 0.0  ;;  %v3643_v5 = vrot.slane %v3500_v51, 1  ;;  %v3657_v27 = vrot.slane %v3508_v29, 1 }
 0x70c   :  { %v3641_v2 = vrot.slane %v3501_v34, 1  ;;  %v3655_v26 = vrot.slane %v3509_v6, 1 }
 0x70d   :  { %v3644_v21 = vrot.slane %v3502_v63, 1  ;;  %v3658_v25 = vrot.slane %v3510_v44, 1  ;;  %v3024_v13 = vpop.f32.mrb[12].mxu0  ;;  %v3086_v32 = vpop.f32.mrb[12].mxu1 }
 0x70e   :  { %v3642_v4 = vsel %vm17160_vm2, %v3640_v28, %v3641_v2  ;;  %v3656_v19 = vsel %vm17160_vm2, %v3654_v7, %v3655_v26  ;;  %v13860_v24 = vadd.f32 %v13575_v38, %v3024_v13  ;;  %v13863_v41 = vadd.f32 %v13575_v38, %v3086_v32  ;;  %v3026_v49 = vpop.f32.mrb[13].mxu0  ;;  %v3088_v52 = vpop.f32.mrb[13].mxu1 }
 0x70f   :  { %v3804_v8 = vmax.f32 %v3499_v57, %v3642_v4  ;;  %v3812_v58 = vmax.f32 %v3507_v59, %v3656_v19  ;;  %v3645_v35 = vsel %vm17160_vm2, %v3643_v5, %v3644_v21  ;;  %v3659_v33 = vsel %vm17160_vm2, %v3657_v27, %v3658_v25  ;;  %v3028_v53 = vpop.f32.mrb[14].mxu0  ;;  %v3090_v16 = vpop.f32.mrb[14].mxu1 }
 0x710   :  { %v3805_v11 = vmax.f32 %v3500_v51, %v3645_v35  ;;  %v3813_v3 = vmax.f32 %v3508_v29, %v3659_v33  ;;  %v3503_v10 = vmax.f32 %v13860_v24, 0.0  ;;  %v3511_v46 = vmax.f32 %v13863_v41, 0.0  ;;  %v3030_v14 = vpop.f32.mrb[15].mxu0  ;;  %v3092_v48 = vpop.f32.mrb[15].mxu1 }
 0x711   :  { %v13870_v39 = vadd.f32 %v13581_v40, %v3026_v49  ;;  %v13873_v62 = vadd.f32 %v13581_v40, %v3088_v52  ;;  %v3441_v56 = vadd.f32 %v13575_v38, %v3028_v53  ;;  %v3449_v30 = vadd.f32 %v13575_v38, %v3090_v16 }
 0x712   :  { %v3898_v12 = vcombine.low %v3804_v8, %v3805_v11  ;;  %v4093_v60 = vcombine.high %v3804_v8, %v3805_v11  ;;  %v3913_v43 = vcombine.low %v3812_v58, %v3813_v3  ;;  %v4108_v55 = vcombine.high %v3812_v58, %v3813_v3 }
 0x713   :  { %v3646_v18 = vrot.slane %v3503_v10, 1  ;;  %v3660_v57 = vrot.slane %v3511_v46, 1  ;;  %v3504_v59 = vmax.f32 %v13870_v39, 0.0  ;;  %v3512_v36 = vmax.f32 %v13873_v62, 0.0 }
 0x714   :  { %v3905_v50 = vrot.slane %v3898_v12, %v13605_v17  ;;  %v4100_v42 = vrot.slane %v4093_v60, %v13605_v17  ;;  %v3920_v1 = vrot.slane %v3913_v43, %v13605_v17  ;;  %v4115_v51 = vrot.slane %v4108_v55, %v13605_v17 }
 0x715   :  { %v3647_v29 = vsel %vm17160_vm2, %v3641_v2, %v3646_v18  ;;  %v3661_v28 = vsel %vm17160_vm2, %v3655_v26, %v3660_v57  ;;  %v3648_v7 = vrot.slane %v3504_v59, 1  ;;  %v3662_v5 = vrot.slane %v3512_v36, 1 }
 0x716   :  { %v3912_v27 = vrot.slane %v3905_v50, %v13605_v17  ;;  %v4107_v13 = vrot.slane %v4100_v42, %v13605_v17  ;;  %v3927_v32 = vrot.slane %v3920_v1, %v13605_v17  ;;  %v4122_v4 = vrot.slane %v4115_v51, %v13605_v17 }
 0x717   :  { %v3806_v19 = vmax.f32 %v3501_v34, %v3647_v29  ;;  %v3814_v49 = vmax.f32 %v3509_v6, %v3661_v28  ;;  %v3649_v2 = vsel %vm17160_vm2, %v3644_v21, %v3648_v7  ;;  %v3663_v26 = vsel %vm17160_vm2, %v3658_v25, %v3662_v5 }
 0x718   :  { %4006 = vst.msk [vmem:[#allocation2 + $0x40] ss:$8 sm:$0x3] %vm13619_vm5, %v3912_v27  ;;  %v4025_v52 = vcombine.high %v3912_v27, %v3912_v27  ;;  %4198 = vst.msk [vmem:[#allocation2 + $0x42] ss:$8 sm:$0x3] %vm13619_vm5, %v4107_v13  ;;  %v4217_v8 = vcombine.high %v4107_v13, %v4107_v13  ;;  %v4026_v58 = vcombine.high %v3927_v32, %v3927_v32 }
 0x719   :  { %4009 = vst.msk [vmem:[#allocation2 + $0x60] ss:$8 sm:$0x3] %vm13619_vm5, %v3927_v32  ;;  %4201 = vst.msk [vmem:[#allocation2 + $0x62] ss:$8 sm:$0x3] %vm13619_vm5, %v4122_v4  ;;  %v4218_v34 = vcombine.high %v4122_v4, %v4122_v4  ;;  %v3807_v6 = vmax.f32 %v3502_v63, %v3649_v2  ;;  %v3815_v21 = vmax.f32 %v3510_v44, %v3663_v26 }
 0x71a   :  { %v3505_v25 = vmax.f32 %v3441_v56, 0.0  ;;  %v3513_v35 = vmax.f32 %v3449_v30, 0.0  ;;  %4046 = vst.msk [vmem:[#allocation2 + $0x41] ss:$8 sm:$0x3] %vm13619_vm5, %v4025_v52  ;;  %v3442_v20 = vadd.f32 %v13581_v40, %v3030_v14  ;;  %v3450_v63 = vadd.f32 %v13581_v40, %v3092_v48 }
 0x71b   :  { %4238 = vst.msk [vmem:[#allocation2 + $0x43] ss:$8 sm:$0x3] %vm13619_vm5, %v4217_v8  ;;  %4049 = vst.msk [vmem:[#allocation2 + $0x61] ss:$8 sm:$0x3] %vm13619_vm5, %v4026_v58  ;;  %v4301_v37 = vcombine.low %v3806_v19, %v3807_v6  ;;  %v4493_v44 = vcombine.high %v3806_v19, %v3807_v6  ;;  %v4316_v33 = vcombine.low %v3814_v49, %v3815_v21 }
 0x71c   :  { %4241 = vst.msk [vmem:[#allocation2 + $0x63] ss:$8 sm:$0x3] %vm13619_vm5, %v4218_v34  ;;  %v4508_v53 = vcombine.high %v3814_v49, %v3815_v21  ;;  %v3650_v16 = vrot.slane %v3505_v25, 1  ;;  %v3664_v11 = vrot.slane %v3513_v35, 1  ;;  %v3506_v3 = vmax.f32 %v3442_v20, 0.0 }
 0x71d   :  { %v3514_v56 = vmax.f32 %v3450_v63, 0.0  ;;  %v4308_v30 = vrot.slane %v4301_v37, %v13605_v17  ;;  %v4500_v12 = vrot.slane %v4493_v44, %v13605_v17  ;;  %v4323_v60 = vrot.slane %v4316_v33, %v13605_v17 }
 0x71e   :  { %v4515_v43 = vrot.slane %v4508_v53, %v13605_v17  ;;  %v3651_v14 = vsel %vm17160_vm2, %v3646_v18, %v3650_v16  ;;  %v3810_v55 = vmax.f32 %v3505_v25, %v3650_v16  ;;  %v3665_v48 = vsel %vm17160_vm2, %v3660_v57, %v3664_v11 }
 0x71f   :  { %v3818_v50 = vmax.f32 %v3513_v35, %v3664_v11  ;;  %v4315_v42 = vrot.slane %v4308_v30, %v13605_v17  ;;  %v4507_v1 = vrot.slane %v4500_v12, %v13605_v17  ;;  %v4330_v51 = vrot.slane %v4323_v60, %v13605_v17 }
 0x720   :  { %v4522_v29 = vrot.slane %v4515_v43, %v13605_v17  ;;  %v3808_v28 = vmax.f32 %v3503_v10, %v3651_v14  ;;  %v3816_v27 = vmax.f32 %v3511_v46, %v3665_v48  ;;  %v3652_v13 = vrot.slane %v3506_v3, 1 }
 0x721   :  { %v3666_v18 = vrot.slane %v3514_v56, 1  ;;  %4406 = vst.msk [vmem:[#allocation2 + $0x44] ss:$8 sm:$0x3] %vm13619_vm5, %v4315_v42  ;;  %v4425_v57 = vcombine.high %v4315_v42, %v4315_v42  ;;  %v4617_v32 = vcombine.high %v4507_v1, %v4507_v1  ;;  %v4426_v4 = vcombine.high %v4330_v51, %v4330_v51 }
 0x722   :  { %4598 = vst.msk [vmem:[#allocation2 + $0x46] ss:$8 sm:$0x3] %vm13619_vm5, %v4507_v1  ;;  %4409 = vst.msk [vmem:[#allocation2 + $0x64] ss:$8 sm:$0x3] %vm13619_vm5, %v4330_v51  ;;  %v4618_v24 = vcombine.high %v4522_v29, %v4522_v29  ;;  %v3653_v41 = vsel %vm17160_vm2, %v3648_v7, %v3652_v13  ;;  %v3811_v10 = vmax.f32 %v3506_v3, %v3652_v13 }
 0x723   :  { %4601 = vst.msk [vmem:[#allocation2 + $0x66] ss:$8 sm:$0x3] %vm13619_vm5, %v4522_v29  ;;  %v3667_v46 = vsel %vm17160_vm2, %v3662_v5, %v3666_v18  ;;  %v3819_v19 = vmax.f32 %v3514_v56, %v3666_v18  ;;  %4446 = vst.msk [vmem:[#allocation2 + $0x45] ss:$8 sm:$0x3] %vm13619_vm5, %v4425_v57  ;;  %v3809_v49 = vmax.f32 %v3504_v59, %v3653_v41 }
 0x724   :  { %4638 = vst.msk [vmem:[#allocation2 + $0x47] ss:$8 sm:$0x3] %vm13619_vm5, %v4617_v32  ;;  %4449 = vst.msk [vmem:[#allocation2 + $0x65] ss:$8 sm:$0x3] %vm13619_vm5, %v4426_v4  ;;  %v3817_v7 = vmax.f32 %v3512_v36, %v3667_v46  ;;  %v5101_v5 = vcombine.low %v3810_v55, %v3811_v10 }
 0x725   :  { %4641 = vst.msk [vmem:[#allocation2 + $0x67] ss:$8 sm:$0x3] %vm13619_vm5, %v4618_v24  ;;  %v5116_v2 = vcombine.low %v3818_v50, %v3819_v19  ;;  %v4701_v26 = vcombine.low %v3808_v28, %v3809_v49  ;;  %v4893_v52 = vcombine.high %v3808_v28, %v3809_v49 }
 0x726   :  { %v4716_v8 = vcombine.low %v3816_v27, %v3817_v7  ;;  %v4908_v58 = vcombine.high %v3816_v27, %v3817_v7  ;;  %v5108_v34 = vrot.slane %v5101_v5, %v13605_v17 }
 0x727   :  { %v5123_v6 = vrot.slane %v5116_v2, %v13605_v17  ;;  %v4708_v21 = vrot.slane %v4701_v26, %v13605_v17  ;;  %v4900_v25 = vrot.slane %v4893_v52, %v13605_v17 }
 0x728   :  { %v4723_v39 = vrot.slane %v4716_v8, %v13605_v17  ;;  %v4915_v59 = vrot.slane %v4908_v58, %v13605_v17  ;;  %v5115_v62 = vrot.slane %v5108_v34, %v13605_v17 }
 0x729   :  { %v5130_v36 = vrot.slane %v5123_v6, %v13605_v17  ;;  %v4715_v35 = vrot.slane %v4708_v21, %v13605_v17  ;;  %v4907_v20 = vrot.slane %v4900_v25, %v13605_v17 }
 0x72a   :  { %v4730_v63 = vrot.slane %v4723_v39, %v13605_v17  ;;  %v4922_v37 = vrot.slane %v4915_v59, %v13605_v17  ;;  %5206 = vst.msk [vmem:[#allocation2 + $0x54] ss:$8 sm:$0x3] %vm13619_vm5, %v5115_v62  ;;  %v5225_v44 = vcombine.high %v5115_v62, %v5115_v62 }
 0x72b   :  { %5209 = vst.msk [vmem:[#allocation2 + $0x74] ss:$8 sm:$0x3] %vm13619_vm5, %v5130_v36  ;;  %v5226_v33 = vcombine.high %v5130_v36, %v5130_v36  ;;  %v13973_v53 = vld [vmem:[#allocation2 + $0x40] sm:$0xff]  ;;  %v4825_v16 = vcombine.high %v4715_v35, %v4715_v35  ;;  %v5017_v11 = vcombine.high %v4907_v20, %v4907_v20  ;;  %v5272_v12 = vld [vmem:[#allocation2 + $0x48] sm:$0xff] }
 0x72c   :  { %4806 = vst.msk [vmem:[#allocation2 + $0x50] ss:$8 sm:$0x3] %vm13619_vm5, %v4715_v35  ;;  %4998 = vst.msk [vmem:[#allocation2 + $0x52] ss:$8 sm:$0x3] %vm13619_vm5, %v4907_v20  ;;  %v4826_v3 = vcombine.high %v4730_v63, %v4730_v63  ;;  %v5018_v56 = vcombine.high %v4922_v37, %v4922_v37  ;;  %5319 = vrot.lane.b32.xlu0 %v13973_v53, %s11772_s2 }
 0x72d   :  { %4809 = vst.msk [vmem:[#allocation2 + $0x70] ss:$8 sm:$0x3] %vm13619_vm5, %v4730_v63  ;;  %5001 = vst.msk [vmem:[#allocation2 + $0x72] ss:$8 sm:$0x3] %vm13619_vm5, %v4922_v37 }
 0x72e   :  { %5246 = vst.msk [vmem:[#allocation2 + $0x55] ss:$8 sm:$0x3] %vm13619_vm5, %v5225_v44  ;;  %5249 = vst.msk [vmem:[#allocation2 + $0x75] ss:$8 sm:$0x3] %vm13619_vm5, %v5226_v33 }
 0x72f   :  { %4846 = vst.msk [vmem:[#allocation2 + $0x51] ss:$8 sm:$0x3] %vm13619_vm5, %v4825_v16  ;;  %5038 = vst.msk [vmem:[#allocation2 + $0x53] ss:$8 sm:$0x3] %vm13619_vm5, %v5017_v11 }
 0x730   :  { %4849 = vst.msk [vmem:[#allocation2 + $0x71] ss:$8 sm:$0x3] %vm13619_vm5, %v4826_v3  ;;  %5041 = vst.msk [vmem:[#allocation2 + $0x73] ss:$8 sm:$0x3] %vm13619_vm5, %v5018_v56 }
 0x731   :  { %v13997_v30 = vld [vmem:[#allocation2 + $0x60] sm:$0xff]  ;;  %v5276_v43 = vld [vmem:[#allocation2 + $0x68] sm:$0xff] }
 0x732   :  { %5323 = vrot.lane.b32.xlu0 %v13997_v30, %s11772_s2 }
 0x736   :  { %6027 = vrot.lane.b32.xlu0 %v5272_v12, %s11772_s2  ;;  %v14002_v60 = vld [vmem:[#allocation2 + $0x50] sm:$0x3f]  ;;  %v5274_v55 = vld [vmem:[#allocation2 + $0x58] sm:$0x3f] }
 0x737   :  { %5321 = vrot.lane.b32.xlu1 %v14002_v60, %s11772_s2  ;;  %v14007_v14 = vld [vmem:[#allocation2 + $0x70] sm:$0x3f]  ;;  %v5278_v48 = vld [vmem:[#allocation2 + $0x78] sm:$0x3f] }
 0x73a   :  { %6031 = vrot.lane.b32.xlu0 %v5276_v43, %s11772_s2 }
 0x73b   :  { %5325 = vrot.lane.b32.xlu1 %v14007_v14, %s11772_s2 }
 0x73f   :  { %6029 = vrot.lane.b32.xlu1 %v5274_v55, %s11772_s2 }
 0x743   :  { %6033 = vrot.lane.b32.xlu1 %v5278_v48, %s11772_s2 }
 0x746   :  { %v14019_v1 = vpop.permute.xlu0 %5311 }
 0x747   :  { %v14013_v50 = vpop.permute.xlu1 %5315  ;;  %v14023_v51 = vmax.f32 %v13773_v22, %v14019_v1 }
 0x748   :  { %v14017_v42 = vmax.f32 %v13771_v23, %v14013_v50 }
 0x749   :  { %5409 = vrot.lane.b32.xlu0 %v14023_v51, %s11772_s2  ;;  %5376 = vst.msk [vmem:[#allocation3] sm:$0xff] %vm5375_vm6, %v14023_v51 }
 0x74a   :  { %5379 = vst.msk [vmem:[#allocation3 + $0x10] sm:$0xff] %vm5375_vm6, %v14017_v42  ;;  %v14031_v29 = vpop.permute.xlu0 %6019 }
 0x74d   :  { %5413 = vrot.lane.b32.xlu0 %v14017_v42, %s11772_s2 }
 0x74e   :  { %v14035_v23 = vpop.permute.xlu0 %6023 }
 0x751   :  { %5475 = vrot.lane.b32.xlu0 %v14023_v51, %s11773_s16 }
 0x752   :  { %v14045_v27 = vpop.permute.xlu0 %5313 }
 0x753   :  { %v14037_v28 = vpop.permute.xlu1 %5317  ;;  %v14051_v13 = vmax.f32 %v13817_v61, %v14045_v27 }
 0x754   :  { %v14041_v22 = vmax.f32 %v13804_v31, %v14037_v28 }
 0x755   :  { %5479 = vrot.lane.b32.xlu0 %v14017_v42, %s11773_s16  ;;  %5411 = vrot.lane.b32.xlu1 %v14051_v13, %s11772_s2  ;;  %5378 = vst.msk [vmem:[#allocation3 + $0x8] sm:$0x3f] %vm5377_vm7, %v14051_v13 }
 0x756   :  { %5380 = vst.msk [vmem:[#allocation3 + $0x18] sm:$0x3f] %vm5377_vm7, %v14041_v22 }
 0x759   :  { %5541 = vrot.lane.b32.xlu0 %v14023_v51, %s11774_s17  ;;  %5415 = vrot.lane.b32.xlu1 %v14041_v22, %s11772_s2 }
 0x75d   :  { %5545 = vrot.lane.b32.xlu0 %v14017_v42, %s11774_s17  ;;  %5477 = vrot.lane.b32.xlu1 %v14051_v13, %s11773_s16  ;;  %v3200_v31 = vpop.f32.mrb[16].mxu1  ;;  %v3138_v61 = vpop.f32.mrb[16].mxu0 }
 0x75e   :  { %v3459_v18 = vadd.f32 %v13575_v38, %v3200_v31  ;;  %v3451_v57 = vadd.f32 %v13575_v38, %v3138_v61  ;;  %v3140_v32 = vpop.f32.mrb[17].mxu0  ;;  %v3202_v4 = vpop.f32.mrb[17].mxu1 }
 0x75f   :  { %v3452_v24 = vadd.f32 %v13581_v40, %v3140_v32  ;;  %v3460_v41 = vadd.f32 %v13581_v40, %v3202_v4  ;;  %v3142_v10 = vpop.f32.mrb[18].mxu0  ;;  %v3204_v46 = vpop.f32.mrb[18].mxu1 }
 0x760   :  { %v3523_v19 = vmax.f32 %v3459_v18, 0.0  ;;  %v3515_v49 = vmax.f32 %v3451_v57, 0.0  ;;  %v14072_v7 = vadd.f32 %v13575_v38, %v3142_v10  ;;  %v14075_v5 = vadd.f32 %v13575_v38, %v3204_v46  ;;  %v3144_v2 = vpop.f32.mrb[19].mxu0  ;;  %v3206_v26 = vpop.f32.mrb[19].mxu1 }
 0x761   :  { %5607 = vrot.lane.b32.xlu0 %v14023_v51, %s11775_s18  ;;  %5481 = vrot.lane.b32.xlu1 %v14041_v22, %s11773_s16  ;;  %v3516_v52 = vmax.f32 %v3452_v24, 0.0  ;;  %v3524_v8 = vmax.f32 %v3460_v41, 0.0  ;;  %v14082_v58 = vadd.f32 %v13581_v40, %v3144_v2  ;;  %v14085_v34 = vadd.f32 %v13581_v40, %v3206_v26 }
 0x762   :  { %v3517_v6 = vmax.f32 %v14072_v7, 0.0  ;;  %v3525_v21 = vmax.f32 %v14075_v5, 0.0  ;;  %v3682_v59 = vrot.slane %v3523_v19, 1  ;;  %v3668_v62 = vrot.slane %v3515_v49, 1 }
 0x763   :  { %v3518_v25 = vmax.f32 %v14082_v58, 0.0  ;;  %v3526_v39 = vmax.f32 %v14085_v34, 0.0  ;;  %v3671_v20 = vrot.slane %v3516_v52, 1  ;;  %v3685_v63 = vrot.slane %v3524_v8, 1 }
 0x764   :  { %v3669_v36 = vrot.slane %v3517_v6, 1  ;;  %v3683_v35 = vrot.slane %v3525_v21, 1 }
 0x765   :  { %v3672_v37 = vrot.slane %v3518_v25, 1  ;;  %v3686_v44 = vrot.slane %v3526_v39, 1  ;;  %5611 = vrot.lane.b32.xlu0 %v14017_v42, %s11775_s18  ;;  %5543 = vrot.lane.b32.xlu1 %v14051_v13, %s11774_s17  ;;  %v3210_v33 = vpop.f32.mrb[20].mxu1  ;;  %v3148_v16 = vpop.f32.mrb[20].mxu0 }
 0x766   :  { %v3670_v11 = vsel %vm17160_vm2, %v3668_v62, %v3669_v36  ;;  %v3684_v3 = vsel %vm17160_vm2, %v3682_v59, %v3683_v35  ;;  %v14104_v56 = vadd.f32 %v13575_v38, %v3210_v33  ;;  %v14107_v12 = vadd.f32 %v13575_v38, %v3148_v16  ;;  %v3150_v43 = vpop.f32.mrb[21].mxu0  ;;  %v3212_v55 = vpop.f32.mrb[21].mxu1 }
 0x767   :  { %v3820_v48 = vmax.f32 %v3515_v49, %v3670_v11  ;;  %v3828_v31 = vmax.f32 %v3523_v19, %v3684_v3  ;;  %v3673_v61 = vsel %vm17160_vm2, %v3671_v20, %v3672_v37  ;;  %v3687_v18 = vsel %vm17160_vm2, %v3685_v63, %v3686_v44  ;;  %v3152_v57 = vpop.f32.mrb[22].mxu0  ;;  %v3214_v32 = vpop.f32.mrb[22].mxu1 }
 0x768   :  { %v3821_v4 = vmax.f32 %v3516_v52, %v3673_v61  ;;  %v3829_v24 = vmax.f32 %v3524_v8, %v3687_v18  ;;  %v3527_v41 = vmax.f32 %v14104_v56, 0.0  ;;  %v3519_v10 = vmax.f32 %v14107_v12, 0.0  ;;  %v3154_v46 = vpop.f32.mrb[23].mxu0  ;;  %v3216_v5 = vpop.f32.mrb[23].mxu1 }
 0x769   :  { %5673 = vrot.lane.b32.xlu0 %v14023_v51, %s11776_s19  ;;  %5547 = vrot.lane.b32.xlu1 %v14041_v22, %s11774_s17  ;;  %v14118_v19 = vadd.f32 %v13581_v40, %v3150_v43  ;;  %v14121_v49 = vadd.f32 %v13581_v40, %v3212_v55  ;;  %v14124_v2 = vadd.f32 %v13575_v38, %v3152_v57 }
 0x76a   :  { %v3928_v26 = vcombine.low %v3820_v48, %v3821_v4  ;;  %v4123_v52 = vcombine.high %v3820_v48, %v3821_v4  ;;  %v3943_v8 = vcombine.low %v3828_v31, %v3829_v24  ;;  %v4138_v59 = vcombine.high %v3828_v31, %v3829_v24 }
 0x76b   :  { %v14128_v62 = vrot.slane %v3527_v41, 1  ;;  %v3674_v20 = vrot.slane %v3519_v10, 1  ;;  %v3520_v63 = vmax.f32 %v14118_v19, 0.0  ;;  %v3528_v33 = vmax.f32 %v14121_v49, 0.0  ;;  %v11657_v19 = vld [vmem:[%s17136_s3 + $0x58] sm:$0xff]  }
 0x76c   :  { %v3935_v16 = vrot.slane %v3928_v26, %v13605_v17  ;;  %v4130_v11 = vrot.slane %v4123_v52, %v13605_v17  ;;  %v3950_v3 = vrot.slane %v3943_v8, %v13605_v17  ;;  %v4145_v43 = vrot.slane %v4138_v59, %v13605_v17 }
 0x76d   :  { %v3689_v55 = vsel %vm17160_vm2, %v3683_v35, %v14128_v62  ;;  %v3675_v48 = vsel %vm17160_vm2, %v3669_v36, %v3674_v20  ;;  %v3676_v31 = vrot.slane %v3520_v63, 1  ;;  %v14145_v61 = vrot.slane %v3528_v33, 1  ;;  %5677 = vrot.lane.b32.xlu0 %v14017_v42, %s11776_s19  ;;  %5609 = vrot.lane.b32.xlu1 %v14051_v13, %s11775_s18 }
 0x76e   :  { %v3942_v18 = vrot.slane %v3935_v16, %v13605_v17  ;;  %v4137_v57 = vrot.slane %v4130_v11, %v13605_v17  ;;  %v3957_v35 = vrot.slane %v3950_v3, %v13605_v17  ;;  %v4152_v36 = vrot.slane %v4145_v43, %v13605_v17 }
 0x76f   :  { %v3830_v4 = vmax.f32 %v3525_v21, %v3689_v55  ;;  %v3822_v24 = vmax.f32 %v3517_v6, %v3675_v48  ;;  %v3677_v26 = vsel %vm17160_vm2, %v3672_v37, %v3676_v31  ;;  %v3691_v52 = vsel %vm17160_vm2, %v3686_v44, %v14145_v61 }
 0x770   :  { %4012 = vst.msk [vmem:[#allocation2 + $0x80] ss:$8 sm:$0x3] %vm13619_vm5, %v3942_v18  ;;  %v4027_v8 = vcombine.high %v3942_v18, %v3942_v18  ;;  %4204 = vst.msk [vmem:[#allocation2 + $0x82] ss:$8 sm:$0x3] %vm13619_vm5, %v4137_v57  ;;  %v4219_v59 = vcombine.high %v4137_v57, %v4137_v57  ;;  %v4028_v21 = vcombine.high %v3957_v35, %v3957_v35 }
 0x771   :  { %4015 = vst.msk [vmem:[#allocation2 + $0xa0] ss:$8 sm:$0x3] %vm13619_vm5, %v3957_v35  ;;  %4207 = vst.msk [vmem:[#allocation2 + $0xa2] ss:$8 sm:$0x3] %vm13619_vm5, %v4152_v36  ;;  %v4220_v7 = vcombine.high %v4152_v36, %v4152_v36  ;;  %v3823_v6 = vmax.f32 %v3518_v25, %v3677_v26  ;;  %v3831_v37 = vmax.f32 %v3526_v39, %v3691_v52  ;;  %5739 = vrot.lane.b32.xlu0 %v14023_v51, %s11777_s20 }
 0x772   :  { %v3521_v44 = vmax.f32 %v14124_v2, 0.0  ;;  %v3465_v16 = vadd.f32 %v13575_v38, %v3214_v32  ;;  %5613 = vrot.lane.b32.xlu1 %v14041_v22, %s11775_s18  ;;  %4052 = vst.msk [vmem:[#allocation2 + $0x81] ss:$8 sm:$0x3] %vm13619_vm5, %v4027_v8  ;;  %v3458_v58 = vadd.f32 %v13581_v40, %v3154_v46  ;;  %v3466_v34 = vadd.f32 %v13581_v40, %v3216_v5  ;;  %v11656_v46 = vld [vmem:[%s17136_s3 + $0x50] sm:$0xff]  }
 0x773   :  { %4244 = vst.msk [vmem:[#allocation2 + $0x83] ss:$8 sm:$0x3] %vm13619_vm5, %v4219_v59  ;;  %4055 = vst.msk [vmem:[#allocation2 + $0xa1] ss:$8 sm:$0x3] %vm13619_vm5, %v4028_v21  ;;  %v4331_v25 = vcombine.low %v3822_v24, %v3823_v6  ;;  %v4523_v39 = vcombine.high %v3822_v24, %v3823_v6  ;;  %v4346_v32 = vcombine.low %v3830_v4, %v3831_v37 }
 0x774   :  { %4247 = vst.msk [vmem:[#allocation2 + $0xa3] ss:$8 sm:$0x3] %vm13619_vm5, %v4220_v7  ;;  %v4538_v2 = vcombine.high %v3830_v4, %v3831_v37  ;;  %v3678_v11 = vrot.slane %v3521_v44, 1  ;;  %v3529_v3 = vmax.f32 %v3465_v16, 0.0  ;;  %v3522_v43 = vmax.f32 %v3458_v58, 0.0 }
 0x775   :  { %v3530_v55 = vmax.f32 %v3466_v34, 0.0  ;;  %v4338_v48 = vrot.slane %v4331_v25, %v13605_v17  ;;  %v4530_v18 = vrot.slane %v4523_v39, %v13605_v17  ;;  %v4353_v57 = vrot.slane %v4346_v32, %v13605_v17  ;;  %5743 = vrot.lane.b32.xlu0 %v14017_v42, %s11777_s20 }
 0x776   :  { %v4545_v35 = vrot.slane %v4538_v2, %v13605_v17  ;;  %v3679_v5 = vsel %vm17160_vm2, %v3674_v20, %v3678_v11  ;;  %v3692_v36 = vrot.slane %v3529_v3, 1  ;;  %v3680_v4 = vrot.slane %v3522_v43, 1  ;;  %5675 = vrot.lane.b32.xlu1 %v14051_v13, %s11776_s19 }
 0x777   :  { %v4345_v24 = vrot.slane %v4338_v48, %v13605_v17  ;;  %v4537_v26 = vrot.slane %v4530_v18, %v13605_v17  ;;  %v4360_v52 = vrot.slane %v4353_v57, %v13605_v17  ;;  %v3824_v59 = vmax.f32 %v3519_v10, %v3679_v5 }
 0x778   :  { %v4552_v8 = vrot.slane %v4545_v35, %v13605_v17  ;;  %v3826_v21 = vmax.f32 %v3521_v44, %v3678_v11  ;;  %v3693_v20 = vsel %vm17160_vm2, %v14128_v62, %v3692_v36  ;;  %v3681_v7 = vsel %vm17160_vm2, %v3676_v31, %v3680_v4 }
 0x779   :  { %4412 = vst.msk [vmem:[#allocation2 + $0x84] ss:$8 sm:$0x3] %vm13619_vm5, %v4345_v24  ;;  %v4427_v6 = vcombine.high %v4345_v24, %v4345_v24  ;;  %4604 = vst.msk [vmem:[#allocation2 + $0x86] ss:$8 sm:$0x3] %vm13619_vm5, %v4537_v26  ;;  %v4619_v37 = vcombine.high %v4537_v26, %v4537_v26  ;;  %v4428_v16 = vcombine.high %v4360_v52, %v4360_v52  ;;  %5805 = vrot.lane.b32.xlu0 %v14023_v51, %s11778_s23 }
 0x77a   :  { %4415 = vst.msk [vmem:[#allocation2 + $0xa4] ss:$8 sm:$0x3] %vm13619_vm5, %v4360_v52  ;;  %4607 = vst.msk [vmem:[#allocation2 + $0xa6] ss:$8 sm:$0x3] %vm13619_vm5, %v4552_v8  ;;  %v4620_v12 = vcombine.high %v4552_v8, %v4552_v8  ;;  %v3832_v10 = vmax.f32 %v3527_v41, %v3693_v20  ;;  %v3825_v62 = vmax.f32 %v3520_v63, %v3681_v7  ;;  %5679 = vrot.lane.b32.xlu1 %v14041_v22, %s11776_s19 }
 0x77b   :  { %v3827_v31 = vmax.f32 %v3522_v43, %v3680_v4  ;;  %v3694_v44 = vrot.slane %v3530_v55, 1  ;;  %4452 = vst.msk [vmem:[#allocation2 + $0x85] ss:$8 sm:$0x3] %vm13619_vm5, %v4427_v6  ;;  %v3834_v56 = vmax.f32 %v3529_v3, %v3692_v36  ;;  %v14234_v41 = vsel %vm6550_vm8, %v11656_v46, 0  ;;  %v11658_v8 = vld [vmem:[%s17136_s3 + $0x60] sm:$0xff]  }
 0x77c   :  { %4644 = vst.msk [vmem:[#allocation2 + $0x87] ss:$8 sm:$0x3] %vm13619_vm5, %v4619_v37  ;;  %4455 = vst.msk [vmem:[#allocation2 + $0xa5] ss:$8 sm:$0x3] %vm13619_vm5, %v4428_v16  ;;  %v4731_v63 = vcombine.low %v3824_v59, %v3825_v62  ;;  %v4923_v58 = vcombine.high %v3824_v59, %v3825_v62  ;;  %6585 = vmatpush1.bf16.xpose.msra.mxu0 %v14234_v41  ;;  %6638 = vmatpush1.bf16.xpose.msra.mxu1 %v14234_v41  ;;  %v6022_v62 = vpop.permute.xlu1 %6021 }
 0x77d   :  { %4647 = vst.msk [vmem:[#allocation2 + $0xa7] ss:$8 sm:$0x3] %vm13619_vm5, %v4620_v12  ;;  %v5131_v34 = vcombine.low %v3826_v21, %v3827_v31  ;;  %v3695_v25 = vsel %vm17160_vm2, %v14145_v61, %v3694_v44  ;;  %v3835_v32 = vmax.f32 %v3530_v55, %v3694_v44  ;;  %5809 = vrot.lane.b32.xlu0 %v14017_v42, %s11778_s23  ;;  %v14258_v18 = vsel %vm6550_vm8, %v11657_v19, 0  ;;  %v11659_v6 = vld [vmem:[%s17136_s3 + $0x68] sm:$0xff]  }
 0x77e   :  { %v3833_v39 = vmax.f32 %v3528_v33, %v3695_v25  ;;  %v4738_v2 = vrot.slane %v4731_v63, %v13605_v17  ;;  %v4930_v11 = vrot.slane %v4923_v58, %v13605_v17  ;;  %5741 = vrot.lane.b32.xlu1 %v14051_v13, %s11777_s20  ;;  %6586 = vmatprep.subr.bf16.mxu0 %v17152_v0  ;;  %v14305_v7 = vsel %vm6550_vm8, %v11658_v8, 0  ;;  %v11749_v44 = vld [vmem:[#allocation2 + $0x18] sm:$0x3f]  ;;  %v11754_v8 = vld [vmem:[#allocation2 + $0x30] sm:$0x3f] }
 0x77f   :  { %v5138_v3 = vrot.slane %v5131_v34, %v13605_v17  ;;  %v5146_v33 = vcombine.low %v3834_v56, %v3835_v32  ;;  %6639 = vmatprep.subr.bf16.mxu1 %v17152_v0  ;;  %v14324_v16 = vsel %vm6550_vm8, %v11659_v6, 0  ;;  %v6199_v56 = vmax.f32 %v11749_v44, %v6022_v62  ;;  %v11661_v63 = vld [vmem:[%s17136_s3 + $0x78] sm:$0xff]  }
 0x780   :  { %v4746_v61 = vcombine.low %v3832_v10, %v3833_v39  ;;  %v4938_v49 = vcombine.high %v3832_v10, %v3833_v39  ;;  %v4745_v43 = vrot.slane %v4738_v2, %v13605_v17  ;;  %v4937_v55 = vrot.slane %v4930_v11, %v13605_v17  ;;  %v11660_v10 = vld [vmem:[%s17136_s3 + $0x70] sm:$0xff]   ;;  %v6026_v19 = vpop.permute.xlu1 %6025  ;;  %v11750_v58 = vld [vmem:[#allocation2 + $0x38] sm:$0x3f]  ;;  %v11662_v2 = vld [vmem:[%s17136_s3 + $0x80] sm:$0xff]  }
 0x781   :  { %v5145_v48 = vrot.slane %v5138_v3, %v13605_v17  ;;  %v5153_v46 = vrot.slane %v5146_v33, %v13605_v17  ;;  %5871 = vrot.lane.b32.xlu0 %v14023_v51, %s11779_s26  ;;  %v14343_v31 = vsel %vm6550_vm8, %v11660_v10, 0  ;;  %v6201_v34 = vmax.f32 %v11750_v58, %v6026_v19  ;;  %v11752_v33 = vld [vmem:[#allocation2 + $0x20] sm:$0xff] }
 0x782   :  { %v4753_v57 = vrot.slane %v4746_v61, %v13605_v17  ;;  %v4945_v35 = vrot.slane %v4938_v49, %v13605_v17  ;;  %4812 = vst.msk [vmem:[#allocation2 + $0x90] ss:$8 sm:$0x3] %vm13619_vm5, %v4745_v43  ;;  %v4827_v5 = vcombine.high %v4745_v43, %v4745_v43  ;;  %5004 = vst.msk [vmem:[#allocation2 + $0x92] ss:$8 sm:$0x3] %vm13619_vm5, %v4937_v55  ;;  %5745 = vrot.lane.b32.xlu1 %v14041_v22, %s11777_s20 }
 0x783   :  { %v5019_v36 = vcombine.high %v4937_v55, %v4937_v55  ;;  %5212 = vst.msk [vmem:[#allocation2 + $0x94] ss:$8 sm:$0x3] %vm13619_vm5, %v5145_v48  ;;  %v5227_v4 = vcombine.high %v5145_v48, %v5145_v48  ;;  %v5160_v52 = vrot.slane %v5153_v46, %v13605_v17  ;;  %v14368_v39 = vsel %vm6550_vm8, %v11661_v63, 0 }
 0x784   :  { %v4760_v24 = vrot.slane %v4753_v57, %v13605_v17  ;;  %v4952_v26 = vrot.slane %v4945_v35, %v13605_v17  ;;  %4852 = vst.msk [vmem:[#allocation2 + $0x91] ss:$8 sm:$0x3] %vm13619_vm5, %v4827_v5  ;;  %6587 = vmatpush1.bf16.xpose.msra.mxu0 %v14258_v18  ;;  %6640 = vmatpush1.bf16.xpose.msra.mxu1 %v14258_v18  ;;  %v14400_v61 = vsel %vm6550_vm8, %v11662_v2, 0  ;;  %v11753_v57 = vld [vmem:[#allocation2 + $0x10] sm:$0x3f] }
 0x785   :  { %5044 = vst.msk [vmem:[#allocation2 + $0x93] ss:$8 sm:$0x3] %vm13619_vm5, %v5019_v36  ;;  %5252 = vst.msk [vmem:[#allocation2 + $0x95] ss:$8 sm:$0x3] %vm13619_vm5, %v5227_v4  ;;  %v5228_v20 = vcombine.high %v5160_v52, %v5160_v52  ;;  %5875 = vrot.lane.b32.xlu0 %v14017_v42, %s11779_s26  ;;  %6588 = vmatprep.subr.bf16.mxu0 %v17152_v0  ;;  %v6052_v32 = vsel %vm6051_vm9, %v14019_v1, %v14031_v29 }
 0x786   :  { %4815 = vst.msk [vmem:[#allocation2 + $0xb0] ss:$8 sm:$0x3] %vm13619_vm5, %v4760_v24  ;;  %v4828_v59 = vcombine.high %v4760_v24, %v4760_v24  ;;  %5007 = vst.msk [vmem:[#allocation2 + $0xb2] ss:$8 sm:$0x3] %vm13619_vm5, %v4952_v26  ;;  %v5020_v21 = vcombine.high %v4952_v26, %v4952_v26  ;;  %5807 = vrot.lane.b32.xlu1 %v14051_v13, %s11778_s23  ;;  %6641 = vmatprep.subr.bf16.mxu1 %v17152_v0 }
 0x787   :  { %5215 = vst.msk [vmem:[#allocation2 + $0xb4] ss:$8 sm:$0x3] %vm13619_vm5, %v5160_v52  ;;  %5255 = vst.msk [vmem:[#allocation2 + $0xb5] ss:$8 sm:$0x3] %vm13619_vm5, %v5228_v20  ;;  %v6054_v11 = vsel %vm6051_vm9, %v14013_v50, %v14035_v23  ;;  %v6053_v55 = vsel %vm6051_vm9, %v14045_v27, %v6022_v62  ;;  %v6055_v5 = vsel %vm6051_vm9, %v14037_v28, %v6026_v19 }
 0x788   :  { %4855 = vst.msk [vmem:[#allocation2 + $0xb1] ss:$8 sm:$0x3] %vm13619_vm5, %v4828_v59  ;;  %5047 = vst.msk [vmem:[#allocation2 + $0xb3] ss:$8 sm:$0x3] %vm13619_vm5, %v5020_v21  ;;  %v6086_v43 = vmax.f32 %v11752_v33, %v6054_v11  ;;  %v6085_v35 = vmax.f32 %v11753_v57, %v6053_v55  ;;  %v6087_v59 = vmax.f32 %v11754_v8, %v6055_v5 }
 0x789   :  { %5937 = vrot.lane.b32.xlu0 %v14023_v51, %s11780_s28  ;;  %v11747_v51 = vld [vmem:[#allocation2 + $0x8] sm:$0xff]  ;;  %v11751_v1 = vld [vmem:[#allocation2] sm:$0xff]  ;;  %v11664_v27 = vld [vmem:[%s17136_s3 + $0x90] sm:$0xff]  }
 0x78a   :  { %5811 = vrot.lane.b32.xlu1 %v14041_v22, %s11778_s23  ;;  %v6198_v37 = vmax.f32 %v11747_v51, %v14031_v29  ;;  %v6084_v29 = vmax.f32 %v11751_v1, %v6052_v32  ;;  %v14434_v46 = vld [vmem:[#allocation2 + $0xa0] sm:$0xff]  ;;  %v5280_v21 = vld [vmem:[#allocation2 + $0x88] sm:$0xff]  ;;  %v14461_v44 = vsel %vm6550_vm8, %v11664_v27, 0 }
 0x78c   :  { %6589 = vmatpush1.bf16.xpose.msra.mxu0 %v14305_v7  ;;  %6642 = vmatpush1.bf16.xpose.msra.mxu1 %v14305_v7  ;;  %v14488_v27 = vld [vmem:[#allocation2 + $0x90] sm:$0x3f] }
 0x78d   :  { %5941 = vrot.lane.b32.xlu0 %v14017_v42, %s11780_s28  ;;  %6590 = vmatprep.subr.bf16.mxu0 %v17152_v0  ;;  %v11748_v42 = vld [vmem:[#allocation2 + $0x28] sm:$0xff] }
 0x78e   :  { %5873 = vrot.lane.b32.xlu1 %v14051_v13, %s11779_s26  ;;  %6643 = vmatprep.subr.bf16.mxu1 %v17152_v0  ;;  %v6200_v12 = vmax.f32 %v11748_v42, %v14035_v23  ;;  %v14424_v23 = vld [vmem:[#allocation2 + $0x80] sm:$0xff] }
 0x791   :  { %6230 = vrot.lane.b32.xlu0 %v6198_v37, %s11781_s12 }
 0x792   :  { %5877 = vrot.lane.b32.xlu1 %v14041_v22, %s11779_s26 }
 0x794   :  { %6591 = vmatpush1.bf16.xpose.msra.mxu0 %v14324_v16  ;;  %6644 = vmatpush1.bf16.xpose.msra.mxu1 %v14324_v16 }
 0x795   :  { %6234 = vrot.lane.b32.xlu0 %v6200_v12, %s11781_s12  ;;  %6592 = vmatprep.subr.bf16.mxu0 %v17152_v0 }
 0x796   :  { %5939 = vrot.lane.b32.xlu1 %v14051_v13, %s11780_s28  ;;  %6645 = vmatprep.subr.bf16.mxu1 %v17152_v0 }
 0x799   :  { %6296 = vrot.lane.b32.xlu0 %v6198_v37, %s11782_s1 }
 0x79a   :  { %5943 = vrot.lane.b32.xlu1 %v14041_v22, %s11780_s28 }
 0x79c   :  { %6593 = vmatpush1.bf16.xpose.msra.mxu0 %v14343_v31  ;;  %6646 = vmatpush1.bf16.xpose.msra.mxu1 %v14343_v31 }
 0x79d   :  { %6300 = vrot.lane.b32.xlu0 %v6200_v12, %s11782_s1  ;;  %6594 = vmatprep.subr.bf16.mxu0 %v17152_v0 }
 0x79e   :  { %v14349_v13 = vpop.permute.xlu0 %5319  ;;  %6232 = vrot.lane.b32.xlu1 %v6199_v56, %s11781_s12  ;;  %6647 = vmatprep.subr.bf16.mxu1 %v17152_v0 }
 0x79f   :  { %v14358_v22 = vmax.f32 %v13973_v53, %v14349_v13 }
 0x7a1   :  { %5381 = vst.msk [vmem:[#allocation3 + $0x20] sm:$0xff] %vm5375_vm6, %v14358_v22  ;;  %6362 = vrot.lane.b32.xlu0 %v6198_v37, %s11783_s22 }
 0x7a2   :  { %6236 = vrot.lane.b32.xlu1 %v6201_v34, %s11781_s12 }
 0x7a4   :  { %v14365_v25 = vpop.permute.xlu0 %5323  ;;  %6595 = vmatpush1.bf16.xpose.msra.mxu0 %v14368_v39  ;;  %6648 = vmatpush1.bf16.xpose.msra.mxu1 %v14368_v39 }
 0x7a5   :  { %v14373_v53 = vmax.f32 %v13997_v30, %v14365_v25  ;;  %6366 = vrot.lane.b32.xlu0 %v6200_v12, %s11783_s22  ;;  %6596 = vmatprep.subr.bf16.mxu0 %v17152_v0 }
 0x7a6   :  { %6298 = vrot.lane.b32.xlu1 %v6199_v56, %s11782_s1  ;;  %6649 = vmatprep.subr.bf16.mxu1 %v17152_v0 }
 0x7a7   :  { %5383 = vst.msk [vmem:[#allocation3 + $0x30] sm:$0xff] %vm5375_vm6, %v14373_v53 }
 0x7a9   :  { %v14388_v30 = vpop.permute.xlu1 %5321  ;;  %6116 = vrot.lane.b32.xlu0 %v6084_v29, %s11784_s0 }
 0x7aa   :  { %v14396_v3 = vmax.f32 %v14002_v60, %v14388_v30  ;;  %6302 = vrot.lane.b32.xlu1 %v6201_v34, %s11782_s1  ;;  %v11663_v60 = vld [vmem:[%s17136_s3 + $0x88] sm:$0xff]  }
 0x7ab   :  { %v14431_v48 = vsel %vm6550_vm8, %v11663_v60, 0  ;;  %v5284_v60 = vld [vmem:[#allocation2 + $0xa8] sm:$0xff] }
 0x7ac   :  { %5382 = vst.msk [vmem:[#allocation3 + $0x28] sm:$0x3f] %vm5377_vm7, %v14396_v3  ;;  %6597 = vmatpush1.bf16.xpose.msra.mxu0 %v14400_v61  ;;  %6650 = vmatpush1.bf16.xpose.msra.mxu1 %v14400_v61 }
 0x7ad   :  { %v14405_v49 = vpop.permute.xlu1 %5325  ;;  %6120 = vrot.lane.b32.xlu0 %v6086_v43, %s11784_s0  ;;  %6598 = vmatprep.subr.bf16.mxu0 %v17152_v0 }
 0x7ae   :  { %v14409_v50 = vmax.f32 %v14007_v14, %v14405_v49  ;;  %6364 = vrot.lane.b32.xlu1 %v6199_v56, %s11783_s22  ;;  %6651 = vmatprep.subr.bf16.mxu1 %v17152_v0  ;;  %v14422_v14 = vpop.permute.xlu0 %6027  ;;  %v11665_v56 = vld [vmem:[%s17136_s3 + $0x98] sm:$0xff]  }
 0x7b0   :  { %5384 = vst.msk [vmem:[#allocation3 + $0x38] sm:$0x3f] %vm5377_vm7, %v14409_v50 }
 0x7b1   :  { %5327 = vrot.lane.b32.xlu0 %v14424_v23, %s11772_s2  ;;  %v14482_v55 = vpop.permute.xlu1 %6029 }
 0x7b2   :  { %6368 = vrot.lane.b32.xlu1 %v6201_v34, %s11783_s22  ;;  %v14445_v36 = vpop.permute.xlu0 %6031 }
 0x7b4   :  { %6599 = vmatpush1.bf16.xpose.msra.mxu0 %v14431_v48  ;;  %6652 = vmatpush1.bf16.xpose.msra.mxu1 %v14431_v48 }
 0x7b5   :  { %5331 = vrot.lane.b32.xlu0 %v14434_v46, %s11772_s2  ;;  %v3262_v4 = vpop.f32.mrb[24].mxu0  ;;  %6600 = vmatprep.subr.bf16.mxu0 %v17152_v0 }
 0x7b6   :  { %6118 = vrot.lane.b32.xlu1 %v6085_v35, %s11784_s0  ;;  %v3324_v24 = vpop.f32.mrb[24].mxu1  ;;  %v3467_v26 = vadd.f32 %v13575_v38, %v3262_v4  ;;  %v3264_v28 = vpop.f32.mrb[25].mxu0  ;;  %6653 = vmatprep.subr.bf16.mxu1 %v17152_v0  ;;  %v14492_v4 = vsel %vm6550_vm8, %v11665_v56, 0 }
 0x7b7   :  { %v14452_v52 = vadd.f32 %v13575_v38, %v3324_v24  ;;  %v3468_v20 = vadd.f32 %v13581_v40, %v3264_v28  ;;  %v3326_v6 = vpop.f32.mrb[25].mxu1  ;;  %v3266_v51 = vpop.f32.mrb[26].mxu0  ;;  %17185 = vst [vmem:[#allocation8_spill] sm:$0xff] %v14492_v4 }
 0x7b8   :  { %v3531_v37 = vmax.f32 %v3467_v26, 0.0  ;;  %v3476_v42 = vadd.f32 %v13581_v40, %v3326_v6  ;;  %v3328_v12 = vpop.f32.mrb[26].mxu1  ;;  %v14458_v10 = vadd.f32 %v13575_v38, %v3266_v51  ;;  %v3268_v62 = vpop.f32.mrb[27].mxu0 }
 0x7b9   :  { %6035 = vrot.lane.b32.xlu0 %v5280_v21, %s11772_s2  ;;  %v3539_v19 = vmax.f32 %v14452_v52, 0.0  ;;  %v3532_v63 = vmax.f32 %v3468_v20, 0.0  ;;  %v14469_v58 = vadd.f32 %v13575_v38, %v3328_v12  ;;  %v14472_v34 = vadd.f32 %v13581_v40, %v3268_v62  ;;  %v3330_v32 = vpop.f32.mrb[27].mxu1 }
 0x7ba   :  { %6122 = vrot.lane.b32.xlu1 %v6087_v59, %s11784_s0  ;;  %v3540_v2 = vmax.f32 %v3476_v42, 0.0  ;;  %v3533_v29 = vmax.f32 %v14458_v10, 0.0  ;;  %v14476_v11 = vadd.f32 %v13581_v40, %v3330_v32  ;;  %v3696_v57 = vrot.slane %v3531_v37, 1 }
 0x7bb   :  { %v5410_v1 = vpop.permute.xlu0 %5409  ;;  %v3541_v33 = vmax.f32 %v14469_v58, 0.0  ;;  %v17151_v43 = vmax.f32 %v14472_v34, 0.0  ;;  %v3710_v24 = vrot.slane %v3539_v19, 1  ;;  %v3699_v26 = vrot.slane %v3532_v63, 1 }
 0x7bc   :  { %5458 = vst.msk [vmem:[#allocation3] sm:$0xff] %vm5457_vm10, %v5410_v1  ;;  %6601 = vmatpush1.bf16.xpose.msra.mxu0 %v14461_v44  ;;  %v3697_v35 = vrot.slane %v3533_v29, 1  ;;  %v17150_v5 = vmax.f32 %v14476_v11, 0.0  ;;  %6654 = vmatpush1.bf16.xpose.msra.mxu1 %v14461_v44  ;;  %v3713_v59 = vrot.slane %v3540_v2, 1 }
 0x7bd   :  { %6039 = vrot.lane.b32.xlu0 %v5284_v60, %s11772_s2  ;;  %v3711_v28 = vrot.slane %v3541_v33, 1  ;;  %v14498_v52 = vrot.slane %v17151_v43, 1  ;;  %v3272_v8 = vpop.f32.mrb[28].mxu0  ;;  %6602 = vmatprep.subr.bf16.mxu0 %v17152_v0 }
 0x7be   :  { %5329 = vrot.lane.b32.xlu1 %v14488_v27, %s11772_s2  ;;  %v3698_v21 = vsel %vm17160_vm2, %v3696_v57, %v3697_v35  ;;  %v14506_v20 = vrot.slane %v17150_v5, 1  ;;  %v3334_v51 = vpop.f32.mrb[28].mxu1  ;;  %v14509_v42 = vadd.f32 %v13575_v38, %v3272_v8  ;;  %6655 = vmatprep.subr.bf16.mxu1 %v17152_v0  ;;  %v3274_v1 = vpop.f32.mrb[29].mxu0 }
 0x7bf   :  { %v5414_v6 = vpop.permute.xlu0 %5413  ;;  %v3712_v12 = vsel %vm17160_vm2, %v3710_v24, %v3711_v28  ;;  %v3836_v62 = vmax.f32 %v3531_v37, %v3698_v21  ;;  %v3701_v56 = vsel %vm17160_vm2, %v3699_v26, %v14498_v52  ;;  %v14517_v32 = vadd.f32 %v13575_v38, %v3334_v51  ;;  %v3336_v60 = vpop.f32.mrb[29].mxu1  ;;  %v14523_v24 = vld [vmem:[#allocation2 + $0xb0] sm:$0x3f] }
 0x7c0   :  { %5461 = vst.msk [vmem:[#allocation3 + $0x10] sm:$0xff] %vm5457_vm10, %v5414_v6  ;;  %v3844_v57 = vmax.f32 %v3539_v19, %v3712_v12  ;;  %v3837_v45 = vmax.f32 %v3532_v63, %v3701_v56  ;;  %v3715_v8 = vsel %vm17160_vm2, %v3713_v59, %v14506_v20  ;;  %v17154_v37 = vmax.f32 %v14509_v42, 0.0  ;;  %v3338_v26 = vpop.f32.mrb[30].mxu1  ;;  %v3276_v21 = vpop.f32.mrb[30].mxu0 }
 0x7c1   :  { %5417 = vrot.lane.b32.xlu0 %v14358_v22, %s11772_s2  ;;  %v3845_v6 = vmax.f32 %v3540_v2, %v3715_v8  ;;  %v17155_v51 = vmax.f32 %v14517_v32, 0.0  ;;  %v14530_v19 = vadd.f32 %v13581_v40, %v3274_v1  ;;  %v14533_v63 = vadd.f32 %v13581_v40, %v3336_v60  ;;  %v3278_v59 = vpop.f32.mrb[31].mxu0  ;;  %v14535_v12 = vpop.f32.mrb[31].mxu1 }
 0x7c2   :  { %5333 = vrot.lane.b32.xlu1 %v14523_v24, %s11772_s2  ;;  %v14537_v56 = vpop.permute.xlu1 %6033  ;;  %v3958_v15 = vcombine.low %v3836_v62, %v3837_v45  ;;  %v4153_v54 = vcombine.high %v3836_v62, %v3837_v45  ;;  %v14541_v2 = vrot.slane %v17154_v37, 1  ;;  %v14544_v8 = vadd.f32 %v13575_v38, %v3338_v26 }
 0x7c3   :  { %v5476_v5 = vpop.permute.xlu0 %5475  ;;  %v3973_v1 = vcombine.low %v3844_v57, %v3845_v6  ;;  %v4168_v43 = vcombine.high %v3844_v57, %v3845_v6  ;;  %v14548_v60 = vrot.slane %v17155_v51, 1  ;;  %v3536_v0 = vmax.f32 %v14530_v19, 0.0  ;;  %v5282_v57 = vld [vmem:[#allocation2 + $0x98] sm:$0x3f] }
 0x7c4   :  { %5524 = vst.msk [vmem:[#allocation3] sm:$0xff] %vm5523_vm11, %v5476_v5  ;;  %6603 = vmatpush1.bf16.xpose.msra.mxu0 %v14492_v4  ;;  %v3965_v45 = vrot.slane %v3958_v15, %v13605_v17  ;;  %v4160_v62 = vrot.slane %v4153_v54, %v13605_v17  ;;  %v3703_v26 = vsel %vm17160_vm2, %v3697_v35, %v14541_v2  ;;  %v3545_v58 = vmax.f32 %v14544_v8, 0.0 }
 0x7c5   :  { %5421 = vrot.lane.b32.xlu0 %v14373_v53, %s11772_s2  ;;  %6656 = vmatpush1.bf16.xpose.msra.mxu1 %v14492_v4  ;;  %v3980_v6 = vrot.slane %v3973_v1, %v13605_v17  ;;  %v4175_v5 = vrot.slane %v4168_v43, %v13605_v17  ;;  %v3717_v15 = vsel %vm17160_vm2, %v3711_v28, %v14548_v60  ;;  %v14574_v1 = vrot.slane %v3536_v0, 1 }
 0x7c6   :  { %v3838_v54 = vmax.f32 %v3533_v29, %v3703_v26  ;;  %6037 = vrot.lane.b32.xlu1 %v5282_v57, %s11772_s2  ;;  %v3972_v35 = vrot.slane %v3965_v45, %v13605_v17  ;;  %v4167_v51 = vrot.slane %v4160_v62, %v13605_v17  ;;  %v3846_v37 = vmax.f32 %v3541_v33, %v3717_v15 }
 0x7c7   :  { %v5480_v43 = vpop.permute.xlu0 %5479  ;;  %v5412_v47 = vpop.permute.xlu1 %5411  ;;  %v17186_v4 = vmov 0   ;;  %v3987_v10 = vrot.slane %v3980_v6, %v13605_v17  ;;  %v4182_v29 = vrot.slane %v4175_v5, %v13605_v17  ;;  %v17187_v28 = vmax.f32 %v14533_v63, 0.0  ;;  %v14597_v6 = vld [vmem:[#allocation2 + $0xb8] sm:$0x3f] }
 0x7c8   :  { %6690 = vmatprep.subr.bf16.mxu0 %v17186_v4  ;;  %6743 = vmatprep.subr.bf16.mxu1 %v17186_v4  ;;  %5527 = vst.msk [vmem:[#allocation3 + $0x10] sm:$0xff] %vm5523_vm11, %v5480_v43  ;;  %v4029_v33 = vcombine.high %v3972_v35, %v3972_v35  ;;  %v4221_v62 = vcombine.high %v4167_v51, %v4167_v51 }
 0x7c9   :  { %v14582_v45 = vrot.slane %v17187_v28, 1  ;;  %5460 = vst.msk [vmem:[#allocation3 + $0x8] sm:$0x3f] %vm5459_vm12, %v5412_v47  ;;  %v3705_v26 = vsel %vm17160_vm2, %v14498_v52, %v14574_v1  ;;  %v3473_v57 = vadd.f32 %v13575_v38, %v3276_v21  ;;  %5483 = vrot.lane.b32.xlu0 %v14358_v22, %s11773_s16  ;;  %v4030_v47 = vcombine.high %v3987_v10, %v3987_v10 }
 0x7ca   :  { %4018 = vst.msk [vmem:[#allocation2 + $0xc0] ss:$8 sm:$0x3] %vm13619_vm5, %v3972_v35  ;;  %4210 = vst.msk [vmem:[#allocation2 + $0xc2] ss:$8 sm:$0x3] %vm13619_vm5, %v4167_v51  ;;  %v4222_v5 = vcombine.high %v4182_v29, %v4182_v29  ;;  %6041 = vrot.lane.b32.xlu1 %v14597_v6, %s11772_s2  ;;  %v3474_v43 = vadd.f32 %v13581_v40, %v3278_v59 }
 0x7cb   :  { %4021 = vst.msk [vmem:[#allocation2 + $0xe0] ss:$8 sm:$0x3] %vm13619_vm5, %v3987_v10  ;;  %4213 = vst.msk [vmem:[#allocation2 + $0xe2] ss:$8 sm:$0x3] %vm13619_vm5, %v4182_v29  ;;  %v3719_v38 = vsel %vm17160_vm2, %v14506_v20, %v14582_v45  ;;  %v5542_v10 = vpop.permute.xlu0 %5541  ;;  %v5416_v20 = vpop.permute.xlu1 %5415 }
 0x7cc   :  { %v17188_v51 = vmax.f32 %v14472_v34, 0.0  ;;  %4058 = vst.msk [vmem:[#allocation2 + $0xc1] ss:$8 sm:$0x3] %vm13619_vm5, %v4029_v33  ;;  %v17189_v52 = vmax.f32 %v14476_v11, 0.0  ;;  %v3720_v34 = vrot.slane %v3545_v58, 1  ;;  %v3482_v11 = vadd.f32 %v13581_v40, %v14535_v12 }
 0x7cd   :  { %4250 = vst.msk [vmem:[#allocation2 + $0xc3] ss:$8 sm:$0x3] %vm13619_vm5, %v4221_v62  ;;  %v3537_v35 = vmax.f32 %v3473_v57, 0.0  ;;  %5487 = vrot.lane.b32.xlu0 %v14373_v53, %s11773_s16  ;;  %v17190_v40 = vmax.f32 %v14517_v32, 0.0 }
 0x7ce   :  { %v3839_v15 = vmax.f32 %v17188_v51, %v3705_v26  ;;  %v3847_v21 = vmax.f32 %v17189_v52, %v3719_v38  ;;  %4061 = vst.msk [vmem:[#allocation2 + $0xe1] ss:$8 sm:$0x3] %vm13619_vm5, %v4030_v47  ;;  %4253 = vst.msk [vmem:[#allocation2 + $0xe3] ss:$8 sm:$0x3] %vm13619_vm5, %v4222_v5  ;;  %v3721_v62 = vsel %vm17160_vm2, %v14548_v60, %v3720_v34  ;;  %5419 = vrot.lane.b32.xlu1 %v14396_v3, %s11772_s2 }
 0x7cf   :  { %5590 = vst.msk [vmem:[#allocation3] sm:$0xff] %vm17179_vm13, %v5542_v10  ;;  %v14635_v12 = vmax.f32 %v17190_v40, %v3721_v62  ;;  %v3706_v57 = vrot.slane %v3537_v35, 1  ;;  %v3538_v47 = vmax.f32 %v3474_v43, 0.0  ;;  %v3546_v5 = vmax.f32 %v3482_v11, 0.0  ;;  %v5546_v51 = vpop.permute.xlu0 %5545 }
 0x7d0   :  { %v4361_v29 = vcombine.low %v3838_v54, %v3839_v15  ;;  %v4553_v28 = vcombine.high %v3838_v54, %v3839_v15  ;;  %5462 = vst.msk [vmem:[#allocation3 + $0x18] sm:$0x3f] %vm5459_vm12, %v5416_v20  ;;  %v4376_v33 = vcombine.low %v3846_v37, %v3847_v21  ;;  %v4568_v59 = vcombine.high %v3846_v37, %v3847_v21  ;;  %v5478_v15 = vpop.permute.xlu1 %5477 }
 0x7d1   :  { %v3707_v32 = vsel %vm17160_vm2, %v14541_v2, %v3706_v57  ;;  %v3842_v21 = vmax.f32 %v3537_v35, %v3706_v57  ;;  %5593 = vst.msk [vmem:[#allocation3 + $0x10] sm:$0xff] %vm17179_vm13, %v5546_v51  ;;  %v17191_v43 = vmax.f32 %v14509_v42, 0.0  ;;  %5549 = vrot.lane.b32.xlu0 %v14358_v22, %s11774_s17  ;;  %v3850_v11 = vmax.f32 %v3545_v58, %v3720_v34 }
 0x7d2   :  { %v4368_v26 = vrot.slane %v4361_v29, %v13605_v17  ;;  %v4560_v54 = vrot.slane %v4553_v28, %v13605_v17  ;;  %v4383_v37 = vrot.slane %v4376_v33, %v13605_v17  ;;  %v4575_v60 = vrot.slane %v4568_v59, %v13605_v17  ;;  %5526 = vst.msk [vmem:[#allocation3 + $0x8] sm:$0x3f] %vm17177_vm14, %v5478_v15 }
 0x7d3   :  { %v3840_v29 = vmax.f32 %v17191_v43, %v3707_v32  ;;  %v3708_v28 = vrot.slane %v3538_v47, 1  ;;  %v3722_v33 = vrot.slane %v3546_v5, 1  ;;  %5423 = vrot.lane.b32.xlu1 %v14409_v50, %s11772_s2  ;;  %v17192_v57 = vmax.f32 %v14533_v63, 0.0 }
 0x7d4   :  { %v4375_v38 = vrot.slane %v4368_v26, %v13605_v17  ;;  %v4567_v52 = vrot.slane %v4560_v54, %v13605_v17  ;;  %v4390_v10 = vrot.slane %v4383_v37, %v13605_v17  ;;  %v4582_v20 = vrot.slane %v4575_v60, %v13605_v17  ;;  %v5608_v54 = vpop.permute.xlu0 %5607  ;;  %v5482_v40 = vpop.permute.xlu1 %5481 }
 0x7d5   :  { %v3709_v62 = vsel %vm17160_vm2, %v14574_v1, %v3708_v28  ;;  %v3843_v26 = vmax.f32 %v3538_v47, %v3708_v28  ;;  %v3723_v58 = vsel %vm17160_vm2, %v14582_v45, %v3722_v33  ;;  %v3851_v34 = vmax.f32 %v3546_v5, %v3722_v33  ;;  %5656 = vst.msk [vmem:[#allocation3] sm:$0xff] %vm17175_vm15, %v5608_v54 }
 0x7d6   :  { %4418 = vst.msk [vmem:[#allocation2 + $0xc4] ss:$8 sm:$0x3] %vm13619_vm5, %v4375_v38  ;;  %v4429_v2 = vcombine.high %v4375_v38, %v4375_v38  ;;  %4610 = vst.msk [vmem:[#allocation2 + $0xc6] ss:$8 sm:$0x3] %vm13619_vm5, %v4567_v52  ;;  %v4621_v35 = vcombine.high %v4567_v52, %v4567_v52  ;;  %v4430_v42 = vcombine.high %v4390_v10, %v4390_v10  ;;  %5553 = vrot.lane.b32.xlu0 %v14373_v53, %s11774_s17 }
 0x7d7   :  { %4421 = vst.msk [vmem:[#allocation2 + $0xe4] ss:$8 sm:$0x3] %vm13619_vm5, %v4390_v10  ;;  %4613 = vst.msk [vmem:[#allocation2 + $0xe6] ss:$8 sm:$0x3] %vm13619_vm5, %v4582_v20  ;;  %v4622_v59 = vcombine.high %v4582_v20, %v4582_v20  ;;  %v3841_v8 = vmax.f32 %v3536_v0, %v3709_v62  ;;  %v5161_v1 = vcombine.low %v3842_v21, %v3843_v26  ;;  %5485 = vrot.lane.b32.xlu1 %v14396_v3, %s11773_s16 }
 0x7d8   :  { %4458 = vst.msk [vmem:[#allocation2 + $0xc5] ss:$8 sm:$0x3] %vm13619_vm5, %v4429_v2  ;;  %4650 = vst.msk [vmem:[#allocation2 + $0xc7] ss:$8 sm:$0x3] %vm13619_vm5, %v4621_v35  ;;  %v3849_v37 = vmax.f32 %v17192_v57, %v3723_v58  ;;  %v5176_v45 = vcombine.low %v3850_v11, %v3851_v34  ;;  %v5612_v51 = vpop.permute.xlu0 %5611  ;;  %v5544_v15 = vpop.permute.xlu1 %5543 }
 0x7d9   :  { %5528 = vst.msk [vmem:[#allocation3 + $0x18] sm:$0x3f] %vm17177_vm14, %v5482_v40  ;;  %v4761_v0 = vcombine.low %v3840_v29, %v3841_v8  ;;  %v4953_v19 = vcombine.high %v3840_v29, %v3841_v8  ;;  %v5168_v60 = vrot.slane %v5161_v1, %v13605_v17  ;;  %vm17163_vm2 = vcmask 392528  }
 0x7da   :  { %4461 = vst.msk [vmem:[#allocation2 + $0xe5] ss:$8 sm:$0x3] %vm13619_vm5, %v4430_v42  ;;  %4653 = vst.msk [vmem:[#allocation2 + $0xe7] ss:$8 sm:$0x3] %vm13619_vm5, %v4622_v59  ;;  %v4776_v47 = vcombine.low %v14635_v12, %v3849_v37  ;;  %v4968_v5 = vcombine.high %v14635_v12, %v3849_v37  ;;  %v5183_v52 = vrot.slane %v5176_v45, %v13605_v17  ;;  %5615 = vrot.lane.b32.xlu0 %v14358_v22, %s11775_s18 }
 0x7db   :  { %v4768_v63 = vrot.slane %v4761_v0, %v13605_v17  ;;  %v4960_v38 = vrot.slane %v4953_v19, %v13605_v17  ;;  %5659 = vst.msk [vmem:[#allocation3 + $0x10] sm:$0xff] %vm17175_vm15, %v5612_v51  ;;  %v5175_v32 = vrot.slane %v5168_v60, %v13605_v17  ;;  %5489 = vrot.lane.b32.xlu1 %v14409_v50, %s11773_s16 }
 0x7dc   :  { %5592 = vst.msk [vmem:[#allocation3 + $0x8] sm:$0x3f] %vm17176_vm0, %v5544_v15  ;;  %v4783_v21 = vrot.slane %v4776_v47, %v13605_v17  ;;  %v4975_v10 = vrot.slane %v4968_v5, %v13605_v17  ;;  %v5190_v43 = vrot.slane %v5183_v52, %v13605_v17  ;;  %v5674_v35 = vpop.permute.xlu0 %5673  ;;  %v5548_v11 = vpop.permute.xlu1 %5547 }
 0x7dd   :  { %v4775_v12 = vrot.slane %v4768_v63, %v13605_v17  ;;  %v4967_v20 = vrot.slane %v4960_v38, %v13605_v17  ;;  %5218 = vst.msk [vmem:[#allocation2 + $0xd4] ss:$8 sm:$0x3] %vm13619_vm5, %v5175_v32  ;;  %v5229_v29 = vcombine.high %v5175_v32, %v5175_v32  ;;  %v11755_v32 = vld [vmem:[#allocation2 + $0x48] sm:$0xff] }
 0x7de   :  { %v4790_v28 = vrot.slane %v4783_v21, %v13605_v17  ;;  %v4982_v2 = vrot.slane %v4975_v10, %v13605_v17  ;;  %5221 = vst.msk [vmem:[#allocation2 + $0xf4] ss:$8 sm:$0x3] %vm13619_vm5, %v5190_v43  ;;  %v5230_v59 = vcombine.high %v5190_v43, %v5190_v43  ;;  %5619 = vrot.lane.b32.xlu0 %v14373_v53, %s11775_s18 }
 0x7df   :  { %4818 = vst.msk [vmem:[#allocation2 + $0xd0] ss:$8 sm:$0x3] %vm13619_vm5, %v4775_v12  ;;  %v4829_v33 = vcombine.high %v4775_v12, %v4775_v12  ;;  %5010 = vst.msk [vmem:[#allocation2 + $0xd2] ss:$8 sm:$0x3] %vm13619_vm5, %v4967_v20  ;;  %v5021_v42 = vcombine.high %v4967_v20, %v4967_v20  ;;  %5551 = vrot.lane.b32.xlu1 %v14396_v3, %s11774_s17  ;;  %v6202_v21 = vmax.f32 %v11755_v32, %v14422_v14 }
 0x7e0   :  { %5722 = vst.msk [vmem:[#allocation3] sm:$0xff] %vm17178_vm1, %v5674_v35  ;;  %v4830_v62 = vcombine.high %v4790_v28, %v4790_v28  ;;  %v5022_v26 = vcombine.high %v4982_v2, %v4982_v2  ;;  %v5678_v54 = vpop.permute.xlu0 %5677  ;;  %v5610_v40 = vpop.permute.xlu1 %5609  ;;  %v11757_v35 = vld [vmem:[#allocation2 + $0x58] sm:$0x3f] }
 0x7e1   :  { %5594 = vst.msk [vmem:[#allocation3 + $0x18] sm:$0x3f] %vm17176_vm0, %v5548_v11  ;;  %v6203_v11 = vmax.f32 %v11757_v35, %v14482_v55 }
 0x7e2   :  { %5258 = vst.msk [vmem:[#allocation2 + $0xd5] ss:$8 sm:$0x3] %vm13619_vm5, %v5229_v29  ;;  %4821 = vst.msk [vmem:[#allocation2 + $0xf0] ss:$8 sm:$0x3] %vm13619_vm5, %v4790_v28  ;;  %5681 = vrot.lane.b32.xlu0 %v14358_v22, %s11776_s19 }
 0x7e3   :  { %5013 = vst.msk [vmem:[#allocation2 + $0xf2] ss:$8 sm:$0x3] %vm13619_vm5, %v4982_v2  ;;  %4858 = vst.msk [vmem:[#allocation2 + $0xd1] ss:$8 sm:$0x3] %vm13619_vm5, %v4829_v33  ;;  %5555 = vrot.lane.b32.xlu1 %v14409_v50, %s11774_s17 }
 0x7e4   :  { %5050 = vst.msk [vmem:[#allocation2 + $0xd3] ss:$8 sm:$0x3] %vm13619_vm5, %v5021_v42  ;;  %5261 = vst.msk [vmem:[#allocation2 + $0xf5] ss:$8 sm:$0x3] %vm13619_vm5, %v5230_v59  ;;  %v5740_v8 = vpop.permute.xlu0 %5739  ;;  %v5614_v58 = vpop.permute.xlu1 %5613 }
 0x7e5   :  { %4861 = vst.msk [vmem:[#allocation2 + $0xf1] ss:$8 sm:$0x3] %vm13619_vm5, %v4830_v62  ;;  %5053 = vst.msk [vmem:[#allocation2 + $0xf3] ss:$8 sm:$0x3] %vm13619_vm5, %v5022_v26  ;;  %v6056_v26 = vsel %vm6051_vm9, %v14349_v13, %v14422_v14  ;;  %v6058_v13 = vsel %vm6051_vm9, %v14365_v25, %v14445_v36 }
 0x7e6   :  { %5725 = vst.msk [vmem:[#allocation3 + $0x10] sm:$0xff] %vm17178_vm1, %v5678_v54  ;;  %5685 = vrot.lane.b32.xlu0 %v14373_v53, %s11776_s19  ;;  %vm17164_vm5 = vcmask 292080   ;;  %v11758_v59 = vld [vmem:[#allocation2 + $0x78] sm:$0x3f] }
 0x7e7   :  { %5658 = vst.msk [vmem:[#allocation3 + $0x8] sm:$0x3f] %vm17162_vm3, %v5610_v40  ;;  %5660 = vst.msk [vmem:[#allocation3 + $0x18] sm:$0x3f] %vm17162_vm3, %v5614_v58  ;;  %5617 = vrot.lane.b32.xlu1 %v14396_v3, %s11775_s18  ;;  %vm17165_vm3 = vcmask 441728   ;;  %v11759_v40 = vld [vmem:[#allocation2 + $0x40] sm:$0xff] }
 0x7e8   :  { %5788 = vst.msk [vmem:[#allocation3] sm:$0xff] %vm17161_vm4, %v5740_v8  ;;  %v5744_v9 = vpop.permute.xlu0 %5743  ;;  %v5676_v34 = vpop.permute.xlu1 %5675  ;;  %v6088_v8 = vmax.f32 %v11759_v40, %v6056_v26 }
 0x7e9   :  { %5791 = vst.msk [vmem:[#allocation3 + $0x10] sm:$0xff] %vm17161_vm4, %v5744_v9  ;;  %vm17170_vm4 = vcmask 341280   ;;  %v11760_v9 = vld [vmem:[#allocation2 + $0x60] sm:$0xff] }
 0x7ea   :  { %5724 = vst.msk [vmem:[#allocation3 + $0x8] sm:$0x3f] %vm17164_vm5, %v5676_v34  ;;  %5747 = vrot.lane.b32.xlu0 %v14358_v22, %s11777_s20  ;;  %v6090_v34 = vmax.f32 %v11760_v9, %v6058_v13 }
 0x7eb   :  { %5621 = vrot.lane.b32.xlu1 %v14409_v50, %s11775_s18  ;;  %v14945_v13 = vld [vmem:[#allocation2 + $0xd8] sm:$0x3f] }
 0x7ec   :  { %v5806_v1 = vpop.permute.xlu0 %5805  ;;  %v5680_v57 = vpop.permute.xlu1 %5679 }
 0x7ed   :  { %5854 = vst.msk [vmem:[#allocation3] sm:$0xff] %vm17163_vm2, %v5806_v1 }
 0x7ee   :  { %5726 = vst.msk [vmem:[#allocation3 + $0x18] sm:$0x3f] %vm17164_vm5, %v5680_v57  ;;  %5751 = vrot.lane.b32.xlu0 %v14373_v53, %s11777_s20  ;;  %vm17166_vm5 = vcmask 490928  }
 0x7ef   :  { %5683 = vrot.lane.b32.xlu1 %v14396_v3, %s11776_s19 }
 0x7f0   :  { %v5810_v37 = vpop.permute.xlu0 %5809  ;;  %v5742_v0 = vpop.permute.xlu1 %5741 }
 0x7f1   :  { %5857 = vst.msk [vmem:[#allocation3 + $0x10] sm:$0xff] %vm17163_vm2, %v5810_v37  ;;  %vm17169_vm2 = vcmask 390480  }
 0x7f2   :  { %5790 = vst.msk [vmem:[#allocation3 + $0x8] sm:$0x3f] %vm17170_vm4, %v5742_v0  ;;  %5813 = vrot.lane.b32.xlu0 %v14358_v22, %s11778_s23 }
 0x7f3   :  { %5687 = vrot.lane.b32.xlu1 %v14409_v50, %s11776_s19 }
 0x7f4   :  { %v5872_v19 = vpop.permute.xlu0 %5871  ;;  %v5746_v45 = vpop.permute.xlu1 %5745 }
 0x7f5   :  { %5920 = vst.msk [vmem:[#allocation3] sm:$0xff] %vm17165_vm3, %v5872_v19  ;;  %v14851_v19 = vld [vmem:[#allocation2 + $0xc0] sm:$0xff] }
 0x7f6   :  { %5792 = vst.msk [vmem:[#allocation3 + $0x18] sm:$0x3f] %vm17170_vm4, %v5746_v45  ;;  %5817 = vrot.lane.b32.xlu0 %v14373_v53, %s11778_s23  ;;  %vm17174_vm4 = vcmask 687728   ;;  %v11761_v45 = vld [vmem:[#allocation2 + $0x50] sm:$0x3f] }
 0x7f7   :  { %5749 = vrot.lane.b32.xlu1 %v14396_v3, %s11777_s20 }
 0x7f8   :  { %v5876_v60 = vpop.permute.xlu0 %5875  ;;  %v5808_v47 = vpop.permute.xlu1 %5807 }
 0x7f9   :  { %5923 = vst.msk [vmem:[#allocation3 + $0x10] sm:$0xff] %vm17165_vm3, %v5876_v60  ;;  %vm17168_vm3 = vcmask 439680  }
 0x7fa   :  { %5856 = vst.msk [vmem:[#allocation3 + $0x8] sm:$0x3f] %vm17169_vm2, %v5808_v47  ;;  %5879 = vrot.lane.b32.xlu0 %v14358_v22, %s11779_s26  ;;  %v6059_v47 = vsel %vm6051_vm9, %v14405_v49, %v14537_v56  ;;  %v14884_v49 = vld [vmem:[#allocation2 + $0xc8] sm:$0xff] }
 0x7fb   :  { %5753 = vrot.lane.b32.xlu1 %v14409_v50, %s11777_s20 }
 0x7fc   :  { %v5938_v5 = vpop.permute.xlu0 %5937  ;;  %v5812_v51 = vpop.permute.xlu1 %5811 }
 0x7fd   :  { %5986 = vst.msk [vmem:[#allocation3] sm:$0xff] %vm17166_vm5, %v5938_v5 }
 0x7fe   :  { %5858 = vst.msk [vmem:[#allocation3 + $0x18] sm:$0x3f] %vm17169_vm2, %v5812_v51  ;;  %5883 = vrot.lane.b32.xlu0 %v14373_v53, %s11779_s26  ;;  %vm17171_vm2 = vcmask 638528   ;;  %v11762_v51 = vld [vmem:[#allocation2 + $0x70] sm:$0x3f] }
 0x7ff   :  { %5815 = vrot.lane.b32.xlu1 %v14396_v3, %s11778_s23 }
 0x800   :  { %v5942_v15 = vpop.permute.xlu0 %5941  ;;  %v5874_v63 = vpop.permute.xlu1 %5873 }
 0x801   :  { %5989 = vst.msk [vmem:[#allocation3 + $0x10] sm:$0xff] %vm17166_vm5, %v5942_v15  ;;  %vm17167_vm5 = vcmask 488880   ;;  %v6091_v15 = vmax.f32 %v11762_v51, %v6059_v47 }
 0x802   :  { %5922 = vst.msk [vmem:[#allocation3 + $0x8] sm:$0x3f] %vm17168_vm3, %v5874_v63  ;;  %5945 = vrot.lane.b32.xlu0 %v14358_v22, %s11780_s28  ;;  %v11756_v22 = vld [vmem:[#allocation2 + $0x68] sm:$0xff] }
 0x803   :  { %5819 = vrot.lane.b32.xlu1 %v14409_v50, %s11778_s23  ;;  %v6204_v20 = vmax.f32 %v11756_v22, %v14445_v36  ;;  %v14908_v22 = vld [vmem:[#allocation2 + $0xd0] sm:$0x3f] }
 0x804   :  { %v6231_v38 = vpop.permute.xlu0 %6230  ;;  %v5878_v52 = vpop.permute.xlu1 %5877 }
 0x805   :  { %5924 = vst.msk [vmem:[#allocation3 + $0x18] sm:$0x3f] %vm17168_vm3, %v5878_v52  ;;  %vm17172_vm3 = vcmask 589328  }
 0x806   :  { %5949 = vrot.lane.b32.xlu0 %v14373_v53, %s11780_s28 }
 0x807   :  { %5881 = vrot.lane.b32.xlu1 %v14396_v3, %s11779_s26 }
 0x808   :  { %v6235_v10 = vpop.permute.xlu0 %6234  ;;  %v5940_v12 = vpop.permute.xlu1 %5939 }
 0x809   :  { %5988 = vst.msk [vmem:[#allocation3 + $0x8] sm:$0x3f] %vm17167_vm5, %v5940_v12 }
 0x80a   :  { %6238 = vrot.lane.b32.xlu0 %v6202_v21, %s11781_s12 }
 0x80b   :  { %5885 = vrot.lane.b32.xlu1 %v14409_v50, %s11779_s26 }
 0x80c   :  { %v6297_v53 = vpop.permute.xlu0 %6296  ;;  %v5944_v43 = vpop.permute.xlu1 %5943 }
 0x80d   :  { %5990 = vst.msk [vmem:[#allocation3 + $0x18] sm:$0x3f] %vm17167_vm5, %v5944_v43  ;;  %vm17173_vm5 = vcmask 540128  }
 0x80e   :  { %6242 = vrot.lane.b32.xlu0 %v6204_v20, %s11781_s12 }
 0x80f   :  { %5947 = vrot.lane.b32.xlu1 %v14396_v3, %s11780_s28  ;;  %v6205_v3 = vmax.f32 %v11758_v59, %v14537_v56 }
 0x810   :  { %v6301_v29 = vpop.permute.xlu0 %6300  ;;  %v6233_v28 = vpop.permute.xlu1 %6232 }
 0x812   :  { %6304 = vrot.lane.b32.xlu0 %v6202_v21, %s11782_s1 }
 0x813   :  { %5951 = vrot.lane.b32.xlu1 %v14409_v50, %s11780_s28 }
 0x814   :  { %v6363_v2 = vpop.permute.xlu0 %6362  ;;  %v14810_v33 = vpop.permute.xlu1 %6236 }
 0x816   :  { %6308 = vrot.lane.b32.xlu0 %v6204_v20, %s11782_s1 }
 0x817   :  { %6240 = vrot.lane.b32.xlu1 %v6203_v11, %s11781_s12 }
 0x818   :  { %v6367_v42 = vpop.permute.xlu0 %6366  ;;  %v6299_v62 = vpop.permute.xlu1 %6298 }
 0x81a   :  { %6370 = vrot.lane.b32.xlu0 %v6202_v21, %s11783_s22 }
 0x81b   :  { %6244 = vrot.lane.b32.xlu1 %v6205_v3, %s11781_s12 }
 0x81c   :  { %v6117_v50 = vpop.permute.xlu0 %6116  ;;  %v6303_v54 = vpop.permute.xlu1 %6302 }
 0x81d   :  { %6165 = vst.msk [vmem:[#allocation3] sm:$0xff] %vm17173_vm5, %v6117_v50 }
 0x81e   :  { %6279 = vst.msk [vmem:[#allocation3] sm:$0xff] %vm17172_vm3, %v6231_v38  ;;  %6374 = vrot.lane.b32.xlu0 %v6204_v20, %s11783_s22 }
 0x81f   :  { %6345 = vst.msk [vmem:[#allocation3] sm:$0xff] %vm17171_vm2, %v6297_v53  ;;  %6306 = vrot.lane.b32.xlu1 %v6203_v11, %s11782_s1 }
 0x820   :  { %6411 = vst.msk [vmem:[#allocation3] sm:$0xff] %vm17174_vm4, %v6363_v2  ;;  %v6121_v58 = vpop.permute.xlu0 %6120  ;;  %v6365_v14 = vpop.permute.xlu1 %6364 }
 0x821   :  { %6168 = vst.msk [vmem:[#allocation3 + $0x10] sm:$0xff] %vm17173_vm5, %v6121_v58  ;;  %vm6346_vm5 = vcmask 636480  }
 0x822   :  { %6282 = vst.msk [vmem:[#allocation3 + $0x10] sm:$0xff] %vm17172_vm3, %v6235_v10  ;;  %6124 = vrot.lane.b32.xlu0 %v6088_v8, %s11784_s0  ;;  %vm6280_vm3 = vcmask 587280   ;;  %v14898_v10 = vld [vmem:[#allocation2 + $0xe8] sm:$0xff] }
 0x823   :  { %6348 = vst.msk [vmem:[#allocation3 + $0x10] sm:$0xff] %vm17171_vm2, %v6301_v29  ;;  %6310 = vrot.lane.b32.xlu1 %v6205_v3, %s11782_s1  ;;  %vm6166_vm2 = vcmask 538080  }
 0x824   :  { %6414 = vst.msk [vmem:[#allocation3 + $0x10] sm:$0xff] %vm17174_vm4, %v6367_v42  ;;  %v14835_v1 = vpop.permute.xlu0 %5327  ;;  %v6369_v57 = vpop.permute.xlu1 %6368  ;;  %vm6412_vm4 = vcmask 685680   ;;  %v14927_v42 = vld [vmem:[#allocation2 + $0xf0] sm:$0x3f] }
 0x825   :  { %v14839_v25 = vmax.f32 %v14424_v23, %v14835_v1  ;;  %v6057_v23 = vsel %vm6051_vm9, %v14388_v30, %v14482_v55  ;;  %v14867_v55 = vld [vmem:[#allocation2 + $0xe0] sm:$0xff] }
 0x826   :  { %6128 = vrot.lane.b32.xlu0 %v6090_v34, %s11784_s0  ;;  %v6089_v60 = vmax.f32 %v11761_v45, %v6057_v23 }
 0x827   :  { %5385 = vst.msk [vmem:[#allocation3 + $0x40] sm:$0xff] %vm5375_vm6, %v14839_v25  ;;  %6372 = vrot.lane.b32.xlu1 %v6203_v11, %s11783_s22  ;;  %v6428_v52 = vld [vmem:[#allocation3] sm:$0xff] }
 0x828   :  { %v14845_v36 = vpop.permute.xlu0 %5331  ;;  %v6119_v37 = vpop.permute.xlu1 %6118 }
 0x829   :  { %v14849_v0 = vmax.f32 %v14434_v46, %v14845_v36  ;;  %6167 = vst.msk [vmem:[#allocation3 + $0x8] sm:$0x3f] %vm6166_vm2, %v6119_v37  ;;  %v14959_v37 = vld [vmem:[#allocation2 + $0xf8] sm:$0x3f] }
 0x82a   :  { %5335 = vrot.lane.b32.xlu0 %v14851_v19, %s11772_s2  ;;  %6281 = vst.msk [vmem:[#allocation3 + $0x8] sm:$0x3f] %vm6280_vm3, %v6233_v28 }
 0x82b   :  { %5387 = vst.msk [vmem:[#allocation3 + $0x50] sm:$0xff] %vm5375_vm6, %v14849_v0  ;;  %6376 = vrot.lane.b32.xlu1 %v6205_v3, %s11783_s22  ;;  %v6430_v29 = vld [vmem:[#allocation3 + $0x10] sm:$0xff] }
 0x82c   :  { %6347 = vst.msk [vmem:[#allocation3 + $0x8] sm:$0x3f] %vm6346_vm5, %v6299_v62  ;;  %v14864_v46 = vpop.permute.xlu0 %6035  ;;  %v6123_v30 = vpop.permute.xlu1 %6122 }
 0x82d   :  { %6413 = vst.msk [vmem:[#allocation3 + $0x8] sm:$0x3f] %vm6412_vm4, %v6365_v14 }
 0x82e   :  { %6169 = vst.msk [vmem:[#allocation3 + $0x18] sm:$0x3f] %vm6166_vm2, %v6123_v30  ;;  %5339 = vrot.lane.b32.xlu0 %v14867_v55, %s11772_s2 }
 0x82f   :  { %6283 = vst.msk [vmem:[#allocation3 + $0x18] sm:$0x3f] %vm6280_vm3, %v14810_v33  ;;  %6126 = vrot.lane.b32.xlu1 %v6089_v60, %s11784_s0 }
 0x830   :  { %6349 = vst.msk [vmem:[#allocation3 + $0x18] sm:$0x3f] %vm6346_vm5, %v6303_v54  ;;  %v14879_v5 = vpop.permute.xlu0 %6039  ;;  %v14882_v63 = vpop.permute.xlu1 %5329 }
 0x831   :  { %6415 = vst.msk [vmem:[#allocation3 + $0x18] sm:$0x3f] %vm6412_vm4, %v6369_v57  ;;  %v14888_v56 = vmax.f32 %v14488_v27, %v14882_v63 }
 0x832   :  { %6043 = vrot.lane.b32.xlu0 %v14884_v49, %s11772_s2 }
 0x833   :  { %6130 = vrot.lane.b32.xlu1 %v6091_v15, %s11784_s0  ;;  %5386 = vst.msk [vmem:[#allocation3 + $0x48] sm:$0x3f] %vm5377_vm7, %v14888_v56 }
 0x834   :  { %v5418_v38 = vpop.permute.xlu0 %5417  ;;  %v6429_v32 = vld [vmem:[#allocation3 + $0x8] sm:$0x3f]  ;;  %v14896_v21 = vpop.permute.xlu1 %5333 }
 0x835   :  { %5463 = vst.msk [vmem:[#allocation3 + $0x20] sm:$0xff] %vm5457_vm10, %v5418_v38  ;;  %v14900_v12 = vpack.c.bf16 %v6429_v32, %v6428_v52  ;;  %v14904_v27 = vmax.f32 %v14523_v24, %v14896_v21 }
 0x836   :  { %6047 = vrot.lane.b32.xlu0 %v14898_v10, %s11772_s2 }
 0x837   :  { %5337 = vrot.lane.b32.xlu1 %v14908_v22, %s11772_s2  ;;  %v6494_v20 = vshrl.u32 %v14900_v12, 16  ;;  %v6496_v53 = vshll.u32 %v14900_v12, 16  ;;  %5388 = vst.msk [vmem:[#allocation3 + $0x58] sm:$0x3f] %vm5377_vm7, %v14904_v27 }
 0x838   :  { %v5422_v43 = vpop.permute.xlu0 %5421  ;;  %v6431_v28 = vld [vmem:[#allocation3 + $0x18] sm:$0x3f]  ;;  %v14917_v24 = vpop.permute.xlu1 %6037 }
 0x839   :  { %5465 = vst.msk [vmem:[#allocation3 + $0x30] sm:$0xff] %vm5457_vm10, %v5422_v43  ;;  %v6498_v2 = vrot.slane %v6496_v53, 1  ;;  %v14919_v35 = vpack.c.bf16 %v6431_v28, %v6430_v29  ;;  %v14921_v11 = vrot.slane %v6494_v20, 1  ;;  %v14923_v33 = vrot.slane %v6496_v53, 2 }
 0x83a   :  { %5425 = vrot.lane.b32.xlu0 %v14839_v25, %s11772_s2 }
 0x83b   :  { %5341 = vrot.lane.b32.xlu1 %v14927_v42, %s11772_s2  ;;  %v6499_v59 = vor.u32 %v6498_v2, %v6494_v20  ;;  %v6628_v3 = vshrl.u32 %v14919_v35, 16  ;;  %v6630_v62 = vshll.u32 %v14919_v35, 16  ;;  %v7978_v26 = vor.u32 %v14923_v33, %v14921_v11  ;;  %v11696_v11 = vld [vmem:[%s17136_s3 + $0x140] sm:$0xff]  }
 0x83c   :  { %v5484_v50 = vpop.permute.xlu0 %5483  ;;  %v14937_v54 = vpop.permute.xlu1 %6041  ;;  %v16297_v33 = vsel %vm6550_vm8, %v11696_v11, 0 }
 0x83d   :  { %10931 = vmatmul.mubr.msk.bf16.vlgmr.msra.gmra.mrb[32].mxu0 %vm6550_vm8, %v6499_v59  ;;  %5529 = vst.msk [vmem:[#allocation3 + $0x20] sm:$0xff] %vm5523_vm11, %v5484_v50  ;;  %v6632_v40 = vrot.slane %v6630_v62, 1  ;;  %v14939_v8 = vrot.slane %v6628_v3, 1  ;;  %v14941_v58 = vrot.slane %v6630_v62, 2 }
 0x83e   :  { %5429 = vrot.lane.b32.xlu0 %v14849_v0, %s11772_s2  ;;  %6691 = vmatpush1.bf16.xpose.msra.mxu0 %v14234_v41 }
 0x83f   :  { %6045 = vrot.lane.b32.xlu1 %v14945_v13, %s11772_s2  ;;  %v6633_v14 = vor.u32 %v6632_v40, %v6628_v3  ;;  %6692 = vmatprep.subr.bf16.mxu0 %v17186_v4  ;;  %v8107_v9 = vor.u32 %v14941_v58, %v14939_v8  ;;  %v11698_v58 = vld [vmem:[%s17136_s3 + $0x150] sm:$0xff]  }
 0x840   :  { %v5488_v34 = vpop.permute.xlu0 %5487  ;;  %6722 = vmatprep.mubr.bf16.mxu0 %v17186_v4  ;;  %v5420_v57 = vpop.permute.xlu1 %5419 }
 0x841   :  { %10932 = vmatmul.mubr.msk.bf16.vlgmr.msra.gmra.mrb[32].mxu1 %vm6550_vm8, %v6633_v14  ;;  %5531 = vst.msk [vmem:[#allocation3 + $0x30] sm:$0xff] %vm5523_vm11, %v5488_v34 }
 0x842   :  { %5464 = vst.msk [vmem:[#allocation3 + $0x28] sm:$0x3f] %vm5459_vm12, %v5420_v57  ;;  %5491 = vrot.lane.b32.xlu0 %v14839_v25, %s11773_s16  ;;  %6744 = vmatpush1.bf16.xpose.msra.mxu1 %v14234_v41 }
 0x843   :  { %6049 = vrot.lane.b32.xlu1 %v14959_v37, %s11772_s2  ;;  %6745 = vmatprep.subr.bf16.mxu1 %v17186_v4 }
 0x844   :  { %v5550_v23 = vpop.permute.xlu0 %5549  ;;  %6775 = vmatprep.mubr.bf16.mxu1 %v17186_v4 }
 0x845   :  { %5595 = vst.msk [vmem:[#allocation3 + $0x20] sm:$0xff] %vm17179_vm13, %v5550_v23  ;;  %v5424_v45 = vpop.permute.xlu1 %5423 }
 0x846   :  { %5466 = vst.msk [vmem:[#allocation3 + $0x38] sm:$0x3f] %vm5459_vm12, %v5424_v45  ;;  %5495 = vrot.lane.b32.xlu0 %v14849_v0, %s11773_s16  ;;  %6693 = vmatpush1.bf16.xpose.msra.mxu0 %v14258_v18 }
 0x847   :  { %5427 = vrot.lane.b32.xlu1 %v14888_v56, %s11772_s2  ;;  %6694 = vmatprep.subr.bf16.mxu0 %v17186_v4 }
 0x848   :  { %v5554_v60 = vpop.permute.xlu0 %5553 }
 0x849   :  { %5597 = vst.msk [vmem:[#allocation3 + $0x30] sm:$0xff] %vm17179_vm13, %v5554_v60  ;;  %v5486_v30 = vpop.permute.xlu1 %5485 }
 0x84a   :  { %5530 = vst.msk [vmem:[#allocation3 + $0x28] sm:$0x3f] %vm17177_vm14, %v5486_v30  ;;  %5557 = vrot.lane.b32.xlu0 %v14839_v25, %s11774_s17  ;;  %6746 = vmatpush1.bf16.xpose.msra.mxu1 %v14258_v18 }
 0x84b   :  { %5431 = vrot.lane.b32.xlu1 %v14904_v27, %s11772_s2  ;;  %6747 = vmatprep.subr.bf16.mxu1 %v17186_v4 }
 0x84c   :  { %v5616_v47 = vpop.permute.xlu0 %5615 }
 0x84d   :  { %5661 = vst.msk [vmem:[#allocation3 + $0x20] sm:$0xff] %vm17175_vm15, %v5616_v47  ;;  %v5490_v51 = vpop.permute.xlu1 %5489 }
 0x84e   :  { %5532 = vst.msk [vmem:[#allocation3 + $0x38] sm:$0x3f] %vm17177_vm14, %v5490_v51  ;;  %5561 = vrot.lane.b32.xlu0 %v14849_v0, %s11774_s17  ;;  %6695 = vmatpush1.bf16.xpose.msra.mxu0 %v14305_v7 }
 0x84f   :  { %5493 = vrot.lane.b32.xlu1 %v14888_v56, %s11773_s16  ;;  %6696 = vmatprep.subr.bf16.mxu0 %v17186_v4 }
 0x850   :  { %v5620_v15 = vpop.permute.xlu0 %5619 }
 0x851   :  { %5663 = vst.msk [vmem:[#allocation3 + $0x30] sm:$0xff] %vm17175_vm15, %v5620_v15  ;;  %v5552_v38 = vpop.permute.xlu1 %5551  ;;  %vm17193_vm15 = vcmask 242880  }
 0x852   :  { %5596 = vst.msk [vmem:[#allocation3 + $0x28] sm:$0x3f] %vm17176_vm0, %v5552_v38  ;;  %5623 = vrot.lane.b32.xlu0 %v14839_v25, %s11775_s18  ;;  %6748 = vmatpush1.bf16.xpose.msra.mxu1 %v14305_v7  ;;  %vm17195_vm14 = vmmov %vm17193_vm15 }
 0x853   :  { %5497 = vrot.lane.b32.xlu1 %v14904_v27, %s11773_s16  ;;  %6749 = vmatprep.subr.bf16.mxu1 %v17186_v4 }
 0x854   :  { %v5682_v52 = vpop.permute.xlu0 %5681 }
 0x855   :  { %5727 = vst.msk [vmem:[#allocation3 + $0x20] sm:$0xff] %vm17178_vm1, %v5682_v52  ;;  %v5556_v32 = vpop.permute.xlu1 %5555 }
 0x856   :  { %5598 = vst.msk [vmem:[#allocation3 + $0x38] sm:$0x3f] %vm17176_vm0, %v5556_v32  ;;  %5627 = vrot.lane.b32.xlu0 %v14849_v0, %s11775_s18  ;;  %6697 = vmatpush1.bf16.xpose.msra.mxu0 %v14324_v16  ;;  %vm17194_vm0 = vcmask 343328  }
 0x857   :  { %5559 = vrot.lane.b32.xlu1 %v14888_v56, %s11774_s17  ;;  %6698 = vmatprep.subr.bf16.mxu0 %v17186_v4 }
 0x858   :  { %v5686_v20 = vpop.permute.xlu0 %5685 }
 0x859   :  { %5729 = vst.msk [vmem:[#allocation3 + $0x30] sm:$0xff] %vm17178_vm1, %v5686_v20  ;;  %v5618_v53 = vpop.permute.xlu1 %5617  ;;  %vm17197_vm1 = vcmask 292080  }
 0x85a   :  { %5662 = vst.msk [vmem:[#allocation3 + $0x28] sm:$0x3f] %vm17193_vm15, %v5618_v53  ;;  %5689 = vrot.lane.b32.xlu0 %v14839_v25, %s11776_s19  ;;  %6750 = vmatpush1.bf16.xpose.msra.mxu1 %v14324_v16  ;;  %vm17196_vm15 = vmmov %vm17194_vm0 }
 0x85b   :  { %5563 = vrot.lane.b32.xlu1 %v14904_v27, %s11774_s17  ;;  %6751 = vmatprep.subr.bf16.mxu1 %v17186_v4 }
 0x85c   :  { %v5748_v43 = vpop.permute.xlu0 %5747 }
 0x85d   :  { %5793 = vst.msk [vmem:[#allocation3 + $0x20] sm:$0xff] %vm17194_vm0, %v5748_v43  ;;  %v5622_v29 = vpop.permute.xlu1 %5621  ;;  %vm17199_vm0 = vmmov %vm17197_vm1  ;;  %v17213_v43 = vld [vmem:[#allocation8_spill] sm:$0xff] }
 0x85e   :  { %5664 = vst.msk [vmem:[#allocation3 + $0x38] sm:$0x3f] %vm17195_vm14, %v5622_v29  ;;  %5693 = vrot.lane.b32.xlu0 %v14849_v0, %s11776_s19  ;;  %6699 = vmatpush1.bf16.xpose.msra.mxu0 %v14343_v31  ;;  %vm17198_vm14 = vcmask 392528  }
 0x85f   :  { %5625 = vrot.lane.b32.xlu1 %v14888_v56, %s11775_s18  ;;  %6700 = vmatprep.subr.bf16.mxu0 %v17186_v4 }
 0x860   :  { %v5752_v28 = vpop.permute.xlu0 %5751 }
 0x861   :  { %5795 = vst.msk [vmem:[#allocation3 + $0x30] sm:$0xff] %vm17196_vm15, %v5752_v28  ;;  %v5684_v2 = vpop.permute.xlu1 %5683  ;;  %vm17201_vm15 = vcmask 341280  }
 0x862   :  { %5728 = vst.msk [vmem:[#allocation3 + $0x28] sm:$0x3f] %vm17197_vm1, %v5684_v2  ;;  %5755 = vrot.lane.b32.xlu0 %v14839_v25, %s11777_s20  ;;  %6752 = vmatpush1.bf16.xpose.msra.mxu1 %v14343_v31  ;;  %vm17200_vm1 = vmmov %vm17198_vm14 }
 0x863   :  { %5629 = vrot.lane.b32.xlu1 %v14904_v27, %s11775_s18  ;;  %6753 = vmatprep.subr.bf16.mxu1 %v17186_v4 }
 0x864   :  { %v5814_v59 = vpop.permute.xlu0 %5813 }
 0x865   :  { %5859 = vst.msk [vmem:[#allocation3 + $0x20] sm:$0xff] %vm17198_vm14, %v5814_v59  ;;  %v5688_v3 = vpop.permute.xlu1 %5687  ;;  %vm17202_vm14 = vcmask 441728   ;;  %v11765_v59 = vld [vmem:[#allocation2 + $0x98] sm:$0x3f] }
 0x866   :  { %5730 = vst.msk [vmem:[#allocation3 + $0x38] sm:$0x3f] %vm17199_vm0, %v5688_v3  ;;  %5759 = vrot.lane.b32.xlu0 %v14849_v0, %s11777_s20  ;;  %6701 = vmatpush1.bf16.xpose.msra.mxu0 %v14368_v39  ;;  %vm17203_vm0 = vmmov %vm17201_vm15  ;;  %v6207_v3 = vmax.f32 %v11765_v59, %v14917_v24 }
 0x867   :  { %5691 = vrot.lane.b32.xlu1 %v14888_v56, %s11776_s19  ;;  %6702 = vmatprep.subr.bf16.mxu0 %v17186_v4 }
 0x868   :  { %v5818_v62 = vpop.permute.xlu0 %5817 }
 0x869   :  { %5861 = vst.msk [vmem:[#allocation3 + $0x30] sm:$0xff] %vm17200_vm1, %v5818_v62  ;;  %v5750_v50 = vpop.permute.xlu1 %5749  ;;  %vm17204_vm1 = vmmov %vm17202_vm14 }
 0x86a   :  { %5794 = vst.msk [vmem:[#allocation3 + $0x28] sm:$0x3f] %vm17201_vm15, %v5750_v50  ;;  %5821 = vrot.lane.b32.xlu0 %v14839_v25, %s11778_s23  ;;  %6754 = vmatpush1.bf16.xpose.msra.mxu1 %v14368_v39  ;;  %vm17205_vm15 = vcmask 390480   ;;  %v6209_v50 = vmax.f32 %v14597_v6, %v14937_v54  ;;  %v11766_v6 = vld [vmem:[#allocation2 + $0x80] sm:$0xff] }
 0x86b   :  { %5695 = vrot.lane.b32.xlu1 %v14904_v27, %s11776_s19  ;;  %6755 = vmatprep.subr.bf16.mxu1 %v17186_v4 }
 0x86c   :  { %v5880_v40 = vpop.permute.xlu0 %5879 }
 0x86d   :  { %5925 = vst.msk [vmem:[#allocation3 + $0x20] sm:$0xff] %vm17202_vm14, %v5880_v40  ;;  %v5754_v14 = vpop.permute.xlu1 %5753  ;;  %vm17206_vm14 = vcmask 490928  }
 0x86e   :  { %5796 = vst.msk [vmem:[#allocation3 + $0x38] sm:$0x3f] %vm17203_vm0, %v5754_v14  ;;  %5825 = vrot.lane.b32.xlu0 %v14849_v0, %s11778_s23  ;;  %6703 = vmatpush1.bf16.xpose.msra.mxu0 %v14400_v61  ;;  %vm17207_vm0 = vmmov %vm17205_vm15  ;;  %v6060_v14 = vsel %vm6051_vm9, %v14835_v1, %v14864_v46  ;;  %v6062_v1 = vsel %vm6051_vm9, %v14845_v36, %v14879_v5 }
 0x86f   :  { %5757 = vrot.lane.b32.xlu1 %v14888_v56, %s11777_s20  ;;  %6704 = vmatprep.subr.bf16.mxu0 %v17186_v4 }
 0x870   :  { %v5884_v34 = vpop.permute.xlu0 %5883 }
 0x871   :  { %5927 = vst.msk [vmem:[#allocation3 + $0x30] sm:$0xff] %vm17204_vm1, %v5884_v34  ;;  %v5816_v57 = vpop.permute.xlu1 %5815  ;;  %vm17208_vm1 = vmmov %vm17206_vm14 }
 0x872   :  { %5860 = vst.msk [vmem:[#allocation3 + $0x28] sm:$0x3f] %vm17205_vm15, %v5816_v57  ;;  %5887 = vrot.lane.b32.xlu0 %v14839_v25, %s11779_s26  ;;  %6756 = vmatpush1.bf16.xpose.msra.mxu1 %v14400_v61  ;;  %vm17209_vm15 = vcmask 439680   ;;  %v6092_v57 = vmax.f32 %v11766_v6, %v6060_v14 }
 0x873   :  { %5761 = vrot.lane.b32.xlu1 %v14904_v27, %s11777_s20  ;;  %6757 = vmatprep.subr.bf16.mxu1 %v17186_v4 }
 0x874   :  { %v5946_v23 = vpop.permute.xlu0 %5945 }
 0x875   :  { %5991 = vst.msk [vmem:[#allocation3 + $0x20] sm:$0xff] %vm17206_vm14, %v5946_v23  ;;  %v5820_v45 = vpop.permute.xlu1 %5819  ;;  %vm17210_vm14 = vmmov %vm17209_vm15 }
 0x876   :  { %5862 = vst.msk [vmem:[#allocation3 + $0x38] sm:$0x3f] %vm17207_vm0, %v5820_v45  ;;  %5891 = vrot.lane.b32.xlu0 %v14849_v0, %s11779_s26  ;;  %6705 = vmatpush1.bf16.xpose.msra.mxu0 %v14431_v48  ;;  %vm17211_vm0 = vcmask 488880   ;;  %v11767_v45 = vld [vmem:[#allocation2 + $0xa0] sm:$0xff] }
 0x877   :  { %5823 = vrot.lane.b32.xlu1 %v14888_v56, %s11778_s23  ;;  %6706 = vmatprep.subr.bf16.mxu0 %v17186_v4 }
 0x878   :  { %v5950_v60 = vpop.permute.xlu0 %5949 }
 0x879   :  { %5993 = vst.msk [vmem:[#allocation3 + $0x30] sm:$0xff] %vm17208_vm1, %v5950_v60  ;;  %v5882_v30 = vpop.permute.xlu1 %5881  ;;  %vm17212_vm1 = vmmov %vm17211_vm0  ;;  %v6094_v60 = vmax.f32 %v11767_v45, %v6062_v1 }
 0x87a   :  { %5926 = vst.msk [vmem:[#allocation3 + $0x28] sm:$0x3f] %vm17209_vm15, %v5882_v30  ;;  %5953 = vrot.lane.b32.xlu0 %v14839_v25, %s11780_s28  ;;  %6758 = vmatpush1.bf16.xpose.msra.mxu1 %v14431_v48  ;;  %v11763_v25 = vld [vmem:[#allocation2 + $0x88] sm:$0xff]  ;;  %vm17214_vm15 = vcmask 540128  }
 0x87b   :  { %5827 = vrot.lane.b32.xlu1 %v14904_v27, %s11778_s23  ;;  %6759 = vmatprep.subr.bf16.mxu1 %v17186_v4  ;;  %v6206_v15 = vmax.f32 %v11763_v25, %v14864_v46  ;;  %vm17218_vm13 = vmmov %vm17214_vm15 }
 0x87c   :  { %v6239_v47 = vpop.permute.xlu0 %6238 }
 0x87d   :  { %v5886_v51 = vpop.permute.xlu1 %5885 }
 0x87e   :  { %5928 = vst.msk [vmem:[#allocation3 + $0x38] sm:$0x3f] %vm17210_vm14, %v5886_v51  ;;  %5957 = vrot.lane.b32.xlu0 %v14849_v0, %s11780_s28  ;;  %6707 = vmatpush1.bf16.xpose.msra.mxu0 %v14461_v44  ;;  %v11764_v0 = vld [vmem:[#allocation2 + $0xa8] sm:$0xff]  ;;  %vm17215_vm14 = vcmask 589328  }
 0x87f   :  { %5889 = vrot.lane.b32.xlu1 %v14888_v56, %s11779_s26  ;;  %6708 = vmatprep.subr.bf16.mxu0 %v17186_v4  ;;  %v6208_v32 = vmax.f32 %v11764_v0, %v14879_v5 }
 0x880   :  { %v6243_v38 = vpop.permute.xlu0 %6242 }
 0x881   :  { %v5948_v52 = vpop.permute.xlu1 %5947 }
 0x882   :  { %5992 = vst.msk [vmem:[#allocation3 + $0x28] sm:$0x3f] %vm17211_vm0, %v5948_v52  ;;  %6246 = vrot.lane.b32.xlu0 %v6206_v15, %s11781_s12  ;;  %6760 = vmatpush1.bf16.xpose.msra.mxu1 %v14461_v44  ;;  %vm17216_vm0 = vcmask 638528   ;;  %v11768_v52 = vld [vmem:[#allocation2 + $0x90] sm:$0x3f] }
 0x883   :  { %5893 = vrot.lane.b32.xlu1 %v14904_v27, %s11779_s26  ;;  %6761 = vmatprep.subr.bf16.mxu1 %v17186_v4 }
 0x884   :  { %v6305_v20 = vpop.permute.xlu0 %6304 }
 0x885   :  { %v5952_v53 = vpop.permute.xlu1 %5951 }
 0x886   :  { %5994 = vst.msk [vmem:[#allocation3 + $0x38] sm:$0x3f] %vm17212_vm1, %v5952_v53  ;;  %6250 = vrot.lane.b32.xlu0 %v6208_v32, %s11781_s12  ;;  %6709 = vmatpush1.bf16.xpose.msra.mxu0 %v17213_v43  ;;  %vm17217_vm1 = vcmask 687728  }
 0x887   :  { %5955 = vrot.lane.b32.xlu1 %v14888_v56, %s11780_s28  ;;  %6796 = vmatprep.subr.bf16.mxu0 %v17186_v4 }
 0x888   :  { %v6309_v29 = vpop.permute.xlu0 %6308 }
 0x889   :  { %v6241_v28 = vpop.permute.xlu1 %6240 }
 0x88a   :  { %6312 = vrot.lane.b32.xlu0 %v6206_v15, %s11782_s1  ;;  %6762 = vmatpush1.bf16.xpose.msra.mxu1 %v17213_v43 }
 0x88b   :  { %5959 = vrot.lane.b32.xlu1 %v14904_v27, %s11780_s28  ;;  %6849 = vmatprep.subr.bf16.mxu1 %v17186_v4 }
 0x88c   :  { %v6371_v2 = vpop.permute.xlu0 %6370 }
 0x88d   :  { %v6245_v62 = vpop.permute.xlu1 %6244 }
 0x88e   :  { %6316 = vrot.lane.b32.xlu0 %v6208_v32, %s11782_s1 }
 0x88f   :  { %6248 = vrot.lane.b32.xlu1 %v6207_v3, %s11781_s12 }
 0x890   :  { %v6375_v56 = vpop.permute.xlu0 %6374 }
 0x891   :  { %v6307_v40 = vpop.permute.xlu1 %6306 }
 0x892   :  { %6378 = vrot.lane.b32.xlu0 %v6206_v15, %s11783_s22  ;;  %v6061_v15 = vsel %vm6051_vm9, %v14882_v63, %v14917_v24  ;;  %v6063_v24 = vsel %vm6051_vm9, %v14896_v21, %v14937_v54 }
 0x893   :  { %6252 = vrot.lane.b32.xlu1 %v6209_v50, %s11781_s12  ;;  %v6093_v0 = vmax.f32 %v11768_v52, %v6061_v15 }
 0x894   :  { %v6125_v27 = vpop.permute.xlu0 %6124 }
 0x895   :  { %6170 = vst.msk [vmem:[#allocation3 + $0x20] sm:$0xff] %vm17214_vm15, %v6125_v27  ;;  %v6311_v34 = vpop.permute.xlu1 %6310  ;;  %vm17219_vm15 = vmmov %vm17215_vm14 }
 0x896   :  { %6284 = vst.msk [vmem:[#allocation3 + $0x20] sm:$0xff] %vm17215_vm14, %v6239_v47  ;;  %6382 = vrot.lane.b32.xlu0 %v6208_v32, %s11783_s22  ;;  %vm17220_vm14 = vmmov %vm17216_vm0 }
 0x897   :  { %6350 = vst.msk [vmem:[#allocation3 + $0x20] sm:$0xff] %vm17216_vm0, %v6305_v20  ;;  %6314 = vrot.lane.b32.xlu1 %v6207_v3, %s11782_s1  ;;  %vm17221_vm0 = vmmov %vm17217_vm1  ;;  %v11769_v20 = vld [vmem:[#allocation2 + $0xb0] sm:$0x3f] }
 0x898   :  { %6416 = vst.msk [vmem:[#allocation3 + $0x20] sm:$0xff] %vm17217_vm1, %v6371_v2  ;;  %v6129_v23 = vpop.permute.xlu0 %6128  ;;  %v6095_v53 = vmax.f32 %v11769_v20, %v6063_v24  ;;  %vm17225_vm1 = vcmask 244928  }
 0x899   :  { %6172 = vst.msk [vmem:[#allocation3 + $0x30] sm:$0xff] %vm17218_vm13, %v6129_v23  ;;  %v6373_v46 = vpop.permute.xlu1 %6372  ;;  %vm17224_vm13 = vcmask 144480  }
 0x89a   :  { %6286 = vst.msk [vmem:[#allocation3 + $0x30] sm:$0xff] %vm17219_vm15, %v6243_v38  ;;  %6132 = vrot.lane.b32.xlu0 %v6092_v57, %s11784_s0  ;;  %vm17226_vm15 = vmmov %vm17224_vm13 }
 0x89b   :  { %6352 = vst.msk [vmem:[#allocation3 + $0x30] sm:$0xff] %vm17220_vm14, %v6309_v29  ;;  %6318 = vrot.lane.b32.xlu1 %v6209_v50, %s11782_s1  ;;  %vm17227_vm14 = vmmov %vm17225_vm1 }
 0x89c   :  { %6418 = vst.msk [vmem:[#allocation3 + $0x30] sm:$0xff] %vm17221_vm0, %v6375_v56  ;;  %v15129_v30 = vpop.permute.xlu0 %5335  ;;  %vm17228_vm0 = vcmask 193680  }
 0x89d   :  { %v6377_v47 = vpop.permute.xlu1 %6376  ;;  %v15133_v36 = vmax.f32 %v14851_v19, %v15129_v30 }
 0x89e   :  { %6136 = vrot.lane.b32.xlu0 %v6094_v60, %s11784_s0 }
 0x89f   :  { %5389 = vst.msk [vmem:[#allocation3 + $0x60] sm:$0xff] %vm5375_vm6, %v15133_v36  ;;  %6380 = vrot.lane.b32.xlu1 %v6207_v3, %s11783_s22 }
 0x8a0   :  { %v15139_v5 = vpop.permute.xlu0 %5339 }
 0x8a1   :  { %v6127_v51 = vpop.permute.xlu1 %6126  ;;  %v15143_v25 = vmax.f32 %v14867_v55, %v15139_v5 }
 0x8a2   :  { %6171 = vst.msk [vmem:[#allocation3 + $0x28] sm:$0x3f] %vm6166_vm2, %v6127_v51  ;;  %5433 = vrot.lane.b32.xlu0 %v15133_v36, %s11772_s2 }
 0x8a3   :  { %6285 = vst.msk [vmem:[#allocation3 + $0x28] sm:$0x3f] %vm6280_vm3, %v6241_v28  ;;  %6384 = vrot.lane.b32.xlu1 %v6209_v50, %s11783_s22  ;;  %v6432_v28 = vld [vmem:[#allocation3 + $0x20] sm:$0xff]  ;;  %v6434_v27 = vld [vmem:[#allocation3 + $0x30] sm:$0xff] }
 0x8a4   :  { %5391 = vst.msk [vmem:[#allocation3 + $0x70] sm:$0xff] %vm5375_vm6, %v15143_v25  ;;  %v15156_v38 = vpop.permute.xlu0 %6043  ;;  %vm17222_vm6 = vcmask 195728  }
 0x8a5   :  { %6351 = vst.msk [vmem:[#allocation3 + $0x28] sm:$0x3f] %vm6346_vm5, %v6307_v40  ;;  %v6131_v63 = vpop.permute.xlu1 %6130 }
 0x8a6   :  { %6417 = vst.msk [vmem:[#allocation3 + $0x28] sm:$0x3f] %vm6412_vm4, %v6373_v46  ;;  %5437 = vrot.lane.b32.xlu0 %v15143_v25, %s11772_s2 }
 0x8a7   :  { %6173 = vst.msk [vmem:[#allocation3 + $0x38] sm:$0x3f] %vm6166_vm2, %v6131_v63  ;;  %6134 = vrot.lane.b32.xlu1 %v6093_v0, %s11784_s0 }
 0x8a8   :  { %6287 = vst.msk [vmem:[#allocation3 + $0x38] sm:$0x3f] %vm6280_vm3, %v6245_v62  ;;  %v15168_v32 = vpop.permute.xlu0 %6047 }
 0x8a9   :  { %6353 = vst.msk [vmem:[#allocation3 + $0x38] sm:$0x3f] %vm6346_vm5, %v6311_v34  ;;  %v15171_v29 = vpop.permute.xlu1 %5337 }
 0x8aa   :  { %6419 = vst.msk [vmem:[#allocation3 + $0x38] sm:$0x3f] %vm6412_vm4, %v6377_v47  ;;  %v15175_v21 = vmax.f32 %v14908_v22, %v15171_v29  ;;  %5499 = vrot.lane.b32.xlu0 %v15133_v36, %s11773_s16 }
 0x8ab   :  { %6138 = vrot.lane.b32.xlu1 %v6095_v53, %s11784_s0 }
 0x8ac   :  { %5390 = vst.msk [vmem:[#allocation3 + $0x68] sm:$0x3f] %vm5377_vm7, %v15175_v21  ;;  %v5426_v54 = vpop.permute.xlu0 %5425 }
 0x8ad   :  { %v6433_v2 = vld [vmem:[#allocation3 + $0x28] sm:$0x3f]  ;;  %5467 = vst.msk [vmem:[#allocation3 + $0x40] sm:$0xff] %vm5457_vm10, %v5426_v54  ;;  %v15183_v59 = vpop.permute.xlu1 %5341 }
 0x8ae   :  { %v15185_v3 = vpack.c.bf16 %v6433_v2, %v6432_v28  ;;  %v15189_v62 = vmax.f32 %v14927_v42, %v15183_v59  ;;  %5503 = vrot.lane.b32.xlu0 %v15143_v25, %s11773_s16 }
 0x8af   :  { %5435 = vrot.lane.b32.xlu1 %v15175_v21, %s11772_s2 }
 0x8b0   :  { %v6681_v56 = vshrl.u32 %v15185_v3, 16  ;;  %v6683_v50 = vshll.u32 %v15185_v3, 16  ;;  %5392 = vst.msk [vmem:[#allocation3 + $0x78] sm:$0x3f] %vm5377_vm7, %v15189_v62  ;;  %v5430_v40 = vpop.permute.xlu0 %5429  ;;  %vm17223_vm7 = vmmov %vm17222_vm6 }
 0x8b1   :  { %v6435_v14 = vld [vmem:[#allocation3 + $0x38] sm:$0x3f]  ;;  %5469 = vst.msk [vmem:[#allocation3 + $0x50] sm:$0xff] %vm5457_vm10, %v5430_v40  ;;  %v15200_v34 = vpop.permute.xlu1 %6045 }
 0x8b2   :  { %v6685_v6 = vrot.slane %v6683_v50, 1  ;;  %v15202_v57 = vpack.c.bf16 %v6435_v14, %v6434_v27  ;;  %v15204_v23 = vrot.slane %v6681_v56, 1  ;;  %v15206_v1 = vrot.slane %v6683_v50, 2  ;;  %5565 = vrot.lane.b32.xlu0 %v15133_v36, %s11774_s17 }
 0x8b3   :  { %5439 = vrot.lane.b32.xlu1 %v15189_v62, %s11772_s2 }
 0x8b4   :  { %v6686_v46 = vor.u32 %v6685_v6, %v6681_v56  ;;  %v6734_v45 = vshrl.u32 %v15202_v57, 16  ;;  %v6736_v60 = vshll.u32 %v15202_v57, 16  ;;  %v5492_v47 = vpop.permute.xlu0 %5491  ;;  %v8156_v51 = vor.u32 %v15206_v1, %v15204_v23  ;;  %v11699_v23 = vld [vmem:[%s17136_s3 + $0x158] sm:$0xff]  }
 0x8b5   :  { %5533 = vst.msk [vmem:[#allocation3 + $0x40] sm:$0xff] %vm5523_vm11, %v5492_v47  ;;  %v15218_v15 = vpop.permute.xlu1 %6049  ;;  %v16337_v1 = vsel %vm6550_vm8, %v11699_v23, 0 }
 0x8b6   :  { %10933 = vmatmul.mubr.msk.bf16.vlgmr.msra.gmra.mrb[36].mxu0 %vm6550_vm8, %v6686_v46  ;;  %v6738_v52 = vrot.slane %v6736_v60, 1  ;;  %v15220_v0 = vrot.slane %v6734_v45, 1  ;;  %v15222_v63 = vrot.slane %v6736_v60, 2  ;;  %5569 = vrot.lane.b32.xlu0 %v15143_v25, %s11774_s17 }
 0x8b7   :  { %6797 = vmatpush1.bf16.xpose.msra.mxu0 %v14234_v41  ;;  %5501 = vrot.lane.b32.xlu1 %v15175_v21, %s11773_s16 }
 0x8b8   :  { %v6739_v24 = vor.u32 %v6738_v52, %v6734_v45  ;;  %6798 = vmatprep.subr.bf16.mxu0 %v17186_v4  ;;  %v8205_v20 = vor.u32 %v15222_v63, %v15220_v0  ;;  %v5496_v53 = vpop.permute.xlu0 %5495  ;;  %6828 = vmatprep.mubr.bf16.mxu0 %v17186_v4  ;;  %v11701_v63 = vld [vmem:[%s17136_s3 + $0x168] sm:$0xff]  }
 0x8b9   :  { %5535 = vst.msk [vmem:[#allocation3 + $0x50] sm:$0xff] %vm5523_vm11, %v5496_v53  ;;  %v5428_v54 = vpop.permute.xlu1 %5427 }
 0x8ba   :  { %10934 = vmatmul.mubr.msk.bf16.vlgmr.msra.gmra.mrb[36].mxu1 %vm6550_vm8, %v6739_v24  ;;  %5468 = vst.msk [vmem:[#allocation3 + $0x48] sm:$0x3f] %vm5459_vm12, %v5428_v54  ;;  %5631 = vrot.lane.b32.xlu0 %v15133_v36, %s11775_s18 }
 0x8bb   :  { %6850 = vmatpush1.bf16.xpose.msra.mxu1 %v14234_v41  ;;  %5505 = vrot.lane.b32.xlu1 %v15189_v62, %s11773_s16 }
 0x8bc   :  { %6851 = vmatprep.subr.bf16.mxu1 %v17186_v4  ;;  %v5558_v28 = vpop.permute.xlu0 %5557  ;;  %6881 = vmatprep.mubr.bf16.mxu1 %v17186_v4 }
 0x8bd   :  { %5599 = vst.msk [vmem:[#allocation3 + $0x40] sm:$0xff] %vm17222_vm6, %v5558_v28  ;;  %v5432_v2 = vpop.permute.xlu1 %5431  ;;  %vm17229_vm6 = vcmask 294128  }
 0x8be   :  { %5470 = vst.msk [vmem:[#allocation3 + $0x58] sm:$0x3f] %vm5459_vm12, %v5432_v2  ;;  %5635 = vrot.lane.b32.xlu0 %v15143_v25, %s11775_s18 }
 0x8bf   :  { %6799 = vmatpush1.bf16.xpose.msra.mxu0 %v14258_v18  ;;  %5567 = vrot.lane.b32.xlu1 %v15175_v21, %s11774_s17 }
 0x8c0   :  { %6800 = vmatprep.subr.bf16.mxu0 %v17186_v4  ;;  %v5562_v56 = vpop.permute.xlu0 %5561 }
 0x8c1   :  { %5601 = vst.msk [vmem:[#allocation3 + $0x50] sm:$0xff] %vm17223_vm7, %v5562_v56  ;;  %v5494_v50 = vpop.permute.xlu1 %5493  ;;  %vm17230_vm7 = vmmov %vm17228_vm0 }
 0x8c2   :  { %5534 = vst.msk [vmem:[#allocation3 + $0x48] sm:$0x3f] %vm17224_vm13, %v5494_v50  ;;  %5697 = vrot.lane.b32.xlu0 %v15133_v36, %s11776_s19  ;;  %vm17231_vm13 = vmmov %vm17229_vm6 }
 0x8c3   :  { %6852 = vmatpush1.bf16.xpose.msra.mxu1 %v14258_v18  ;;  %5571 = vrot.lane.b32.xlu1 %v15189_v62, %s11774_s17 }
 0x8c4   :  { %6853 = vmatprep.subr.bf16.mxu1 %v17186_v4  ;;  %v5624_v40 = vpop.permute.xlu0 %5623 }
 0x8c5   :  { %5665 = vst.msk [vmem:[#allocation3 + $0x40] sm:$0xff] %vm17225_vm1, %v5624_v40  ;;  %v5498_v27 = vpop.permute.xlu1 %5497  ;;  %vm17232_vm1 = vcmask 242880  }
 0x8c6   :  { %5536 = vst.msk [vmem:[#allocation3 + $0x58] sm:$0x3f] %vm17226_vm15, %v5498_v27  ;;  %5701 = vrot.lane.b32.xlu0 %v15143_v25, %s11776_s19  ;;  %vm17233_vm15 = vcmask 343328  }
 0x8c7   :  { %6801 = vmatpush1.bf16.xpose.msra.mxu0 %v14305_v7  ;;  %5633 = vrot.lane.b32.xlu1 %v15175_v21, %s11775_s18 }
 0x8c8   :  { %6802 = vmatprep.subr.bf16.mxu0 %v17186_v4  ;;  %v5628_v14 = vpop.permute.xlu0 %5627 }
 0x8c9   :  { %5667 = vst.msk [vmem:[#allocation3 + $0x50] sm:$0xff] %vm17227_vm14, %v5628_v14  ;;  %v5560_v6 = vpop.permute.xlu1 %5559  ;;  %vm17234_vm14 = vmmov %vm17232_vm1 }
 0x8ca   :  { %5600 = vst.msk [vmem:[#allocation3 + $0x48] sm:$0x3f] %vm17228_vm0, %v5560_v6  ;;  %5763 = vrot.lane.b32.xlu0 %v15133_v36, %s11777_s20  ;;  %vm17235_vm0 = vmmov %vm17233_vm15 }
 0x8cb   :  { %6854 = vmatpush1.bf16.xpose.msra.mxu1 %v14305_v7  ;;  %5637 = vrot.lane.b32.xlu1 %v15189_v62, %s11775_s18 }
 0x8cc   :  { %6855 = vmatprep.subr.bf16.mxu1 %v17186_v4  ;;  %v5690_v46 = vpop.permute.xlu0 %5689 }
 0x8cd   :  { %5731 = vst.msk [vmem:[#allocation3 + $0x40] sm:$0xff] %vm17229_vm6, %v5690_v46  ;;  %v5564_v45 = vpop.permute.xlu1 %5563  ;;  %vm17236_vm6 = vcmask 292080  }
 0x8ce   :  { %5602 = vst.msk [vmem:[#allocation3 + $0x58] sm:$0x3f] %vm17230_vm7, %v5564_v45  ;;  %5767 = vrot.lane.b32.xlu0 %v15143_v25, %s11777_s20  ;;  %vm17237_vm7 = vcmask 392528  }
 0x8cf   :  { %6803 = vmatpush1.bf16.xpose.msra.mxu0 %v14324_v16  ;;  %5699 = vrot.lane.b32.xlu1 %v15175_v21, %s11776_s19 }
 0x8d0   :  { %6804 = vmatprep.subr.bf16.mxu0 %v17186_v4  ;;  %v5694_v60 = vpop.permute.xlu0 %5693 }
 0x8d1   :  { %5733 = vst.msk [vmem:[#allocation3 + $0x50] sm:$0xff] %vm17231_vm13, %v5694_v60  ;;  %v5626_v47 = vpop.permute.xlu1 %5625  ;;  %vm17238_vm13 = vmmov %vm17236_vm6 }
 0x8d2   :  { %5666 = vst.msk [vmem:[#allocation3 + $0x48] sm:$0x3f] %vm17232_vm1, %v5626_v47  ;;  %5829 = vrot.lane.b32.xlu0 %v15133_v36, %s11778_s23  ;;  %vm17239_vm1 = vmmov %vm17237_vm7 }
 0x8d3   :  { %6856 = vmatpush1.bf16.xpose.msra.mxu1 %v14324_v16  ;;  %5703 = vrot.lane.b32.xlu1 %v15189_v62, %s11776_s19 }
 0x8d4   :  { %6857 = vmatprep.subr.bf16.mxu1 %v17186_v4  ;;  %v5756_v52 = vpop.permute.xlu0 %5755 }
 0x8d5   :  { %5797 = vst.msk [vmem:[#allocation3 + $0x40] sm:$0xff] %vm17233_vm15, %v5756_v52  ;;  %v5630_v24 = vpop.permute.xlu1 %5629  ;;  %vm17240_vm15 = vcmask 341280  }
 0x8d6   :  { %5668 = vst.msk [vmem:[#allocation3 + $0x58] sm:$0x3f] %vm17234_vm14, %v5630_v24  ;;  %5833 = vrot.lane.b32.xlu0 %v15143_v25, %s11778_s23  ;;  %vm17241_vm14 = vcmask 441728   ;;  %v6213_v24 = vmax.f32 %v14959_v37, %v15218_v15 }
 0x8d7   :  { %6805 = vmatpush1.bf16.xpose.msra.mxu0 %v14343_v31  ;;  %5765 = vrot.lane.b32.xlu1 %v15175_v21, %s11777_s20 }
 0x8d8   :  { %6806 = vmatprep.subr.bf16.mxu0 %v17186_v4  ;;  %v5760_v53 = vpop.permute.xlu0 %5759 }
 0x8d9   :  { %5799 = vst.msk [vmem:[#allocation3 + $0x50] sm:$0xff] %vm17235_vm0, %v5760_v53  ;;  %v5692_v54 = vpop.permute.xlu1 %5691  ;;  %vm17242_vm0 = vmmov %vm17240_vm15 }
 0x8da   :  { %5732 = vst.msk [vmem:[#allocation3 + $0x48] sm:$0x3f] %vm17236_vm6, %v5692_v54  ;;  %5895 = vrot.lane.b32.xlu0 %v15133_v36, %s11779_s26  ;;  %vm17243_vm6 = vmmov %vm17241_vm14 }
 0x8db   :  { %6858 = vmatpush1.bf16.xpose.msra.mxu1 %v14343_v31  ;;  %5769 = vrot.lane.b32.xlu1 %v15189_v62, %s11777_s20 }
 0x8dc   :  { %6859 = vmatprep.subr.bf16.mxu1 %v17186_v4  ;;  %v5822_v28 = vpop.permute.xlu0 %5821 }
 0x8dd   :  { %5863 = vst.msk [vmem:[#allocation3 + $0x40] sm:$0xff] %vm17237_vm7, %v5822_v28  ;;  %v5696_v2 = vpop.permute.xlu1 %5695  ;;  %vm17244_vm7 = vcmask 390480  }
 0x8de   :  { %5734 = vst.msk [vmem:[#allocation3 + $0x58] sm:$0x3f] %vm17238_vm13, %v5696_v2  ;;  %5899 = vrot.lane.b32.xlu0 %v15143_v25, %s11779_s26  ;;  %vm17245_vm13 = vcmask 490928   ;;  %v6065_v2 = vsel %vm6051_vm9, %v15171_v29, %v15200_v34 }
 0x8df   :  { %6807 = vmatpush1.bf16.xpose.msra.mxu0 %v14368_v39  ;;  %5831 = vrot.lane.b32.xlu1 %v15175_v21, %s11778_s23 }
 0x8e0   :  { %6808 = vmatprep.subr.bf16.mxu0 %v17186_v4  ;;  %v5826_v56 = vpop.permute.xlu0 %5825 }
 0x8e1   :  { %5865 = vst.msk [vmem:[#allocation3 + $0x50] sm:$0xff] %vm17239_vm1, %v5826_v56  ;;  %v5758_v50 = vpop.permute.xlu1 %5757  ;;  %vm17246_vm1 = vmmov %vm17244_vm7  ;;  %v6097_v56 = vmax.f32 %v14908_v22, %v6065_v2 }
 0x8e2   :  { %5798 = vst.msk [vmem:[#allocation3 + $0x48] sm:$0x3f] %vm17240_vm15, %v5758_v50  ;;  %5961 = vrot.lane.b32.xlu0 %v15133_v36, %s11780_s28  ;;  %v6210_v36 = vmax.f32 %v14884_v49, %v15156_v38  ;;  %vm17247_vm15 = vmmov %vm17245_vm13 }
 0x8e3   :  { %6860 = vmatpush1.bf16.xpose.msra.mxu1 %v14368_v39  ;;  %5835 = vrot.lane.b32.xlu1 %v15189_v62, %s11778_s23 }
 0x8e4   :  { %6861 = vmatprep.subr.bf16.mxu1 %v17186_v4  ;;  %v5888_v40 = vpop.permute.xlu0 %5887 }
 0x8e5   :  { %5929 = vst.msk [vmem:[#allocation3 + $0x40] sm:$0xff] %vm17241_vm14, %v5888_v40  ;;  %v5762_v27 = vpop.permute.xlu1 %5761  ;;  %vm17248_vm14 = vcmask 439680   ;;  %v6067_v40 = vsel %vm6051_vm9, %v15183_v59, %v15218_v15 }
 0x8e6   :  { %5800 = vst.msk [vmem:[#allocation3 + $0x58] sm:$0x3f] %vm17242_vm0, %v5762_v27  ;;  %5965 = vrot.lane.b32.xlu0 %v15143_v25, %s11780_s28  ;;  %v6212_v25 = vmax.f32 %v14898_v10, %v15168_v32  ;;  %vm17249_vm0 = vmmov %vm17248_vm14 }
 0x8e7   :  { %6809 = vmatpush1.bf16.xpose.msra.mxu0 %v14400_v61  ;;  %5897 = vrot.lane.b32.xlu1 %v15175_v21, %s11779_s26 }
 0x8e8   :  { %6810 = vmatprep.subr.bf16.mxu0 %v17186_v4  ;;  %v5892_v14 = vpop.permute.xlu0 %5891 }
 0x8e9   :  { %5931 = vst.msk [vmem:[#allocation3 + $0x50] sm:$0xff] %vm17243_vm6, %v5892_v14  ;;  %v5824_v6 = vpop.permute.xlu1 %5823  ;;  %vm17250_vm6 = vcmask 488880  }
 0x8ea   :  { %5864 = vst.msk [vmem:[#allocation3 + $0x48] sm:$0x3f] %vm17244_vm7, %v5824_v6  ;;  %6254 = vrot.lane.b32.xlu0 %v6210_v36, %s11781_s12  ;;  %vm17251_vm7 = vmmov %vm17250_vm6 }
 0x8eb   :  { %6862 = vmatpush1.bf16.xpose.msra.mxu1 %v14400_v61  ;;  %5901 = vrot.lane.b32.xlu1 %v15189_v62, %s11779_s26 }
 0x8ec   :  { %6863 = vmatprep.subr.bf16.mxu1 %v17186_v4  ;;  %v5954_v46 = vpop.permute.xlu0 %5953 }
 0x8ed   :  { %5995 = vst.msk [vmem:[#allocation3 + $0x40] sm:$0xff] %vm17245_vm13, %v5954_v46  ;;  %v5828_v49 = vpop.permute.xlu1 %5827  ;;  %vm17252_vm13 = vcmask 540128  }
 0x8ee   :  { %5866 = vst.msk [vmem:[#allocation3 + $0x58] sm:$0x3f] %vm17246_vm1, %v5828_v49  ;;  %6258 = vrot.lane.b32.xlu0 %v6212_v25, %s11781_s12  ;;  %vm17253_vm1 = vcmask 589328  }
 0x8ef   :  { %6811 = vmatpush1.bf16.xpose.msra.mxu0 %v14431_v48  ;;  %5963 = vrot.lane.b32.xlu1 %v15175_v21, %s11780_s28  ;;  %v6211_v21 = vmax.f32 %v14945_v13, %v15200_v34 }
 0x8f0   :  { %6812 = vmatprep.subr.bf16.mxu0 %v17186_v4  ;;  %v5958_v45 = vpop.permute.xlu0 %5957 }
 0x8f1   :  { %5997 = vst.msk [vmem:[#allocation3 + $0x50] sm:$0xff] %vm17247_vm15, %v5958_v45  ;;  %v5890_v60 = vpop.permute.xlu1 %5889  ;;  %vm17254_vm15 = vcmask 638528  }
 0x8f2   :  { %5930 = vst.msk [vmem:[#allocation3 + $0x48] sm:$0x3f] %vm17248_vm14, %v5890_v60  ;;  %6320 = vrot.lane.b32.xlu0 %v6210_v36, %s11782_s1  ;;  %vm17255_vm14 = vcmask 687728  }
 0x8f3   :  { %6864 = vmatpush1.bf16.xpose.msra.mxu1 %v14431_v48  ;;  %5967 = vrot.lane.b32.xlu1 %v15189_v62, %s11780_s28  ;;  %v6064_v62 = vsel %vm6051_vm9, %v15129_v30, %v15156_v38  ;;  %v6066_v30 = vsel %vm6051_vm9, %v15139_v5, %v15168_v32  ;;  %vm17257_vm9 = vmmov %vm17253_vm1  ;;  %s11788_s28 = smov 32  }
 0x8f4   :  { %6865 = vmatprep.subr.bf16.mxu1 %v17186_v4  ;;  %v6247_v10 = vpop.permute.xlu0 %6246  ;;  %v6096_v53 = vmax.f32 %v14851_v19, %v6064_v62  ;;  %v6098_v37 = vmax.f32 %v14867_v55, %v6066_v30 }
 0x8f5   :  { %v5894_v47 = vpop.permute.xlu1 %5893 }
 0x8f6   :  { %5932 = vst.msk [vmem:[#allocation3 + $0x58] sm:$0x3f] %vm17249_vm0, %v5894_v47  ;;  %6324 = vrot.lane.b32.xlu0 %v6212_v25, %s11782_s1  ;;  %vm17256_vm0 = vmmov %vm17252_vm13 }
 0x8f7   :  { %6813 = vmatpush1.bf16.xpose.msra.mxu0 %v14461_v44  ;;  %6256 = vrot.lane.b32.xlu1 %v6211_v21, %s11781_s12 }
 0x8f8   :  { %6814 = vmatprep.subr.bf16.mxu0 %v17186_v4  ;;  %v6251_v52 = vpop.permute.xlu0 %6250 }
 0x8f9   :  { %v5956_v13 = vpop.permute.xlu1 %5955 }
 0x8fa   :  { %5996 = vst.msk [vmem:[#allocation3 + $0x48] sm:$0x3f] %vm17250_vm6, %v5956_v13  ;;  %6386 = vrot.lane.b32.xlu0 %v6210_v36, %s11783_s22  ;;  %v6099_v36 = vmax.f32 %v14927_v42, %v6067_v40  ;;  %vm17258_vm6 = vmmov %vm17254_vm15 }
 0x8fb   :  { %6866 = vmatpush1.bf16.xpose.msra.mxu1 %v14461_v44  ;;  %6260 = vrot.lane.b32.xlu1 %v6213_v24, %s11781_s12 }
 0x8fc   :  { %6867 = vmatprep.subr.bf16.mxu1 %v17186_v4  ;;  %v6313_v54 = vpop.permute.xlu0 %6312 }
 0x8fd   :  { %v5960_v38 = vpop.permute.xlu1 %5959 }
 0x8fe   :  { %5998 = vst.msk [vmem:[#allocation3 + $0x58] sm:$0x3f] %vm17251_vm7, %v5960_v38  ;;  %6140 = vrot.lane.b32.xlu0 %v6096_v53, %s11784_s0  ;;  %vm17259_vm7 = vmmov %vm17255_vm14 }
 0x8ff   :  { %6815 = vmatpush1.bf16.xpose.msra.mxu0 %v17213_v43  ;;  %6322 = vrot.lane.b32.xlu1 %v6211_v21, %s11782_s1 }
 0x900   :  { %6902 = vmatprep.subr.bf16.mxu0 %v17186_v4  ;;  %v6317_v28 = vpop.permute.xlu0 %6316 }
 0x901   :  { %v6249_v19 = vpop.permute.xlu1 %6248 }
 0x902   :  { %6144 = vrot.lane.b32.xlu0 %v6098_v37, %s11784_s0 }
 0x903   :  { %6868 = vmatpush1.bf16.xpose.msra.mxu1 %v17213_v43  ;;  %6326 = vrot.lane.b32.xlu1 %v6213_v24, %s11782_s1 }
 0x904   :  { %6955 = vmatprep.subr.bf16.mxu1 %v17186_v4  ;;  %v6379_v5 = vpop.permute.xlu0 %6378 }
 0x905   :  { %v6253_v32 = vpop.permute.xlu1 %6252 }
 0x906   :  { %6390 = vrot.lane.b32.xlu0 %v6212_v25, %s11783_s22 }
 0x907   :  { %6388 = vrot.lane.b32.xlu1 %v6211_v21, %s11783_s22 }
 0x908   :  { %v6383_v55 = vpop.permute.xlu0 %6382 }
 0x909   :  { %v6315_v50 = vpop.permute.xlu1 %6314 }
 0x90b   :  { %6142 = vrot.lane.b32.xlu1 %v6097_v56, %s11784_s0 }
 0x90c   :  { %v6133_v27 = vpop.permute.xlu0 %6132 }
 0x90d   :  { %6174 = vst.msk [vmem:[#allocation3 + $0x40] sm:$0xff] %vm17252_vm13, %v6133_v27  ;;  %v6319_v29 = vpop.permute.xlu1 %6318  ;;  %vm17262_vm13 = vcmask 144480  }
 0x90e   :  { %6288 = vst.msk [vmem:[#allocation3 + $0x40] sm:$0xff] %vm17253_vm1, %v6247_v10  ;;  %vm17264_vm1 = vmmov %vm17262_vm13 }
 0x90f   :  { %6354 = vst.msk [vmem:[#allocation3 + $0x40] sm:$0xff] %vm17254_vm15, %v6313_v54  ;;  %6146 = vrot.lane.b32.xlu1 %v6099_v36, %s11784_s0 }
 0x910   :  { %6420 = vst.msk [vmem:[#allocation3 + $0x40] sm:$0xff] %vm17255_vm14, %v6379_v5  ;;  %v6137_v22 = vpop.permute.xlu0 %6136  ;;  %vm17266_vm14 = vcmask 193680  }
 0x911   :  { %6176 = vst.msk [vmem:[#allocation3 + $0x50] sm:$0xff] %vm17256_vm0, %v6137_v22  ;;  %v6381_v59 = vpop.permute.xlu1 %6380  ;;  %vm17267_vm0 = vcmask 294128  }
 0x912   :  { %6290 = vst.msk [vmem:[#allocation3 + $0x50] sm:$0xff] %vm17257_vm9, %v6251_v52  ;;  %vm17268_vm9 = vmmov %vm17266_vm14 }
 0x913   :  { %6356 = vst.msk [vmem:[#allocation3 + $0x50] sm:$0xff] %vm17258_vm6, %v6317_v28  ;;  %6392 = vrot.lane.b32.xlu1 %v6213_v24, %s11783_s22  ;;  %vm17269_vm6 = vmmov %vm17267_vm0 }
 0x914   :  { %6422 = vst.msk [vmem:[#allocation3 + $0x50] sm:$0xff] %vm17259_vm7, %v6383_v55  ;;  %v5434_v42 = vpop.permute.xlu0 %5433  ;;  %vm17270_vm7 = vcmask 242880  }
 0x915   :  { %5471 = vst.msk [vmem:[#allocation3 + $0x60] sm:$0xff] %vm5457_vm10, %v5434_v42  ;;  %v6385_v34 = vpop.permute.xlu1 %6384 }
 0x917   :  { %v6436_v60 = vld [vmem:[#allocation3 + $0x40] sm:$0xff] }
 0x918   :  { %v5438_v15 = vpop.permute.xlu0 %5437 }
 0x919   :  { %5473 = vst.msk [vmem:[#allocation3 + $0x70] sm:$0xff] %vm5457_vm10, %v5438_v15  ;;  %v6135_v14 = vpop.permute.xlu1 %6134  ;;  %vm17260_vm10 = vcmask 195728  }
 0x91a   :  { %6175 = vst.msk [vmem:[#allocation3 + $0x48] sm:$0x3f] %vm6166_vm2, %v6135_v14 }
 0x91b   :  { %6289 = vst.msk [vmem:[#allocation3 + $0x48] sm:$0x3f] %vm6280_vm3, %v6249_v19  ;;  %v6438_v13 = vld [vmem:[#allocation3 + $0x50] sm:$0xff] }
 0x91c   :  { %6355 = vst.msk [vmem:[#allocation3 + $0x48] sm:$0x3f] %vm6346_vm5, %v6315_v50  ;;  %v5500_v6 = vpop.permute.xlu0 %5499 }
 0x91d   :  { %6421 = vst.msk [vmem:[#allocation3 + $0x48] sm:$0x3f] %vm6412_vm4, %v6381_v59  ;;  %v6139_v25 = vpop.permute.xlu1 %6138 }
 0x91e   :  { %5537 = vst.msk [vmem:[#allocation3 + $0x60] sm:$0xff] %vm5523_vm11, %v5500_v6 }
 0x91f   :  { %6177 = vst.msk [vmem:[#allocation3 + $0x58] sm:$0x3f] %vm6166_vm2, %v6139_v25 }
 0x920   :  { %6291 = vst.msk [vmem:[#allocation3 + $0x58] sm:$0x3f] %vm6280_vm3, %v6253_v32  ;;  %v5504_v46 = vpop.permute.xlu0 %5503 }
 0x921   :  { %6357 = vst.msk [vmem:[#allocation3 + $0x58] sm:$0x3f] %vm6346_vm5, %v6319_v29  ;;  %v5436_v49 = vpop.permute.xlu1 %5435 }
 0x922   :  { %6423 = vst.msk [vmem:[#allocation3 + $0x58] sm:$0x3f] %vm6412_vm4, %v6385_v34 }
 0x923   :  { %5539 = vst.msk [vmem:[#allocation3 + $0x70] sm:$0xff] %vm5523_vm11, %v5504_v46  ;;  %vm17261_vm11 = vmmov %vm17260_vm10 }
 0x924   :  { %5472 = vst.msk [vmem:[#allocation3 + $0x68] sm:$0x3f] %vm5459_vm12, %v5436_v49  ;;  %v5566_v45 = vpop.permute.xlu0 %5565  ;;  %v6437_v10 = vld [vmem:[#allocation3 + $0x48] sm:$0x3f] }
 0x925   :  { %5603 = vst.msk [vmem:[#allocation3 + $0x60] sm:$0xff] %vm17260_vm10, %v5566_v45  ;;  %v5440_v21 = vpop.permute.xlu1 %5439  ;;  %v15422_v47 = vpack.c.bf16 %v6437_v10, %v6436_v60  ;;  %vm17271_vm10 = vcmask 343328  }
 0x926   :  { %5474 = vst.msk [vmem:[#allocation3 + $0x78] sm:$0x3f] %vm5459_vm12, %v5440_v21  ;;  %vm17263_vm12 = vcmask 244928  }
 0x927   :  { %v6787_v52 = vshrl.u32 %v15422_v47, 16  ;;  %v6789_v62 = vshll.u32 %v15422_v47, 16  ;;  %vm17265_vm15 = vmmov %vm17263_vm12 }
 0x928   :  { %v5570_v24 = vpop.permute.xlu0 %5569 }
 0x929   :  { %v6439_v53 = vld [vmem:[#allocation3 + $0x58] sm:$0x3f]  ;;  %5605 = vst.msk [vmem:[#allocation3 + $0x70] sm:$0xff] %vm17261_vm11, %v5570_v24  ;;  %v5502_v54 = vpop.permute.xlu1 %5501  ;;  %v6791_v30 = vrot.slane %v6789_v62, 1  ;;  %v15430_v37 = vrot.slane %v6787_v52, 1  ;;  %v15433_v28 = vrot.slane %v6789_v62, 2  ;;  %vm17272_vm11 = vmmov %vm17270_vm7 }
 0x92a   :  { %v15428_v38 = vpack.c.bf16 %v6439_v53, %v6438_v13  ;;  %5538 = vst.msk [vmem:[#allocation3 + $0x68] sm:$0x3f] %vm17262_vm13, %v5502_v54  ;;  %vm17273_vm13 = vmmov %vm17271_vm10 }
 0x92b   :  { %v6792_v19 = vor.u32 %v6791_v30, %v6787_v52  ;;  %v8254_v55 = vor.u32 %v15433_v28, %v15430_v37  ;;  %v11702_v37 = vld [vmem:[%s17136_s3 + $0x170] sm:$0xff]  }
 0x92c   :  { %v6840_v5 = vshrl.u32 %v15428_v38, 16  ;;  %v6842_v32 = vshll.u32 %v15428_v38, 16  ;;  %v5632_v2 = vpop.permute.xlu0 %5631  ;;  %v16367_v28 = vsel %vm6550_vm8, %v11702_v37, 0  ;;  %v17303_v37 = vlaneseq }
 0x92d   :  { %5669 = vst.msk [vmem:[#allocation3 + $0x60] sm:$0xff] %vm17263_vm12, %v5632_v2  ;;  %10935 = vmatmul.mubr.msk.bf16.vlgmr.msra.gmra.mrb[40].mxu0 %vm6550_vm8, %v6792_v19  ;;  %v5506_v56 = vpop.permute.xlu1 %5505  ;;  %vm17274_vm12 = vcmask 292080  }
 0x92e   :  { %v6844_v50 = vrot.slane %v6842_v32, 1  ;;  %v15441_v40 = vrot.slane %v6840_v5, 1  ;;  %v15443_v27 = vrot.slane %v6842_v32, 2  ;;  %5540 = vst.msk [vmem:[#allocation3 + $0x78] sm:$0x3f] %vm17264_vm1, %v5506_v56  ;;  %6903 = vmatpush1.bf16.xpose.msra.mxu0 %v14234_v41  ;;  %6934 = vmatprep.mubr.bf16.mxu0 %v17186_v4  ;;  %vm17275_vm1 = vcmask 392528  }
 0x92f   :  { %6904 = vmatprep.subr.bf16.mxu0 %v17186_v4 }
 0x930   :  { %v6845_v36 = vor.u32 %v6844_v50, %v6840_v5  ;;  %v8303_v29 = vor.u32 %v15443_v27, %v15441_v40  ;;  %v5636_v22 = vpop.permute.xlu0 %5635  ;;  %v11704_v27 = vld [vmem:[%s17136_s3 + $0x180] sm:$0xff]  }
 0x931   :  { %5671 = vst.msk [vmem:[#allocation3 + $0x70] sm:$0xff] %vm17265_vm15, %v5636_v22  ;;  %v5568_v59 = vpop.permute.xlu1 %5567  ;;  %vm17276_vm15 = vmmov %vm17274_vm12 }
 0x932   :  { %10936 = vmatmul.mubr.msk.bf16.vlgmr.msra.gmra.mrb[40].mxu1 %vm6550_vm8, %v6845_v36  ;;  %5604 = vst.msk [vmem:[#allocation3 + $0x68] sm:$0x3f] %vm17266_vm14, %v5568_v59  ;;  %vm17277_vm14 = vmmov %vm17275_vm1 }
 0x933   :  { %6956 = vmatpush1.bf16.xpose.msra.mxu1 %v14234_v41  ;;  %6987 = vmatprep.mubr.bf16.mxu1 %v17186_v4 }
 0x934   :  { %6957 = vmatprep.subr.bf16.mxu1 %v17186_v4  ;;  %v5698_v42 = vpop.permute.xlu0 %5697 }
 0x935   :  { %5735 = vst.msk [vmem:[#allocation3 + $0x60] sm:$0xff] %vm17267_vm0, %v5698_v42  ;;  %v5572_v34 = vpop.permute.xlu1 %5571  ;;  %vm17278_vm0 = vcmask 341280  }
 0x936   :  { %5606 = vst.msk [vmem:[#allocation3 + $0x78] sm:$0x3f] %vm17268_vm9, %v5572_v34  ;;  %6905 = vmatpush1.bf16.xpose.msra.mxu0 %v14258_v18  ;;  %vm17279_vm9 = vcmask 441728  }
 0x937   :  { %6906 = vmatprep.subr.bf16.mxu0 %v17186_v4 }
 0x938   :  { %v5702_v15 = vpop.permute.xlu0 %5701 }
 0x939   :  { %5737 = vst.msk [vmem:[#allocation3 + $0x70] sm:$0xff] %vm17269_vm6, %v5702_v15  ;;  %v5634_v14 = vpop.permute.xlu1 %5633  ;;  %vm17280_vm6 = vmmov %vm17278_vm0 }
 0x93a   :  { %5670 = vst.msk [vmem:[#allocation3 + $0x68] sm:$0x3f] %vm17270_vm7, %v5634_v14  ;;  %vm17281_vm7 = vmmov %vm17279_vm9 }
 0x93b   :  { %6958 = vmatpush1.bf16.xpose.msra.mxu1 %v14258_v18 }
 0x93c   :  { %6959 = vmatprep.subr.bf16.mxu1 %v17186_v4  ;;  %v5764_v41 = vpop.permute.xlu0 %5763 }
 0x93d   :  { %5801 = vst.msk [vmem:[#allocation3 + $0x60] sm:$0xff] %vm17271_vm10, %v5764_v41  ;;  %v5638_v6 = vpop.permute.xlu1 %5637  ;;  %vm17282_vm10 = vcmask 390480  }
 0x93e   :  { %5672 = vst.msk [vmem:[#allocation3 + $0x78] sm:$0x3f] %vm17272_vm11, %v5638_v6  ;;  %6907 = vmatpush1.bf16.xpose.msra.mxu0 %v14305_v7  ;;  %vm17283_vm11 = vcmask 490928  }
 0x93f   :  { %6908 = vmatprep.subr.bf16.mxu0 %v17186_v4 }
 0x940   :  { %v5768_v25 = vpop.permute.xlu0 %5767 }
 0x941   :  { %5803 = vst.msk [vmem:[#allocation3 + $0x70] sm:$0xff] %vm17273_vm13, %v5768_v25  ;;  %v5700_v46 = vpop.permute.xlu1 %5699  ;;  %vm17284_vm13 = vmmov %vm17282_vm10  ;;  %v11666_v25 = vld [vmem:[%s17136_s3] sm:$0xff]  }
 0x942   :  { %5736 = vst.msk [vmem:[#allocation3 + $0x68] sm:$0x3f] %vm17274_vm12, %v5700_v46  ;;  %vm17285_vm12 = vmmov %vm17283_vm11 }
 0x943   :  { %6960 = vmatpush1.bf16.xpose.msra.mxu1 %v14305_v7 }
 0x944   :  { %6961 = vmatprep.subr.bf16.mxu1 %v17186_v4  ;;  %v5830_v18 = vpop.permute.xlu0 %5829 }
 0x945   :  { %5867 = vst.msk [vmem:[#allocation3 + $0x60] sm:$0xff] %vm17275_vm1, %v5830_v18  ;;  %v5704_v49 = vpop.permute.xlu1 %5703  ;;  %vm17286_vm1 = vcmask 439680  }
 0x946   :  { %5738 = vst.msk [vmem:[#allocation3 + $0x78] sm:$0x3f] %vm17276_vm15, %v5704_v49  ;;  %6909 = vmatpush1.bf16.xpose.msra.mxu0 %v14324_v16  ;;  %vm17287_vm15 = vmmov %vm17286_vm1 }
 0x947   :  { %6910 = vmatprep.subr.bf16.mxu0 %v17186_v4 }
 0x948   :  { %v5834_v45 = vpop.permute.xlu0 %5833 }
 0x949   :  { %5869 = vst.msk [vmem:[#allocation3 + $0x70] sm:$0xff] %vm17277_vm14, %v5834_v45  ;;  %v5766_v60 = vpop.permute.xlu1 %5765  ;;  %vm17288_vm14 = vcmask 488880  }
 0x94a   :  { %5802 = vst.msk [vmem:[#allocation3 + $0x68] sm:$0x3f] %vm17278_vm0, %v5766_v60  ;;  %vm17289_vm0 = vmmov %vm17288_vm14 }
 0x94b   :  { %6962 = vmatpush1.bf16.xpose.msra.mxu1 %v14324_v16 }
 0x94c   :  { %6963 = vmatprep.subr.bf16.mxu1 %v17186_v4  ;;  %v5896_v7 = vpop.permute.xlu0 %5895 }
 0x94d   :  { %5933 = vst.msk [vmem:[#allocation3 + $0x60] sm:$0xff] %vm17279_vm9, %v5896_v7  ;;  %v5770_v10 = vpop.permute.xlu1 %5769  ;;  %vm17290_vm9 = vcmask 540128  }
 0x94e   :  { %5804 = vst.msk [vmem:[#allocation3 + $0x78] sm:$0x3f] %vm17280_vm6, %v5770_v10  ;;  %6911 = vmatpush1.bf16.xpose.msra.mxu0 %v14343_v31  ;;  %vm17291_vm6 = vcmask 589328  }
 0x94f   :  { %6912 = vmatprep.subr.bf16.mxu0 %v17186_v4 }
 0x950   :  { %v5900_v21 = vpop.permute.xlu0 %5899 }
 0x951   :  { %5935 = vst.msk [vmem:[#allocation3 + $0x70] sm:$0xff] %vm17281_vm7, %v5900_v21  ;;  %v5832_v52 = vpop.permute.xlu1 %5831  ;;  %vm17292_vm7 = vcmask 638528   ;;  %v15546_v21 = vsel %vm6550_vm8, %v11666_v25, 0  ;;  %v11677_v25 = vld [vmem:[%s17136_s3 + $0xa8] sm:$0xff]  }
 0x952   :  { %5868 = vst.msk [vmem:[#allocation3 + $0x68] sm:$0x3f] %vm17282_vm10, %v5832_v52  ;;  %vm17293_vm10 = vcmask 687728  }
 0x953   :  { %6964 = vmatpush1.bf16.xpose.msra.mxu1 %v14343_v31 }
 0x954   :  { %6965 = vmatprep.subr.bf16.mxu1 %v17186_v4  ;;  %v5962_v16 = vpop.permute.xlu0 %5961 }
 0x955   :  { %5999 = vst.msk [vmem:[#allocation3 + $0x60] sm:$0xff] %vm17283_vm11, %v5962_v16  ;;  %v5836_v62 = vpop.permute.xlu1 %5835  ;;  %vm17294_vm11 = vmmov %vm17290_vm9 }
 0x956   :  { %5870 = vst.msk [vmem:[#allocation3 + $0x78] sm:$0x3f] %vm17284_vm13, %v5836_v62  ;;  %6913 = vmatpush1.bf16.xpose.msra.mxu0 %v14368_v39  ;;  %vm17295_vm13 = vmmov %vm17291_vm6 }
 0x957   :  { %6914 = vmatprep.subr.bf16.mxu0 %v17186_v4 }
 0x958   :  { %v5966_v24 = vpop.permute.xlu0 %5965 }
 0x959   :  { %6001 = vst.msk [vmem:[#allocation3 + $0x70] sm:$0xff] %vm17285_vm12, %v5966_v24  ;;  %v5898_v13 = vpop.permute.xlu1 %5897  ;;  %vm17296_vm12 = vmmov %vm17292_vm7 }
 0x95a   :  { %5934 = vst.msk [vmem:[#allocation3 + $0x68] sm:$0x3f] %vm17286_vm1, %v5898_v13  ;;  %vm17297_vm1 = vmmov %vm17293_vm10 }
 0x95b   :  { %6966 = vmatpush1.bf16.xpose.msra.mxu1 %v14368_v39 }
 0x95c   :  { %6967 = vmatprep.subr.bf16.mxu1 %v17186_v4  ;;  %v6255_v31 = vpop.permute.xlu0 %6254 }
 0x95d   :  { %v5902_v53 = vpop.permute.xlu1 %5901 }
 0x95e   :  { %5936 = vst.msk [vmem:[#allocation3 + $0x78] sm:$0x3f] %vm17287_vm15, %v5902_v53  ;;  %6915 = vmatpush1.bf16.xpose.msra.mxu0 %v14400_v61  ;;  %v11667_v53 = vld [vmem:[%s17136_s3 + $0x8] sm:$0xff]  }
 0x95f   :  { %6916 = vmatprep.subr.bf16.mxu0 %v17186_v4 }
 0x960   :  { %v6259_v54 = vpop.permute.xlu0 %6258 }
 0x961   :  { %v5964_v30 = vpop.permute.xlu1 %5963 }
 0x962   :  { %6000 = vst.msk [vmem:[#allocation3 + $0x68] sm:$0x3f] %vm17288_vm14, %v5964_v30 }
 0x963   :  { %6968 = vmatpush1.bf16.xpose.msra.mxu1 %v14400_v61 }
 0x964   :  { %6969 = vmatprep.subr.bf16.mxu1 %v17186_v4  ;;  %v6321_v19 = vpop.permute.xlu0 %6320 }
 0x965   :  { %v5968_v39 = vpop.permute.xlu1 %5967 }
 0x966   :  { %6002 = vst.msk [vmem:[#allocation3 + $0x78] sm:$0x3f] %vm17289_vm0, %v5968_v39  ;;  %6917 = vmatpush1.bf16.xpose.msra.mxu0 %v14431_v48  ;;  %v11668_v39 = vld [vmem:[%s17136_s3 + $0x10] sm:$0xff]  }
 0x967   :  { %6918 = vmatprep.subr.bf16.mxu0 %v17186_v4 }
 0x968   :  { %v6325_v5 = vpop.permute.xlu0 %6324 }
 0x969   :  { %v6257_v32 = vpop.permute.xlu1 %6256 }
 0x96b   :  { %6970 = vmatpush1.bf16.xpose.msra.mxu1 %v14431_v48 }
 0x96c   :  { %6971 = vmatprep.subr.bf16.mxu1 %v17186_v4  ;;  %v6387_v2 = vpop.permute.xlu0 %6386 }
 0x96d   :  { %v6261_v56 = vpop.permute.xlu1 %6260 }
 0x96e   :  { %6919 = vmatpush1.bf16.xpose.msra.mxu0 %v14461_v44 }
 0x96f   :  { %6920 = vmatprep.subr.bf16.mxu0 %v17186_v4 }
 0x970   :  { %v6141_v61 = vpop.permute.xlu0 %6140 }
 0x971   :  { %6178 = vst.msk [vmem:[#allocation3 + $0x60] sm:$0xff] %vm17290_vm9, %v6141_v61  ;;  %v6323_v50 = vpop.permute.xlu1 %6322 }
 0x972   :  { %6292 = vst.msk [vmem:[#allocation3 + $0x60] sm:$0xff] %vm17291_vm6, %v6255_v31  ;;  %vm9834_vm6 = vcmask 126976  }
 0x973   :  { %6972 = vmatpush1.bf16.xpose.msra.mxu1 %v14461_v44  ;;  %6358 = vst.msk [vmem:[#allocation3 + $0x60] sm:$0xff] %vm17292_vm7, %v6321_v19  ;;  %v15568_v19 = vsel %vm6550_vm8, %v11667_v53, 0 }
 0x974   :  { %6973 = vmatprep.subr.bf16.mxu1 %v17186_v4  ;;  %6424 = vst.msk [vmem:[#allocation3 + $0x60] sm:$0xff] %vm17293_vm10, %v6387_v2  ;;  %v6145_v48 = vpop.permute.xlu0 %6144 }
 0x975   :  { %6180 = vst.msk [vmem:[#allocation3 + $0x70] sm:$0xff] %vm17294_vm11, %v6145_v48  ;;  %v6327_v36 = vpop.permute.xlu1 %6326 }
 0x976   :  { %6294 = vst.msk [vmem:[#allocation3 + $0x70] sm:$0xff] %vm17295_vm13, %v6259_v54  ;;  %6921 = vmatpush1.bf16.xpose.msra.mxu0 %v17213_v43 }
 0x977   :  { %6360 = vst.msk [vmem:[#allocation3 + $0x70] sm:$0xff] %vm17296_vm12, %v6325_v5  ;;  %7080 = vmatprep.subr.bf16.mxu0 %v17186_v4  ;;  %v15579_v5 = vsel %vm6550_vm8, %v11668_v39, 0  ;;  %v11683_v39 = vld [vmem:[%s17136_s3 + $0xd8] sm:$0xff]  }
 0x978   :  { %v6391_v22 = vpop.permute.xlu0 %6390 }
 0x979   :  { %6426 = vst.msk [vmem:[#allocation3 + $0x70] sm:$0xff] %vm17297_vm1, %v6391_v22  ;;  %v6389_v44 = vpop.permute.xlu1 %6388 }
 0x97b   :  { %6974 = vmatpush1.bf16.xpose.msra.mxu1 %v17213_v43  ;;  %v6440_v43 = vld [vmem:[#allocation3 + $0x60] sm:$0xff] }
 0x97c   :  { %7125 = vmatprep.subr.bf16.mxu1 %v17186_v4 }
 0x97d   :  { %v6143_v59 = vpop.permute.xlu1 %6142 }
 0x97e   :  { %6179 = vst.msk [vmem:[#allocation3 + $0x68] sm:$0x3f] %vm6166_vm2, %v6143_v59 }
 0x97f   :  { %6293 = vst.msk [vmem:[#allocation3 + $0x68] sm:$0x3f] %vm6280_vm3, %v6257_v32  ;;  %v11669_v32 = vld [vmem:[%s17136_s3 + $0x18] sm:$0xff]  }
 0x980   :  { %6359 = vst.msk [vmem:[#allocation3 + $0x68] sm:$0x3f] %vm6346_vm5, %v6323_v50  ;;  %v6442_v18 = vld [vmem:[#allocation3 + $0x70] sm:$0xff]  ;;  %v15589_v2 = vsel %vm6550_vm8, %v11669_v32, 0  ;;  %v11671_v50 = vld [vmem:[%s17136_s3 + $0x28] sm:$0xff]   ;;  %v11684_v32 = vld [vmem:[%s17136_s3 + $0xe0] sm:$0xff]  }
 0x981   :  { %6425 = vst.msk [vmem:[#allocation3 + $0x68] sm:$0x3f] %vm6412_vm4, %v6389_v44  ;;  %v6147_v42 = vpop.permute.xlu1 %6146  ;;  %v15609_v48 = vsel %vm6550_vm8, %v11671_v50, 0  ;;  %v11673_v44 = vld [vmem:[%s17136_s3 + $0x38] sm:$0xff]   ;;  %v7460_v50 = vrot.slane %v14900_v12, 1 }
 0x982   :  { %6181 = vst.msk [vmem:[#allocation3 + $0x78] sm:$0x3f] %vm6166_vm2, %v6147_v42  ;;  %v15629_v59 = vsel %vm6550_vm8, %v11673_v44, 0  ;;  %v11674_v42 = vld [vmem:[%s17136_s3 + $0x40] sm:$0xff]   ;;  %v7732_v44 = vrot.slane %v15422_v47, 1  ;;  %vm17301_vm2 = vcmask 1046528  }
 0x983   :  { %6295 = vst.msk [vmem:[#allocation3 + $0x78] sm:$0x3f] %vm6280_vm3, %v6261_v56  ;;  %v11670_v56 = vld [vmem:[%s17136_s3 + $0x20] sm:$0xff]   ;;  %vm17302_vm3 = vmmov %vm17301_vm2 }
 0x984   :  { %6361 = vst.msk [vmem:[#allocation3 + $0x78] sm:$0x3f] %vm6346_vm5, %v6327_v36  ;;  %v15599_v61 = vsel %vm6550_vm8, %v11670_v56, 0  ;;  %v11672_v36 = vld [vmem:[%s17136_s3 + $0x30] sm:$0xff]   ;;  %v11685_v56 = vld [vmem:[%s17136_s3 + $0xe8] sm:$0xff]   ;;  %vm17306_vm5 = vmmov %vm17301_vm2 }
 0x985   :  { %v6393_v34 = vpop.permute.xlu1 %6392  ;;  %v15619_v22 = vsel %vm6550_vm8, %v11672_v36, 0  ;;  %v7636_v36 = vrot.slane %v15185_v3, 1  ;;  %vm17307_vm15 = vmmov %vm17301_vm2 }
 0x986   :  { %6427 = vst.msk [vmem:[#allocation3 + $0x78] sm:$0x3f] %vm6412_vm4, %v6393_v34  ;;  %v15639_v34 = vsel %vm6550_vm8, %v11674_v42, 0  ;;  %v11686_v42 = vld [vmem:[%s17136_s3 + $0xf0] sm:$0xff]   ;;  %vm16556_vm4 = vcmp.lt.s32.totalorder %v17303_v37, 160  ;;  %vm17309_vm14 = vmmov %vm17301_vm2 }
 0x987   :  { %vm17310_vm0 = vmmov %vm17301_vm2 }
 0x988   :  { %v6441_v15 = vld [vmem:[#allocation3 + $0x68] sm:$0x3f]  ;;  %vm17311_vm9 = vmmov %vm17310_vm0 }
 0x989   :  { %v15532_v14 = vpack.c.bf16 %v6441_v15, %v6440_v43  ;;  %v11675_v43 = vld [vmem:[%s17136_s3 + $0x48] sm:$0xff]   ;;  %vm17312_vm7 = vmmov %vm17310_vm0 }
 0x98a   :  { %v15649_v15 = vsel %vm6550_vm8, %v11675_v43, 0  ;;  %v16042_v43 = vsel %vm6550_vm8, %v11686_v42, 0  ;;  %vm17313_vm10 = vmmov %vm17310_vm0 }
 0x98b   :  { %v6893_v41 = vshrl.u32 %v15532_v14, 16  ;;  %v6895_v6 = vshll.u32 %v15532_v14, 16  ;;  %vm17314_vm11 = vmmov %vm17310_vm0 }
 0x98c   :  { %vm17315_vm13 = vmmov %vm17310_vm0 }
 0x98d   :  { %v6897_v46 = vrot.slane %v6895_v6, 1  ;;  %v6443_v49 = vld [vmem:[#allocation3 + $0x78] sm:$0x3f]  ;;  %v15539_v45 = vrot.slane %v6893_v41, 1  ;;  %v15541_v60 = vrot.slane %v6895_v6, 2  ;;  %vm17316_vm12 = vmmov %vm17310_vm0 }
 0x98e   :  { %v15543_v7 = vpack.c.bf16 %v6443_v49, %v6442_v18  ;;  %v11678_v18 = vld [vmem:[%s17136_s3 + $0xb0] sm:$0xff]   ;;  %vm17317_vm1 = vmmov %vm17310_vm0 }
 0x98f   :  { %v6898_v10 = vor.u32 %v6897_v46, %v6893_v41  ;;  %v8352_v52 = vor.u32 %v15541_v60, %v15539_v45  ;;  %v11676_v41 = vld [vmem:[%s17136_s3 + $0xa0] sm:$0xff]   ;;  %v15812_v46 = vsel %vm6550_vm8, %v11677_v25, 0  ;;  %v15823_v49 = vsel %vm6550_vm8, %v11678_v18, 0  ;;  %v11689_v18 = vld [vmem:[%s17136_s3 + $0x108] sm:$0xff]  }
 0x990   :  { %v6946_v16 = vshrl.u32 %v15543_v7, 16  ;;  %v6948_v62 = vshll.u32 %v15543_v7, 16  ;;  %v15797_v6 = vsel %vm6550_vm8, %v11676_v41, 0  ;;  %v7876_v41 = vrot.slane %v15543_v7, 1  ;;  %v11688_v25 = vld [vmem:[%s17136_s3 + $0x100] sm:$0xff]   ;;  %v11705_v45 = vld [vmem:[%s17136_s3 + $0x188] sm:$0xff]  }
 0x991   :  { %10937 = vmatmul.mubr.msk.bf16.vlgmr.msra.gmra.mrb[44].mxu0 %vm6550_vm8, %v6898_v10  ;;  %v11679_v10 = vld [vmem:[%s17136_s3 + $0xb8] sm:$0xff]   ;;  %v16397_v60 = vsel %vm6550_vm8, %v11705_v45, 0 }
 0x992   :  { %7081 = vmatpush1.bf16.xpose.msra.mxu0 %v15546_v21  ;;  %v6950_v24 = vrot.slane %v6948_v62, 1  ;;  %7112 = vmatprep.mubr.bf16.mxu0 %v17186_v4  ;;  %v15555_v13 = vrot.slane %v6946_v16, 1  ;;  %v15557_v31 = vrot.slane %v6948_v62, 2 }
 0x993   :  { %7082 = vmatprep.subr.bf16.mxu0 %v17186_v4 }
 0x994   :  { %v6951_v54 = vor.u32 %v6950_v24, %v6946_v16  ;;  %v8401_v30 = vor.u32 %v15557_v31, %v15555_v13  ;;  %v11680_v16 = vld [vmem:[%s17136_s3 + $0xc0] sm:$0xff]   ;;  %v11681_v24 = vld [vmem:[%s17136_s3 + $0xc8] sm:$0xff]   ;;  %v8628_v13 = vrot.slane %v14919_v35, 2 }
 0x995   :  { %v15843_v62 = vsel %vm6550_vm8, %v11680_v16, 0  ;;  %v15853_v53 = vsel %vm6550_vm8, %v11681_v24, 0  ;;  %v11691_v16 = vld [vmem:[%s17136_s3 + $0x118] sm:$0xff]   ;;  %v11692_v24 = vld [vmem:[%s17136_s3 + $0x120] sm:$0xff]  }
 0x996   :  { %10938 = vmatmul.mubr.msk.bf16.vlgmr.msra.gmra.mrb[44].mxu1 %vm6550_vm8, %v6951_v54  ;;  %v11682_v54 = vld [vmem:[%s17136_s3 + $0xd0] sm:$0xff]  }
 0x997   :  { %7126 = vmatpush1.bf16.xpose.msra.mxu1 %v15546_v21  ;;  %7157 = vmatprep.mubr.bf16.mxu1 %v17186_v4 }
 0x998   :  { %7127 = vmatprep.subr.bf16.mxu1 %v17186_v4 }
 0x99a   :  { %7083 = vmatpush1.bf16.xpose.msra.mxu0 %v15568_v19 }
 0x99b   :  { %7084 = vmatprep.subr.bf16.mxu0 %v17186_v4 }
 0x99f   :  { %7128 = vmatpush1.bf16.xpose.msra.mxu1 %v15568_v19 }
 0x9a0   :  { %7129 = vmatprep.subr.bf16.mxu1 %v17186_v4 }
 0x9a2   :  { %7085 = vmatpush1.bf16.xpose.msra.mxu0 %v15579_v5 }
 0x9a3   :  { %7086 = vmatprep.subr.bf16.mxu0 %v17186_v4 }
 0x9a7   :  { %7130 = vmatpush1.bf16.xpose.msra.mxu1 %v15579_v5 }
 0x9a8   :  { %7131 = vmatprep.subr.bf16.mxu1 %v17186_v4 }
 0x9aa   :  { %7087 = vmatpush1.bf16.xpose.msra.mxu0 %v15589_v2 }
 0x9ab   :  { %7088 = vmatprep.subr.bf16.mxu0 %v17186_v4 }
 0x9af   :  { %7132 = vmatpush1.bf16.xpose.msra.mxu1 %v15589_v2 }
 0x9b0   :  { %7133 = vmatprep.subr.bf16.mxu1 %v17186_v4 }
 0x9b2   :  { %7089 = vmatpush1.bf16.xpose.msra.mxu0 %v15599_v61 }
 0x9b3   :  { %7090 = vmatprep.subr.bf16.mxu0 %v17186_v4 }
 0x9b7   :  { %7134 = vmatpush1.bf16.xpose.msra.mxu1 %v15599_v61 }
 0x9b8   :  { %7135 = vmatprep.subr.bf16.mxu1 %v17186_v4 }
 0x9ba   :  { %7091 = vmatpush1.bf16.xpose.msra.mxu0 %v15609_v48 }
 0x9bb   :  { %7092 = vmatprep.subr.bf16.mxu0 %v17186_v4 }
 0x9bf   :  { %7136 = vmatpush1.bf16.xpose.msra.mxu1 %v15609_v48 }
 0x9c0   :  { %7137 = vmatprep.subr.bf16.mxu1 %v17186_v4 }
 0x9c2   :  { %7093 = vmatpush1.bf16.xpose.msra.mxu0 %v15619_v22 }
 0x9c3   :  { %7094 = vmatprep.subr.bf16.mxu0 %v17186_v4 }
 0x9c7   :  { %7138 = vmatpush1.bf16.xpose.msra.mxu1 %v15619_v22 }
 0x9c8   :  { %7139 = vmatprep.subr.bf16.mxu1 %v17186_v4 }
 0x9ca   :  { %7095 = vmatpush1.bf16.xpose.msra.mxu0 %v15629_v59 }
 0x9cb   :  { %7096 = vmatprep.subr.bf16.mxu0 %v17186_v4 }
 0x9cf   :  { %7140 = vmatpush1.bf16.xpose.msra.mxu1 %v15629_v59 }
 0x9d0   :  { %7141 = vmatprep.subr.bf16.mxu1 %v17186_v4 }
 0x9d2   :  { %7097 = vmatpush1.bf16.xpose.msra.mxu0 %v15639_v34 }
 0x9d3   :  { %7098 = vmatprep.subr.bf16.mxu0 %v17186_v4 }
 0x9d7   :  { %7142 = vmatpush1.bf16.xpose.msra.mxu1 %v15639_v34 }
 0x9d8   :  { %7143 = vmatprep.subr.bf16.mxu1 %v17186_v4 }
 0x9da   :  { %7099 = vmatpush1.bf16.xpose.msra.mxu0 %v15649_v15 }
 0x9db   :  { %7170 = vmatprep.subr.bf16.mxu0 %v17186_v4 }
 0x9df   :  { %7144 = vmatpush1.bf16.xpose.msra.mxu1 %v15649_v15 }
 0x9e0   :  { %7215 = vmatprep.subr.bf16.mxu1 %v17186_v4 }
 0x9e1   :  { %10949 = vmatmul.mubr.msk.bf16.vlgmr.msra.gmra.mrb[32].mxu0 %vm6550_vm8, %v14900_v12 }
 0x9e2   :  { %7171 = vmatpush1.bf16.xpose.msra.mxu0 %v15546_v21  ;;  %7202 = vmatprep.mubr.bf16.mxu0 %v17186_v4 }
 0x9e3   :  { %7172 = vmatprep.subr.bf16.mxu0 %v17186_v4 }
 0x9e6   :  { %10950 = vmatmul.mubr.msk.bf16.vlgmr.msra.gmra.mrb[32].mxu1 %vm6550_vm8, %v14919_v35 }
 0x9e7   :  { %7216 = vmatpush1.bf16.xpose.msra.mxu1 %v15546_v21  ;;  %7247 = vmatprep.mubr.bf16.mxu1 %v17186_v4 }
 0x9e8   :  { %7217 = vmatprep.subr.bf16.mxu1 %v17186_v4 }
 0x9ea   :  { %7173 = vmatpush1.bf16.xpose.msra.mxu0 %v15568_v19 }
 0x9eb   :  { %7174 = vmatprep.subr.bf16.mxu0 %v17186_v4 }
 0x9ef   :  { %7218 = vmatpush1.bf16.xpose.msra.mxu1 %v15568_v19 }
 0x9f0   :  { %7219 = vmatprep.subr.bf16.mxu1 %v17186_v4 }
 0x9f2   :  { %7175 = vmatpush1.bf16.xpose.msra.mxu0 %v15579_v5 }
 0x9f3   :  { %7176 = vmatprep.subr.bf16.mxu0 %v17186_v4 }
 0x9f7   :  { %7220 = vmatpush1.bf16.xpose.msra.mxu1 %v15579_v5 }
 0x9f8   :  { %7221 = vmatprep.subr.bf16.mxu1 %v17186_v4 }
 0x9fa   :  { %7177 = vmatpush1.bf16.xpose.msra.mxu0 %v15589_v2 }
 0x9fb   :  { %7178 = vmatprep.subr.bf16.mxu0 %v17186_v4 }
 0x9ff   :  { %7222 = vmatpush1.bf16.xpose.msra.mxu1 %v15589_v2 }
 0xa00   :  { %7223 = vmatprep.subr.bf16.mxu1 %v17186_v4 }
 0xa02   :  { %7179 = vmatpush1.bf16.xpose.msra.mxu0 %v15599_v61 }
 0xa03   :  { %7180 = vmatprep.subr.bf16.mxu0 %v17186_v4 }
 0xa07   :  { %7224 = vmatpush1.bf16.xpose.msra.mxu1 %v15599_v61 }
 0xa08   :  { %7225 = vmatprep.subr.bf16.mxu1 %v17186_v4 }
 0xa0a   :  { %7181 = vmatpush1.bf16.xpose.msra.mxu0 %v15609_v48 }
 0xa0b   :  { %7182 = vmatprep.subr.bf16.mxu0 %v17186_v4 }
 0xa0f   :  { %7226 = vmatpush1.bf16.xpose.msra.mxu1 %v15609_v48 }
 0xa10   :  { %7227 = vmatprep.subr.bf16.mxu1 %v17186_v4 }
 0xa12   :  { %7183 = vmatpush1.bf16.xpose.msra.mxu0 %v15619_v22 }
 0xa13   :  { %7184 = vmatprep.subr.bf16.mxu0 %v17186_v4 }
 0xa17   :  { %7228 = vmatpush1.bf16.xpose.msra.mxu1 %v15619_v22 }
 0xa18   :  { %7229 = vmatprep.subr.bf16.mxu1 %v17186_v4 }
 0xa1a   :  { %7185 = vmatpush1.bf16.xpose.msra.mxu0 %v15629_v59 }
 0xa1b   :  { %7186 = vmatprep.subr.bf16.mxu0 %v17186_v4 }
 0xa1f   :  { %7230 = vmatpush1.bf16.xpose.msra.mxu1 %v15629_v59 }
 0xa20   :  { %7231 = vmatprep.subr.bf16.mxu1 %v17186_v4 }
 0xa22   :  { %7187 = vmatpush1.bf16.xpose.msra.mxu0 %v15639_v34 }
 0xa23   :  { %7188 = vmatprep.subr.bf16.mxu0 %v17186_v4 }
 0xa27   :  { %7232 = vmatpush1.bf16.xpose.msra.mxu1 %v15639_v34 }
 0xa28   :  { %7233 = vmatprep.subr.bf16.mxu1 %v17186_v4 }
 0xa2a   :  { %7189 = vmatpush1.bf16.xpose.msra.mxu0 %v15649_v15 }
 0xa2b   :  { %7260 = vmatprep.subr.bf16.mxu0 %v17186_v4 }
 0xa2f   :  { %7234 = vmatpush1.bf16.xpose.msra.mxu1 %v15649_v15 }
 0xa30   :  { %7305 = vmatprep.subr.bf16.mxu1 %v17186_v4 }
 0xa31   :  { %10951 = vmatmul.mubr.msk.bf16.vlgmr.msra.gmra.mrb[36].mxu0 %vm6550_vm8, %v15185_v3 }
 0xa32   :  { %7261 = vmatpush1.bf16.xpose.msra.mxu0 %v15546_v21  ;;  %7292 = vmatprep.mubr.bf16.mxu0 %v17186_v4 }
 0xa33   :  { %7262 = vmatprep.subr.bf16.mxu0 %v17186_v4 }
 0xa36   :  { %10952 = vmatmul.mubr.msk.bf16.vlgmr.msra.gmra.mrb[36].mxu1 %vm6550_vm8, %v15202_v57 }
 0xa37   :  { %7306 = vmatpush1.bf16.xpose.msra.mxu1 %v15546_v21  ;;  %7337 = vmatprep.mubr.bf16.mxu1 %v17186_v4 }
 0xa38   :  { %7307 = vmatprep.subr.bf16.mxu1 %v17186_v4 }
 0xa3a   :  { %7263 = vmatpush1.bf16.xpose.msra.mxu0 %v15568_v19 }
 0xa3b   :  { %7264 = vmatprep.subr.bf16.mxu0 %v17186_v4 }
 0xa3f   :  { %7308 = vmatpush1.bf16.xpose.msra.mxu1 %v15568_v19 }
 0xa40   :  { %7309 = vmatprep.subr.bf16.mxu1 %v17186_v4 }
 0xa42   :  { %7265 = vmatpush1.bf16.xpose.msra.mxu0 %v15579_v5 }
 0xa43   :  { %7266 = vmatprep.subr.bf16.mxu0 %v17186_v4 }
 0xa47   :  { %7310 = vmatpush1.bf16.xpose.msra.mxu1 %v15579_v5 }
 0xa48   :  { %7311 = vmatprep.subr.bf16.mxu1 %v17186_v4 }
 0xa4a   :  { %7267 = vmatpush1.bf16.xpose.msra.mxu0 %v15589_v2 }
 0xa4b   :  { %7268 = vmatprep.subr.bf16.mxu0 %v17186_v4 }
 0xa4f   :  { %7312 = vmatpush1.bf16.xpose.msra.mxu1 %v15589_v2 }
 0xa50   :  { %7313 = vmatprep.subr.bf16.mxu1 %v17186_v4 }
 0xa52   :  { %7269 = vmatpush1.bf16.xpose.msra.mxu0 %v15599_v61 }
 0xa53   :  { %7270 = vmatprep.subr.bf16.mxu0 %v17186_v4 }
 0xa57   :  { %7314 = vmatpush1.bf16.xpose.msra.mxu1 %v15599_v61 }
 0xa58   :  { %7315 = vmatprep.subr.bf16.mxu1 %v17186_v4 }
 0xa5a   :  { %7271 = vmatpush1.bf16.xpose.msra.mxu0 %v15609_v48 }
 0xa5b   :  { %7272 = vmatprep.subr.bf16.mxu0 %v17186_v4 }
 0xa5f   :  { %7316 = vmatpush1.bf16.xpose.msra.mxu1 %v15609_v48 }
 0xa60   :  { %7317 = vmatprep.subr.bf16.mxu1 %v17186_v4 }
 0xa62   :  { %7273 = vmatpush1.bf16.xpose.msra.mxu0 %v15619_v22 }
 0xa63   :  { %7274 = vmatprep.subr.bf16.mxu0 %v17186_v4 }
 0xa67   :  { %7318 = vmatpush1.bf16.xpose.msra.mxu1 %v15619_v22 }
 0xa68   :  { %7319 = vmatprep.subr.bf16.mxu1 %v17186_v4 }
 0xa6a   :  { %7275 = vmatpush1.bf16.xpose.msra.mxu0 %v15629_v59 }
 0xa6b   :  { %7276 = vmatprep.subr.bf16.mxu0 %v17186_v4 }
 0xa6f   :  { %7320 = vmatpush1.bf16.xpose.msra.mxu1 %v15629_v59 }
 0xa70   :  { %7321 = vmatprep.subr.bf16.mxu1 %v17186_v4 }
 0xa72   :  { %7277 = vmatpush1.bf16.xpose.msra.mxu0 %v15639_v34 }
 0xa73   :  { %7278 = vmatprep.subr.bf16.mxu0 %v17186_v4 }
 0xa77   :  { %7322 = vmatpush1.bf16.xpose.msra.mxu1 %v15639_v34 }
 0xa78   :  { %7323 = vmatprep.subr.bf16.mxu1 %v17186_v4 }
 0xa7a   :  { %7279 = vmatpush1.bf16.xpose.msra.mxu0 %v15649_v15 }
 0xa7b   :  { %7350 = vmatprep.subr.bf16.mxu0 %v17186_v4 }
 0xa7f   :  { %7324 = vmatpush1.bf16.xpose.msra.mxu1 %v15649_v15 }
 0xa80   :  { %7395 = vmatprep.subr.bf16.mxu1 %v17186_v4 }
 0xa81   :  { %10953 = vmatmul.mubr.msk.bf16.vlgmr.msra.gmra.mrb[40].mxu0 %vm6550_vm8, %v15422_v47 }
 0xa82   :  { %7351 = vmatpush1.bf16.xpose.msra.mxu0 %v15546_v21  ;;  %7382 = vmatprep.mubr.bf16.mxu0 %v17186_v4 }
 0xa83   :  { %7352 = vmatprep.subr.bf16.mxu0 %v17186_v4 }
 0xa86   :  { %10954 = vmatmul.mubr.msk.bf16.vlgmr.msra.gmra.mrb[40].mxu1 %vm6550_vm8, %v15428_v38 }
 0xa87   :  { %7396 = vmatpush1.bf16.xpose.msra.mxu1 %v15546_v21  ;;  %7427 = vmatprep.mubr.bf16.mxu1 %v17186_v4  ;;  %v15833_v21 = vsel %vm6550_vm8, %v11679_v10, 0  ;;  %v11690_v10 = vld [vmem:[%s17136_s3 + $0x110] sm:$0xff]  }
 0xa88   :  { %7397 = vmatprep.subr.bf16.mxu1 %v17186_v4 }
 0xa8a   :  { %7353 = vmatpush1.bf16.xpose.msra.mxu0 %v15568_v19 }
 0xa8b   :  { %7354 = vmatprep.subr.bf16.mxu0 %v17186_v4 }
 0xa8f   :  { %7398 = vmatpush1.bf16.xpose.msra.mxu1 %v15568_v19  ;;  %v15863_v19 = vsel %vm6550_vm8, %v11682_v54, 0  ;;  %v11693_v54 = vld [vmem:[%s17136_s3 + $0x128] sm:$0xff]  }
 0xa90   :  { %7399 = vmatprep.subr.bf16.mxu1 %v17186_v4 }
 0xa92   :  { %7355 = vmatpush1.bf16.xpose.msra.mxu0 %v15579_v5 }
 0xa93   :  { %7356 = vmatprep.subr.bf16.mxu0 %v17186_v4 }
 0xa97   :  { %7400 = vmatpush1.bf16.xpose.msra.mxu1 %v15579_v5  ;;  %v15873_v5 = vsel %vm6550_vm8, %v11683_v39, 0  ;;  %v11694_v39 = vld [vmem:[%s17136_s3 + $0x130] sm:$0xff]  }
 0xa98   :  { %7401 = vmatprep.subr.bf16.mxu1 %v17186_v4 }
 0xa9a   :  { %7357 = vmatpush1.bf16.xpose.msra.mxu0 %v15589_v2 }
 0xa9b   :  { %7358 = vmatprep.subr.bf16.mxu0 %v17186_v4 }
 0xa9f   :  { %7402 = vmatpush1.bf16.xpose.msra.mxu1 %v15589_v2  ;;  %v15883_v2 = vsel %vm6550_vm8, %v11684_v32, 0  ;;  %v11695_v32 = vld [vmem:[%s17136_s3 + $0x138] sm:$0xff]  }
 0xaa0   :  { %7403 = vmatprep.subr.bf16.mxu1 %v17186_v4 }
 0xaa2   :  { %7359 = vmatpush1.bf16.xpose.msra.mxu0 %v15599_v61 }
 0xaa3   :  { %7360 = vmatprep.subr.bf16.mxu0 %v17186_v4 }
 0xaa7   :  { %7404 = vmatpush1.bf16.xpose.msra.mxu1 %v15599_v61  ;;  %v15893_v61 = vsel %vm6550_vm8, %v11685_v56, 0 }
 0xaa8   :  { %7405 = vmatprep.subr.bf16.mxu1 %v17186_v4 }
 0xaaa   :  { %7361 = vmatpush1.bf16.xpose.msra.mxu0 %v15609_v48 }
 0xaab   :  { %7362 = vmatprep.subr.bf16.mxu0 %v17186_v4 }
 0xaaf   :  { %7406 = vmatpush1.bf16.xpose.msra.mxu1 %v15609_v48  ;;  %v7588_v48 = vrot.slane %v14919_v35, 1  ;;  %v8722_v35 = vrot.slane %v15202_v57, 2 }
 0xab0   :  { %7407 = vmatprep.subr.bf16.mxu1 %v17186_v4 }
 0xab2   :  { %7363 = vmatpush1.bf16.xpose.msra.mxu0 %v15619_v22 }
 0xab3   :  { %7364 = vmatprep.subr.bf16.mxu0 %v17186_v4 }
 0xab7   :  { %7408 = vmatpush1.bf16.xpose.msra.mxu1 %v15619_v22  ;;  %v7684_v22 = vrot.slane %v15202_v57, 1  ;;  %v8816_v57 = vrot.slane %v15428_v38, 2 }
 0xab8   :  { %7409 = vmatprep.subr.bf16.mxu1 %v17186_v4 }
 0xaba   :  { %7365 = vmatpush1.bf16.xpose.msra.mxu0 %v15629_v59 }
 0xabb   :  { %7366 = vmatprep.subr.bf16.mxu0 %v17186_v4 }
 0xabf   :  { %7410 = vmatpush1.bf16.xpose.msra.mxu1 %v15629_v59  ;;  %v7780_v59 = vrot.slane %v15428_v38, 1  ;;  %v17298_v38 = vld [vmem:[#allocation7_spill] sm:$0xff] }
 0xac0   :  { %7411 = vmatprep.subr.bf16.mxu1 %v17186_v4  ;;  %v17299_v31 = vsub.s32 0, %v17298_v38  ;;  %v17300_v56 = vsub.s32 1, %v17298_v38 }
 0xac2   :  { %7367 = vmatpush1.bf16.xpose.msra.mxu0 %v15639_v34 }
 0xac3   :  { %7368 = vmatprep.subr.bf16.mxu0 %v17186_v4 }
 0xac7   :  { %7412 = vmatpush1.bf16.xpose.msra.mxu1 %v15639_v34  ;;  %v7828_v34 = vrot.slane %v15532_v14, 1 }
 0xac8   :  { %7413 = vmatprep.subr.bf16.mxu1 %v17186_v4 }
 0xaca   :  { %7369 = vmatpush1.bf16.xpose.msra.mxu0 %v15649_v15 }
 0xacb   :  { %7544 = vmatprep.subr.bf16.mxu0 %v17186_v4 }
 0xacf   :  { %7414 = vmatpush1.bf16.xpose.msra.mxu1 %v15649_v15  ;;  %v11687_v15 = vld [vmem:[%s17136_s3 + $0xf8] sm:$0xff]  }
 0xad0   :  { %7592 = vmatprep.subr.bf16.mxu1 %v17186_v4 }
 0xad1   :  { %10955 = vmatmul.mubr.msk.bf16.vlgmr.msra.gmra.mrb[44].mxu0 %vm6550_vm8, %v15532_v14 }
 0xad2   :  { %7545 = vmatpush1.bf16.xpose.msra.mxu0 %v15797_v6  ;;  %7576 = vmatprep.mubr.bf16.mxu0 %v17186_v4 }
 0xad3   :  { %7546 = vmatprep.subr.bf16.mxu0 %v17186_v4 }
 0xad6   :  { %10956 = vmatmul.mubr.msk.bf16.vlgmr.msra.gmra.mrb[44].mxu1 %vm6550_vm8, %v15543_v7 }
 0xad7   :  { %7593 = vmatpush1.bf16.xpose.msra.mxu1 %v15797_v6  ;;  %7624 = vmatprep.mubr.bf16.mxu1 %v17186_v4 }
 0xad8   :  { %7594 = vmatprep.subr.bf16.mxu1 %v17186_v4 }
 0xada   :  { %7547 = vmatpush1.bf16.xpose.msra.mxu0 %v15812_v46 }
 0xadb   :  { %7548 = vmatprep.subr.bf16.mxu0 %v17186_v4 }
 0xadf   :  { %7595 = vmatpush1.bf16.xpose.msra.mxu1 %v15812_v46 }
 0xae0   :  { %7596 = vmatprep.subr.bf16.mxu1 %v17186_v4 }
 0xae2   :  { %7549 = vmatpush1.bf16.xpose.msra.mxu0 %v15823_v49 }
 0xae3   :  { %7550 = vmatprep.subr.bf16.mxu0 %v17186_v4 }
 0xae7   :  { %7597 = vmatpush1.bf16.xpose.msra.mxu1 %v15823_v49 }
 0xae8   :  { %7598 = vmatprep.subr.bf16.mxu1 %v17186_v4 }
 0xaea   :  { %7551 = vmatpush1.bf16.xpose.msra.mxu0 %v15833_v21 }
 0xaeb   :  { %7552 = vmatprep.subr.bf16.mxu0 %v17186_v4 }
 0xaef   :  { %7599 = vmatpush1.bf16.xpose.msra.mxu1 %v15833_v21 }
 0xaf0   :  { %7600 = vmatprep.subr.bf16.mxu1 %v17186_v4 }
 0xaf2   :  { %7553 = vmatpush1.bf16.xpose.msra.mxu0 %v15843_v62 }
 0xaf3   :  { %7554 = vmatprep.subr.bf16.mxu0 %v17186_v4 }
 0xaf7   :  { %7601 = vmatpush1.bf16.xpose.msra.mxu1 %v15843_v62 }
 0xaf8   :  { %7602 = vmatprep.subr.bf16.mxu1 %v17186_v4 }
 0xafa   :  { %7555 = vmatpush1.bf16.xpose.msra.mxu0 %v15853_v53 }
 0xafb   :  { %7556 = vmatprep.subr.bf16.mxu0 %v17186_v4 }
 0xaff   :  { %7603 = vmatpush1.bf16.xpose.msra.mxu1 %v15853_v53 }
 0xb00   :  { %7604 = vmatprep.subr.bf16.mxu1 %v17186_v4 }
 0xb02   :  { %7557 = vmatpush1.bf16.xpose.msra.mxu0 %v15863_v19 }
 0xb03   :  { %7558 = vmatprep.subr.bf16.mxu0 %v17186_v4 }
 0xb07   :  { %7605 = vmatpush1.bf16.xpose.msra.mxu1 %v15863_v19 }
 0xb08   :  { %7606 = vmatprep.subr.bf16.mxu1 %v17186_v4 }
 0xb0a   :  { %7559 = vmatpush1.bf16.xpose.msra.mxu0 %v15873_v5 }
 0xb0b   :  { %7560 = vmatprep.subr.bf16.mxu0 %v17186_v4 }
 0xb0f   :  { %7607 = vmatpush1.bf16.xpose.msra.mxu1 %v15873_v5 }
 0xb10   :  { %7608 = vmatprep.subr.bf16.mxu1 %v17186_v4 }
 0xb12   :  { %7561 = vmatpush1.bf16.xpose.msra.mxu0 %v15883_v2 }
 0xb13   :  { %7562 = vmatprep.subr.bf16.mxu0 %v17186_v4 }
 0xb17   :  { %7609 = vmatpush1.bf16.xpose.msra.mxu1 %v15883_v2 }
 0xb18   :  { %7610 = vmatprep.subr.bf16.mxu1 %v17186_v4 }
 0xb1a   :  { %7563 = vmatpush1.bf16.xpose.msra.mxu0 %v15893_v61 }
 0xb1b   :  { %7640 = vmatprep.subr.bf16.mxu0 %v17186_v4 }
 0xb1f   :  { %7611 = vmatpush1.bf16.xpose.msra.mxu1 %v15893_v61 }
 0xb20   :  { %7688 = vmatprep.subr.bf16.mxu1 %v17186_v4 }
 0xb21   :  { %10987 = vmatmul.mubr.msk.bf16.vlgmr.msra.gmra.mrb[32].mxu0 %vm6550_vm8, %v7460_v50 }
 0xb22   :  { %7641 = vmatpush1.bf16.xpose.msra.mxu0 %v15797_v6  ;;  %7672 = vmatprep.mubr.bf16.mxu0 %v17186_v4 }
 0xb23   :  { %7642 = vmatprep.subr.bf16.mxu0 %v17186_v4 }
 0xb26   :  { %10988 = vmatmul.mubr.msk.bf16.vlgmr.msra.gmra.mrb[32].mxu1 %vm6550_vm8, %v7588_v48 }
 0xb27   :  { %7689 = vmatpush1.bf16.xpose.msra.mxu1 %v15797_v6  ;;  %7720 = vmatprep.mubr.bf16.mxu1 %v17186_v4 }
 0xb28   :  { %7690 = vmatprep.subr.bf16.mxu1 %v17186_v4 }
 0xb2a   :  { %7643 = vmatpush1.bf16.xpose.msra.mxu0 %v15812_v46 }
 0xb2b   :  { %7644 = vmatprep.subr.bf16.mxu0 %v17186_v4 }
 0xb2f   :  { %7691 = vmatpush1.bf16.xpose.msra.mxu1 %v15812_v46 }
 0xb30   :  { %7692 = vmatprep.subr.bf16.mxu1 %v17186_v4 }
 0xb32   :  { %7645 = vmatpush1.bf16.xpose.msra.mxu0 %v15823_v49 }
 0xb33   :  { %7646 = vmatprep.subr.bf16.mxu0 %v17186_v4 }
 0xb37   :  { %7693 = vmatpush1.bf16.xpose.msra.mxu1 %v15823_v49 }
 0xb38   :  { %7694 = vmatprep.subr.bf16.mxu1 %v17186_v4 }
 0xb3a   :  { %7647 = vmatpush1.bf16.xpose.msra.mxu0 %v15833_v21 }
 0xb3b   :  { %7648 = vmatprep.subr.bf16.mxu0 %v17186_v4 }
 0xb3f   :  { %7695 = vmatpush1.bf16.xpose.msra.mxu1 %v15833_v21 }
 0xb40   :  { %7696 = vmatprep.subr.bf16.mxu1 %v17186_v4 }
 0xb42   :  { %7649 = vmatpush1.bf16.xpose.msra.mxu0 %v15843_v62 }
 0xb43   :  { %7650 = vmatprep.subr.bf16.mxu0 %v17186_v4 }
 0xb47   :  { %7697 = vmatpush1.bf16.xpose.msra.mxu1 %v15843_v62 }
 0xb48   :  { %7698 = vmatprep.subr.bf16.mxu1 %v17186_v4 }
 0xb4a   :  { %7651 = vmatpush1.bf16.xpose.msra.mxu0 %v15853_v53 }
 0xb4b   :  { %7652 = vmatprep.subr.bf16.mxu0 %v17186_v4 }
 0xb4f   :  { %7699 = vmatpush1.bf16.xpose.msra.mxu1 %v15853_v53 }
 0xb50   :  { %7700 = vmatprep.subr.bf16.mxu1 %v17186_v4 }
 0xb52   :  { %7653 = vmatpush1.bf16.xpose.msra.mxu0 %v15863_v19 }
 0xb53   :  { %7654 = vmatprep.subr.bf16.mxu0 %v17186_v4 }
 0xb57   :  { %7701 = vmatpush1.bf16.xpose.msra.mxu1 %v15863_v19 }
 0xb58   :  { %7702 = vmatprep.subr.bf16.mxu1 %v17186_v4 }
 0xb5a   :  { %7655 = vmatpush1.bf16.xpose.msra.mxu0 %v15873_v5 }
 0xb5b   :  { %7656 = vmatprep.subr.bf16.mxu0 %v17186_v4 }
 0xb5f   :  { %7703 = vmatpush1.bf16.xpose.msra.mxu1 %v15873_v5 }
 0xb60   :  { %7704 = vmatprep.subr.bf16.mxu1 %v17186_v4 }
 0xb62   :  { %7657 = vmatpush1.bf16.xpose.msra.mxu0 %v15883_v2 }
 0xb63   :  { %7658 = vmatprep.subr.bf16.mxu0 %v17186_v4 }
 0xb67   :  { %7705 = vmatpush1.bf16.xpose.msra.mxu1 %v15883_v2 }
 0xb68   :  { %7706 = vmatprep.subr.bf16.mxu1 %v17186_v4 }
 0xb6a   :  { %7659 = vmatpush1.bf16.xpose.msra.mxu0 %v15893_v61 }
 0xb6b   :  { %7736 = vmatprep.subr.bf16.mxu0 %v17186_v4 }
 0xb6f   :  { %7707 = vmatpush1.bf16.xpose.msra.mxu1 %v15893_v61 }
 0xb70   :  { %7784 = vmatprep.subr.bf16.mxu1 %v17186_v4 }
 0xb71   :  { %10989 = vmatmul.mubr.msk.bf16.vlgmr.msra.gmra.mrb[36].mxu0 %vm6550_vm8, %v7636_v36 }
 0xb72   :  { %7737 = vmatpush1.bf16.xpose.msra.mxu0 %v15797_v6  ;;  %7768 = vmatprep.mubr.bf16.mxu0 %v17186_v4 }
 0xb73   :  { %7738 = vmatprep.subr.bf16.mxu0 %v17186_v4 }
 0xb76   :  { %10990 = vmatmul.mubr.msk.bf16.vlgmr.msra.gmra.mrb[36].mxu1 %vm6550_vm8, %v7684_v22 }
 0xb77   :  { %7785 = vmatpush1.bf16.xpose.msra.mxu1 %v15797_v6  ;;  %7816 = vmatprep.mubr.bf16.mxu1 %v17186_v4 }
 0xb78   :  { %7786 = vmatprep.subr.bf16.mxu1 %v17186_v4 }
 0xb7a   :  { %7739 = vmatpush1.bf16.xpose.msra.mxu0 %v15812_v46 }
 0xb7b   :  { %7740 = vmatprep.subr.bf16.mxu0 %v17186_v4 }
 0xb7f   :  { %7787 = vmatpush1.bf16.xpose.msra.mxu1 %v15812_v46 }
 0xb80   :  { %7788 = vmatprep.subr.bf16.mxu1 %v17186_v4 }
 0xb82   :  { %7741 = vmatpush1.bf16.xpose.msra.mxu0 %v15823_v49 }
 0xb83   :  { %7742 = vmatprep.subr.bf16.mxu0 %v17186_v4 }
 0xb87   :  { %7789 = vmatpush1.bf16.xpose.msra.mxu1 %v15823_v49 }
 0xb88   :  { %7790 = vmatprep.subr.bf16.mxu1 %v17186_v4 }
 0xb8a   :  { %7743 = vmatpush1.bf16.xpose.msra.mxu0 %v15833_v21 }
 0xb8b   :  { %7744 = vmatprep.subr.bf16.mxu0 %v17186_v4 }
 0xb8f   :  { %7791 = vmatpush1.bf16.xpose.msra.mxu1 %v15833_v21 }
 0xb90   :  { %7792 = vmatprep.subr.bf16.mxu1 %v17186_v4 }
 0xb92   :  { %7745 = vmatpush1.bf16.xpose.msra.mxu0 %v15843_v62 }
 0xb93   :  { %7746 = vmatprep.subr.bf16.mxu0 %v17186_v4 }
 0xb97   :  { %7793 = vmatpush1.bf16.xpose.msra.mxu1 %v15843_v62 }
 0xb98   :  { %7794 = vmatprep.subr.bf16.mxu1 %v17186_v4 }
 0xb9a   :  { %7747 = vmatpush1.bf16.xpose.msra.mxu0 %v15853_v53 }
 0xb9b   :  { %7748 = vmatprep.subr.bf16.mxu0 %v17186_v4 }
 0xb9f   :  { %7795 = vmatpush1.bf16.xpose.msra.mxu1 %v15853_v53 }
 0xba0   :  { %7796 = vmatprep.subr.bf16.mxu1 %v17186_v4 }
 0xba2   :  { %7749 = vmatpush1.bf16.xpose.msra.mxu0 %v15863_v19 }
 0xba3   :  { %7750 = vmatprep.subr.bf16.mxu0 %v17186_v4 }
 0xba7   :  { %7797 = vmatpush1.bf16.xpose.msra.mxu1 %v15863_v19 }
 0xba8   :  { %7798 = vmatprep.subr.bf16.mxu1 %v17186_v4 }
 0xbaa   :  { %7751 = vmatpush1.bf16.xpose.msra.mxu0 %v15873_v5 }
 0xbab   :  { %7752 = vmatprep.subr.bf16.mxu0 %v17186_v4 }
 0xbaf   :  { %7799 = vmatpush1.bf16.xpose.msra.mxu1 %v15873_v5 }
 0xbb0   :  { %7800 = vmatprep.subr.bf16.mxu1 %v17186_v4 }
 0xbb2   :  { %7753 = vmatpush1.bf16.xpose.msra.mxu0 %v15883_v2 }
 0xbb3   :  { %7754 = vmatprep.subr.bf16.mxu0 %v17186_v4 }
 0xbb7   :  { %7801 = vmatpush1.bf16.xpose.msra.mxu1 %v15883_v2 }
 0xbb8   :  { %7802 = vmatprep.subr.bf16.mxu1 %v17186_v4 }
 0xbba   :  { %7755 = vmatpush1.bf16.xpose.msra.mxu0 %v15893_v61 }
 0xbbb   :  { %7832 = vmatprep.subr.bf16.mxu0 %v17186_v4 }
 0xbbf   :  { %7803 = vmatpush1.bf16.xpose.msra.mxu1 %v15893_v61 }
 0xbc0   :  { %7880 = vmatprep.subr.bf16.mxu1 %v17186_v4 }
 0xbc1   :  { %10991 = vmatmul.mubr.msk.bf16.vlgmr.msra.gmra.mrb[40].mxu0 %vm6550_vm8, %v7732_v44 }
 0xbc2   :  { %7833 = vmatpush1.bf16.xpose.msra.mxu0 %v15797_v6  ;;  %7864 = vmatprep.mubr.bf16.mxu0 %v17186_v4 }
 0xbc3   :  { %7834 = vmatprep.subr.bf16.mxu0 %v17186_v4 }
 0xbc6   :  { %10992 = vmatmul.mubr.msk.bf16.vlgmr.msra.gmra.mrb[40].mxu1 %vm6550_vm8, %v7780_v59 }
 0xbc7   :  { %7881 = vmatpush1.bf16.xpose.msra.mxu1 %v15797_v6  ;;  %7912 = vmatprep.mubr.bf16.mxu1 %v17186_v4  ;;  %v16056_v6 = vsel %vm6550_vm8, %v11687_v15, 0 }
 0xbc8   :  { %7882 = vmatprep.subr.bf16.mxu1 %v17186_v4 }
 0xbca   :  { %7835 = vmatpush1.bf16.xpose.msra.mxu0 %v15812_v46 }
 0xbcb   :  { %7836 = vmatprep.subr.bf16.mxu0 %v17186_v4 }
 0xbcf   :  { %7883 = vmatpush1.bf16.xpose.msra.mxu1 %v15812_v46  ;;  %v16067_v46 = vsel %vm6550_vm8, %v11688_v25, 0 }
 0xbd0   :  { %7884 = vmatprep.subr.bf16.mxu1 %v17186_v4 }
 0xbd2   :  { %7837 = vmatpush1.bf16.xpose.msra.mxu0 %v15823_v49 }
 0xbd3   :  { %7838 = vmatprep.subr.bf16.mxu0 %v17186_v4 }
 0xbd7   :  { %7885 = vmatpush1.bf16.xpose.msra.mxu1 %v15823_v49  ;;  %v16077_v49 = vsel %vm6550_vm8, %v11689_v18, 0 }
 0xbd8   :  { %7886 = vmatprep.subr.bf16.mxu1 %v17186_v4 }
 0xbda   :  { %7839 = vmatpush1.bf16.xpose.msra.mxu0 %v15833_v21 }
 0xbdb   :  { %7840 = vmatprep.subr.bf16.mxu0 %v17186_v4 }
 0xbdf   :  { %7887 = vmatpush1.bf16.xpose.msra.mxu1 %v15833_v21  ;;  %v16087_v21 = vsel %vm6550_vm8, %v11690_v10, 0 }
 0xbe0   :  { %7888 = vmatprep.subr.bf16.mxu1 %v17186_v4 }
 0xbe2   :  { %7841 = vmatpush1.bf16.xpose.msra.mxu0 %v15843_v62 }
 0xbe3   :  { %7842 = vmatprep.subr.bf16.mxu0 %v17186_v4 }
 0xbe7   :  { %7889 = vmatpush1.bf16.xpose.msra.mxu1 %v15843_v62  ;;  %v16097_v62 = vsel %vm6550_vm8, %v11691_v16, 0 }
 0xbe8   :  { %7890 = vmatprep.subr.bf16.mxu1 %v17186_v4 }
 0xbea   :  { %7843 = vmatpush1.bf16.xpose.msra.mxu0 %v15853_v53 }
 0xbeb   :  { %7844 = vmatprep.subr.bf16.mxu0 %v17186_v4 }
 0xbef   :  { %7891 = vmatpush1.bf16.xpose.msra.mxu1 %v15853_v53  ;;  %v16107_v53 = vsel %vm6550_vm8, %v11692_v24, 0 }
 0xbf0   :  { %7892 = vmatprep.subr.bf16.mxu1 %v17186_v4 }
 0xbf2   :  { %7845 = vmatpush1.bf16.xpose.msra.mxu0 %v15863_v19 }
 0xbf3   :  { %7846 = vmatprep.subr.bf16.mxu0 %v17186_v4 }
 0xbf7   :  { %7893 = vmatpush1.bf16.xpose.msra.mxu1 %v15863_v19  ;;  %v16117_v19 = vsel %vm6550_vm8, %v11693_v54, 0 }
 0xbf8   :  { %7894 = vmatprep.subr.bf16.mxu1 %v17186_v4 }
 0xbfa   :  { %7847 = vmatpush1.bf16.xpose.msra.mxu0 %v15873_v5 }
 0xbfb   :  { %7848 = vmatprep.subr.bf16.mxu0 %v17186_v4 }
 0xbff   :  { %7895 = vmatpush1.bf16.xpose.msra.mxu1 %v15873_v5  ;;  %v16127_v5 = vsel %vm6550_vm8, %v11694_v39, 0 }
 0xc00   :  { %7896 = vmatprep.subr.bf16.mxu1 %v17186_v4 }
 0xc02   :  { %7849 = vmatpush1.bf16.xpose.msra.mxu0 %v15883_v2 }
 0xc03   :  { %7850 = vmatprep.subr.bf16.mxu0 %v17186_v4 }
 0xc07   :  { %7897 = vmatpush1.bf16.xpose.msra.mxu1 %v15883_v2  ;;  %v16137_v2 = vsel %vm6550_vm8, %v11695_v32, 0 }
 0xc08   :  { %7898 = vmatprep.subr.bf16.mxu1 %v17186_v4 }
 0xc0a   :  { %7851 = vmatpush1.bf16.xpose.msra.mxu0 %v15893_v61 }
 0xc0b   :  { %8062 = vmatprep.subr.bf16.mxu0 %v17186_v4 }
 0xc0f   :  { %7899 = vmatpush1.bf16.xpose.msra.mxu1 %v15893_v61 }
 0xc10   :  { %8111 = vmatprep.subr.bf16.mxu1 %v17186_v4 }
 0xc11   :  { %10993 = vmatmul.mubr.msk.bf16.vlgmr.msra.gmra.mrb[44].mxu0 %vm6550_vm8, %v7828_v34 }
 0xc12   :  { %8063 = vmatpush1.bf16.xpose.msra.mxu0 %v16042_v43  ;;  %8094 = vmatprep.mubr.bf16.mxu0 %v17186_v4 }
 0xc13   :  { %8064 = vmatprep.subr.bf16.mxu0 %v17186_v4 }
 0xc16   :  { %10994 = vmatmul.mubr.msk.bf16.vlgmr.msra.gmra.mrb[44].mxu1 %vm6550_vm8, %v7876_v41 }
 0xc17   :  { %8112 = vmatpush1.bf16.xpose.msra.mxu1 %v16042_v43  ;;  %8143 = vmatprep.mubr.bf16.mxu1 %v17186_v4 }
 0xc18   :  { %8113 = vmatprep.subr.bf16.mxu1 %v17186_v4 }
 0xc1a   :  { %8065 = vmatpush1.bf16.xpose.msra.mxu0 %v16056_v6 }
 0xc1b   :  { %8066 = vmatprep.subr.bf16.mxu0 %v17186_v4 }
 0xc1f   :  { %8114 = vmatpush1.bf16.xpose.msra.mxu1 %v16056_v6 }
 0xc20   :  { %8115 = vmatprep.subr.bf16.mxu1 %v17186_v4 }
 0xc22   :  { %8067 = vmatpush1.bf16.xpose.msra.mxu0 %v16067_v46 }
 0xc23   :  { %8068 = vmatprep.subr.bf16.mxu0 %v17186_v4 }
 0xc27   :  { %8116 = vmatpush1.bf16.xpose.msra.mxu1 %v16067_v46 }
 0xc28   :  { %8117 = vmatprep.subr.bf16.mxu1 %v17186_v4 }
 0xc2a   :  { %8069 = vmatpush1.bf16.xpose.msra.mxu0 %v16077_v49 }
 0xc2b   :  { %8070 = vmatprep.subr.bf16.mxu0 %v17186_v4 }
 0xc2f   :  { %8118 = vmatpush1.bf16.xpose.msra.mxu1 %v16077_v49 }
 0xc30   :  { %8119 = vmatprep.subr.bf16.mxu1 %v17186_v4 }
 0xc32   :  { %8071 = vmatpush1.bf16.xpose.msra.mxu0 %v16087_v21 }
 0xc33   :  { %8072 = vmatprep.subr.bf16.mxu0 %v17186_v4 }
 0xc37   :  { %8120 = vmatpush1.bf16.xpose.msra.mxu1 %v16087_v21 }
 0xc38   :  { %8121 = vmatprep.subr.bf16.mxu1 %v17186_v4 }
 0xc3a   :  { %8073 = vmatpush1.bf16.xpose.msra.mxu0 %v16097_v62 }
 0xc3b   :  { %8074 = vmatprep.subr.bf16.mxu0 %v17186_v4 }
 0xc3f   :  { %8122 = vmatpush1.bf16.xpose.msra.mxu1 %v16097_v62 }
 0xc40   :  { %8123 = vmatprep.subr.bf16.mxu1 %v17186_v4 }
 0xc42   :  { %8075 = vmatpush1.bf16.xpose.msra.mxu0 %v16107_v53 }
 0xc43   :  { %8076 = vmatprep.subr.bf16.mxu0 %v17186_v4 }
 0xc47   :  { %8124 = vmatpush1.bf16.xpose.msra.mxu1 %v16107_v53 }
 0xc48   :  { %8125 = vmatprep.subr.bf16.mxu1 %v17186_v4 }
 0xc4a   :  { %8077 = vmatpush1.bf16.xpose.msra.mxu0 %v16117_v19 }
 0xc4b   :  { %8078 = vmatprep.subr.bf16.mxu0 %v17186_v4 }
 0xc4f   :  { %8126 = vmatpush1.bf16.xpose.msra.mxu1 %v16117_v19 }
 0xc50   :  { %8127 = vmatprep.subr.bf16.mxu1 %v17186_v4 }
 0xc52   :  { %8079 = vmatpush1.bf16.xpose.msra.mxu0 %v16127_v5 }
 0xc53   :  { %8080 = vmatprep.subr.bf16.mxu0 %v17186_v4 }
 0xc57   :  { %8128 = vmatpush1.bf16.xpose.msra.mxu1 %v16127_v5 }
 0xc58   :  { %8129 = vmatprep.subr.bf16.mxu1 %v17186_v4 }
 0xc5a   :  { %8081 = vmatpush1.bf16.xpose.msra.mxu0 %v16137_v2 }
 0xc5b   :  { %8160 = vmatprep.subr.bf16.mxu0 %v17186_v4 }
 0xc5f   :  { %8130 = vmatpush1.bf16.xpose.msra.mxu1 %v16137_v2 }
 0xc60   :  { %8209 = vmatprep.subr.bf16.mxu1 %v17186_v4 }
 0xc61   :  { %11025 = vmatmul.mubr.msk.bf16.vlgmr.msra.gmra.mrb[32].mxu0 %vm6550_vm8, %v7978_v26  ;;  %v11697_v26 = vld [vmem:[%s17136_s3 + $0x148] sm:$0xff]  }
 0xc62   :  { %8161 = vmatpush1.bf16.xpose.msra.mxu0 %v16042_v43  ;;  %8192 = vmatprep.mubr.bf16.mxu0 %v17186_v4  ;;  %v16316_v8 = vsel %vm6550_vm8, %v11697_v26, 0 }
 0xc63   :  { %8162 = vmatprep.subr.bf16.mxu0 %v17186_v4 }
 0xc66   :  { %11026 = vmatmul.mubr.msk.bf16.vlgmr.msra.gmra.mrb[32].mxu1 %vm6550_vm8, %v8107_v9  ;;  %v16327_v9 = vsel %vm6550_vm8, %v11698_v58, 0 }
 0xc67   :  { %8210 = vmatpush1.bf16.xpose.msra.mxu1 %v16042_v43  ;;  %8241 = vmatprep.mubr.bf16.mxu1 %v17186_v4 }
 0xc68   :  { %8211 = vmatprep.subr.bf16.mxu1 %v17186_v4 }
 0xc6a   :  { %8163 = vmatpush1.bf16.xpose.msra.mxu0 %v16056_v6 }
 0xc6b   :  { %8164 = vmatprep.subr.bf16.mxu0 %v17186_v4 }
 0xc6f   :  { %8212 = vmatpush1.bf16.xpose.msra.mxu1 %v16056_v6 }
 0xc70   :  { %8213 = vmatprep.subr.bf16.mxu1 %v17186_v4 }
 0xc72   :  { %8165 = vmatpush1.bf16.xpose.msra.mxu0 %v16067_v46 }
 0xc73   :  { %8166 = vmatprep.subr.bf16.mxu0 %v17186_v4 }
 0xc77   :  { %8214 = vmatpush1.bf16.xpose.msra.mxu1 %v16067_v46 }
 0xc78   :  { %8215 = vmatprep.subr.bf16.mxu1 %v17186_v4 }
 0xc7a   :  { %8167 = vmatpush1.bf16.xpose.msra.mxu0 %v16077_v49 }
 0xc7b   :  { %8168 = vmatprep.subr.bf16.mxu0 %v17186_v4 }
 0xc7f   :  { %8216 = vmatpush1.bf16.xpose.msra.mxu1 %v16077_v49 }
 0xc80   :  { %8217 = vmatprep.subr.bf16.mxu1 %v17186_v4 }
 0xc82   :  { %8169 = vmatpush1.bf16.xpose.msra.mxu0 %v16087_v21 }
 0xc83   :  { %8170 = vmatprep.subr.bf16.mxu0 %v17186_v4 }
 0xc87   :  { %8218 = vmatpush1.bf16.xpose.msra.mxu1 %v16087_v21 }
 0xc88   :  { %8219 = vmatprep.subr.bf16.mxu1 %v17186_v4 }
 0xc8a   :  { %8171 = vmatpush1.bf16.xpose.msra.mxu0 %v16097_v62 }
 0xc8b   :  { %8172 = vmatprep.subr.bf16.mxu0 %v17186_v4 }
 0xc8f   :  { %8220 = vmatpush1.bf16.xpose.msra.mxu1 %v16097_v62 }
 0xc90   :  { %8221 = vmatprep.subr.bf16.mxu1 %v17186_v4 }
 0xc92   :  { %8173 = vmatpush1.bf16.xpose.msra.mxu0 %v16107_v53 }
 0xc93   :  { %8174 = vmatprep.subr.bf16.mxu0 %v17186_v4 }
 0xc97   :  { %8222 = vmatpush1.bf16.xpose.msra.mxu1 %v16107_v53 }
 0xc98   :  { %8223 = vmatprep.subr.bf16.mxu1 %v17186_v4 }
 0xc9a   :  { %8175 = vmatpush1.bf16.xpose.msra.mxu0 %v16117_v19 }
 0xc9b   :  { %8176 = vmatprep.subr.bf16.mxu0 %v17186_v4 }
 0xc9f   :  { %8224 = vmatpush1.bf16.xpose.msra.mxu1 %v16117_v19 }
 0xca0   :  { %8225 = vmatprep.subr.bf16.mxu1 %v17186_v4 }
 0xca2   :  { %8177 = vmatpush1.bf16.xpose.msra.mxu0 %v16127_v5 }
 0xca3   :  { %8178 = vmatprep.subr.bf16.mxu0 %v17186_v4 }
 0xca7   :  { %8226 = vmatpush1.bf16.xpose.msra.mxu1 %v16127_v5 }
 0xca8   :  { %8227 = vmatprep.subr.bf16.mxu1 %v17186_v4 }
 0xcaa   :  { %8179 = vmatpush1.bf16.xpose.msra.mxu0 %v16137_v2 }
 0xcab   :  { %8258 = vmatprep.subr.bf16.mxu0 %v17186_v4 }
 0xcaf   :  { %8228 = vmatpush1.bf16.xpose.msra.mxu1 %v16137_v2 }
 0xcb0   :  { %8307 = vmatprep.subr.bf16.mxu1 %v17186_v4 }
 0xcb1   :  { %11027 = vmatmul.mubr.msk.bf16.vlgmr.msra.gmra.mrb[36].mxu0 %vm6550_vm8, %v8156_v51  ;;  %v11700_v51 = vld [vmem:[%s17136_s3 + $0x160] sm:$0xff]  }
 0xcb2   :  { %8259 = vmatpush1.bf16.xpose.msra.mxu0 %v16042_v43  ;;  %8290 = vmatprep.mubr.bf16.mxu0 %v17186_v4  ;;  %v16347_v0 = vsel %vm6550_vm8, %v11700_v51, 0 }
 0xcb3   :  { %8260 = vmatprep.subr.bf16.mxu0 %v17186_v4 }
 0xcb6   :  { %11028 = vmatmul.mubr.msk.bf16.vlgmr.msra.gmra.mrb[36].mxu1 %vm6550_vm8, %v8205_v20  ;;  %v16357_v20 = vsel %vm6550_vm8, %v11701_v63, 0 }
 0xcb7   :  { %8308 = vmatpush1.bf16.xpose.msra.mxu1 %v16042_v43  ;;  %8339 = vmatprep.mubr.bf16.mxu1 %v17186_v4 }
 0xcb8   :  { %8309 = vmatprep.subr.bf16.mxu1 %v17186_v4 }
 0xcba   :  { %8261 = vmatpush1.bf16.xpose.msra.mxu0 %v16056_v6 }
 0xcbb   :  { %8262 = vmatprep.subr.bf16.mxu0 %v17186_v4 }
 0xcbf   :  { %8310 = vmatpush1.bf16.xpose.msra.mxu1 %v16056_v6 }
 0xcc0   :  { %8311 = vmatprep.subr.bf16.mxu1 %v17186_v4 }
 0xcc2   :  { %8263 = vmatpush1.bf16.xpose.msra.mxu0 %v16067_v46 }
 0xcc3   :  { %8264 = vmatprep.subr.bf16.mxu0 %v17186_v4 }
 0xcc7   :  { %8312 = vmatpush1.bf16.xpose.msra.mxu1 %v16067_v46 }
 0xcc8   :  { %8313 = vmatprep.subr.bf16.mxu1 %v17186_v4 }
 0xcca   :  { %8265 = vmatpush1.bf16.xpose.msra.mxu0 %v16077_v49 }
 0xccb   :  { %8266 = vmatprep.subr.bf16.mxu0 %v17186_v4 }
 0xccf   :  { %8314 = vmatpush1.bf16.xpose.msra.mxu1 %v16077_v49 }
 0xcd0   :  { %8315 = vmatprep.subr.bf16.mxu1 %v17186_v4 }
 0xcd2   :  { %8267 = vmatpush1.bf16.xpose.msra.mxu0 %v16087_v21 }
 0xcd3   :  { %8268 = vmatprep.subr.bf16.mxu0 %v17186_v4 }
 0xcd7   :  { %8316 = vmatpush1.bf16.xpose.msra.mxu1 %v16087_v21 }
 0xcd8   :  { %8317 = vmatprep.subr.bf16.mxu1 %v17186_v4 }
 0xcda   :  { %8269 = vmatpush1.bf16.xpose.msra.mxu0 %v16097_v62 }
 0xcdb   :  { %8270 = vmatprep.subr.bf16.mxu0 %v17186_v4 }
 0xcdf   :  { %8318 = vmatpush1.bf16.xpose.msra.mxu1 %v16097_v62 }
 0xce0   :  { %8319 = vmatprep.subr.bf16.mxu1 %v17186_v4 }
 0xce2   :  { %8271 = vmatpush1.bf16.xpose.msra.mxu0 %v16107_v53 }
 0xce3   :  { %8272 = vmatprep.subr.bf16.mxu0 %v17186_v4 }
 0xce7   :  { %8320 = vmatpush1.bf16.xpose.msra.mxu1 %v16107_v53 }
 0xce8   :  { %8321 = vmatprep.subr.bf16.mxu1 %v17186_v4 }
 0xcea   :  { %8273 = vmatpush1.bf16.xpose.msra.mxu0 %v16117_v19 }
 0xceb   :  { %8274 = vmatprep.subr.bf16.mxu0 %v17186_v4 }
 0xcef   :  { %8322 = vmatpush1.bf16.xpose.msra.mxu1 %v16117_v19 }
 0xcf0   :  { %8323 = vmatprep.subr.bf16.mxu1 %v17186_v4 }
 0xcf2   :  { %8275 = vmatpush1.bf16.xpose.msra.mxu0 %v16127_v5 }
 0xcf3   :  { %8276 = vmatprep.subr.bf16.mxu0 %v17186_v4 }
 0xcf7   :  { %8324 = vmatpush1.bf16.xpose.msra.mxu1 %v16127_v5 }
 0xcf8   :  { %8325 = vmatprep.subr.bf16.mxu1 %v17186_v4 }
 0xcfa   :  { %8277 = vmatpush1.bf16.xpose.msra.mxu0 %v16137_v2 }
 0xcfb   :  { %8356 = vmatprep.subr.bf16.mxu0 %v17186_v4 }
 0xcff   :  { %8326 = vmatpush1.bf16.xpose.msra.mxu1 %v16137_v2 }
 0xd00   :  { %8405 = vmatprep.subr.bf16.mxu1 %v17186_v4 }
 0xd01   :  { %11029 = vmatmul.mubr.msk.bf16.vlgmr.msra.gmra.mrb[40].mxu0 %vm6550_vm8, %v8254_v55  ;;  %v11703_v55 = vld [vmem:[%s17136_s3 + $0x178] sm:$0xff]  }
 0xd02   :  { %8357 = vmatpush1.bf16.xpose.msra.mxu0 %v16042_v43  ;;  %8388 = vmatprep.mubr.bf16.mxu0 %v17186_v4  ;;  %v16377_v40 = vsel %vm6550_vm8, %v11703_v55, 0 }
 0xd03   :  { %8358 = vmatprep.subr.bf16.mxu0 %v17186_v4 }
 0xd06   :  { %11030 = vmatmul.mubr.msk.bf16.vlgmr.msra.gmra.mrb[40].mxu1 %vm6550_vm8, %v8303_v29  ;;  %v16387_v29 = vsel %vm6550_vm8, %v11704_v27, 0 }
 0xd07   :  { %8406 = vmatpush1.bf16.xpose.msra.mxu1 %v16042_v43  ;;  %8437 = vmatprep.mubr.bf16.mxu1 %v17186_v4 }
 0xd08   :  { %8407 = vmatprep.subr.bf16.mxu1 %v17186_v4 }
 0xd0a   :  { %8359 = vmatpush1.bf16.xpose.msra.mxu0 %v16056_v6 }
 0xd0b   :  { %8360 = vmatprep.subr.bf16.mxu0 %v17186_v4 }
 0xd0f   :  { %8408 = vmatpush1.bf16.xpose.msra.mxu1 %v16056_v6 }
 0xd10   :  { %8409 = vmatprep.subr.bf16.mxu1 %v17186_v4 }
 0xd12   :  { %8361 = vmatpush1.bf16.xpose.msra.mxu0 %v16067_v46 }
 0xd13   :  { %8362 = vmatprep.subr.bf16.mxu0 %v17186_v4 }
 0xd17   :  { %8410 = vmatpush1.bf16.xpose.msra.mxu1 %v16067_v46 }
 0xd18   :  { %8411 = vmatprep.subr.bf16.mxu1 %v17186_v4 }
 0xd1a   :  { %8363 = vmatpush1.bf16.xpose.msra.mxu0 %v16077_v49 }
 0xd1b   :  { %8364 = vmatprep.subr.bf16.mxu0 %v17186_v4 }
 0xd1f   :  { %8412 = vmatpush1.bf16.xpose.msra.mxu1 %v16077_v49 }
 0xd20   :  { %8413 = vmatprep.subr.bf16.mxu1 %v17186_v4 }
 0xd22   :  { %8365 = vmatpush1.bf16.xpose.msra.mxu0 %v16087_v21 }
 0xd23   :  { %8366 = vmatprep.subr.bf16.mxu0 %v17186_v4 }
 0xd27   :  { %8414 = vmatpush1.bf16.xpose.msra.mxu1 %v16087_v21 }
 0xd28   :  { %8415 = vmatprep.subr.bf16.mxu1 %v17186_v4 }
 0xd2a   :  { %8367 = vmatpush1.bf16.xpose.msra.mxu0 %v16097_v62 }
 0xd2b   :  { %8368 = vmatprep.subr.bf16.mxu0 %v17186_v4 }
 0xd2f   :  { %8416 = vmatpush1.bf16.xpose.msra.mxu1 %v16097_v62 }
 0xd30   :  { %8417 = vmatprep.subr.bf16.mxu1 %v17186_v4 }
 0xd32   :  { %8369 = vmatpush1.bf16.xpose.msra.mxu0 %v16107_v53 }
 0xd33   :  { %8370 = vmatprep.subr.bf16.mxu0 %v17186_v4 }
 0xd37   :  { %8418 = vmatpush1.bf16.xpose.msra.mxu1 %v16107_v53 }
 0xd38   :  { %8419 = vmatprep.subr.bf16.mxu1 %v17186_v4 }
 0xd3a   :  { %8371 = vmatpush1.bf16.xpose.msra.mxu0 %v16117_v19 }
 0xd3b   :  { %8372 = vmatprep.subr.bf16.mxu0 %v17186_v4 }
 0xd3f   :  { %8420 = vmatpush1.bf16.xpose.msra.mxu1 %v16117_v19 }
 0xd40   :  { %8421 = vmatprep.subr.bf16.mxu1 %v17186_v4 }
 0xd42   :  { %8373 = vmatpush1.bf16.xpose.msra.mxu0 %v16127_v5 }
 0xd43   :  { %8374 = vmatprep.subr.bf16.mxu0 %v17186_v4 }
 0xd47   :  { %8422 = vmatpush1.bf16.xpose.msra.mxu1 %v16127_v5 }
 0xd48   :  { %8423 = vmatprep.subr.bf16.mxu1 %v17186_v4 }
 0xd4a   :  { %8375 = vmatpush1.bf16.xpose.msra.mxu0 %v16137_v2 }
 0xd4b   :  { %8585 = vmatprep.subr.bf16.mxu0 %v17186_v4 }
 0xd4f   :  { %8424 = vmatpush1.bf16.xpose.msra.mxu1 %v16137_v2 }
 0xd50   :  { %8632 = vmatprep.subr.bf16.mxu1 %v17186_v4 }
 0xd51   :  { %11031 = vmatmul.mubr.msk.bf16.vlgmr.msra.gmra.mrb[44].mxu0 %vm6550_vm8, %v8352_v52  ;;  %v8501_v52 = vrot.slane %v14900_v12, 2  ;;  %v8675_v12 = vrot.slane %v15185_v3, 2  ;;  %v8769_v3 = vrot.slane %v15422_v47, 2  ;;  %v8989_v47 = vld [vmem:[%s17137_s4] sm:$0x3]  ;;  %s11785_s4 = smov 112  }
 0xd52   :  { %8586 = vmatpush1.bf16.xpose.msra.mxu0 %v16297_v33  ;;  %8617 = vmatprep.mubr.bf16.mxu0 %v17186_v4  ;;  %v16536_v61 = vrot.slane %v8989_v47, %v17300_v56 }
 0xd53   :  { %8587 = vmatprep.subr.bf16.mxu0 %v17186_v4 }
 0xd56   :  { %11032 = vmatmul.mubr.msk.bf16.vlgmr.msra.gmra.mrb[44].mxu1 %vm6550_vm8, %v8401_v30  ;;  %v16531_v30 = vrot.slane %v8989_v47, %v17299_v31 }
 0xd57   :  { %8633 = vmatpush1.bf16.xpose.msra.mxu1 %v16297_v33  ;;  %8664 = vmatprep.mubr.bf16.mxu1 %v17186_v4 }
 0xd58   :  { %8634 = vmatprep.subr.bf16.mxu1 %v17186_v4 }
 0xd5a   :  { %8588 = vmatpush1.bf16.xpose.msra.mxu0 %v16316_v8 }
 0xd5b   :  { %8589 = vmatprep.subr.bf16.mxu0 %v17186_v4 }
 0xd5f   :  { %8635 = vmatpush1.bf16.xpose.msra.mxu1 %v16316_v8 }
 0xd60   :  { %8636 = vmatprep.subr.bf16.mxu1 %v17186_v4 }
 0xd62   :  { %8590 = vmatpush1.bf16.xpose.msra.mxu0 %v16327_v9 }
 0xd63   :  { %8591 = vmatprep.subr.bf16.mxu0 %v17186_v4 }
 0xd67   :  { %8637 = vmatpush1.bf16.xpose.msra.mxu1 %v16327_v9 }
 0xd68   :  { %8638 = vmatprep.subr.bf16.mxu1 %v17186_v4 }
 0xd6a   :  { %8592 = vmatpush1.bf16.xpose.msra.mxu0 %v16337_v1 }
 0xd6b   :  { %8593 = vmatprep.subr.bf16.mxu0 %v17186_v4 }
 0xd6f   :  { %8639 = vmatpush1.bf16.xpose.msra.mxu1 %v16337_v1 }
 0xd70   :  { %8640 = vmatprep.subr.bf16.mxu1 %v17186_v4 }
 0xd72   :  { %8594 = vmatpush1.bf16.xpose.msra.mxu0 %v16347_v0 }
 0xd73   :  { %8595 = vmatprep.subr.bf16.mxu0 %v17186_v4 }
 0xd77   :  { %8641 = vmatpush1.bf16.xpose.msra.mxu1 %v16347_v0 }
 0xd78   :  { %8642 = vmatprep.subr.bf16.mxu1 %v17186_v4 }
 0xd7a   :  { %8596 = vmatpush1.bf16.xpose.msra.mxu0 %v16357_v20 }
 0xd7b   :  { %8597 = vmatprep.subr.bf16.mxu0 %v17186_v4 }
 0xd7f   :  { %8643 = vmatpush1.bf16.xpose.msra.mxu1 %v16357_v20 }
 0xd80   :  { %8644 = vmatprep.subr.bf16.mxu1 %v17186_v4 }
 0xd82   :  { %8598 = vmatpush1.bf16.xpose.msra.mxu0 %v16367_v28 }
 0xd83   :  { %8599 = vmatprep.subr.bf16.mxu0 %v17186_v4 }
 0xd87   :  { %8645 = vmatpush1.bf16.xpose.msra.mxu1 %v16367_v28 }
 0xd88   :  { %8646 = vmatprep.subr.bf16.mxu1 %v17186_v4 }
 0xd8a   :  { %8600 = vmatpush1.bf16.xpose.msra.mxu0 %v16377_v40 }
 0xd8b   :  { %8601 = vmatprep.subr.bf16.mxu0 %v17186_v4 }
 0xd8f   :  { %8647 = vmatpush1.bf16.xpose.msra.mxu1 %v16377_v40 }
 0xd90   :  { %8648 = vmatprep.subr.bf16.mxu1 %v17186_v4 }
 0xd92   :  { %8602 = vmatpush1.bf16.xpose.msra.mxu0 %v16387_v29 }
 0xd93   :  { %8603 = vmatprep.subr.bf16.mxu0 %v17186_v4 }
 0xd97   :  { %8649 = vmatpush1.bf16.xpose.msra.mxu1 %v16387_v29 }
 0xd98   :  { %8650 = vmatprep.subr.bf16.mxu1 %v17186_v4 }
 0xd9a   :  { %8604 = vmatpush1.bf16.xpose.msra.mxu0 %v16397_v60 }
 0xd9b   :  { %8679 = vmatprep.subr.bf16.mxu0 %v17186_v4 }
 0xd9f   :  { %8651 = vmatpush1.bf16.xpose.msra.mxu1 %v16397_v60 }
 0xda0   :  { %8726 = vmatprep.subr.bf16.mxu1 %v17186_v4 }
 0xda1   :  { %11063 = vmatmul.mubr.msk.bf16.vlgmr.msra.gmra.mrb[32].mxu0 %vm6550_vm8, %v8501_v52 }
 0xda2   :  { %8680 = vmatpush1.bf16.xpose.msra.mxu0 %v16297_v33  ;;  %8711 = vmatprep.mubr.bf16.mxu0 %v17186_v4 }
 0xda3   :  { %8681 = vmatprep.subr.bf16.mxu0 %v17186_v4 }
 0xda6   :  { %11064 = vmatmul.mubr.msk.bf16.vlgmr.msra.gmra.mrb[32].mxu1 %vm6550_vm8, %v8628_v13 }
 0xda7   :  { %8727 = vmatpush1.bf16.xpose.msra.mxu1 %v16297_v33  ;;  %8758 = vmatprep.mubr.bf16.mxu1 %v17186_v4 }
 0xda8   :  { %8728 = vmatprep.subr.bf16.mxu1 %v17186_v4 }
 0xdaa   :  { %8682 = vmatpush1.bf16.xpose.msra.mxu0 %v16316_v8 }
 0xdab   :  { %8683 = vmatprep.subr.bf16.mxu0 %v17186_v4 }
 0xdaf   :  { %8729 = vmatpush1.bf16.xpose.msra.mxu1 %v16316_v8 }
 0xdb0   :  { %8730 = vmatprep.subr.bf16.mxu1 %v17186_v4 }
 0xdb2   :  { %8684 = vmatpush1.bf16.xpose.msra.mxu0 %v16327_v9 }
 0xdb3   :  { %8685 = vmatprep.subr.bf16.mxu0 %v17186_v4 }
 0xdb7   :  { %8731 = vmatpush1.bf16.xpose.msra.mxu1 %v16327_v9 }
 0xdb8   :  { %8732 = vmatprep.subr.bf16.mxu1 %v17186_v4 }
 0xdba   :  { %8686 = vmatpush1.bf16.xpose.msra.mxu0 %v16337_v1 }
 0xdbb   :  { %8687 = vmatprep.subr.bf16.mxu0 %v17186_v4 }
 0xdbf   :  { %8733 = vmatpush1.bf16.xpose.msra.mxu1 %v16337_v1 }
 0xdc0   :  { %8734 = vmatprep.subr.bf16.mxu1 %v17186_v4 }
 0xdc2   :  { %8688 = vmatpush1.bf16.xpose.msra.mxu0 %v16347_v0 }
 0xdc3   :  { %8689 = vmatprep.subr.bf16.mxu0 %v17186_v4 }
 0xdc7   :  { %8735 = vmatpush1.bf16.xpose.msra.mxu1 %v16347_v0 }
 0xdc8   :  { %8736 = vmatprep.subr.bf16.mxu1 %v17186_v4 }
 0xdca   :  { %8690 = vmatpush1.bf16.xpose.msra.mxu0 %v16357_v20 }
 0xdcb   :  { %8691 = vmatprep.subr.bf16.mxu0 %v17186_v4 }
 0xdcf   :  { %8737 = vmatpush1.bf16.xpose.msra.mxu1 %v16357_v20 }
 0xdd0   :  { %8738 = vmatprep.subr.bf16.mxu1 %v17186_v4 }
 0xdd2   :  { %8692 = vmatpush1.bf16.xpose.msra.mxu0 %v16367_v28 }
 0xdd3   :  { %8693 = vmatprep.subr.bf16.mxu0 %v17186_v4 }
 0xdd7   :  { %8739 = vmatpush1.bf16.xpose.msra.mxu1 %v16367_v28 }
 0xdd8   :  { %8740 = vmatprep.subr.bf16.mxu1 %v17186_v4 }
 0xdda   :  { %8694 = vmatpush1.bf16.xpose.msra.mxu0 %v16377_v40 }
 0xddb   :  { %8695 = vmatprep.subr.bf16.mxu0 %v17186_v4 }
 0xddf   :  { %8741 = vmatpush1.bf16.xpose.msra.mxu1 %v16377_v40 }
 0xde0   :  { %8742 = vmatprep.subr.bf16.mxu1 %v17186_v4 }
 0xde2   :  { %8696 = vmatpush1.bf16.xpose.msra.mxu0 %v16387_v29 }
 0xde3   :  { %8697 = vmatprep.subr.bf16.mxu0 %v17186_v4 }
 0xde7   :  { %8743 = vmatpush1.bf16.xpose.msra.mxu1 %v16387_v29 }
 0xde8   :  { %8744 = vmatprep.subr.bf16.mxu1 %v17186_v4 }
 0xdea   :  { %8698 = vmatpush1.bf16.xpose.msra.mxu0 %v16397_v60 }
 0xdeb   :  { %8773 = vmatprep.subr.bf16.mxu0 %v17186_v4 }
 0xdef   :  { %8745 = vmatpush1.bf16.xpose.msra.mxu1 %v16397_v60 }
 0xdf0   :  { %8820 = vmatprep.subr.bf16.mxu1 %v17186_v4 }
 0xdf1   :  { %11065 = vmatmul.mubr.msk.bf16.vlgmr.msra.gmra.mrb[36].mxu0 %vm6550_vm8, %v8675_v12 }
 0xdf2   :  { %8774 = vmatpush1.bf16.xpose.msra.mxu0 %v16297_v33  ;;  %8805 = vmatprep.mubr.bf16.mxu0 %v17186_v4 }
 0xdf3   :  { %8775 = vmatprep.subr.bf16.mxu0 %v17186_v4 }
 0xdf6   :  { %11066 = vmatmul.mubr.msk.bf16.vlgmr.msra.gmra.mrb[36].mxu1 %vm6550_vm8, %v8722_v35 }
 0xdf7   :  { %8821 = vmatpush1.bf16.xpose.msra.mxu1 %v16297_v33  ;;  %8852 = vmatprep.mubr.bf16.mxu1 %v17186_v4 }
 0xdf8   :  { %8822 = vmatprep.subr.bf16.mxu1 %v17186_v4 }
 0xdfa   :  { %8776 = vmatpush1.bf16.xpose.msra.mxu0 %v16316_v8 }
 0xdfb   :  { %8777 = vmatprep.subr.bf16.mxu0 %v17186_v4 }
 0xdff   :  { %8823 = vmatpush1.bf16.xpose.msra.mxu1 %v16316_v8 }
 0xe00   :  { %8824 = vmatprep.subr.bf16.mxu1 %v17186_v4 }
 0xe02   :  { %8778 = vmatpush1.bf16.xpose.msra.mxu0 %v16327_v9 }
 0xe03   :  { %8779 = vmatprep.subr.bf16.mxu0 %v17186_v4 }
 0xe07   :  { %8825 = vmatpush1.bf16.xpose.msra.mxu1 %v16327_v9 }
 0xe08   :  { %8826 = vmatprep.subr.bf16.mxu1 %v17186_v4 }
 0xe0a   :  { %8780 = vmatpush1.bf16.xpose.msra.mxu0 %v16337_v1 }
 0xe0b   :  { %8781 = vmatprep.subr.bf16.mxu0 %v17186_v4 }
 0xe0f   :  { %8827 = vmatpush1.bf16.xpose.msra.mxu1 %v16337_v1 }
 0xe10   :  { %8828 = vmatprep.subr.bf16.mxu1 %v17186_v4 }
 0xe12   :  { %8782 = vmatpush1.bf16.xpose.msra.mxu0 %v16347_v0 }
 0xe13   :  { %8783 = vmatprep.subr.bf16.mxu0 %v17186_v4 }
 0xe17   :  { %8829 = vmatpush1.bf16.xpose.msra.mxu1 %v16347_v0 }
 0xe18   :  { %8830 = vmatprep.subr.bf16.mxu1 %v17186_v4 }
 0xe1a   :  { %8784 = vmatpush1.bf16.xpose.msra.mxu0 %v16357_v20 }
 0xe1b   :  { %8785 = vmatprep.subr.bf16.mxu0 %v17186_v4 }
 0xe1f   :  { %8831 = vmatpush1.bf16.xpose.msra.mxu1 %v16357_v20 }
 0xe20   :  { %8832 = vmatprep.subr.bf16.mxu1 %v17186_v4 }
 0xe22   :  { %8786 = vmatpush1.bf16.xpose.msra.mxu0 %v16367_v28 }
 0xe23   :  { %8787 = vmatprep.subr.bf16.mxu0 %v17186_v4 }
 0xe27   :  { %8833 = vmatpush1.bf16.xpose.msra.mxu1 %v16367_v28 }
 0xe28   :  { %8834 = vmatprep.subr.bf16.mxu1 %v17186_v4 }
 0xe2a   :  { %8788 = vmatpush1.bf16.xpose.msra.mxu0 %v16377_v40 }
 0xe2b   :  { %8789 = vmatprep.subr.bf16.mxu0 %v17186_v4 }
 0xe2f   :  { %8835 = vmatpush1.bf16.xpose.msra.mxu1 %v16377_v40 }
 0xe30   :  { %8836 = vmatprep.subr.bf16.mxu1 %v17186_v4 }
 0xe32   :  { %8790 = vmatpush1.bf16.xpose.msra.mxu0 %v16387_v29 }
 0xe33   :  { %8791 = vmatprep.subr.bf16.mxu0 %v17186_v4 }
 0xe37   :  { %8837 = vmatpush1.bf16.xpose.msra.mxu1 %v16387_v29 }
 0xe38   :  { %8838 = vmatprep.subr.bf16.mxu1 %v17186_v4 }
 0xe3a   :  { %8792 = vmatpush1.bf16.xpose.msra.mxu0 %v16397_v60 }
 0xe3b   :  { %8867 = vmatprep.subr.bf16.mxu0 %v17186_v4 }
 0xe3f   :  { %8839 = vmatpush1.bf16.xpose.msra.mxu1 %v16397_v60 }
 0xe40   :  { %8914 = vmatprep.subr.bf16.mxu1 %v17186_v4 }
 0xe41   :  { %11067 = vmatmul.mubr.msk.bf16.vlgmr.msra.gmra.mrb[40].mxu0 %vm6550_vm8, %v8769_v3 }
 0xe42   :  { %8868 = vmatpush1.bf16.xpose.msra.mxu0 %v16297_v33  ;;  %8899 = vmatprep.mubr.bf16.mxu0 %v17186_v4 }
 0xe43   :  { %8869 = vmatprep.subr.bf16.mxu0 %v17186_v4 }
 0xe46   :  { %11068 = vmatmul.mubr.msk.bf16.vlgmr.msra.gmra.mrb[40].mxu1 %vm6550_vm8, %v8816_v57 }
 0xe47   :  { %8915 = vmatpush1.bf16.xpose.msra.mxu1 %v16297_v33  ;;  %8946 = vmatprep.mubr.bf16.mxu1 %v17186_v4 }
 0xe48   :  { %8916 = vmatprep.subr.bf16.mxu1 %v17186_v4 }
 0xe4a   :  { %8870 = vmatpush1.bf16.xpose.msra.mxu0 %v16316_v8 }
 0xe4b   :  { %8871 = vmatprep.subr.bf16.mxu0 %v17186_v4 }
 0xe4f   :  { %8917 = vmatpush1.bf16.xpose.msra.mxu1 %v16316_v8 }
 0xe50   :  { %8918 = vmatprep.subr.bf16.mxu1 %v17186_v4 }
 0xe52   :  { %8872 = vmatpush1.bf16.xpose.msra.mxu0 %v16327_v9 }
 0xe53   :  { %8873 = vmatprep.subr.bf16.mxu0 %v17186_v4 }
 0xe57   :  { %8919 = vmatpush1.bf16.xpose.msra.mxu1 %v16327_v9 }
 0xe58   :  { %8920 = vmatprep.subr.bf16.mxu1 %v17186_v4 }
 0xe5a   :  { %8874 = vmatpush1.bf16.xpose.msra.mxu0 %v16337_v1 }
 0xe5b   :  { %8875 = vmatprep.subr.bf16.mxu0 %v17186_v4 }
 0xe5f   :  { %8921 = vmatpush1.bf16.xpose.msra.mxu1 %v16337_v1 }
 0xe60   :  { %8922 = vmatprep.subr.bf16.mxu1 %v17186_v4 }
 0xe62   :  { %8876 = vmatpush1.bf16.xpose.msra.mxu0 %v16347_v0 }
 0xe63   :  { %8877 = vmatprep.subr.bf16.mxu0 %v17186_v4 }
 0xe67   :  { %8923 = vmatpush1.bf16.xpose.msra.mxu1 %v16347_v0 }
 0xe68   :  { %8924 = vmatprep.subr.bf16.mxu1 %v17186_v4 }
 0xe6a   :  { %8878 = vmatpush1.bf16.xpose.msra.mxu0 %v16357_v20 }
 0xe6b   :  { %8879 = vmatprep.subr.bf16.mxu0 %v17186_v4 }
 0xe6f   :  { %8925 = vmatpush1.bf16.xpose.msra.mxu1 %v16357_v20 }
 0xe70   :  { %8926 = vmatprep.subr.bf16.mxu1 %v17186_v4 }
 0xe72   :  { %8880 = vmatpush1.bf16.xpose.msra.mxu0 %v16367_v28 }
 0xe73   :  { %8881 = vmatprep.subr.bf16.mxu0 %v17186_v4 }
 0xe74   :  { %v8619_v50 = vpop.f32.mrb[32].mxu0 }
 0xe75   :  { %v9001_v48 = vadd.f32 %v16531_v30, %v8619_v50  ;;  %v8621_v36 = vpop.f32.mrb[33].mxu0 }
 0xe76   :  { %v9002_v22 = vadd.f32 %v16536_v61, %v8621_v36  ;;  %v8623_v44 = vpop.f32.mrb[34].mxu0 }
 0xe77   :  { %v9033_v59 = vmax.f32 %v9001_v48, 0.0  ;;  %v9003_v42 = vadd.f32 %v16531_v30, %v8623_v44  ;;  %v8625_v34 = vpop.f32.mrb[35].mxu0  ;;  %8927 = vmatpush1.bf16.xpose.msra.mxu1 %v16367_v28 }
 0xe78   :  { %v9034_v43 = vmax.f32 %v9002_v22, 0.0  ;;  %v9004_v15 = vadd.f32 %v16536_v61, %v8625_v34  ;;  %8928 = vmatprep.subr.bf16.mxu1 %v17186_v4 }
 0xe79   :  { %v9035_v41 = vmax.f32 %v9003_v42, 0.0  ;;  %v8666_v6 = vpop.f32.mrb[32].mxu1  ;;  %v9097_v49 = vrot.slane %v9033_v59, 1 }
 0xe7a   :  { %v9036_v25 = vmax.f32 %v9004_v15, 0.0  ;;  %v9005_v46 = vadd.f32 %v16531_v30, %v8666_v6  ;;  %v8668_v18 = vpop.f32.mrb[33].mxu1  ;;  %8882 = vmatpush1.bf16.xpose.msra.mxu0 %v16377_v40  ;;  %v9100_v62 = vrot.slane %v9034_v43, 1  ;;  %v8863_v6 = vrot.slane %v15532_v14, 2 }
 0xe7b   :  { %v9098_v10 = vrot.slane %v9035_v41, 1  ;;  %v9006_v21 = vadd.f32 %v16536_v61, %v8668_v18  ;;  %v8670_v16 = vpop.f32.mrb[34].mxu1  ;;  %8883 = vmatprep.subr.bf16.mxu0 %v17186_v4 }
 0xe7c   :  { %v9101_v24 = vrot.slane %v9036_v25, 1  ;;  %v9037_v53 = vmax.f32 %v9005_v46, 0.0  ;;  %v9007_v54 = vadd.f32 %v16531_v30, %v8670_v16  ;;  %v8672_v19 = vpop.f32.mrb[35].mxu1  ;;  %v8910_v46 = vrot.slane %v15543_v7, 2 }
 0xe7d   :  { %v9099_v39 = vsel %vm17301_vm2, %v9097_v49, %v9098_v10  ;;  %v9179_v5 = vmax.f32 %v9035_v41, %v9098_v10  ;;  %v9008_v32 = vadd.f32 %v16536_v61, %v8672_v19  ;;  %v9038_v26 = vmax.f32 %v9006_v21, 0.0 }
 0xe7e   :  { %v9177_v2 = vmax.f32 %v9033_v59, %v9099_v39  ;;  %v9102_v11 = vsel %vm17302_vm3, %v9100_v62, %v9101_v24  ;;  %v9180_v33 = vmax.f32 %v9036_v25, %v9101_v24  ;;  %v9039_v58 = vmax.f32 %v9007_v54, 0.0  ;;  %vm17319_vm3 = vmmov %vm17310_vm0 }
 0xe7f   :  { %v9178_v8 = vmax.f32 %v9034_v43, %v9102_v11  ;;  %v9040_v9 = vmax.f32 %v9008_v32, 0.0  ;;  %8929 = vmatpush1.bf16.xpose.msra.mxu1 %v16377_v40  ;;  %v9103_v1 = vrot.slane %v9037_v53, 1  ;;  %v9106_v27 = vrot.slane %v9038_v26, 1 }
 0xe80   :  { %v9626_v23 = vcombine.low %v9179_v5, %v9180_v33  ;;  %8930 = vmatprep.subr.bf16.mxu1 %v17186_v4  ;;  %v9104_v63 = vrot.slane %v9039_v58, 1 }
 0xe81   :  { %v9225_v51 = vcombine.low %v9177_v2, %v9178_v8  ;;  %v9418_v0 = vcombine.high %v9177_v2, %v9178_v8  ;;  %v9107_v20 = vrot.slane %v9040_v9, 1 }
 0xe82   :  { %v9633_v55 = vrot.slane %v9626_v23, %v13605_v17  ;;  %8884 = vmatpush1.bf16.xpose.msra.mxu0 %v16387_v29  ;;  %v9105_v52 = vsel %vm17306_vm5, %v9103_v1, %v9104_v63  ;;  %v9183_v13 = vmax.f32 %v9039_v58, %v9104_v63  ;;  %vm9875_vm5 = vcmask 258176  }
 0xe83   :  { %v9232_v40 = vrot.slane %v9225_v51, %v13605_v17  ;;  %v9425_v45 = vrot.slane %v9418_v0, %v13605_v17  ;;  %8885 = vmatprep.subr.bf16.mxu0 %v17186_v4  ;;  %v9181_v35 = vmax.f32 %v9037_v53, %v9105_v52  ;;  %v9108_v3 = vsel %vm17307_vm15, %v9106_v27, %v9107_v20 }
 0xe84   :  { %v9640_v12 = vrot.slane %v9633_v55, %v13605_v17  ;;  %v9184_v57 = vmax.f32 %v9040_v9, %v9107_v20  ;;  %v9182_v31 = vmax.f32 %v9038_v26, %v9108_v3  ;;  %vm9941_vm15 = vcmask 520576  }
 0xe85   :  { %v9239_v47 = vrot.slane %v9232_v40, %v13605_v17  ;;  %v9432_v38 = vrot.slane %v9425_v45, %v13605_v17 }
 0xe86   :  { %9755 = vst.msk [vmem:[#allocation4 + $0x4] ss:$8 sm:$0x3] %vm16556_vm4, %v9640_v12  ;;  %v9641_v56 = vcombine.low %v9183_v13, %v9184_v57  ;;  %v9240_v36 = vcombine.low %v9181_v35, %v9182_v31  ;;  %v9433_v22 = vcombine.high %v9181_v35, %v9182_v31 }
 0xe87   :  { %9355 = vst.msk [vmem:[#allocation4] ss:$8 sm:$0x3] %vm16556_vm4, %v9239_v47  ;;  %v9378_v50 = vcombine.high %v9239_v47, %v9239_v47  ;;  %9547 = vst.msk [vmem:[#allocation4 + $0x2] ss:$8 sm:$0x3] %vm16556_vm4, %v9432_v38  ;;  %v9570_v48 = vcombine.high %v9432_v38, %v9432_v38  ;;  %8931 = vmatpush1.bf16.xpose.msra.mxu1 %v16387_v29 }
 0xe88   :  { %v9648_v44 = vrot.slane %v9641_v56, %v13605_v17  ;;  %8932 = vmatprep.subr.bf16.mxu1 %v17186_v4  ;;  %v9247_v59 = vrot.slane %v9240_v36, %v13605_v17  ;;  %v9440_v42 = vrot.slane %v9433_v22, %v13605_v17 }
 0xe89   :  { %9395 = vst.msk [vmem:[#allocation4 + $0x1] ss:$8 sm:$0x3] %vm16556_vm4, %v9378_v50  ;;  %9587 = vst.msk [vmem:[#allocation4 + $0x3] ss:$8 sm:$0x3] %vm16556_vm4, %v9570_v48 }
 0xe8a   :  { %v9655_v34 = vrot.slane %v9648_v44, %v13605_v17  ;;  %8886 = vmatpush1.bf16.xpose.msra.mxu0 %v16397_v60  ;;  %v9254_v29 = vrot.slane %v9247_v59, %v13605_v17  ;;  %v9447_v43 = vrot.slane %v9440_v42, %v13605_v17 }
 0xe8c   :  { %9758 = vst.msk [vmem:[#allocation4 + $0x14] ss:$8 sm:$0x3] %vm16556_vm4, %v9655_v34  ;;  %9358 = vst.msk [vmem:[#allocation4 + $0x10] ss:$8 sm:$0x3] %vm16556_vm4, %v9254_v29  ;;  %v9379_v15 = vcombine.high %v9254_v29, %v9254_v29  ;;  %v9571_v41 = vcombine.high %v9447_v43, %v9447_v43 }
 0xe8d   :  { %9550 = vst.msk [vmem:[#allocation4 + $0x12] ss:$8 sm:$0x3] %vm16556_vm4, %v9447_v43 }
 0xe8e   :  { %9398 = vst.msk [vmem:[#allocation4 + $0x11] ss:$8 sm:$0x3] %vm16556_vm4, %v9379_v15  ;;  %9590 = vst.msk [vmem:[#allocation4 + $0x13] ss:$8 sm:$0x3] %vm16556_vm4, %v9571_v41 }
 0xe8f   :  { %8933 = vmatpush1.bf16.xpose.msra.mxu1 %v16397_v60 }
 0xe90   :  { %v16601_v25 = vld [vmem:[#allocation4] sm:$0x1f]  ;;  %10411 = vmatprep.subr.bf16.mxu1 %v17186_v4  ;;  %v16613_v14 = vld [vmem:[#allocation4 + $0x8] sm:$0x1f] }
 0xe91   :  { %11069 = vmatmul.mubr.msk.bf16.vlgmr.msra.gmra.mrb[44].mxu0 %vm6550_vm8, %v8863_v6  ;;  %9802 = vrot.lane.b32.xlu0 %v16601_v25, %s11785_s4 }
 0xe95   :  { %v16609_v18 = vld [vmem:[#allocation4 + $0x10] sm:$0x1f]  ;;  %v16617_v60 = vld [vmem:[#allocation4 + $0x18] sm:$0x1f] }
 0xe96   :  { %11070 = vmatmul.mubr.msk.bf16.vlgmr.msra.gmra.mrb[44].mxu1 %vm6550_vm8, %v8910_v46  ;;  %9804 = vrot.lane.b32.xlu1 %v16609_v18, %s11785_s4  ;;  %vm17308_vm8 = vmmov %vm17301_vm2 }
 0xe97   :  { %vm17318_vm2 = vmmov %vm17310_vm0 }
 0xe9a   :  { %9958 = vrot.lane.b32.xlu1 %v16613_v14, %s11785_s4 }
 0xe9e   :  { %9960 = vrot.lane.b32.xlu1 %v16617_v60, %s11785_s4 }
 0xec4   :  { %v8713_v49 = vpop.f32.mrb[36].mxu0 }
 0xec5   :  { %v9009_v7 = vadd.f32 %v16531_v30, %v8713_v49  ;;  %v8715_v10 = vpop.f32.mrb[37].mxu0 }
 0xec6   :  { %v9010_v21 = vadd.f32 %v16536_v61, %v8715_v10  ;;  %v8717_v16 = vpop.f32.mrb[38].mxu0 }
 0xec7   :  { %v9041_v62 = vmax.f32 %v9009_v7, 0.0  ;;  %v9011_v24 = vadd.f32 %v16531_v30, %v8717_v16  ;;  %v8719_v53 = vpop.f32.mrb[39].mxu0 }
 0xec8   :  { %v9042_v54 = vmax.f32 %v9010_v21, 0.0  ;;  %v9012_v19 = vadd.f32 %v16536_v61, %v8719_v53 }
 0xec9   :  { %v9043_v39 = vmax.f32 %v9011_v24, 0.0  ;;  %v8760_v5 = vpop.f32.mrb[36].mxu1  ;;  %v9109_v33 = vrot.slane %v9041_v62, 1 }
 0xeca   :  { %v9044_v32 = vmax.f32 %v9012_v19, 0.0  ;;  %v9013_v2 = vadd.f32 %v16531_v30, %v8760_v5  ;;  %v8762_v11 = vpop.f32.mrb[37].mxu1  ;;  %v9112_v9 = vrot.slane %v9042_v54, 1 }
 0xecb   :  { %v9110_v26 = vrot.slane %v9043_v39, 1  ;;  %v9014_v8 = vadd.f32 %v16536_v61, %v8762_v11  ;;  %v8764_v58 = vpop.f32.mrb[38].mxu1 }
 0xecc   :  { %v9113_v23 = vrot.slane %v9044_v32, 1  ;;  %v9045_v1 = vmax.f32 %v9013_v2, 0.0  ;;  %v9015_v51 = vadd.f32 %v16531_v30, %v8764_v58  ;;  %v8766_v0 = vpop.f32.mrb[39].mxu1 }
 0xecd   :  { %v9111_v63 = vsel %vm17308_vm8, %v9109_v33, %v9110_v26  ;;  %v9187_v20 = vmax.f32 %v9043_v39, %v9110_v26  ;;  %v9016_v37 = vadd.f32 %v16536_v61, %v8766_v0  ;;  %v9046_v45 = vmax.f32 %v9014_v8, 0.0 }
 0xece   :  { %v9185_v55 = vmax.f32 %v9041_v62, %v9111_v63  ;;  %v9114_v27 = vsel %vm17309_vm14, %v9112_v9, %v9113_v23  ;;  %v9188_v40 = vmax.f32 %v9044_v32, %v9113_v23  ;;  %v9047_v13 = vmax.f32 %v9015_v51, 0.0 }
 0xecf   :  { %v9186_v52 = vmax.f32 %v9042_v54, %v9114_v27  ;;  %v9048_v12 = vmax.f32 %v9016_v37, 0.0  ;;  %v9115_v3 = vrot.slane %v9045_v1, 1  ;;  %v9118_v50 = vrot.slane %v9046_v45, 1 }
 0xed0   :  { %v9656_v35 = vcombine.low %v9187_v20, %v9188_v40  ;;  %v9116_v38 = vrot.slane %v9047_v13, 1  ;;  %vm10022_vm8 = vcmask 651776   ;;  %vm10048_vm14 = vcmask 1041409  }
 0xed1   :  { %v9255_v57 = vcombine.low %v9185_v55, %v9186_v52  ;;  %v9448_v47 = vcombine.high %v9185_v55, %v9186_v52  ;;  %v9119_v31 = vrot.slane %v9048_v12, 1 }
 0xed2   :  { %v9663_v56 = vrot.slane %v9656_v35, %v13605_v17  ;;  %v9117_v22 = vsel %vm17310_vm0, %v9115_v3, %v9116_v38  ;;  %v9191_v44 = vmax.f32 %v9047_v13, %v9116_v38  ;;  %vm10051_vm0 = vcmask 1042434  }
 0xed3   :  { %v9262_v48 = vrot.slane %v9255_v57, %v13605_v17  ;;  %v9455_v36 = vrot.slane %v9448_v47, %v13605_v17  ;;  %v9189_v42 = vmax.f32 %v9045_v1, %v9117_v22  ;;  %v9120_v34 = vsel %vm17311_vm9, %v9118_v50, %v9119_v31 }
 0xed4   :  { %v9670_v59 = vrot.slane %v9663_v56, %v13605_v17  ;;  %v9192_v29 = vmax.f32 %v9048_v12, %v9119_v31  ;;  %v9190_v41 = vmax.f32 %v9046_v45, %v9120_v34  ;;  %vm10054_vm9 = vcmask 1043459  }
 0xed5   :  { %v9269_v43 = vrot.slane %v9262_v48, %v13605_v17  ;;  %v9462_v15 = vrot.slane %v9455_v36, %v13605_v17 }
 0xed6   :  { %9761 = vst.msk [vmem:[#allocation4 + $0x24] ss:$8 sm:$0x3] %vm16556_vm4, %v9670_v59  ;;  %v9671_v6 = vcombine.low %v9191_v44, %v9192_v29  ;;  %v9270_v7 = vcombine.low %v9189_v42, %v9190_v41  ;;  %v9463_v10 = vcombine.high %v9189_v42, %v9190_v41 }
 0xed7   :  { %9361 = vst.msk [vmem:[#allocation4 + $0x20] ss:$8 sm:$0x3] %vm16556_vm4, %v9269_v43  ;;  %v9380_v46 = vcombine.high %v9269_v43, %v9269_v43  ;;  %9553 = vst.msk [vmem:[#allocation4 + $0x22] ss:$8 sm:$0x3] %vm16556_vm4, %v9462_v15  ;;  %v9572_v49 = vcombine.high %v9462_v15, %v9462_v15 }
 0xed8   :  { %v9678_v21 = vrot.slane %v9671_v6, %v13605_v17  ;;  %v9277_v16 = vrot.slane %v9270_v7, %v13605_v17  ;;  %v9470_v62 = vrot.slane %v9463_v10, %v13605_v17 }
 0xed9   :  { %9401 = vst.msk [vmem:[#allocation4 + $0x21] ss:$8 sm:$0x3] %vm16556_vm4, %v9380_v46  ;;  %9593 = vst.msk [vmem:[#allocation4 + $0x23] ss:$8 sm:$0x3] %vm16556_vm4, %v9572_v49 }
 0xeda   :  { %v9685_v24 = vrot.slane %v9678_v21, %v13605_v17  ;;  %v9284_v53 = vrot.slane %v9277_v16, %v13605_v17  ;;  %v9477_v54 = vrot.slane %v9470_v62, %v13605_v17 }
 0xedc   :  { %9764 = vst.msk [vmem:[#allocation4 + $0x34] ss:$8 sm:$0x3] %vm16556_vm4, %v9685_v24  ;;  %9364 = vst.msk [vmem:[#allocation4 + $0x30] ss:$8 sm:$0x3] %vm16556_vm4, %v9284_v53  ;;  %v9381_v19 = vcombine.high %v9284_v53, %v9284_v53  ;;  %v9573_v39 = vcombine.high %v9477_v54, %v9477_v54 }
 0xedd   :  { %9556 = vst.msk [vmem:[#allocation4 + $0x32] ss:$8 sm:$0x3] %vm16556_vm4, %v9477_v54 }
 0xede   :  { %9404 = vst.msk [vmem:[#allocation4 + $0x31] ss:$8 sm:$0x3] %vm16556_vm4, %v9381_v19  ;;  %9596 = vst.msk [vmem:[#allocation4 + $0x33] ss:$8 sm:$0x3] %vm16556_vm4, %v9573_v39 }
 0xee0   :  { %v16665_v5 = vld [vmem:[#allocation4 + $0x20] sm:$0x1f]  ;;  %v16669_v32 = vld [vmem:[#allocation4 + $0x28] sm:$0x1f] }
 0xee1   :  { %9806 = vrot.lane.b32.xlu0 %v16665_v5, %s11785_s4 }
 0xee5   :  { %9962 = vrot.lane.b32.xlu0 %v16669_v32, %s11785_s4  ;;  %v16673_v2 = vld [vmem:[#allocation4 + $0x30] sm:$0x1f]  ;;  %v16677_v11 = vld [vmem:[#allocation4 + $0x38] sm:$0x1f] }
 0xee6   :  { %9808 = vrot.lane.b32.xlu1 %v16673_v2, %s11785_s4 }
 0xee9   :  { %9964 = vrot.lane.b32.xlu0 %v16677_v11, %s11785_s4 }
 0xf03   :  { %v9803_v33 = vpop.permute.xlu0 %9802 }
 0xf04   :  { %v16682_v26 = vmax.f32 %v16601_v25, %v9803_v33 }
 0xf06   :  { %9851 = vrot.lane.b32.xlu0 %v16682_v26, %s11785_s4  ;;  %9835 = vst.msk [vmem:[#allocation5] sm:$0x1f] %vm9834_vm6, %v16682_v26 }
 0xf08   :  { %v9805_v8 = vpop.permute.xlu1 %9804 }
 0xf09   :  { %v16689_v58 = vmax.f32 %v16609_v18, %v9805_v8 }
 0xf0b   :  { %9853 = vrot.lane.b32.xlu1 %v16689_v58, %s11785_s4  ;;  %9836 = vst.msk [vmem:[#allocation5 + $0x8] sm:$0x1f] %vm9834_vm6, %v16689_v58 }
 0xf14   :  { %v8807_v9 = vpop.f32.mrb[40].mxu0 }
 0xf15   :  { %v9017_v25 = vadd.f32 %v16531_v30, %v8807_v9  ;;  %v8809_v23 = vpop.f32.mrb[41].mxu0 }
 0xf16   :  { %v9018_v1 = vadd.f32 %v16536_v61, %v8809_v23  ;;  %v8811_v51 = vpop.f32.mrb[42].mxu0 }
 0xf17   :  { %v9049_v0 = vmax.f32 %v9017_v25, 0.0  ;;  %v9019_v63 = vadd.f32 %v16531_v30, %v8811_v51  ;;  %v8813_v20 = vpop.f32.mrb[43].mxu0 }
 0xf18   :  { %v9050_v37 = vmax.f32 %v9018_v1, 0.0  ;;  %v9020_v18 = vadd.f32 %v16536_v61, %v8813_v20 }
 0xf19   :  { %v9051_v55 = vmax.f32 %v9019_v63, 0.0  ;;  %v8854_v27 = vpop.f32.mrb[40].mxu1  ;;  %v9121_v13 = vrot.slane %v9049_v0, 1 }
 0xf1a   :  { %v9052_v40 = vmax.f32 %v9020_v18, 0.0  ;;  %v9021_v45 = vadd.f32 %v16531_v30, %v8854_v27  ;;  %v8856_v52 = vpop.f32.mrb[41].mxu1  ;;  %v9124_v57 = vrot.slane %v9050_v37, 1 }
 0xf1b   :  { %v9122_v12 = vrot.slane %v9051_v55, 1  ;;  %v9022_v35 = vadd.f32 %v16536_v61, %v8856_v52  ;;  %v8858_v3 = vpop.f32.mrb[42].mxu1 }
 0xf1c   :  { %v9125_v47 = vrot.slane %v9052_v40, 1  ;;  %v9053_v38 = vmax.f32 %v9021_v45, 0.0  ;;  %v9023_v31 = vadd.f32 %v16531_v30, %v8858_v3  ;;  %v8860_v56 = vpop.f32.mrb[43].mxu1 }
 0xf1d   :  { %v9123_v50 = vsel %vm17312_vm7, %v9121_v13, %v9122_v12  ;;  %v9195_v48 = vmax.f32 %v9051_v55, %v9122_v12  ;;  %v9024_v36 = vadd.f32 %v16536_v61, %v8860_v56  ;;  %v9054_v42 = vmax.f32 %v9022_v35, 0.0 }
 0xf1e   :  { %v9193_v22 = vmax.f32 %v9049_v0, %v9123_v50  ;;  %v9126_v44 = vsel %vm17313_vm10, %v9124_v57, %v9125_v47  ;;  %v9196_v59 = vmax.f32 %v9052_v40, %v9125_v47  ;;  %v9055_v29 = vmax.f32 %v9023_v31, 0.0  ;;  %v16755_v57 = vpop.permute.xlu1 %9958 }
 0xf1f   :  { %v9194_v34 = vmax.f32 %v9050_v37, %v9126_v44  ;;  %v9056_v43 = vmax.f32 %v9024_v36, 0.0  ;;  %v9127_v41 = vrot.slane %v9053_v38, 1  ;;  %v9130_v21 = vrot.slane %v9054_v42, 1 }
 0xf20   :  { %v9686_v15 = vcombine.low %v9195_v48, %v9196_v59  ;;  %v9128_v49 = vrot.slane %v9055_v29, 1  ;;  %vm10060_vm7 = vcmask 1045509   ;;  %vm10063_vm10 = vcmask 1046534  }
 0xf21   :  { %v9285_v6 = vcombine.low %v9193_v22, %v9194_v34  ;;  %v9478_v46 = vcombine.high %v9193_v22, %v9194_v34  ;;  %v9131_v7 = vrot.slane %v9056_v43, 1 }
 0xf22   :  { %v9693_v10 = vrot.slane %v9686_v15, %v13605_v17  ;;  %v9129_v24 = vsel %vm17314_vm11, %v9127_v41, %v9128_v49  ;;  %v9199_v53 = vmax.f32 %v9055_v29, %v9128_v49  ;;  %v16760_v31 = vpop.permute.xlu1 %9960  ;;  %vm10066_vm11 = vcmask 1047559  }
 0xf23   :  { %v9292_v16 = vrot.slane %v9285_v6, %v13605_v17  ;;  %v9485_v62 = vrot.slane %v9478_v46, %v13605_v17  ;;  %v9197_v19 = vmax.f32 %v9053_v38, %v9129_v24  ;;  %v9132_v39 = vsel %vm17315_vm13, %v9130_v21, %v9131_v7 }
 0xf24   :  { %v9700_v54 = vrot.slane %v9693_v10, %v13605_v17  ;;  %v9200_v33 = vmax.f32 %v9056_v43, %v9131_v7  ;;  %v9198_v25 = vmax.f32 %v9054_v42, %v9132_v39  ;;  %vm10069_vm13 = vcmask 654336  }
 0xf25   :  { %v9299_v8 = vrot.slane %v9292_v16, %v13605_v17  ;;  %v9492_v9 = vrot.slane %v9485_v62, %v13605_v17 }
 0xf26   :  { %9767 = vst.msk [vmem:[#allocation4 + $0x44] ss:$8 sm:$0x3] %vm16556_vm4, %v9700_v54  ;;  %v9701_v23 = vcombine.low %v9199_v53, %v9200_v33  ;;  %v9300_v0 = vcombine.low %v9197_v19, %v9198_v25  ;;  %v9493_v63 = vcombine.high %v9197_v19, %v9198_v25 }
 0xf27   :  { %9367 = vst.msk [vmem:[#allocation4 + $0x40] ss:$8 sm:$0x3] %vm16556_vm4, %v9299_v8  ;;  %v9382_v1 = vcombine.high %v9299_v8, %v9299_v8  ;;  %9559 = vst.msk [vmem:[#allocation4 + $0x42] ss:$8 sm:$0x3] %vm16556_vm4, %v9492_v9  ;;  %v9574_v51 = vcombine.high %v9492_v9, %v9492_v9 }
 0xf28   :  { %v9708_v20 = vrot.slane %v9701_v23, %v13605_v17  ;;  %v9307_v37 = vrot.slane %v9300_v0, %v13605_v17  ;;  %v9500_v18 = vrot.slane %v9493_v63, %v13605_v17 }
 0xf29   :  { %9407 = vst.msk [vmem:[#allocation4 + $0x41] ss:$8 sm:$0x3] %vm16556_vm4, %v9382_v1  ;;  %9599 = vst.msk [vmem:[#allocation4 + $0x43] ss:$8 sm:$0x3] %vm16556_vm4, %v9574_v51 }
 0xf2a   :  { %v9715_v55 = vrot.slane %v9708_v20, %v13605_v17  ;;  %v9314_v27 = vrot.slane %v9307_v37, %v13605_v17  ;;  %v9507_v40 = vrot.slane %v9500_v18, %v13605_v17 }
 0xf2c   :  { %9770 = vst.msk [vmem:[#allocation4 + $0x54] ss:$8 sm:$0x3] %vm16556_vm4, %v9715_v55  ;;  %9370 = vst.msk [vmem:[#allocation4 + $0x50] ss:$8 sm:$0x3] %vm16556_vm4, %v9314_v27  ;;  %v9383_v45 = vcombine.high %v9314_v27, %v9314_v27  ;;  %v9575_v52 = vcombine.high %v9507_v40, %v9507_v40 }
 0xf2d   :  { %9562 = vst.msk [vmem:[#allocation4 + $0x52] ss:$8 sm:$0x3] %vm16556_vm4, %v9507_v40 }
 0xf2e   :  { %9410 = vst.msk [vmem:[#allocation4 + $0x51] ss:$8 sm:$0x3] %vm16556_vm4, %v9383_v45  ;;  %9602 = vst.msk [vmem:[#allocation4 + $0x53] ss:$8 sm:$0x3] %vm16556_vm4, %v9575_v52 }
 0xf30   :  { %v16739_v13 = vld [vmem:[#allocation4 + $0x40] sm:$0x1f]  ;;  %v16751_v3 = vld [vmem:[#allocation4 + $0x48] sm:$0x1f] }
 0xf31   :  { %9810 = vrot.lane.b32.xlu0 %v16739_v13, %s11785_s4 }
 0xf35   :  { %v16743_v12 = vld [vmem:[#allocation4 + $0x58] sm:$0x1f]  ;;  %v16745_v35 = vld [vmem:[#allocation4 + $0x50] sm:$0x1f] }
 0xf36   :  { %9968 = vrot.lane.b32.xlu1 %v16743_v12, %s11785_s4  ;;  %9812 = vrot.lane.b32.xlu0 %v16745_v35, %s11785_s4 }
 0xf3a   :  { %9966 = vrot.lane.b32.xlu0 %v16751_v3, %s11785_s4 }
 0xf53   :  { %v9807_v47 = vpop.permute.xlu0 %9806 }
 0xf54   :  { %v16758_v38 = vmax.f32 %v16665_v5, %v9807_v47 }
 0xf56   :  { %9837 = vst.msk [vmem:[#allocation5 + $0x10] sm:$0x1f] %vm9834_vm6, %v16758_v38 }
 0xf57   :  { %v16778_v8 = vpop.permute.xlu0 %9962 }
 0xf58   :  { %v9809_v56 = vpop.permute.xlu1 %9808 }
 0xf59   :  { %v16765_v50 = vmax.f32 %v16673_v2, %v9809_v56 }
 0xf5b   :  { %9838 = vst.msk [vmem:[#allocation5 + $0x18] sm:$0x1f] %vm9834_vm6, %v16765_v50 }
 0xf64   :  { %v8901_v48 = vpop.f32.mrb[44].mxu0 }
 0xf65   :  { %v9025_v36 = vadd.f32 %v16531_v30, %v8901_v48  ;;  %v8903_v22 = vpop.f32.mrb[45].mxu0  ;;  %v16785_v48 = vpop.permute.xlu0 %9964 }
 0xf66   :  { %v9026_v44 = vadd.f32 %v16536_v61, %v8903_v22  ;;  %v8905_v5 = vpop.f32.mrb[46].mxu0 }
 0xf67   :  { %v9057_v59 = vmax.f32 %v9025_v36, 0.0  ;;  %v9027_v42 = vadd.f32 %v16531_v30, %v8905_v5  ;;  %v8907_v34 = vpop.f32.mrb[47].mxu0 }
 0xf68   :  { %v9058_v29 = vmax.f32 %v9026_v44, 0.0  ;;  %v9028_v43 = vadd.f32 %v16536_v61, %v8907_v34 }
 0xf69   :  { %v9059_v15 = vmax.f32 %v9027_v42, 0.0  ;;  %v8948_v2 = vpop.f32.mrb[44].mxu1  ;;  %v9133_v49 = vrot.slane %v9057_v59, 1 }
 0xf6a   :  { %v9060_v41 = vmax.f32 %v9028_v43, 0.0  ;;  %v9029_v6 = vadd.f32 %v16531_v30, %v8948_v2  ;;  %v8950_v46 = vpop.f32.mrb[45].mxu1  ;;  %v9136_v16 = vrot.slane %v9058_v29, 1 }
 0xf6b   :  { %v9134_v7 = vrot.slane %v9059_v15, 1  ;;  %v9030_v10 = vadd.f32 %v16536_v61, %v8950_v46  ;;  %v8952_v21 = vpop.f32.mrb[46].mxu1 }
 0xf6c   :  { %v9137_v62 = vrot.slane %v9060_v41, 1  ;;  %v9061_v24 = vmax.f32 %v9029_v6, 0.0  ;;  %v9031_v53 = vadd.f32 %v16531_v30, %v8952_v21  ;;  %v8954_v54 = vpop.f32.mrb[47].mxu1 }
 0xf6d   :  { %v9135_v19 = vsel %vm17316_vm12, %v9133_v49, %v9134_v7  ;;  %v9203_v39 = vmax.f32 %v9059_v15, %v9134_v7  ;;  %v9032_v33 = vadd.f32 %v16536_v61, %v8954_v54  ;;  %v9062_v1 = vmax.f32 %v9030_v10, 0.0 }
 0xf6e   :  { %v9201_v9 = vmax.f32 %v9057_v59, %v9135_v19  ;;  %v9138_v25 = vsel %vm17317_vm1, %v9136_v16, %v9137_v62  ;;  %v9204_v23 = vmax.f32 %v9060_v41, %v9137_v62  ;;  %v9063_v0 = vmax.f32 %v9031_v53, 0.0 }
 0xf6f   :  { %v9202_v51 = vmax.f32 %v9058_v29, %v9138_v25  ;;  %v9064_v63 = vmax.f32 %v9032_v33, 0.0  ;;  %v9139_v37 = vrot.slane %v9061_v24, 1  ;;  %v9142_v45 = vrot.slane %v9062_v1, 1 }
 0xf70   :  { %v9716_v20 = vcombine.low %v9203_v39, %v9204_v23  ;;  %v9140_v55 = vrot.slane %v9063_v0, 1  ;;  %v9982_v39 = vmax.f32 %v16613_v14, %v16755_v57  ;;  %v9983_v33 = vmax.f32 %v16617_v60, %v16760_v31 }
 0xf71   :  { %v9315_v18 = vcombine.low %v9201_v9, %v9202_v51  ;;  %v9508_v30 = vcombine.high %v9201_v9, %v9202_v51  ;;  %v9143_v27 = vrot.slane %v9064_v63, 1  ;;  %v9984_v60 = vmax.f32 %v16669_v32, %v16778_v8 }
 0xf72   :  { %v9723_v40 = vrot.slane %v9716_v20, %v13605_v17  ;;  %v9141_v47 = vsel %vm17318_vm2, %v9139_v37, %v9140_v55  ;;  %v9207_v56 = vmax.f32 %v9063_v0, %v9140_v55  ;;  %vm10088_vm12 = vcmask 1048192  }
 0xf73   :  { %v9322_v61 = vrot.slane %v9315_v18, %v13605_v17  ;;  %v9515_v52 = vrot.slane %v9508_v30, %v13605_v17  ;;  %v9205_v22 = vmax.f32 %v9061_v24, %v9141_v47  ;;  %v9144_v44 = vsel %vm17319_vm3, %v9142_v45, %v9143_v27  ;;  %v11706_v30 = vld [vmem:[%s17138_s5 + $0x80] sm:$0xff]  }
 0xf74   :  { %v9730_v36 = vrot.slane %v9723_v40, %v13605_v17  ;;  %v9208_v5 = vmax.f32 %v9064_v63, %v9143_v27  ;;  %v9206_v34 = vmax.f32 %v9062_v1, %v9144_v44  ;;  %v11707_v27 = vld [vmem:[%s17138_s5 + $0x40] sm:$0xff]   ;;  %10412 = vmatpush1.bf16.msra.mxu1 %v11706_v30  ;;  %vm10090_vm1 = vcmask 261120  }
 0xf75   :  { %v9329_v59 = vrot.slane %v9322_v61, %v13605_v17  ;;  %v9522_v42 = vrot.slane %v9515_v52, %v13605_v17  ;;  %v11708_v40 = vld [vmem:[%s17138_s5] sm:$0xff]   ;;  %11116 = vmatprep.subr.bf16.mxu0 %v11707_v27  ;;  %10413 = vmatprep.subr.bf16.mxu1 %v17186_v4  ;;  %v11709_v61 = vld [vmem:[%s17138_s5 + $0x88] sm:$0xff]   ;;  %vm10109_vm2 = vcmask 916736   ;;  %vm10151_vm3 = vcmask 130048  }
 0xf76   :  { %9773 = vst.msk [vmem:[#allocation4 + $0x64] ss:$8 sm:$0x3] %vm16556_vm4, %v9730_v36  ;;  %v9731_v29 = vcombine.low %v9207_v56, %v9208_v5  ;;  %v9330_v2 = vcombine.low %v9205_v22, %v9206_v34  ;;  %v9523_v41 = vcombine.high %v9205_v22, %v9206_v34  ;;  %11117 = vmatpush3.bf16.msra.mxu0 %v11708_v40  ;;  %v11710_v52 = vld [vmem:[%s17138_s5 + $0x48] sm:$0xff]   ;;  %v11713_v36 = vld [vmem:[%s17138_s5 + $0x50] sm:$0xff]   ;;  %v11715_v5 = vld [vmem:[%s17138_s5 + $0x98] sm:$0xff]  }
 0xf77   :  { %9373 = vst.msk [vmem:[#allocation4 + $0x60] ss:$8 sm:$0x3] %vm16556_vm4, %v9329_v59  ;;  %v9384_v43 = vcombine.high %v9329_v59, %v9329_v59  ;;  %9565 = vst.msk [vmem:[#allocation4 + $0x62] ss:$8 sm:$0x3] %vm16556_vm4, %v9522_v42  ;;  %v9576_v15 = vcombine.high %v9522_v42, %v9522_v42  ;;  %11118 = vmatprep.subr.bf16.mxu0 %v11710_v52 }
 0xf78   :  { %v9738_v6 = vrot.slane %v9731_v29, %v13605_v17  ;;  %v9852_v46 = vpop.permute.xlu0 %9851  ;;  %v9337_v49 = vrot.slane %v9330_v2, %v13605_v17  ;;  %v9530_v7 = vrot.slane %v9523_v41, %v13605_v17  ;;  %v11711_v56 = vld [vmem:[%s17138_s5 + $0x8] sm:$0xff]   ;;  %10414 = vmatpush1.bf16.msra.mxu1 %v11709_v61  ;;  %v11714_v22 = vld [vmem:[%s17138_s5 + $0x10] sm:$0xff]   ;;  %v11716_v59 = vld [vmem:[%s17138_s5 + $0x58] sm:$0xff]  }
 0xf79   :  { %9413 = vst.msk [vmem:[#allocation4 + $0x61] ss:$8 sm:$0x3] %vm16556_vm4, %v9384_v43  ;;  %9605 = vst.msk [vmem:[#allocation4 + $0x63] ss:$8 sm:$0x3] %vm16556_vm4, %v9576_v15  ;;  %10415 = vmatprep.subr.bf16.mxu1 %v17186_v4 }
 0xf7a   :  { %9876 = vst.msk [vmem:[#allocation5] sm:$0x1f] %vm9875_vm5, %v9852_v46  ;;  %v9745_v10 = vrot.slane %v9738_v6, %v13605_v17  ;;  %v9344_v21 = vrot.slane %v9337_v49, %v13605_v17  ;;  %v9537_v16 = vrot.slane %v9530_v7, %v13605_v17  ;;  %11119 = vmatpush3.bf16.msra.mxu0 %v11711_v56  ;;  %v11717_v34 = vld [vmem:[%s17138_s5 + $0x18] sm:$0xff]   ;;  %v11718_v29 = vld [vmem:[%s17138_s5 + $0xa0] sm:$0xff]  }
 0xf7b   :  { %11120 = vmatprep.subr.bf16.mxu0 %v11713_v36  ;;  %v11719_v43 = vld [vmem:[%s17138_s5 + $0x60] sm:$0xff]  }
 0xf7c   :  { %9776 = vst.msk [vmem:[#allocation4 + $0x74] ss:$8 sm:$0x3] %vm16556_vm4, %v9745_v10  ;;  %9376 = vst.msk [vmem:[#allocation4 + $0x70] ss:$8 sm:$0x3] %vm16556_vm4, %v9344_v21  ;;  %v9385_v62 = vcombine.high %v9344_v21, %v9344_v21  ;;  %v9577_v24 = vcombine.high %v9537_v16, %v9537_v16 }
 0xf7d   :  { %9568 = vst.msk [vmem:[#allocation4 + $0x72] ss:$8 sm:$0x3] %vm16556_vm4, %v9537_v16  ;;  %v9854_v53 = vpop.permute.xlu1 %9853 }
 0xf7e   :  { %9416 = vst.msk [vmem:[#allocation4 + $0x71] ss:$8 sm:$0x3] %vm16556_vm4, %v9385_v62  ;;  %9608 = vst.msk [vmem:[#allocation4 + $0x73] ss:$8 sm:$0x3] %vm16556_vm4, %v9577_v24  ;;  %11121 = vmatpush3.bf16.msra.mxu0 %v11714_v22 }
 0xf7f   :  { %9877 = vst.msk [vmem:[#allocation5 + $0x8] sm:$0x1f] %vm9875_vm5, %v9854_v53  ;;  %vm9908_vm4 = vcmask 389376   ;;  %11122 = vmatprep.subr.bf16.mxu0 %v11716_v59 }
 0xf80   :  { %v9790_v17 = vld [vmem:[#allocation4 + $0x60] sm:$0x1f]  ;;  %v16819_v54 = vld [vmem:[#allocation4 + $0x68] sm:$0x1f] }
 0xf81   :  { %9814 = vrot.lane.b32.xlu1 %v9790_v17, %s11785_s4  ;;  %9970 = vrot.lane.b32.xlu0 %v16819_v54, %s11785_s4 }
 0xf82   :  { %11123 = vmatpush3.bf16.msra.mxu0 %v11717_v34 }
 0xf83   :  { %11124 = vmatprep.subr.bf16.mxu0 %v11719_v43  ;;  %v11724_v43 = vld [vmem:[%s17138_s5 + $0xb0] sm:$0xff]  }
 0xf85   :  { %9855 = vrot.lane.b32.xlu0 %v16758_v38, %s11785_s4  ;;  %v9792_v19 = vld [vmem:[#allocation4 + $0x70] sm:$0x1f]  ;;  %v16829_v28 = vld [vmem:[#allocation4 + $0x78] sm:$0x1f] }
 0xf86   :  { %9816 = vrot.lane.b32.xlu1 %v9792_v19, %s11785_s4 }
 0xf89   :  { %9857 = vrot.lane.b32.xlu0 %v16765_v50, %s11785_s4 }
 0xf8a   :  { %9972 = vrot.lane.b32.xlu1 %v16829_v28, %s11785_s4 }
 0xf8d   :  { %9888 = vrot.lane.b32.xlu0 %v16758_v38, %s11786_s13 }
 0xf8e   :  { %9884 = vrot.lane.b32.xlu1 %v16682_v26, %s11786_s13 }
 0xf91   :  { %9919 = vrot.lane.b32.xlu0 %v16689_v58, %s11779_s26 }
 0xf92   :  { %9886 = vrot.lane.b32.xlu1 %v16689_v58, %s11786_s13 }
 0xf95   :  { %9998 = vrot.lane.b32.xlu0 %v9982_v39, %s11787_s14 }
 0xf96   :  { %9917 = vrot.lane.b32.xlu1 %v16682_v26, %s11779_s26  ;;  %v9985_v26 = vmax.f32 %v16677_v11, %v16785_v48  ;;  %v11712_v48 = vld [vmem:[%s17138_s5 + $0x90] sm:$0xff]  }
 0xf97   :  { %10416 = vmatpush1.bf16.msra.mxu1 %v11712_v48 }
 0xf98   :  { %10417 = vmatprep.subr.bf16.mxu1 %v17186_v4 }
 0xf99   :  { %10000 = vrot.lane.b32.xlu0 %v9983_v33, %s11787_s14 }
 0xf9a   :  { %9890 = vrot.lane.b32.xlu1 %v16765_v50, %s11786_s13 }
 0xf9b   :  { %10418 = vmatpush1.bf16.msra.mxu1 %v11715_v5 }
 0xf9c   :  { %10419 = vmatprep.subr.bf16.mxu1 %v17186_v4 }
 0xf9e   :  { %9921 = vrot.lane.b32.xlu1 %v16758_v38, %s11779_s26 }
 0xf9f   :  { %10420 = vmatpush1.bf16.msra.mxu1 %v11718_v29  ;;  %v11723_v29 = vld [vmem:[%s17138_s5 + $0x28] sm:$0xff]  }
 0xfa0   :  { %10421 = vmatprep.subr.bf16.mxu1 %v17186_v4 }
 0xfa2   :  { %9923 = vrot.lane.b32.xlu1 %v16765_v50, %s11779_s26 }
 0xfa3   :  { %v9811_v14 = vpop.permute.xlu0 %9810 }
 0xfa4   :  { %v9830_v58 = vmax.f32 %v16739_v13, %v9811_v14 }
 0xfa6   :  { %9839 = vst.msk [vmem:[#allocation5 + $0x20] sm:$0x1f] %vm9834_vm6, %v9830_v58  ;;  %9859 = vrot.lane.b32.xlu0 %v9830_v58, %s11785_s4  ;;  %10002 = vrot.lane.b32.xlu1 %v9984_v60, %s11787_s14 }
 0xfa8   :  { %v9813_v57 = vpop.permute.xlu0 %9812  ;;  %v9969_v32 = vpop.permute.xlu1 %9968 }
 0xfa9   :  { %v9831_v38 = vmax.f32 %v16745_v35, %v9813_v57  ;;  %v9987_v11 = vmax.f32 %v16743_v12, %v9969_v32 }
 0xfaa   :  { %9892 = vrot.lane.b32.xlu0 %v9830_v58, %s11786_s13  ;;  %10004 = vrot.lane.b32.xlu1 %v9985_v26, %s11787_s14 }
 0xfab   :  { %9840 = vst.msk [vmem:[#allocation5 + $0x28] sm:$0x1f] %vm9834_vm6, %v9831_v38 }
 0xfac   :  { %v9967_v13 = vpop.permute.xlu0 %9966 }
 0xfad   :  { %v9986_v35 = vmax.f32 %v16751_v3, %v9967_v13 }
 0xfae   :  { %9925 = vrot.lane.b32.xlu0 %v9830_v58, %s11779_s26  ;;  %9861 = vrot.lane.b32.xlu1 %v9831_v38, %s11785_s4 }
 0xfb2   :  { %9927 = vrot.lane.b32.xlu0 %v9831_v38, %s11779_s26  ;;  %9894 = vrot.lane.b32.xlu1 %v9831_v38, %s11786_s13 }
 0xfb6   :  { %10008 = vrot.lane.b32.xlu0 %v9987_v11, %s11787_s14  ;;  %10006 = vrot.lane.b32.xlu1 %v9986_v35, %s11787_s14 }
 0xff3   :  { %v9815_v31 = vpop.permute.xlu1 %9814  ;;  %v9971_v50 = vpop.permute.xlu0 %9970 }
 0xff4   :  { %v9832_v8 = vmax.f32 %v9790_v17, %v9815_v31  ;;  %v9988_v63 = vmax.f32 %v16819_v54, %v9971_v50 }
 0xff6   :  { %9841 = vst.msk [vmem:[#allocation5 + $0x30] sm:$0x1f] %vm9834_vm6, %v9832_v8  ;;  %9863 = vrot.lane.b32.xlu0 %v9832_v8, %s11785_s4  ;;  %9896 = vrot.lane.b32.xlu1 %v9832_v8, %s11786_s13 }
 0xff7   :  { %v9856_v9 = vpop.permute.xlu0 %9855 }
 0xff8   :  { %9878 = vst.msk [vmem:[#allocation5 + $0x10] sm:$0x1f] %vm9875_vm5, %v9856_v9  ;;  %v9817_v25 = vpop.permute.xlu1 %9816 }
 0xff9   :  { %v9833_v12 = vmax.f32 %v9792_v19, %v9817_v25 }
 0xffa   :  { %9929 = vrot.lane.b32.xlu1 %v9832_v8, %s11779_s26 }
 0xffb   :  { %v9858_v3 = vpop.permute.xlu0 %9857  ;;  %9842 = vst.msk [vmem:[#allocation5 + $0x38] sm:$0x1f] %vm9834_vm6, %v9833_v12  ;;  %9865 = vrot.lane.b32.xlu0 %v9833_v12, %s11785_s4  ;;  %vm10057_vm6 = vcmask 1044484  }
 0xffc   :  { %9879 = vst.msk [vmem:[#allocation5 + $0x18] sm:$0x1f] %vm9875_vm5, %v9858_v3  ;;  %v9973_v23 = vpop.permute.xlu1 %9972 }
 0xffd   :  { %v9989_v51 = vmax.f32 %v16829_v28, %v9973_v23 }
 0xffe   :  { %9931 = vrot.lane.b32.xlu1 %v9833_v12, %s11779_s26 }
 0xfff   :  { %v9889_v1 = vpop.permute.xlu0 %9888  ;;  %9898 = vrot.lane.b32.xlu0 %v9833_v12, %s11786_s13 }
0x1000   :  { %9911 = vst.msk [vmem:[#allocation5 + $0x10] sm:$0x1f] %vm9908_vm4, %v9889_v1  ;;  %v9885_v0 = vpop.permute.xlu1 %9884  ;;  %v11720_v1 = vld [vmem:[%s17138_s5 + $0x20] sm:$0xff]  }
0x1001   :  { %9909 = vst.msk [vmem:[#allocation5] sm:$0x1f] %vm9908_vm4, %v9885_v0  ;;  %v11722_v0 = vld [vmem:[%s17138_s5 + $0x68] sm:$0xff]   ;;  %11125 = vmatpush3.bf16.msra.mxu0 %v11720_v1 }
0x1002   :  { %10012 = vrot.lane.b32.xlu1 %v9989_v51, %s11787_s14  ;;  %v11721_v51 = vld [vmem:[%s17138_s5 + $0xa8] sm:$0xff]   ;;  %11126 = vmatprep.subr.bf16.mxu0 %v11722_v0 }
0x1003   :  { %v9920_v20 = vpop.permute.xlu0 %9919  ;;  %10010 = vrot.lane.b32.xlu0 %v9988_v63, %s11787_s14  ;;  %10422 = vmatpush1.bf16.msra.mxu1 %v11721_v51 }
0x1004   :  { %v9887_v37 = vpop.permute.xlu1 %9886  ;;  %10423 = vmatprep.subr.bf16.mxu1 %v17186_v4 }
0x1005   :  { %9910 = vst.msk [vmem:[#allocation5 + $0x8] sm:$0x1f] %vm9908_vm4, %v9887_v37  ;;  %11127 = vmatpush3.bf16.msra.mxu0 %v11723_v29  ;;  %v11736_v29 = vld [vmem:[%s17139_s7 + $0x28] sm:$0xff]  }
0x1006   :  { %9943 = vst.msk [vmem:[#allocation5 + $0x8] sm:$0x1f] %vm9941_vm15, %v9920_v20 }
0x1007   :  { %v9999_v18 = vpop.permute.xlu0 %9998  ;;  %10424 = vmatpush1.bf16.msra.mxu1 %v11724_v43  ;;  %v11737_v43 = vld [vmem:[%s17139_s7 + $0x30] sm:$0xff]  }
0x1008   :  { %v9918_v55 = vpop.permute.xlu1 %9917  ;;  %10425 = vmatprep.subr.bf16.mxu1 %v17186_v4 }
0x1009   :  { %9942 = vst.msk [vmem:[#allocation5] sm:$0x1f] %vm9941_vm15, %v9918_v55 }
0x100a   :  { %10023 = vst.msk [vmem:[#allocation5] sm:$0x1f] %vm10022_vm8, %v9999_v18 }
0x100b   :  { %v10001_v45 = vpop.permute.xlu0 %10000 }
0x100c   :  { %10024 = vst.msk [vmem:[#allocation5 + $0x8] sm:$0x1f] %vm10022_vm8, %v10001_v45  ;;  %v9891_v47 = vpop.permute.xlu1 %9890 }
0x100d   :  { %9912 = vst.msk [vmem:[#allocation5 + $0x18] sm:$0x1f] %vm9908_vm4, %v9891_v47 }
0x1010   :  { %v9922_v44 = vpop.permute.xlu1 %9921 }
0x1011   :  { %9944 = vst.msk [vmem:[#allocation5 + $0x10] sm:$0x1f] %vm9941_vm15, %v9922_v44  ;;  %v10031_v54 = vld [vmem:[#allocation5] sm:$0x1f] }
0x1012   :  { %v10071_v58 = vrot.slane %v10031_v54, 1  ;;  %v10092_v13 = vrot.slane %v10031_v54, 2  ;;  %v10132_v11 = vrot.slane %v10031_v54, 4  ;;  %v10111_v50 = vrot.slane %v10031_v54, 3 }
0x1013   :  { %v10032_v19 = vld [vmem:[#allocation5 + $0x8] sm:$0x1f] }
0x1014   :  { %v9924_v42 = vpop.permute.xlu1 %9923  ;;  %v10093_v14 = vrot.slane %v10032_v19, 1  ;;  %v10133_v60 = vrot.slane %v10032_v19, 3  ;;  %v10112_v57 = vrot.slane %v10032_v19, 2  ;;  %v10047_v8 = vrot.slane %v10032_v19, 7 }
0x1015   :  { %9945 = vst.msk [vmem:[#allocation5 + $0x18] sm:$0x1f] %vm9941_vm15, %v9924_v42  ;;  %v10072_v3 = vsel %vm10048_vm14, %v10032_v19, %v10071_v58 }
0x1016   :  { %v10094_v25 = vsel %vm10048_vm14, %v10093_v14, %v10092_v13  ;;  %v10134_v23 = vsel %vm10048_vm14, %v10133_v60, %v10132_v11  ;;  %v10113_v18 = vsel %vm10048_vm14, %v10112_v57, %v10111_v50  ;;  %v10049_v56 = vsel %vm10048_vm14, %v10047_v8, %v10031_v54  ;;  %v11729_v50 = vld [vmem:[%s17138_s5 + $0x38] sm:$0xff]  }
0x1018   :  { %v9860_v15 = vpop.permute.xlu0 %9859  ;;  %v10003_v2 = vpop.permute.xlu1 %10002 }
0x1019   :  { %9880 = vst.msk [vmem:[#allocation5 + $0x20] sm:$0x1f] %vm9875_vm5, %v9860_v15  ;;  %v11725_v15 = vld [vmem:[%s17138_s5 + $0x70] sm:$0xff]  }
0x101a   :  { %10025 = vst.msk [vmem:[#allocation5 + $0x10] sm:$0x1f] %vm10022_vm8, %v10003_v2  ;;  %11128 = vmatprep.subr.bf16.mxu0 %v11725_v15  ;;  %v11738_v15 = vld [vmem:[%s17139_s7 + $0x38] sm:$0xff]  }
0x101c   :  { %v9893_v41 = vpop.permute.xlu0 %9892  ;;  %v10005_v6 = vpop.permute.xlu1 %10004 }
0x101d   :  { %9913 = vst.msk [vmem:[#allocation5 + $0x20] sm:$0x1f] %vm9908_vm4, %v9893_v41 }
0x101e   :  { %10026 = vst.msk [vmem:[#allocation5 + $0x18] sm:$0x1f] %vm10022_vm8, %v10005_v6 }
0x1020   :  { %v9926_v46 = vpop.permute.xlu0 %9925  ;;  %v9862_v49 = vpop.permute.xlu1 %9861 }
0x1021   :  { %9946 = vst.msk [vmem:[#allocation5 + $0x20] sm:$0x1f] %vm9941_vm15, %v9926_v46  ;;  %v10033_v39 = vld [vmem:[#allocation5 + $0x10] sm:$0x1f] }
0x1022   :  { %9881 = vst.msk [vmem:[#allocation5 + $0x28] sm:$0x1f] %vm9875_vm5, %v9862_v49  ;;  %v10114_v35 = vrot.slane %v10033_v39, 1  ;;  %v10073_v31 = vrot.slane %v10033_v39, 7  ;;  %v10135_v37 = vrot.slane %v10033_v39, 2  ;;  %v10050_v30 = vrot.slane %v10033_v39, 6 }
0x1023   :  { %v10095_v61 = vsel %vm10051_vm0, %v10033_v39, %v10094_v25 }
0x1024   :  { %v9928_v7 = vpop.permute.xlu0 %9927  ;;  %v9895_v10 = vpop.permute.xlu1 %9894  ;;  %v10115_v40 = vsel %vm10051_vm0, %v10114_v35, %v10113_v18  ;;  %v10074_v52 = vsel %vm10051_vm0, %v10073_v31, %v10072_v3  ;;  %v10136_v59 = vsel %vm10051_vm0, %v10135_v37, %v10134_v23  ;;  %v10052_v34 = vsel %vm10051_vm0, %v10050_v30, %v10049_v56  ;;  %v11730_v3 = vld [vmem:[%s17138_s5 + $0xc0] sm:$0xff]  }
0x1025   :  { %9914 = vst.msk [vmem:[#allocation5 + $0x28] sm:$0x1f] %vm9908_vm4, %v9895_v10  ;;  %v10034_v26 = vld [vmem:[#allocation5 + $0x18] sm:$0x1f]  ;;  %v11789_v30 = vmov 0.0  }
0x1026   :  { %9947 = vst.msk [vmem:[#allocation5 + $0x28] sm:$0x1f] %vm9941_vm15, %v9928_v7  ;;  %v10096_v12 = vrot.slane %v10034_v26, 7  ;;  %v10075_v55 = vrot.slane %v10034_v26, 6  ;;  %v10137_v27 = vrot.slane %v10034_v26, 1  ;;  %v10053_v45 = vrot.slane %v10034_v26, 5 }
0x1027   :  { %v10116_v42 = vsel %vm10054_vm9, %v10034_v26, %v10115_v40 }
0x1028   :  { %v10009_v21 = vpop.permute.xlu0 %10008  ;;  %v10007_v16 = vpop.permute.xlu1 %10006  ;;  %v10097_v48 = vsel %vm10054_vm9, %v10096_v12, %v10095_v61  ;;  %v10076_v2 = vsel %vm10054_vm9, %v10075_v55, %v10074_v52  ;;  %v10138_v6 = vsel %vm10054_vm9, %v10137_v27, %v10136_v59  ;;  %v10055_v46 = vsel %vm10054_vm9, %v10053_v45, %v10052_v34  ;;  %v11733_v59 = vld [vmem:[%s17139_s7 + $0x10] sm:$0xff]   ;;  %v11735_v34 = vld [vmem:[%s17139_s7 + $0x20] sm:$0xff]  }
0x1029   :  { %10028 = vst.msk [vmem:[#allocation5 + $0x28] sm:$0x1f] %vm10022_vm8, %v10009_v21  ;;  %10027 = vst.msk [vmem:[#allocation5 + $0x20] sm:$0x1f] %vm10022_vm8, %v10007_v16 }
0x1030   :  { %v16962_v32 = vld [vmem:[#allocation5 + $0x20] sm:$0x1f]  ;;  %v16978_v63 = vld [vmem:[#allocation5 + $0x28] sm:$0x1f] }
0x1031   :  { %v10098_v20 = vrot.slane %v16962_v32, 6  ;;  %v10077_v47 = vrot.slane %v16962_v32, 5  ;;  %v10100_v36 = vrot.slane %v16978_v63, 5  ;;  %v10117_v22 = vrot.slane %v16962_v32, 7 }
0x1032   :  { %v10056_v44 = vrot.slane %v16962_v32, 4  ;;  %v10079_v41 = vrot.slane %v16978_v63, 4  ;;  %v10139_v10 = vsel %vm10057_vm6, %v16962_v32, %v10138_v6  ;;  %v10140_v21 = vrot.slane %v16978_v63, 7  ;;  %v11728_v32 = vld [vmem:[%s17138_s5 + $0x78] sm:$0xff]   ;;  %v11741_v6 = vld [vmem:[%s17140_s9 + $0x10] sm:$0xff]  }
0x1033   :  { %v10099_v5 = vsel %vm10057_vm6, %v10098_v20, %v10097_v48  ;;  %v10078_v7 = vsel %vm10057_vm6, %v10077_v47, %v10076_v2  ;;  %v10119_v16 = vrot.slane %v16978_v63, 6  ;;  %v10059_v19 = vrot.slane %v16978_v63, 3  ;;  %v11739_v2 = vld [vmem:[%s17140_s9] sm:$0xff]  }
0x1034   :  { %v10058_v54 = vsel %vm10057_vm6, %v10056_v44, %v10055_v46  ;;  %v10080_v26 = vsel %vm10060_vm7, %v10079_v41, %v10078_v7  ;;  %v10141_v35 = vsel %vm10060_vm7, %v10140_v21, %v10139_v10  ;;  %v11740_v41 = vld [vmem:[%s17140_s9 + $0x8] sm:$0xff]   ;;  %v11742_v46 = vld [vmem:[%s17140_s9 + $0x18] sm:$0xff]  }
0x1035   :  { %v10061_v25 = vsel %vm10060_vm7, %v10059_v19, %v10058_v54  ;;  %v11744_v7 = vld [vmem:[%s17140_s9 + $0x28] sm:$0xff]  }
0x1068   :  { %v9864_v62 = vpop.permute.xlu0 %9863  ;;  %v9897_v24 = vpop.permute.xlu1 %9896 }
0x1069   :  { %9882 = vst.msk [vmem:[#allocation5 + $0x30] sm:$0x1f] %vm9875_vm5, %v9864_v62  ;;  %v11726_v62 = vld [vmem:[%s17138_s5 + $0x30] sm:$0xff]  }
0x106a   :  { %9915 = vst.msk [vmem:[#allocation5 + $0x30] sm:$0x1f] %vm9908_vm4, %v9897_v24  ;;  %11129 = vmatpush3.bf16.msra.mxu0 %v11726_v62 }
0x106b   :  { %11130 = vmatprep.subr.bf16.mxu0 %v11728_v32 }
0x106c   :  { %v9930_v53 = vpop.permute.xlu1 %9929 }
0x106d   :  { %9948 = vst.msk [vmem:[#allocation5 + $0x30] sm:$0x1f] %vm9941_vm15, %v9930_v53  ;;  %v9866_v17 = vpop.permute.xlu0 %9865  ;;  %v10101_v53 = vsel %vm10060_vm7, %v10100_v36, %v10099_v5  ;;  %v11731_v36 = vld [vmem:[%s17139_s7] sm:$0xff]   ;;  %v11732_v5 = vld [vmem:[%s17139_s7 + $0x8] sm:$0xff]  }
0x106e   :  { %9883 = vst.msk [vmem:[#allocation5 + $0x38] sm:$0x1f] %vm9875_vm5, %v9866_v17  ;;  %v10118_v17 = vsel %vm10057_vm6, %v10117_v22, %v10116_v42  ;;  %11131 = vmatpush3.bf16.msra.mxu0 %v11729_v50  ;;  %vm10128_vm5 = vcmask 1048448   ;;  %v11734_v42 = vld [vmem:[%s17139_s7 + $0x18] sm:$0xff]  }
0x106f   :  { %v10120_v31 = vsel %vm10060_vm7, %v10119_v16, %v10118_v17  ;;  %11156 = vmatprep.subr.bf16.mxu0 %v11789_v30  ;;  %v11071_v16 = vld [vmem:[%s17141_s6] ss:$0 sm:$0xff] }
0x1070   :  { %v9932_v28 = vpop.permute.xlu1 %9931 }
0x1071   :  { %v9899_v33 = vpop.permute.xlu0 %9898 }
0x1072   :  { %9916 = vst.msk [vmem:[#allocation5 + $0x38] sm:$0x1f] %vm9908_vm4, %v9899_v33  ;;  %vm10130_vm4 = vcmask 523264  }
0x1073   :  { %9949 = vst.msk [vmem:[#allocation5 + $0x38] sm:$0x1f] %vm9941_vm15, %v9932_v28  ;;  %v11727_v28 = vld [vmem:[%s17138_s5 + $0xb8] sm:$0xff]   ;;  %vm10149_vm15 = vcmask 1048064  }
0x1074   :  { %v10013_v38 = vpop.permute.xlu1 %10012  ;;  %10426 = vmatpush1.bf16.msra.mxu1 %v11727_v28 }
0x1075   :  { %10030 = vst.msk [vmem:[#allocation5 + $0x38] sm:$0x1f] %vm10022_vm8, %v10013_v38  ;;  %v10011_v9 = vpop.permute.xlu0 %10010  ;;  %10427 = vmatprep.subr.bf16.mxu1 %v17186_v4 }
0x1076   :  { %10029 = vst.msk [vmem:[#allocation5 + $0x30] sm:$0x1f] %vm10022_vm8, %v10011_v9  ;;  %vm11790_vm8 = vmmov 0  }
0x1078   :  { %10428 = vmatpush1.bf16.msra.mxu1 %v11730_v3 }
0x1079   :  { %11176 = vmatprep.subr.bf16.mxu1 %v11789_v30 }
0x107c   :  { %v10038_v49 = vld [vmem:[#allocation5 + $0x38] sm:$0x1f] }
0x107d   :  { %v10037_v24 = vld [vmem:[#allocation5 + $0x30] sm:$0x1f]  ;;  %v10104_v60 = vrot.slane %v10038_v49, 3  ;;  %v10083_v57 = vrot.slane %v10038_v49, 2  ;;  %v10065_v12 = vrot.slane %v10038_v49, 1  ;;  %v10144_v0 = vrot.slane %v10038_v49, 5 }
0x107e   :  { %v10102_v39 = vrot.slane %v10037_v24, 4  ;;  %v10081_v33 = vrot.slane %v10037_v24, 3  ;;  %v10142_v14 = vrot.slane %v10037_v24, 6  ;;  %v10121_v58 = vrot.slane %v10037_v24, 5 }
0x107f   :  { %v10062_v38 = vrot.slane %v10037_v24, 2  ;;  %v10123_v63 = vrot.slane %v10038_v49, 4  ;;  %v11743_v49 = vld [vmem:[%s17140_s9 + $0x20] sm:$0xff]  }
0x1080   :  { %v10103_v13 = vsel %vm10063_vm10, %v10102_v39, %v10101_v53  ;;  %v10082_v11 = vsel %vm10063_vm10, %v10081_v33, %v10080_v26  ;;  %v10143_v23 = vsel %vm10063_vm10, %v10142_v14, %v10141_v35  ;;  %v10122_v1 = vsel %vm10063_vm10, %v10121_v58, %v10120_v31  ;;  %v11746_v26 = vld [vmem:[%s17140_s9 + $0x38] sm:$0xff]  }
0x1081   :  { %v10105_v8 = vsel %vm10066_vm11, %v10104_v60, %v10103_v13  ;;  %v10084_v9 = vsel %vm10066_vm11, %v10083_v57, %v10082_v11  ;;  %v10064_v51 = vsel %vm10063_vm10, %v10062_v38, %v10061_v25  ;;  %v10145_v37 = vsel %vm10066_vm11, %v10144_v0, %v10143_v23  ;;  %v11745_v60 = vld [vmem:[%s17140_s9 + $0x30] sm:$0xff]   ;;  %v11098_v57 = vld [vmem:[%s17142_s8] ss:$0 sm:$0xff] }
0x1082   :  { %10106 = vrot.lane.b32.xlu1 %v10105_v8, %s11788_s28  ;;  %10085 = vrot.lane.b32.xlu0 %v10084_v9, %s11779_s26  ;;  %v10067_v20 = vsel %vm10066_vm11, %v10065_v12, %v10064_v51  ;;  %v10124_v18 = vsel %vm10066_vm11, %v10123_v63, %v10122_v1  ;;  %v11107_v8 = vld [vmem:[%s17143_s10] ss:$0 sm:$0xff] }
0x1083   :  { %10070 = vst.msk [vmem:[#allocation6] sm:$0xff] %vm10069_vm13, %v10067_v20 }
0x1086   :  { %10146 = vrot.lane.b32.xlu1 %v10145_v37, %s11787_s14  ;;  %10125 = vrot.lane.b32.xlu0 %v10124_v18, %s11785_s4 }
0x10f4   :  { %v10107_v4 = vpop.permute.xlu1 %10106  ;;  %v10086_v55 = vpop.permute.xlu0 %10085 }
0x10f5   :  { %10089 = vst.msk [vmem:[#allocation6] sm:$0xff] %vm10088_vm12, %v10086_v55 }
0x10f6   :  { %10091 = vst.msk [vmem:[#allocation6 + $0x8] sm:$0xff] %vm10090_vm1, %v10086_v55 }
0x10f7   :  { %10110 = vst.msk [vmem:[#allocation6 + $0x8] sm:$0xff] %vm10109_vm2, %v10107_v4 }
0x10f8   :  { %v10147_v27 = vpop.permute.xlu1 %10146  ;;  %v10126_v40 = vpop.permute.xlu0 %10125 }
0x10f9   :  { %10152 = vst.msk [vmem:[#allocation6 + $0x18] sm:$0xff] %vm10151_vm3, %v10147_v27 }
0x10fa   :  { %10129 = vst.msk [vmem:[#allocation6 + $0x8] sm:$0xff] %vm10128_vm5, %v10126_v40 }
0x10fb   :  { %10131 = vst.msk [vmem:[#allocation6 + $0x10] sm:$0xff] %vm10130_vm4, %v10126_v40 }
0x10fc   :  { %10150 = vst.msk [vmem:[#allocation6 + $0x10] sm:$0xff] %vm10149_vm15, %v10147_v27  ;;  %v10153_v45 = vld [vmem:[#allocation6] sm:$0xff] }
0x10fd   :  { %v10157_v22 = vpack.c.bf16 %v10153_v45, %v10153_v45 }
0x1100   :  { %v10156_v52 = vld [vmem:[#allocation6 + $0x18] sm:$0xff] }
0x1101   :  { %v10154_v61 = vld [vmem:[#allocation6 + $0x8] sm:$0xff]  ;;  %v10160_v56 = vpack.c.bf16 %v10156_v52, %v10156_v52 }
0x1102   :  { %v10158_v47 = vpack.c.bf16 %v10154_v61, %v10154_v61 }
0x1103   :  { %v10155_v48 = vld [vmem:[#allocation6 + $0x10] sm:$0xff]  ;;  %11097 = vmatprep.mubr.msk.bf16.mxu1 %vm10151_vm3, %v10160_v56 }
0x1104   :  { %v10159_v44 = vpack.c.bf16 %v10155_v48, %v10155_v48  ;;  %10403 = vmatprep.mubr.bf16.mxu0 %v10158_v47 }
0x1105   :  { %10404 = vmatmul.mubr.bf16.vlgmr.msra.gmra.mrb[48].mxu0 %v10157_v22 }
0x1106   :  { %10444 = vmatmul.mubr.bf16.vlgmr.msra.gmra.mrb[48].mxu1 %v10159_v44  ;;  %11157 = vmatpush3.bf16.msra.mxu0 %v11731_v36 }
0x1107   :  { %11158 = vmatprep.subr.bf16.mxu0 %v11789_v30  ;;  %11172 = vmatprep.mubr.msk.bf16.mxu0 %vm11790_vm8, %v11789_v30 }
0x1108   :  { %11192 = vmatprep.mubr.msk.bf16.mxu1 %vm11790_vm8, %v11789_v30  ;;  %11177 = vmatpush3.bf16.msra.mxu1 %v11739_v2 }
0x1109   :  { %11178 = vmatprep.subr.bf16.mxu1 %v11789_v30 }
0x110a   :  { %11159 = vmatpush3.bf16.msra.mxu0 %v11732_v5 }
0x110b   :  { %11160 = vmatprep.subr.bf16.mxu0 %v11789_v30 }
0x110c   :  { %11179 = vmatpush3.bf16.msra.mxu1 %v11740_v41 }
0x110d   :  { %11180 = vmatprep.subr.bf16.mxu1 %v11789_v30 }
0x110e   :  { %11161 = vmatpush3.bf16.msra.mxu0 %v11733_v59 }
0x110f   :  { %11162 = vmatprep.subr.bf16.mxu0 %v11789_v30 }
0x1110   :  { %11181 = vmatpush3.bf16.msra.mxu1 %v11741_v6 }
0x1111   :  { %11182 = vmatprep.subr.bf16.mxu1 %v11789_v30 }
0x1112   :  { %11163 = vmatpush3.bf16.msra.mxu0 %v11734_v42 }
0x1113   :  { %11164 = vmatprep.subr.bf16.mxu0 %v11789_v30 }
0x1114   :  { %11183 = vmatpush3.bf16.msra.mxu1 %v11742_v46 }
0x1115   :  { %11184 = vmatprep.subr.bf16.mxu1 %v11789_v30 }
0x1116   :  { %11165 = vmatpush3.bf16.msra.mxu0 %v11735_v34 }
0x1117   :  { %11166 = vmatprep.subr.bf16.mxu0 %v11789_v30 }
0x1118   :  { %11185 = vmatpush3.bf16.msra.mxu1 %v11743_v49 }
0x1119   :  { %11186 = vmatprep.subr.bf16.mxu1 %v11789_v30 }
0x111a   :  { %11167 = vmatpush3.bf16.msra.mxu0 %v11736_v29 }
0x111b   :  { %11168 = vmatprep.subr.bf16.mxu0 %v11789_v30 }
0x111c   :  { %11187 = vmatpush3.bf16.msra.mxu1 %v11744_v7 }
0x111d   :  { %11188 = vmatprep.subr.bf16.mxu1 %v11789_v30 }
0x111e   :  { %11169 = vmatpush3.bf16.msra.mxu0 %v11737_v43 }
0x111f   :  { %11170 = vmatprep.subr.bf16.mxu0 %v11789_v30 }
0x1120   :  { %11189 = vmatpush3.bf16.msra.mxu1 %v11745_v60 }
0x1121   :  { %11190 = vmatprep.subr.bf16.mxu1 %v11789_v30 }
0x1122   :  { %11171 = vmatpush3.bf16.msra.mxu0 %v11738_v15 }
0x1124   :  { %11191 = vmatpush3.bf16.msra.mxu1 %v11746_v26 }
0x11d8   :  { %v11132_v10 = vpop.f32.mrb[48].mxu0 }
0x11d9   :  { %v10445_v21 = vpop.f32.mrb[48].mxu1  ;;  %v11133_v62 = vpop.f32.mrb[49].mxu0 }
0x11da   :  { %v10447_v24 = vpop.f32.mrb[49].mxu1  ;;  %v11134_v53 = vadd.f32 %v11133_v62, %v11132_v10  ;;  %v11135_v17 = vpop.f32.mrb[50].mxu0 }
0x11db   :  { %v10448_v54 = vpop.f32.mrb[50].mxu1  ;;  %v11136_v19 = vpop.f32.mrb[51].mxu0 }
0x11dc   :  { %v10449_v28 = vpop.f32.mrb[51].mxu1  ;;  %v10406_v39 = vadd.f32 %v11134_v53, %v11071_v16 }
0x11de   :  { %v10446_v33 = vadd.f32 %v10445_v21, %v10406_v39 }
0x11e0   :  { %v10451_v14 = vmax.f32 %v10446_v33, 0.0 }
0x11e2   :  { %v10452_v58 = vpack.c.bf16 %v10451_v14, %v10451_v14 }
0x11e4   :  { %11173 = vmatmul.mubr.bf16.vlgmr.msra.gmra.mrb[52].mxu0 %v10452_v58 }
0x12b7   :  { %v10558_v38 = vpop.f32.mrb[52].mxu0 }
0x12b8   :  { %v10559_v32 = vadd.f32 %v11098_v57, %v10558_v38  ;;  %v11174_v13 = vpop.f32.mrb[53].mxu0 }
0x12b9   :  { %v10561_v11 = vpop.f32.mrb[54].mxu0 }
0x12ba   :  { %v10564_v35 = vmax.f32 %v10559_v32, 0.0  ;;  %v11175_v31 = vpop.f32.mrb[55].mxu0 }
0x12bc   :  { %v10565_v50 = vpack.c.bf16 %v10564_v35, %v10564_v35 }
0x12be   :  { %11193 = vmatmul.mubr.bf16.vlgmr.msra.gmra.mrb[52].mxu1 %v10565_v50 }
0x1391   :  { %v10671_v9 = vpop.f32.mrb[52].mxu1 }
0x1392   :  { %v10672_v25 = vadd.f32 %v11107_v8, %v10671_v9  ;;  %v11194_v12 = vpop.f32.mrb[53].mxu1 }
0x1393   :  { %v10674_v3 = vpop.f32.mrb[54].mxu1 }
0x1394   :  { %10677 = vst [vmem:[%s17144_s11] sm:$0xff] %v10672_v25  ;;  %v11195_v23 = vpop.f32.mrb[55].mxu1 }

</bundles_post_ra>
